<compile_context>
chip_gen: v5e
topology: v5e:2x2
jax: 0.10.0
libtpu: 0.0.40
codegen_flags: <defaults>
</compile_context>

<pallas_src>
import jax
import jax.numpy as jnp
from jax import lax
from jax.experimental import pallas as pl
from jax.experimental.pallas import tpu as pltpu


# vgg19.features[:9] conv configs: (Cin, Cout); MaxPool2d(2,2) sits after conv #2.
VGG_SLICE_CFG = [(3, 64), (64, 64), (64, 128), (128, 128)]


# ------------------------------ Pallas kernel ---------------------------------

def _conv3x3_relu(x4, w_ref, b_ref):
    """3x3 conv (padding=1) + bias + ReLU as ONE big-K im2col matmul.

    x4:    (2, H, W, Cin) bf16   (sr and hr stacked on the leading dim)
    w_ref: (9*Cin, Cout)  bf16   taps flattened in (ky, kx, cin) order
    b_ref: (1, Cout)      f32
    returns (2*H*W, Cout) f32, rows ordered (img, h, w).
    """
    two, H, W, Cin = x4.shape
    # Column (kx) shifts: pad W (sublane dim) once, take the three width-W
    # views and concatenate along the channel (lane) dim.
    zc = jnp.zeros((two, H, 1, Cin), x4.dtype)
    xw = jnp.concatenate([zc, x4, zc], axis=2)                     # (2,H,W+2,Cin)
    xc = jnp.concatenate([xw[:, :, 0:W, :],
                          xw[:, :, 1:W + 1, :],
                          xw[:, :, 2:W + 2, :]], axis=-1)          # (2,H,W,3Cin)
    # Row (ky) shifts: pad H (major dim -> free) and take free row slices.
    zr = jnp.zeros((two, 1, W, 3 * Cin), x4.dtype)
    xh = jnp.concatenate([zr, xc, zr], axis=1)                     # (2,H+2,W,3Cin)
    patches = jnp.concatenate([xh[:, 0:H], xh[:, 1:H + 1], xh[:, 2:H + 2]],
                              axis=-1)                             # (2,H,W,9Cin)
    pm = patches.reshape(two * H * W, 9 * Cin)        # W % 8 == 0 -> layout no-op
    acc = jnp.dot(pm, w_ref[...], preferred_element_type=jnp.float32)  # bf16 MXU
    return jnp.maximum(acc + b_ref[...], 0.0)                      # f32 bias+ReLU


def _vgg_l1_kernel(x_ref, w1_ref, b1_ref, w2_ref, b2_ref, w3_ref, b3_ref,
                   w4_ref, b4_ref, sel_ref, o_ref):
    """Fused VGG19[:9] features + L1 partial sums for one batch item.

    x_ref:   (2, H, W, 3) f32          index 0 = sr image, index 1 = hr image
    w*_ref:  (9*Cin, Cout) bf16 ; b*_ref: (1, Cout) f32
    sel_ref: (4, 2*Ho*Wo, 2*H*W) bf16  one-hot 2x2-maxpool corner selectors
    o_ref:   (1, 8, Cout_last) f32     partial sums of |sr_feat - hr_feat|
    """
    x = x_ref[...].astype(jnp.bfloat16)              # (2, H, W, 3)
    two, H, W, _ = x.shape
    Ho, Wo = H // 2, W // 2

    a = _conv3x3_relu(x, w1_ref, b1_ref)                              # (2HW, 64)
    a = _conv3x3_relu(a.astype(jnp.bfloat16).reshape(two, H, W, -1),
                      w2_ref, b2_ref)                                 # (2HW, 64)

    # MaxPool2d(2,2): 4 one-hot corner selections on the MXU + elementwise max.
    a16 = a.astype(jnp.bfloat16)
    p = jnp.maximum(
        jnp.maximum(jnp.dot(sel_ref[0], a16, preferred_element_type=jnp.float32),
                    jnp.dot(sel_ref[1], a16, preferred_element_type=jnp.float32)),
        jnp.maximum(jnp.dot(sel_ref[2], a16, preferred_element_type=jnp.float32),
                    jnp.dot(sel_ref[3], a16, preferred_element_type=jnp.float32)))

    a = _conv3x3_relu(p.astype(jnp.bfloat16).reshape(two, Ho, Wo, -1),
                      w3_ref, b3_ref)                                 # (2HoWo,128)
    a = _conv3x3_relu(a.astype(jnp.bfloat16).reshape(two, Ho, Wo, -1),
                      w4_ref, b4_ref)                                 # f32, kept

    # L1 partial sums between the sr rows [0,HoWo) and hr rows [HoWo, 2HoWo).
    hw = Ho * Wo
    diff = jnp.abs(a[0:hw, :] - a[hw:2 * hw, :])                      # (HoWo, C)
    part = jnp.sum(diff.reshape(8, hw // 8, diff.shape[-1]), axis=1)  # (8, C)
    o_ref[...] = part[None]


# ------------------------------ JAX wrappers ----------------------------------

def _make_pool_selectors(H, W, dtype=jnp.bfloat16):
    """One-hot (2*Ho*Wo, 2*H*W) selectors picking the 4 corners of each 2x2 window."""
    Ho, Wo = H // 2, W // 2
    i = jnp.arange(2 * Ho * Wo)
    img, rem = i // (Ho * Wo), i % (Ho * Wo)
    ho, wo = rem // Wo, rem % Wo
    j = jnp.arange(2 * H * W)
    sels = []
    for dy in (0, 1):
        for dx in (0, 1):
            tgt = img * (H * W) + (2 * ho + dy) * W + (2 * wo + dx)
            sels.append((j[None, :] == tgt[:, None]).astype(dtype))
    return jnp.stack(sels, axis=0)                    # (4, 2*Ho*Wo, 2*H*W)


def init_params(key):
    """Deterministic synthetic weights in the exact nn.Conv2d shapes."""
    keys = jax.random.split(key, 2 * len(VGG_SLICE_CFG))
    torch_params, kernel_params = [], []
    for idx, (cin, cout) in enumerate(VGG_SLICE_CFG):
        kw, kb = keys[2 * idx], keys[2 * idx + 1]
        w = jax.random.normal(kw, (cout, cin, 3, 3), jnp.float32) / jnp.sqrt(9.0 * cin)
        b = jax.random.normal(kb, (cout,), jnp.float32) * 0.05
        torch_params.append((w, b))
        # (Cout,Cin,3,3) -> (ky,kx,Cin,Cout) -> (9*Cin,Cout): matches the
        # (ky, kx, cin) ordering of the im2col patches built in the kernel.
        w_k = jnp.transpose(w, (2, 3, 1, 0)).reshape(9 * cin, cout)
        kernel_params.append((w_k.astype(jnp.bfloat16),
                              b.reshape(1, cout).astype(jnp.float32)))
    return {"torch": torch_params, "kernel": kernel_params}


@jax.jit
def perceptual_loss_pallas(sr, hr, params):
    N, C, H, W = sr.shape
    cout_last = VGG_SLICE_CFG[-1][1]
    # NCHW -> NHWC; stack sr/hr per batch item so rows (2n, 2n+1) = (sr_n, hr_n).
    sr_n = jnp.transpose(sr, (0, 2, 3, 1)).astype(jnp.float32)
    hr_n = jnp.transpose(hr, (0, 2, 3, 1)).astype(jnp.float32)
    x = jnp.stack([sr_n, hr_n], axis=1).reshape(2 * N, H, W, C)
    sel = _make_pool_selectors(H, W)
    (w1, b1), (w2, b2), (w3, b3), (w4, b4) = params["kernel"]

    const2 = lambda n: (0, 0)
    in_specs = [
        pl.BlockSpec((2, H, W, C), lambda n: (n, 0, 0, 0)),
        pl.BlockSpec(w1.shape, const2), pl.BlockSpec(b1.shape, const2),
        pl.BlockSpec(w2.shape, const2), pl.BlockSpec(b2.shape, const2),
        pl.BlockSpec(w3.shape, const2), pl.BlockSpec(b3.shape, const2),
        pl.BlockSpec(w4.shape, const2), pl.BlockSpec(b4.shape, const2),
        pl.BlockSpec(sel.shape, lambda n: (0, 0, 0)),
    ]
    partials = pl.pallas_call(
        _vgg_l1_kernel,
        out_shape=jax.ShapeDtypeStruct((N, 8, cout_last), jnp.float32),
        grid=(N,),
        in_specs=in_specs,
        out_specs=pl.BlockSpec((1, 8, cout_last), lambda n: (n, 0, 0)),
        compiler_params=pltpu.CompilerParams(dimension_semantics=("parallel",)),
    )(x, w1, b1, w2, b2, w3, b3, w4, b4, sel)

    n_elems = N * cout_last * (H // 2) * (W // 2)     # nn.L1Loss mean denominator
    return jnp.sum(partials) / n_elems


def perceptual_loss_ref(sr, hr, params):
    """Pure-JAX f32 reference (matches the PyTorch forward semantics)."""
    def feats(x):
        for i, (w, b) in enumerate(params["torch"]):
            x = lax.conv_general_dilated(
                x, w, window_strides=(1, 1), padding=((1, 1), (1, 1)),
                dimension_numbers=("NCHW", "OIHW", "NCHW"),
                precision=lax.Precision.HIGHEST)
            x = jnp.maximum(x + b.reshape(1, -1, 1, 1), 0.0)
            if i == 1:
                x = lax.reduce_window(x, -jnp.inf, lax.max,
                                      (1, 1, 2, 2), (1, 1, 2, 2), "VALID")
        return x
    return jnp.mean(jnp.abs(feats(sr) - feats(hr)))


if __name__ == "__main__":
    key = jax.random.PRNGKey(0)
    k_sr, k_hr, k_p = jax.random.split(key, 3)
    # NCHW inputs, like the PyTorch module's sr / hr
    sr = jax.random.normal(k_sr, (2, 3, 16, 16), jnp.float32)
    hr = jax.random.normal(k_hr, (2, 3, 16, 16), jnp.float32)
    params = init_params(k_p)

    loss = jax.block_until_ready(perceptual_loss_pallas(sr, hr, params))
    ref = jax.block_until_ready(perceptual_loss_ref(sr, hr, params))

    assert bool(jnp.isfinite(loss)), "loss is not finite"
    assert abs(float(loss) - float(ref)) <= 5e-2 * abs(float(ref)) + 1e-4, (
        float(loss), float(ref))
    print("KERNEL_OK")
</pallas_src>

<mosaic_0001>
module attributes {stable_mosaic.version = 11 : i64} {
  func.func @_vgg_l1_kernel(%arg0: i32, %arg1: memref<2x16x16x3xf32, #tpu.memory_space<vmem>>, %arg2: memref<27x64xbf16, #tpu.memory_space<vmem>>, %arg3: memref<1x64xf32, #tpu.memory_space<vmem>>, %arg4: memref<576x64xbf16, #tpu.memory_space<vmem>>, %arg5: memref<1x64xf32, #tpu.memory_space<vmem>>, %arg6: memref<576x128xbf16, #tpu.memory_space<vmem>>, %arg7: memref<1x128xf32, #tpu.memory_space<vmem>>, %arg8: memref<1152x128xbf16, #tpu.memory_space<vmem>>, %arg9: memref<1x128xf32, #tpu.memory_space<vmem>>, %arg10: memref<4x128x512xbf16, #tpu.memory_space<vmem>>, %arg11: memref<1x8x128xf32, #tpu.memory_space<vmem>>) attributes {dimension_semantics = [#tpu.dimension_semantics<parallel>], iteration_bounds = array<i64: 2>, scalar_prefetch = 0 : i64, scratch_operands = 0 : i64, tpu.core_type = #tpu.core_type<tc>, window_params = [{transform_indices = @transform_0, window_bounds = array<i64: 2, 16, 16, 3>}, {pipeline_mode = #tpu.pipeline_mode<synchronous>, transform_indices = @transform_1, window_bounds = array<i64: 27, 64>}, {pipeline_mode = #tpu.pipeline_mode<synchronous>, transform_indices = @transform_2, window_bounds = array<i64: 1, 64>}, {pipeline_mode = #tpu.pipeline_mode<synchronous>, transform_indices = @transform_3, window_bounds = array<i64: 576, 64>}, {pipeline_mode = #tpu.pipeline_mode<synchronous>, transform_indices = @transform_4, window_bounds = array<i64: 1, 64>}, {pipeline_mode = #tpu.pipeline_mode<synchronous>, transform_indices = @transform_5, window_bounds = array<i64: 576, 128>}, {pipeline_mode = #tpu.pipeline_mode<synchronous>, transform_indices = @transform_6, window_bounds = array<i64: 1, 128>}, {pipeline_mode = #tpu.pipeline_mode<synchronous>, transform_indices = @transform_7, window_bounds = array<i64: 1152, 128>}, {pipeline_mode = #tpu.pipeline_mode<synchronous>, transform_indices = @transform_8, window_bounds = array<i64: 1, 128>}, {pipeline_mode = #tpu.pipeline_mode<synchronous>, transform_indices = @transform_9, window_bounds = array<i64: 4, 128, 512>}, {transform_indices = @transform_10, window_bounds = array<i64: 1, 8, 128>}]} {
    %c0 = arith.constant 0 : index
    %c0_0 = arith.constant 0 : index
    %c0_1 = arith.constant 0 : index
    %c0_2 = arith.constant 0 : index
    %0 = vector.load %arg1[%c0, %c0_0, %c0_1, %c0_2] : memref<2x16x16x3xf32, #tpu.memory_space<vmem>>, vector<2x16x16x3xf32>
    %1 = arith.truncf %0 : vector<2x16x16x3xf32> to vector<2x16x16x3xbf16>
    %cst = arith.constant 0.000000e+00 : bf16
    %2 = vector.broadcast %cst : bf16 to vector<2x16x1x3xbf16>
    %3 = tpu.concatenate %2, %1, %2 in 2 : vector<2x16x1x3xbf16>, vector<2x16x16x3xbf16>, vector<2x16x1x3xbf16> -> vector<2x16x18x3xbf16>
    %4 = vector.extract_strided_slice %3 {offsets = [0, 0, 0, 0], sizes = [2, 16, 16, 3], strides = [1, 1, 1, 1]} : vector<2x16x18x3xbf16> to vector<2x16x16x3xbf16>
    %5 = vector.extract_strided_slice %3 {offsets = [0, 0, 1, 0], sizes = [2, 16, 16, 3], strides = [1, 1, 1, 1]} : vector<2x16x18x3xbf16> to vector<2x16x16x3xbf16>
    %6 = vector.extract_strided_slice %3 {offsets = [0, 0, 2, 0], sizes = [2, 16, 16, 3], strides = [1, 1, 1, 1]} : vector<2x16x18x3xbf16> to vector<2x16x16x3xbf16>
    %7 = tpu.concatenate %4, %5, %6 in 3 : vector<2x16x16x3xbf16>, vector<2x16x16x3xbf16>, vector<2x16x16x3xbf16> -> vector<2x16x16x9xbf16>
    %cst_3 = arith.constant 0.000000e+00 : bf16
    %8 = vector.broadcast %cst_3 : bf16 to vector<2x1x16x9xbf16>
    %9 = tpu.concatenate %8, %7, %8 in 1 : vector<2x1x16x9xbf16>, vector<2x16x16x9xbf16>, vector<2x1x16x9xbf16> -> vector<2x18x16x9xbf16>
    %10 = vector.extract_strided_slice %9 {offsets = [0, 0, 0, 0], sizes = [2, 16, 16, 9], strides = [1, 1, 1, 1]} : vector<2x18x16x9xbf16> to vector<2x16x16x9xbf16>
    %11 = vector.extract_strided_slice %9 {offsets = [0, 1, 0, 0], sizes = [2, 16, 16, 9], strides = [1, 1, 1, 1]} : vector<2x18x16x9xbf16> to vector<2x16x16x9xbf16>
    %12 = vector.extract_strided_slice %9 {offsets = [0, 2, 0, 0], sizes = [2, 16, 16, 9], strides = [1, 1, 1, 1]} : vector<2x18x16x9xbf16> to vector<2x16x16x9xbf16>
    %13 = tpu.concatenate %10, %11, %12 in 3 : vector<2x16x16x9xbf16>, vector<2x16x16x9xbf16>, vector<2x16x16x9xbf16> -> vector<2x16x16x27xbf16>
    %14 = vector.shape_cast %13 : vector<2x16x16x27xbf16> to vector<512x27xbf16>
    %c0_4 = arith.constant 0 : index
    %c0_5 = arith.constant 0 : index
    %15 = vector.load %arg2[%c0_4, %c0_5] : memref<27x64xbf16, #tpu.memory_space<vmem>>, vector<27x64xbf16>
    %cst_6 = arith.constant dense<0.000000e+00> : vector<512x64xf32>
    %16 = tpu.matmul %14, %15, %cst_6 {dimension_numbers = #tpu.dot_dimension_numbers<[1], [0], [0], [1], [0, 0, 1, 1], [], []>} : vector<512x27xbf16>, vector<27x64xbf16>, vector<512x64xf32> -> vector<512x64xf32>
    %c0_7 = arith.constant 0 : index
    %c0_8 = arith.constant 0 : index
    %17 = vector.load %arg3[%c0_7, %c0_8] : memref<1x64xf32, #tpu.memory_space<vmem>>, vector<1x64xf32>
    %18 = vector.broadcast %17 : vector<1x64xf32> to vector<512x64xf32>
    %19 = arith.addf %16, %18 : vector<512x64xf32>
    %cst_9 = arith.constant 0.000000e+00 : f32
    %20 = vector.broadcast %cst_9 : f32 to vector<512x64xf32>
    %21 = arith.maximumf %19, %20 : vector<512x64xf32>
    %22 = arith.truncf %21 : vector<512x64xf32> to vector<512x64xbf16>
    %23 = vector.shape_cast %22 : vector<512x64xbf16> to vector<2x16x16x64xbf16>
    %cst_10 = arith.constant 0.000000e+00 : bf16
    %24 = vector.broadcast %cst_10 : bf16 to vector<2x16x1x64xbf16>
    %25 = tpu.concatenate %24, %23, %24 in 2 : vector<2x16x1x64xbf16>, vector<2x16x16x64xbf16>, vector<2x16x1x64xbf16> -> vector<2x16x18x64xbf16>
    %26 = vector.extract_strided_slice %25 {offsets = [0, 0, 0, 0], sizes = [2, 16, 16, 64], strides = [1, 1, 1, 1]} : vector<2x16x18x64xbf16> to vector<2x16x16x64xbf16>
    %27 = vector.extract_strided_slice %25 {offsets = [0, 0, 1, 0], sizes = [2, 16, 16, 64], strides = [1, 1, 1, 1]} : vector<2x16x18x64xbf16> to vector<2x16x16x64xbf16>
    %28 = vector.extract_strided_slice %25 {offsets = [0, 0, 2, 0], sizes = [2, 16, 16, 64], strides = [1, 1, 1, 1]} : vector<2x16x18x64xbf16> to vector<2x16x16x64xbf16>
    %29 = tpu.concatenate %26, %27, %28 in 3 : vector<2x16x16x64xbf16>, vector<2x16x16x64xbf16>, vector<2x16x16x64xbf16> -> vector<2x16x16x192xbf16>
    %cst_11 = arith.constant 0.000000e+00 : bf16
    %30 = vector.broadcast %cst_11 : bf16 to vector<2x1x16x192xbf16>
    %31 = tpu.concatenate %30, %29, %30 in 1 : vector<2x1x16x192xbf16>, vector<2x16x16x192xbf16>, vector<2x1x16x192xbf16> -> vector<2x18x16x192xbf16>
    %32 = vector.extract_strided_slice %31 {offsets = [0, 0, 0, 0], sizes = [2, 16, 16, 192], strides = [1, 1, 1, 1]} : vector<2x18x16x192xbf16> to vector<2x16x16x192xbf16>
    %33 = vector.extract_strided_slice %31 {offsets = [0, 1, 0, 0], sizes = [2, 16, 16, 192], strides = [1, 1, 1, 1]} : vector<2x18x16x192xbf16> to vector<2x16x16x192xbf16>
    %34 = vector.extract_strided_slice %31 {offsets = [0, 2, 0, 0], sizes = [2, 16, 16, 192], strides = [1, 1, 1, 1]} : vector<2x18x16x192xbf16> to vector<2x16x16x192xbf16>
    %35 = tpu.concatenate %32, %33, %34 in 3 : vector<2x16x16x192xbf16>, vector<2x16x16x192xbf16>, vector<2x16x16x192xbf16> -> vector<2x16x16x576xbf16>
    %36 = vector.shape_cast %35 : vector<2x16x16x576xbf16> to vector<512x576xbf16>
    %c0_12 = arith.constant 0 : index
    %c0_13 = arith.constant 0 : index
    %37 = vector.load %arg4[%c0_12, %c0_13] : memref<576x64xbf16, #tpu.memory_space<vmem>>, vector<576x64xbf16>
    %cst_14 = arith.constant dense<0.000000e+00> : vector<512x64xf32>
    %38 = tpu.matmul %36, %37, %cst_14 {dimension_numbers = #tpu.dot_dimension_numbers<[1], [0], [0], [1], [0, 0, 1, 1], [], []>} : vector<512x576xbf16>, vector<576x64xbf16>, vector<512x64xf32> -> vector<512x64xf32>
    %c0_15 = arith.constant 0 : index
    %c0_16 = arith.constant 0 : index
    %39 = vector.load %arg5[%c0_15, %c0_16] : memref<1x64xf32, #tpu.memory_space<vmem>>, vector<1x64xf32>
    %40 = vector.broadcast %39 : vector<1x64xf32> to vector<512x64xf32>
    %41 = arith.addf %38, %40 : vector<512x64xf32>
    %cst_17 = arith.constant 0.000000e+00 : f32
    %42 = vector.broadcast %cst_17 : f32 to vector<512x64xf32>
    %43 = arith.maximumf %41, %42 : vector<512x64xf32>
    %44 = arith.truncf %43 : vector<512x64xf32> to vector<512x64xbf16>
    %c0_18 = arith.constant 0 : index
    %c0_19 = arith.constant 0 : index
    %c0_20 = arith.constant 0 : index
    %45 = vector.load %arg10[%c0_18, %c0_19, %c0_20] : memref<4x128x512xbf16, #tpu.memory_space<vmem>>, vector<1x128x512xbf16>
    %46 = vector.shape_cast %45 : vector<1x128x512xbf16> to vector<128x512xbf16>
    %cst_21 = arith.constant dense<0.000000e+00> : vector<128x64xf32>
    %47 = tpu.matmul %46, %44, %cst_21 {dimension_numbers = #tpu.dot_dimension_numbers<[1], [0], [0], [1], [0, 0, 1, 1], [], []>} : vector<128x512xbf16>, vector<512x64xbf16>, vector<128x64xf32> -> vector<128x64xf32>
    %c1 = arith.constant 1 : index
    %c0_22 = arith.constant 0 : index
    %c0_23 = arith.constant 0 : index
    %48 = vector.load %arg10[%c1, %c0_22, %c0_23] : memref<4x128x512xbf16, #tpu.memory_space<vmem>>, vector<1x128x512xbf16>
    %49 = vector.shape_cast %48 : vector<1x128x512xbf16> to vector<128x512xbf16>
    %cst_24 = arith.constant dense<0.000000e+00> : vector<128x64xf32>
    %50 = tpu.matmul %49, %44, %cst_24 {dimension_numbers = #tpu.dot_dimension_numbers<[1], [0], [0], [1], [0, 0, 1, 1], [], []>} : vector<128x512xbf16>, vector<512x64xbf16>, vector<128x64xf32> -> vector<128x64xf32>
    %51 = arith.maximumf %47, %50 : vector<128x64xf32>
    %c2 = arith.constant 2 : index
    %c0_25 = arith.constant 0 : index
    %c0_26 = arith.constant 0 : index
    %52 = vector.load %arg10[%c2, %c0_25, %c0_26] : memref<4x128x512xbf16, #tpu.memory_space<vmem>>, vector<1x128x512xbf16>
    %53 = vector.shape_cast %52 : vector<1x128x512xbf16> to vector<128x512xbf16>
    %cst_27 = arith.constant dense<0.000000e+00> : vector<128x64xf32>
    %54 = tpu.matmul %53, %44, %cst_27 {dimension_numbers = #tpu.dot_dimension_numbers<[1], [0], [0], [1], [0, 0, 1, 1], [], []>} : vector<128x512xbf16>, vector<512x64xbf16>, vector<128x64xf32> -> vector<128x64xf32>
    %c3 = arith.constant 3 : index
    %c0_28 = arith.constant 0 : index
    %c0_29 = arith.constant 0 : index
    %55 = vector.load %arg10[%c3, %c0_28, %c0_29] : memref<4x128x512xbf16, #tpu.memory_space<vmem>>, vector<1x128x512xbf16>
    %56 = vector.shape_cast %55 : vector<1x128x512xbf16> to vector<128x512xbf16>
    %cst_30 = arith.constant dense<0.000000e+00> : vector<128x64xf32>
    %57 = tpu.matmul %56, %44, %cst_30 {dimension_numbers = #tpu.dot_dimension_numbers<[1], [0], [0], [1], [0, 0, 1, 1], [], []>} : vector<128x512xbf16>, vector<512x64xbf16>, vector<128x64xf32> -> vector<128x64xf32>
    %58 = arith.maximumf %54, %57 : vector<128x64xf32>
    %59 = arith.maximumf %51, %58 : vector<128x64xf32>
    %60 = arith.truncf %59 : vector<128x64xf32> to vector<128x64xbf16>
    %61 = vector.shape_cast %60 : vector<128x64xbf16> to vector<2x8x8x64xbf16>
    %cst_31 = arith.constant 0.000000e+00 : bf16
    %62 = vector.broadcast %cst_31 : bf16 to vector<2x8x1x64xbf16>
    %63 = tpu.concatenate %62, %61, %62 in 2 : vector<2x8x1x64xbf16>, vector<2x8x8x64xbf16>, vector<2x8x1x64xbf16> -> vector<2x8x10x64xbf16>
    %64 = vector.extract_strided_slice %63 {offsets = [0, 0, 0, 0], sizes = [2, 8, 8, 64], strides = [1, 1, 1, 1]} : vector<2x8x10x64xbf16> to vector<2x8x8x64xbf16>
    %65 = vector.extract_strided_slice %63 {offsets = [0, 0, 1, 0], sizes = [2, 8, 8, 64], strides = [1, 1, 1, 1]} : vector<2x8x10x64xbf16> to vector<2x8x8x64xbf16>
    %66 = vector.extract_strided_slice %63 {offsets = [0, 0, 2, 0], sizes = [2, 8, 8, 64], strides = [1, 1, 1, 1]} : vector<2x8x10x64xbf16> to vector<2x8x8x64xbf16>
    %67 = tpu.concatenate %64, %65, %66 in 3 : vector<2x8x8x64xbf16>, vector<2x8x8x64xbf16>, vector<2x8x8x64xbf16> -> vector<2x8x8x192xbf16>
    %cst_32 = arith.constant 0.000000e+00 : bf16
    %68 = vector.broadcast %cst_32 : bf16 to vector<2x1x8x192xbf16>
    %69 = tpu.concatenate %68, %67, %68 in 1 : vector<2x1x8x192xbf16>, vector<2x8x8x192xbf16>, vector<2x1x8x192xbf16> -> vector<2x10x8x192xbf16>
    %70 = vector.extract_strided_slice %69 {offsets = [0, 0, 0, 0], sizes = [2, 8, 8, 192], strides = [1, 1, 1, 1]} : vector<2x10x8x192xbf16> to vector<2x8x8x192xbf16>
    %71 = vector.extract_strided_slice %69 {offsets = [0, 1, 0, 0], sizes = [2, 8, 8, 192], strides = [1, 1, 1, 1]} : vector<2x10x8x192xbf16> to vector<2x8x8x192xbf16>
    %72 = vector.extract_strided_slice %69 {offsets = [0, 2, 0, 0], sizes = [2, 8, 8, 192], strides = [1, 1, 1, 1]} : vector<2x10x8x192xbf16> to vector<2x8x8x192xbf16>
    %73 = tpu.concatenate %70, %71, %72 in 3 : vector<2x8x8x192xbf16>, vector<2x8x8x192xbf16>, vector<2x8x8x192xbf16> -> vector<2x8x8x576xbf16>
    %74 = vector.shape_cast %73 : vector<2x8x8x576xbf16> to vector<128x576xbf16>
    %c0_33 = arith.constant 0 : index
    %c0_34 = arith.constant 0 : index
    %75 = vector.load %arg6[%c0_33, %c0_34] : memref<576x128xbf16, #tpu.memory_space<vmem>>, vector<576x128xbf16>
    %cst_35 = arith.constant dense<0.000000e+00> : vector<128x128xf32>
    %76 = tpu.matmul %74, %75, %cst_35 {dimension_numbers = #tpu.dot_dimension_numbers<[1], [0], [0], [1], [0, 0, 1, 1], [], []>} : vector<128x576xbf16>, vector<576x128xbf16>, vector<128x128xf32> -> vector<128x128xf32>
    %c0_36 = arith.constant 0 : index
    %c0_37 = arith.constant 0 : index
    %77 = vector.load %arg7[%c0_36, %c0_37] : memref<1x128xf32, #tpu.memory_space<vmem>>, vector<1x128xf32>
    %78 = vector.broadcast %77 : vector<1x128xf32> to vector<128x128xf32>
    %79 = arith.addf %76, %78 : vector<128x128xf32>
    %cst_38 = arith.constant 0.000000e+00 : f32
    %80 = vector.broadcast %cst_38 : f32 to vector<128x128xf32>
    %81 = arith.maximumf %79, %80 : vector<128x128xf32>
    %82 = arith.truncf %81 : vector<128x128xf32> to vector<128x128xbf16>
    %83 = vector.shape_cast %82 : vector<128x128xbf16> to vector<2x8x8x128xbf16>
    %cst_39 = arith.constant 0.000000e+00 : bf16
    %84 = vector.broadcast %cst_39 : bf16 to vector<2x8x1x128xbf16>
    %85 = tpu.concatenate %84, %83, %84 in 2 : vector<2x8x1x128xbf16>, vector<2x8x8x128xbf16>, vector<2x8x1x128xbf16> -> vector<2x8x10x128xbf16>
    %86 = vector.extract_strided_slice %85 {offsets = [0, 0, 0, 0], sizes = [2, 8, 8, 128], strides = [1, 1, 1, 1]} : vector<2x8x10x128xbf16> to vector<2x8x8x128xbf16>
    %87 = vector.extract_strided_slice %85 {offsets = [0, 0, 1, 0], sizes = [2, 8, 8, 128], strides = [1, 1, 1, 1]} : vector<2x8x10x128xbf16> to vector<2x8x8x128xbf16>
    %88 = vector.extract_strided_slice %85 {offsets = [0, 0, 2, 0], sizes = [2, 8, 8, 128], strides = [1, 1, 1, 1]} : vector<2x8x10x128xbf16> to vector<2x8x8x128xbf16>
    %89 = tpu.concatenate %86, %87, %88 in 3 : vector<2x8x8x128xbf16>, vector<2x8x8x128xbf16>, vector<2x8x8x128xbf16> -> vector<2x8x8x384xbf16>
    %cst_40 = arith.constant 0.000000e+00 : bf16
    %90 = vector.broadcast %cst_40 : bf16 to vector<2x1x8x384xbf16>
    %91 = tpu.concatenate %90, %89, %90 in 1 : vector<2x1x8x384xbf16>, vector<2x8x8x384xbf16>, vector<2x1x8x384xbf16> -> vector<2x10x8x384xbf16>
    %92 = vector.extract_strided_slice %91 {offsets = [0, 0, 0, 0], sizes = [2, 8, 8, 384], strides = [1, 1, 1, 1]} : vector<2x10x8x384xbf16> to vector<2x8x8x384xbf16>
    %93 = vector.extract_strided_slice %91 {offsets = [0, 1, 0, 0], sizes = [2, 8, 8, 384], strides = [1, 1, 1, 1]} : vector<2x10x8x384xbf16> to vector<2x8x8x384xbf16>
    %94 = vector.extract_strided_slice %91 {offsets = [0, 2, 0, 0], sizes = [2, 8, 8, 384], strides = [1, 1, 1, 1]} : vector<2x10x8x384xbf16> to vector<2x8x8x384xbf16>
    %95 = tpu.concatenate %92, %93, %94 in 3 : vector<2x8x8x384xbf16>, vector<2x8x8x384xbf16>, vector<2x8x8x384xbf16> -> vector<2x8x8x1152xbf16>
    %96 = vector.shape_cast %95 : vector<2x8x8x1152xbf16> to vector<128x1152xbf16>
    %c0_41 = arith.constant 0 : index
    %c0_42 = arith.constant 0 : index
    %97 = vector.load %arg8[%c0_41, %c0_42] : memref<1152x128xbf16, #tpu.memory_space<vmem>>, vector<1152x128xbf16>
    %cst_43 = arith.constant dense<0.000000e+00> : vector<128x128xf32>
    %98 = tpu.matmul %96, %97, %cst_43 {dimension_numbers = #tpu.dot_dimension_numbers<[1], [0], [0], [1], [0, 0, 1, 1], [], []>} : vector<128x1152xbf16>, vector<1152x128xbf16>, vector<128x128xf32> -> vector<128x128xf32>
    %c0_44 = arith.constant 0 : index
    %c0_45 = arith.constant 0 : index
    %99 = vector.load %arg9[%c0_44, %c0_45] : memref<1x128xf32, #tpu.memory_space<vmem>>, vector<1x128xf32>
    %100 = vector.broadcast %99 : vector<1x128xf32> to vector<128x128xf32>
    %101 = arith.addf %98, %100 : vector<128x128xf32>
    %cst_46 = arith.constant 0.000000e+00 : f32
    %102 = vector.broadcast %cst_46 : f32 to vector<128x128xf32>
    %103 = arith.maximumf %101, %102 : vector<128x128xf32>
    %104 = vector.extract_strided_slice %103 {offsets = [0, 0], sizes = [64, 128], strides = [1, 1]} : vector<128x128xf32> to vector<64x128xf32>
    %105 = vector.extract_strided_slice %103 {offsets = [64, 0], sizes = [64, 128], strides = [1, 1]} : vector<128x128xf32> to vector<64x128xf32>
    %106 = arith.subf %104, %105 : vector<64x128xf32>
    %107 = math.absf %106 : vector<64x128xf32>
    %108 = vector.shape_cast %107 : vector<64x128xf32> to vector<8x8x128xf32>
    %cst_47 = arith.constant dense<0.000000e+00> : vector<8x128xf32>
    %109 = vector.multi_reduction <add>, %108, %cst_47 [1] : vector<8x8x128xf32> to vector<8x128xf32>
    %110 = vector.shape_cast %109 : vector<8x128xf32> to vector<1x8x128xf32>
    %c0_48 = arith.constant 0 : index
    %c0_49 = arith.constant 0 : index
    %c0_50 = arith.constant 0 : index
    %111 = vector.load %arg11[%c0_48, %c0_49, %c0_50] : memref<1x8x128xf32, #tpu.memory_space<vmem>>, vector<1x8x128xf32>
    tpu.vector_store %arg11[%c0_48, %c0_49, %c0_50], %110 {strides = array<i32>} : memref<1x8x128xf32, #tpu.memory_space<vmem>>, vector<1x8x128xf32>,
    return
  }
  func.func @transform_0(%arg0: i32) -> (i32, i32, i32, i32) {
    %c0_i32 = arith.constant 0 : i32
    %c0_i32_0 = arith.constant 0 : i32
    %c0_i32_1 = arith.constant 0 : i32
    %c0_i32_2 = arith.constant 0 : i32
    return %arg0, %c0_i32, %c0_i32_0, %c0_i32_1 : i32, i32, i32, i32
  }
  func.func @transform_1(%arg0: i32) -> (i32, i32) {
    %c0_i32 = arith.constant 0 : i32
    %c0_i32_0 = arith.constant 0 : i32
    %c0_i32_1 = arith.constant 0 : i32
    return %c0_i32, %c0_i32_0 : i32, i32
  }
  func.func @transform_2(%arg0: i32) -> (i32, i32) {
    %c0_i32 = arith.constant 0 : i32
    %c0_i32_0 = arith.constant 0 : i32
    %c0_i32_1 = arith.constant 0 : i32
    return %c0_i32, %c0_i32_0 : i32, i32
  }
  func.func @transform_3(%arg0: i32) -> (i32, i32) {
    %c0_i32 = arith.constant 0 : i32
    %c0_i32_0 = arith.constant 0 : i32
    %c0_i32_1 = arith.constant 0 : i32
    return %c0_i32, %c0_i32_0 : i32, i32
  }
  func.func @transform_4(%arg0: i32) -> (i32, i32) {
    %c0_i32 = arith.constant 0 : i32
    %c0_i32_0 = arith.constant 0 : i32
    %c0_i32_1 = arith.constant 0 : i32
    return %c0_i32, %c0_i32_0 : i32, i32
  }
  func.func @transform_5(%arg0: i32) -> (i32, i32) {
    %c0_i32 = arith.constant 0 : i32
    %c0_i32_0 = arith.constant 0 : i32
    %c0_i32_1 = arith.constant 0 : i32
    return %c0_i32, %c0_i32_0 : i32, i32
  }
  func.func @transform_6(%arg0: i32) -> (i32, i32) {
    %c0_i32 = arith.constant 0 : i32
    %c0_i32_0 = arith.constant 0 : i32
    %c0_i32_1 = arith.constant 0 : i32
    return %c0_i32, %c0_i32_0 : i32, i32
  }
  func.func @transform_7(%arg0: i32) -> (i32, i32) {
    %c0_i32 = arith.constant 0 : i32
    %c0_i32_0 = arith.constant 0 : i32
    %c0_i32_1 = arith.constant 0 : i32
    return %c0_i32, %c0_i32_0 : i32, i32
  }
  func.func @transform_8(%arg0: i32) -> (i32, i32) {
    %c0_i32 = arith.constant 0 : i32
    %c0_i32_0 = arith.constant 0 : i32
    %c0_i32_1 = arith.constant 0 : i32
    return %c0_i32, %c0_i32_0 : i32, i32
  }
  func.func @transform_9(%arg0: i32) -> (i32, i32, i32) {
    %c0_i32 = arith.constant 0 : i32
    %c0_i32_0 = arith.constant 0 : i32
    %c0_i32_1 = arith.constant 0 : i32
    %c0_i32_2 = arith.constant 0 : i32
    return %c0_i32, %c0_i32_0, %c0_i32_1 : i32, i32, i32
  }
  func.func @transform_10(%arg0: i32) -> (i32, i32, i32) {
    %c0_i32 = arith.constant 0 : i32
    %c0_i32_0 = arith.constant 0 : i32
    %c0_i32_1 = arith.constant 0 : i32
    return %arg0, %c0_i32, %c0_i32_0 : i32, i32, i32
  }
}

</mosaic_0001>

<bundles_post_ra>
// kernel: perceptual_loss_pallas.1
= control target key start
LH: loop header
LB: loop body
LE: loop exit
PB: predicated region body
PF: predicated region fallthrough
CT: control target
= control target key end

     0   :  { %s11607_s13 = smov 0   ;;  %s17163_s0 = inlined_call_operand.vmem [shape: f32[4,16,16,3], index: 0, kind: input, shape index: {}]   ;;  %s17164_s1 = inlined_call_operand.vmem [shape: bf16[27,64], index: 1, kind: input, shape index: {}]   ;;  %s17165_s2 = inlined_call_operand.vmem [shape: f32[1,64], index: 2, kind: input, shape index: {}]   ;;  %s17166_s3 = inlined_call_operand.vmem [shape: bf16[576,64], index: 3, kind: input, shape index: {}]   ;;  %s17167_s4 = inlined_call_operand.vmem [shape: f32[1,64], index: 4, kind: input, shape index: {}]   ;;  %s17168_s5 = inlined_call_operand.vmem [shape: bf16[576,128], index: 5, kind: input, shape index: {}]   ;;  %s17169_s6 = inlined_call_operand.vmem [shape: f32[1,128], index: 6, kind: input, shape index: {}]   ;;  %s17170_s7 = inlined_call_operand.vmem [shape: bf16[1152,128], index: 7, kind: input, shape index: {}]   ;;  %s17171_s8 = inlined_call_operand.vmem [shape: f32[1,128], index: 8, kind: input, shape index: {}]   ;;  %s17172_s9 = inlined_call_operand.vmem [shape: bf16[4,128,512], index: 9, kind: input, shape index: {}]   ;;  %s17173_s10 = inlined_call_operand.vmem [shape: f32[2,8,128], index: 10, kind: output, shape index: {}]  }
   0x1 LB: > { %s11613_s14 = sadd.s32 4294967295, %s11543_s13   ;;  %p9955_p0 = scmp.ge.s32.totalorder %s11543_s13, 1  ;;  %s11543_s13 = sphi %s11607_s13, %s20_s13  }
   0x2   : > { %p314_p1 = scmp.lt.s32.totalorder %s11543_s13, 3 }
   0x4   : > { %p315_p2 = pnand %p9955_p0, %p314_p1 }
   0x6   : > { %318 = sbr.rel (%p315_p2) target bundleno = 3989 (0xf95), region = 60 }
   0xb   : > { %s9956_s15 = sshll.u32 %s11613_s14, 1  ;;  %vm940_vm0 = vcmask 1040384   ;;  %vm941_vm1 = vsmask.f32 256  ;;  %v17288_v34 = vmov 0  ;;  %vm1520_vm4 = vcmask 1046528  }
   0xc   : > { %p353_p3 = scmp.lt.s32.totalorder %s9956_s15, 3  ;;  %vm11631_vm2 = vmand %vm940_vm0, %vm941_vm1  ;;  %vm1007_vm3 = vsmask.f32 7424  ;;  %s11545_s20 = smov 6   ;;  %vm1681_vm5 = vcmask 23552   ;;  %vm1746_vm6 = vcmask 48128  }
   0xd   : > { %v17289_v34 = vsel %vm11631_vm2, 4294967295, %v17288_v34  ;;  %s11546_s21 = smov 3   ;;  %s11547_s22 = smov 18   ;;  %vm2184_vm7 = vcmask 1044480   ;;  %vm2185_vm8 = vcmask 1045504   ;;  %vm1970_vm9 = vcmask 72704  }
   0xe   : > { %s17703_s15 = smov (!%p353_p3, %s9956_s15), 3  ;;  %17290 = vst [vmem:[#allocation2_spill] sm:$0xff] %v17289_v34  ;;  %s11548_s23 = smov 9   ;;  %vm2036_vm10 = vcmask 146432   ;;  %vm2119_vm11 = vcmask 220160   ;;  %vm3608_vm12 = vcmask 523264  }
   0xf   : > { %s11228_s16 = sshll.u32 %s17703_s15, 8  ;;  %s11551_s12 = smov 64   ;;  %vm13748_vm13 = vmneg %vm3608_vm12  ;;  %vm7165_vm14 = vsmask.f32 4352  ;;  %vm9882_vm0 = vcmask 1041409   ;;  %vm9884_vm1 = vcmask 1042434  }
  0x10   : > { %s11621_s19 = scalar_lea.vmem %s17163_s0, %s11228_s16  ;;  %vm15784_vm15 = vmand %vm2184_vm7, %vm7165_vm14  ;;  %p359_p4 = scmp.lt.s32.totalorder %s11613_s14, 1 }
  0x11   : > { %v368_v0 = vld [vmem:[%s11621_s19 + $0x20] sm:$0xff]  ;;  %v369_v1 = vld [vmem:[%s11621_s19 + $0x28] sm:$0xff]  ;;  %v366_v7 = vld [vmem:[%s11621_s19 + $0x10] sm:$0xff] }
  0x12   : > { %v364_v2 = vld [vmem:[%s11621_s19] sm:$0xff]  ;;  %v432_v3 = vpack.c.bf16 %v368_v0, %v368_v0  ;;  %v433_v4 = vpack.c.bf16 %v369_v1, %v369_v1  ;;  %v365_v5 = vld [vmem:[%s11621_s19 + $0x8] sm:$0xff]  ;;  %v367_v8 = vld [vmem:[%s11621_s19 + $0x18] sm:$0xff]  ;;  %v430_v10 = vpack.c.bf16 %v366_v7, %v366_v7  ;;  %s17705_s14 = smov (!%p359_p4, %s11613_s14), 1 }
  0x13   : > { %v428_v6 = vpack.c.bf16 %v364_v2, %v364_v2  ;;  %v429_v9 = vpack.c.bf16 %v365_v5, %v365_v5  ;;  %v431_v11 = vpack.c.bf16 %v367_v8, %v367_v8  ;;  %v370_v12 = vld [vmem:[%s11621_s19 + $0x30] sm:$0xff]  ;;  %v371_v13 = vld [vmem:[%s11621_s19 + $0x38] sm:$0xff]  ;;  %s9959_s11 = sshll.u32 %s17705_s14, 3 }
  0x14   : > { %v560_v14 = vunpack.c.l.b16 %v432_v3  ;;  %v561_v15 = vunpack.c.l.b16 %v433_v4  ;;  %v434_v17 = vpack.c.bf16 %v370_v12, %v370_v12  ;;  %v558_v19 = vunpack.c.l.b16 %v430_v10  ;;  %s362_s17 = scalar_lea.vmem %s17173_s10, %s9959_s11 }
  0x15   : > { %v556_v16 = vunpack.c.l.b16 %v428_v6  ;;  %v557_v18 = vunpack.c.l.b16 %v429_v9  ;;  %v559_v20 = vunpack.c.l.b16 %v431_v11  ;;  %v435_v21 = vpack.c.bf16 %v371_v13, %v371_v13 }
  0x16   : > { %v622_v22 = vpack.c.b16 %v561_v15, %v560_v14  ;;  %v562_v25 = vunpack.c.l.b16 %v434_v17 }
  0x17   : > { %v620_v23 = vpack.c.b16 %v557_v18, %v556_v16  ;;  %v621_v24 = vpack.c.b16 %v559_v20, %v558_v19  ;;  %v563_v26 = vunpack.c.l.b16 %v435_v21 }
  0x18   : > { %v667_v27 = vshrl.u32 %v622_v22, 16  ;;  %v670_v28 = vshll.u32 %v622_v22, 16 }
  0x19   : > { %v653_v29 = vshrl.u32 %v620_v23, 16  ;;  %v656_v30 = vshll.u32 %v620_v23, 16  ;;  %v660_v31 = vshrl.u32 %v621_v24, 16  ;;  %v663_v33 = vshll.u32 %v621_v24, 16 }
  0x1a   : > { %v669_v32 = vrot.slane %v667_v27, 7  ;;  %v623_v37 = vpack.c.b16 %v563_v26, %v562_v25 }
  0x1b   : > { %v655_v35 = vrot.slane %v653_v29, 7  ;;  %v662_v36 = vrot.slane %v660_v31, 7  ;;  %v372_v29 = vld [vmem:[%s11621_s19 + $0x40] sm:$0xff] }
  0x1c   : > { %v672_v38 = vor.u32 %v670_v28, %v669_v32  ;;  %v977_v39 = vsel %vm11631_vm2, %v669_v32, 0  ;;  %v674_v50 = vshrl.u32 %v623_v37, 16  ;;  %v677_v54 = vshll.u32 %v623_v37, 16 }
  0x1d   : > { %v1040_v40 = vshll.u32 %v977_v39, 16  ;;  %v658_v41 = vor.u32 %v656_v30, %v655_v35  ;;  %v975_v42 = vsel %vm11631_vm2, %v655_v35, 0  ;;  %v665_v46 = vor.u32 %v663_v33, %v662_v36  ;;  %v373_v30 = vld [vmem:[%s11621_s19 + $0x48] sm:$0xff] }
  0x1e   : > { %v11641_v43 = vsel %vm11631_vm2, 0, %v672_v38  ;;  %v1016_v44 = vshll.u32 %v975_v42, 16  ;;  %v1522_v45 = vrot.slane %v975_v42, 1  ;;  %v976_v58 = vsel %vm11631_vm2, %v662_v36, 0 }
  0x1f   : > { %v1033_v47 = vshrl.u32 %v11641_v43, 16  ;;  %v1035_v48 = vshll.u32 %v11641_v43, 16  ;;  %v11647_v49 = vsel %vm11631_vm2, 0, %v658_v41  ;;  %v1042_v56 = vrot.slane %v1040_v40, 1 }
  0x20   : > { %v1009_v51 = vshrl.u32 %v11647_v49, 16  ;;  %v1011_v52 = vshll.u32 %v11647_v49, 16  ;;  %v1521_v53 = vrot.slane %v11647_v49, 1  ;;  %v11654_v57 = vsel %vm11631_vm2, 0, %v665_v46 }
  0x21   : > { %v1037_v55 = vrot.slane %v1035_v48, 1  ;;  %v1018_v60 = vrot.slane %v1016_v44, 1  ;;  %v1023_v62 = vshll.u32 %v11654_v57, 16  ;;  %v1021_v0 = vshrl.u32 %v11654_v57, 16 }
  0x22   : > { %v1013_v59 = vrot.slane %v1011_v52, 1  ;;  %v1523_v61 = vsel %vm1520_vm4, %v1521_v53, %v1522_v45  ;;  %v1028_v1 = vshll.u32 %v976_v58, 16  ;;  %v1524_v2 = vrot.slane %v11654_v57, 1  ;;  %v376_v52 = vld [vmem:[%s11621_s19 + $0x60] sm:$0xff]  ;;  %v377_v53 = vld [vmem:[%s11621_s19 + $0x68] sm:$0xff] }
  0x23   : > { %v1038_v63 = vor.u32 %v1037_v55, %v1033_v47  ;;  %1617 = vrot.lane.b32.xlu1 %v1523_v61, %s11545_s20  ;;  %v1025_v4 = vrot.slane %v1023_v62, 1  ;;  %v1525_v5 = vrot.slane %v976_v58, 1  ;;  %v676_v6 = vrot.slane %v674_v50, 7  ;;  %v379_v55 = vld [vmem:[%s11621_s19 + $0x78] sm:$0xff] }
  0x24   : > { %v1014_v3 = vor.u32 %v1013_v59, %v1009_v51  ;;  %v1527_v10 = vrot.slane %v11641_v43, 1  ;;  %v1528_v11 = vrot.slane %v977_v39, 1  ;;  %v1030_v13 = vrot.slane %v1028_v1, 1  ;;  %v374_v1 = vld [vmem:[%s11621_s19 + $0x50] sm:$0xff] }
  0x25   : > { %v1043_v7 = vsel %vm1007_vm3, %v1038_v63, %v1042_v56  ;;  %v679_v9 = vor.u32 %v677_v54, %v676_v6  ;;  %v1026_v12 = vor.u32 %v1025_v4, %v1021_v0  ;;  %v1526_v14 = vsel %vm1520_vm4, %v1524_v2, %v1525_v5  ;;  %v378_v54 = vld [vmem:[%s11621_s19 + $0x70] sm:$0xff]  ;;  %v375_v2 = vld [vmem:[%s11621_s19 + $0x58] sm:$0xff] }
  0x26   : > { %1396 = vrot.lane.b32.xlu2 %v1043_v7, %s11546_s21  ;;  %v1019_v8 = vsel %vm1007_vm3, %v1014_v3, %v1018_v60  ;;  %v978_v16 = vsel %vm11631_vm2, %v676_v6, 0  ;;  %v1529_v18 = vsel %vm1520_vm4, %v1527_v10, %v1528_v11  ;;  %v436_v31 = vpack.c.bf16 %v372_v29, %v372_v29 }
  0x27   : > { %1392 = vrot.lane.b32.xlu0 %v1019_v8, %s11546_s21  ;;  %v11671_v15 = vsel %vm11631_vm2, 0, %v679_v9  ;;  %v1031_v19 = vsel %vm1007_vm3, %v1026_v12, %v1030_v13  ;;  %v1052_v20 = vshll.u32 %v978_v16, 16  ;;  %v1531_v24 = vrot.slane %v978_v16, 1 }
  0x28   : > { %v1047_v17 = vshll.u32 %v11671_v15, 16  ;;  %v1045_v21 = vshrl.u32 %v11671_v15, 16  ;;  %v1530_v23 = vrot.slane %v11671_v15, 1  ;;  %v437_v32 = vpack.c.bf16 %v373_v30, %v373_v30 }
  0x29   : > { %v1054_v26 = vrot.slane %v1052_v20, 1  ;;  %v564_v33 = vunpack.c.l.b16 %v436_v31  ;;  %v440_v56 = vpack.c.bf16 %v376_v52, %v376_v52  ;;  %v441_v58 = vpack.c.bf16 %v377_v53, %v377_v53 }
  0x2a   : > { %v1049_v22 = vrot.slane %v1047_v17, 1  ;;  %v1532_v27 = vsel %vm1520_vm4, %v1530_v23, %v1531_v24  ;;  %v565_v35 = vunpack.c.l.b16 %v437_v32  ;;  %v442_v59 = vpack.c.bf16 %v378_v54, %v378_v54 }
  0x2b   : > { %1619 = vrot.lane.b32.xlu1 %v1526_v14, %s11545_s20  ;;  %v443_v60 = vpack.c.bf16 %v379_v55, %v379_v55  ;;  %v568_v61 = vunpack.c.l.b16 %v440_v56  ;;  %v569_v62 = vunpack.c.l.b16 %v441_v58  ;;  %v438_v6 = vpack.c.bf16 %v374_v1, %v374_v1 }
  0x2c   : > { %v1050_v25 = vor.u32 %v1049_v22, %v1045_v21  ;;  %v624_v36 = vpack.c.b16 %v565_v35, %v564_v33  ;;  %v570_v63 = vunpack.c.l.b16 %v442_v59  ;;  %v439_v7 = vpack.c.bf16 %v375_v2, %v375_v2 }
  0x2d   : > { %v571_v0 = vunpack.c.l.b16 %v443_v60  ;;  %v626_v4 = vpack.c.b16 %v569_v62, %v568_v61  ;;  %v566_v11 = vunpack.c.l.b16 %v438_v6 }
  0x2e   : > { %1621 = vrot.lane.b32.xlu2 %v1529_v18, %s11545_s20  ;;  %v1055_v28 = vsel %vm1007_vm3, %v1050_v25, %v1054_v26  ;;  %v681_v37 = vshrl.u32 %v624_v36, 16  ;;  %v684_v39 = vshll.u32 %v624_v36, 16  ;;  %v567_v12 = vunpack.c.l.b16 %v439_v7 }
  0x2f   : > { %1394 = vrot.lane.b32.xlu0 %v1031_v19, %s11546_s21  ;;  %v627_v5 = vpack.c.b16 %v571_v0, %v570_v63  ;;  %v695_v8 = vshrl.u32 %v626_v4, 16  ;;  %v698_v16 = vshll.u32 %v626_v4, 16 }
  0x30   : > { %v683_v38 = vrot.slane %v681_v37, 7  ;;  %v625_v20 = vpack.c.b16 %v567_v12, %v566_v11 }
  0x31   : > { %v702_v9 = vshrl.u32 %v627_v5, 16  ;;  %v697_v14 = vrot.slane %v695_v8, 7  ;;  %v705_v18 = vshll.u32 %v627_v5, 16 }
  0x32   : > { %v686_v40 = vor.u32 %v684_v39, %v683_v38  ;;  %v11696_v44 = vsel %vm11631_vm2, %v683_v38, 0  ;;  %v688_v23 = vshrl.u32 %v625_v20, 16 }
  0x33   : > { %1623 = vrot.lane.b32.xlu1 %v1532_v27, %s11545_s20  ;;  %v1064_v47 = vshll.u32 %v11696_v44, 16  ;;  %v704_v17 = vrot.slane %v702_v9, 7  ;;  %v700_v21 = vor.u32 %v698_v16, %v697_v14  ;;  %v981_v24 = vsel %vm11631_vm2, %v697_v14, 0  ;;  %v380_v16 = vld [vmem:[%s11621_s19 + $0x80] sm:$0xff] }
  0x34   : > { %v11691_v41 = vsel %vm11631_vm2, 0, %v686_v40  ;;  %v690_v26 = vrot.slane %v688_v23, 7  ;;  %v691_v27 = vshll.u32 %v625_v20, 16  ;;  %v1540_v29 = vrot.slane %v981_v24, 1  ;;  %v382_v23 = vld [vmem:[%s11621_s19 + $0x90] sm:$0xff] }
  0x35   : > { %v1059_v42 = vshll.u32 %v11691_v41, 16  ;;  %v1057_v45 = vshrl.u32 %v11691_v41, 16  ;;  %v1066_v50 = vrot.slane %v1064_v47, 1  ;;  %v707_v22 = vor.u32 %v705_v18, %v704_v17 }
  0x36   : > { %v982_v31 = vsel %vm11631_vm2, %v704_v17, 0  ;;  %v693_v33 = vor.u32 %v691_v27, %v690_v26  ;;  %v1088_v9 = vshll.u32 %v981_v24, 16  ;;  %v381_v17 = vld [vmem:[%s11621_s19 + $0x88] sm:$0xff]  ;;  %v444_v18 = vpack.c.bf16 %v380_v16, %v380_v16  ;;  %v383_v24 = vld [vmem:[%s11621_s19 + $0x98] sm:$0xff] }
  0x37   : > { %1398 = vrot.lane.b32.xlu0 %v1055_v28, %s11546_s21  ;;  %v1061_v46 = vrot.slane %v1059_v42, 1  ;;  %v11723_v25 = vsel %vm11631_vm2, 0, %v707_v22  ;;  %v1100_v38 = vshll.u32 %v982_v31, 16  ;;  %v445_v20 = vpack.c.bf16 %v381_v17, %v381_v17  ;;  %v11230_v27 = vld [vmem:[%s17164_s1 + $0x8] sm:$0x30] }
  0x38   : > { %v1095_v30 = vshll.u32 %v11723_v25, 16  ;;  %v1093_v36 = vshrl.u32 %v11723_v25, 16  ;;  %v11738_v42 = vsel %vm11631_vm2, 0, %v693_v33  ;;  %v1542_v12 = vrot.slane %v11723_v25, 1 }
  0x39   : > { %v1062_v48 = vor.u32 %v1061_v46, %v1057_v45  ;;  %v1102_v47 = vrot.slane %v1100_v38, 1  ;;  %v1069_v56 = vshrl.u32 %v11738_v42, 16  ;;  %v573_v22 = vunpack.c.l.b16 %v445_v20 }
  0x3a   : > { %v1097_v37 = vrot.slane %v1095_v30, 1  ;;  %v447_v30 = vpack.c.bf16 %v383_v24, %v383_v24 }
  0x3b   : > { %v1067_v51 = vsel %vm1007_vm3, %v1062_v48, %v1066_v50  ;;  %v1533_v48 = vrot.slane %v11691_v41, 1  ;;  %v1534_v50 = vrot.slane %v11696_v44, 1 }
  0x3c   : > { %1400 = vrot.lane.b32.xlu1 %v1067_v51, %s11546_s21  ;;  %v1098_v46 = vor.u32 %v1097_v37, %v1093_v36  ;;  %v980_v51 = vsel %vm11631_vm2, %v690_v26, 0  ;;  %v9966_v26 = vld [vmem:[%s17164_s1 + $0x8] sm:$0xf]  ;;  %v575_v38 = vunpack.c.l.b16 %v447_v30 }
  0x3d   : > { %v1535_v55 = vsel %vm1520_vm4, %v1533_v48, %v1534_v50  ;;  %v1076_v59 = vshll.u32 %v980_v51, 16  ;;  %v1537_v1 = vrot.slane %v980_v51, 1 }
  0x3e   : > { %v1103_v52 = vsel %vm1007_vm3, %v1098_v46, %v1102_v47  ;;  %v11229_v46 = vld [vmem:[%s17164_s1] sm:$0xff] }
  0x3f   : > { %v1078_v62 = vrot.slane %v1076_v59, 1 }
  0x80   : > { %v1397_v3 = vpop.permute.xlu2 %1396 }
  0x81   : > { %v1687_v10 = vsel %vm1681_vm5, %v11641_v43, %v1397_v3  ;;  %v11717_v43 = vsel %vm11631_vm2, 0, %v700_v21  ;;  %v572_v21 = vunpack.c.l.b16 %v444_v18 }
  0x82   : > { %v1539_v28 = vrot.slane %v11717_v43, 1  ;;  %v1083_v2 = vshll.u32 %v11717_v43, 16  ;;  %v1081_v7 = vshrl.u32 %v11717_v43, 16 }
  0x84   : > { %v1541_v35 = vsel %vm1520_vm4, %v1539_v28, %v1540_v29  ;;  %v1085_v8 = vrot.slane %v1083_v2, 1  ;;  %v9967_v28 = vor.u32 %v11230_v27, %v9966_v26  ;;  %v446_v29 = vpack.c.bf16 %v382_v23, %v382_v23 }
  0x86   : > { %v574_v37 = vunpack.c.l.b16 %v446_v29  ;;  %v385_v29 = vld [vmem:[%s11621_s19 + $0xa8] sm:$0xff] }
  0x88   : > { %v1622_v13 = vpop.permute.xlu2 %1621  ;;  %v629_v48 = vpack.c.b16 %v575_v38, %v574_v37  ;;  %v449_v37 = vpack.c.bf16 %v385_v29, %v385_v29 }
  0x89   : > { %v11711_v19 = vsel %vm1746_vm6, %v1687_v10, %v1622_v13  ;;  %v1086_v10 = vor.u32 %v1085_v8, %v1081_v7  ;;  %v1543_v13 = vrot.slane %v982_v31, 1  ;;  %v628_v31 = vpack.c.b16 %v573_v22, %v572_v21 }
  0x8a   : > { %1910 = vrot.lane.b32.xlu1 %v11711_v19, %s11547_s22  ;;  %v716_v51 = vshrl.u32 %v629_v48, 16 }
  0x8b   : > { %v1544_v14 = vsel %vm1520_vm4, %v1542_v12, %v1543_v13  ;;  %v387_v12 = vld [vmem:[%s11621_s19 + $0xb8] sm:$0xff] }
  0x8c   : > { %v451_v21 = vpack.c.bf16 %v387_v12, %v387_v12 }
  0x8e   : > { %v579_v27 = vunpack.c.l.b16 %v451_v21 }
  0x92   : > { %1847 = vrot.lane.b32.xlu1 %v11711_v19, %s11548_s23 }
  0x95   : > { %v1618_v32 = vpop.permute.xlu1 %1617 }
  0x99   : > { %v1393_v39 = vpop.permute.xlu0 %1392 }
  0x9a   : > { %v1683_v40 = vsel %vm1681_vm5, %v11647_v49, %v1393_v39  ;;  %1629 = vrot.lane.b32.xlu1 %v1541_v35, %s11545_s20  ;;  %v1071_v49 = vshll.u32 %v11738_v42, 16 }
  0x9b   : > { %v11741_v45 = vsel %vm1746_vm6, %v1683_v40, %v1618_v32  ;;  %v11549_v32 = vmov 65535   ;;  %v709_v40 = vshrl.u32 %v628_v31, 16 }
  0x9c   : > { %1843 = vrot.lane.b32.xlu2 %v11741_v45, %s11548_s23  ;;  %v1073_v58 = vrot.slane %v1071_v49, 1  ;;  %v2186_v33 = vsel %vm2184_vm7, 4294967295, %v11549_v32  ;;  %v712_v49 = vshll.u32 %v628_v31, 16 }
  0x9d   : > { %v1620_v53 = vpop.permute.xlu1 %1619  ;;  %v2187_v35 = vsel %vm2185_vm8, %v2186_v33, 0  ;;  %v711_v50 = vrot.slane %v709_v40, 7 }
  0x9e   : > { %v1074_v61 = vor.u32 %v1073_v58, %v1069_v56  ;;  %v2189_v36 = vand.u32 %v9967_v28, %v2187_v35  ;;  %v718_v56 = vrot.slane %v716_v51, 7  ;;  %v719_v58 = vshll.u32 %v629_v48, 16  ;;  %v384_v28 = vld [vmem:[%s11621_s19 + $0xa0] sm:$0xff] }
  0x9f   : > { %v577_v48 = vunpack.c.l.b16 %v449_v37 }
  0xa0   : > { %v1079_v63 = vsel %vm1007_vm3, %v1074_v61, %v1078_v62  ;;  %2197 = vmatpush.bf16.msra.mxu0 %v2189_v36  ;;  %11503 = vmatpush.bf16.msra.mxu3 %v2189_v36  ;;  %v721_v62 = vor.u32 %v719_v58, %v718_v56  ;;  %v448_v36 = vpack.c.bf16 %v384_v28, %v384_v28 }
  0xa1   : > { %v1395_v54 = vpop.permute.xlu0 %1394 }
  0xa2   : > { %v1685_v60 = vsel %vm1681_vm5, %v11654_v57, %v1395_v54  ;;  %1406 = vrot.lane.b32.xlu1 %v1103_v52, %s11546_s21  ;;  %v1536_v57 = vrot.slane %v11738_v42, 1  ;;  %v714_v52 = vor.u32 %v712_v49, %v711_v50 }
  0xa3   : > { %v11757_v44 = vsel %vm1746_vm6, %v1685_v60, %v1620_v53 }
  0xa4   : > { %1625 = vrot.lane.b32.xlu2 %v1535_v55, %s11545_s20  ;;  %1908 = vrot.lane.b32.xlu0 %v11757_v44, %s11547_s22  ;;  %v1538_v5 = vsel %vm1520_vm4, %v1536_v57, %v1537_v1  ;;  %v11808_v60 = vsel %vm11631_vm2, 0, %v714_v52 }
  0xa5   : > { %v1624_v4 = vpop.permute.xlu1 %1623  ;;  %2198 = vmatpush.bf16.msra.mxu0 %v11229_v46  ;;  %11504 = vmatpush.bf16.msra.mxu3 %v11229_v46  ;;  %v1107_v61 = vshll.u32 %v11808_v60, 16  ;;  %v1545_v8 = vrot.slane %v11808_v60, 1  ;;  %v576_v46 = vunpack.c.l.b16 %v448_v36  ;;  %v389_v36 = vld [vmem:[%s11621_s19 + $0xc8] sm:$0xff] }
  0xa9   : > { %v1399_v0 = vpop.permute.xlu0 %1398 }
  0xaa   : > { %v1689_v3 = vsel %vm1681_vm5, %v11671_v15, %v1399_v0  ;;  %v1090_v15 = vrot.slane %v1088_v9, 1  ;;  %v1109_v0 = vrot.slane %v1107_v61, 1 }
  0xab   : > { %v11772_v6 = vsel %vm1746_vm6, %v1689_v3, %v1624_v4  ;;  %v11818_v4 = vsel %vm11631_vm2, 0, %v721_v62 }
  0xac   : > { %1402 = vrot.lane.b32.xlu2 %v1079_v63, %s11546_s21  ;;  %1845 = vrot.lane.b32.xlu0 %v11757_v44, %s11548_s23  ;;  %v1091_v11 = vsel %vm1007_vm3, %v1086_v10, %v1090_v15  ;;  %v1105_v63 = vshrl.u32 %v11808_v60, 16  ;;  %v1119_v10 = vshll.u32 %v11818_v4, 16  ;;  %v11830_v15 = vsel %vm11631_vm2, %v718_v56, 0 }
  0xad   : > { %v1124_v17 = vshll.u32 %v11830_v15, 16  ;;  %v1548_v12 = vrot.slane %v11818_v4, 1 }
  0xae   : > { %v1401_v39 = vpop.permute.xlu1 %1400  ;;  %v1110_v1 = vor.u32 %v1109_v0, %v1105_v63  ;;  %v1121_v16 = vrot.slane %v1119_v10, 1 }
  0xaf   : > { %v1691_v53 = vsel %vm1681_vm5, %v11691_v41, %v1401_v39  ;;  %v983_v41 = vsel %vm11631_vm2, %v711_v50, 0  ;;  %v1126_v24 = vrot.slane %v1124_v17, 1 }
  0xb0   : > { %v1112_v57 = vshll.u32 %v983_v41, 16  ;;  %v1546_v9 = vrot.slane %v983_v41, 1 }
  0xb2   : > { %v1114_v2 = vrot.slane %v1112_v57, 1  ;;  %v1547_v13 = vsel %vm1520_vm4, %v1545_v8, %v1546_v9 }
  0xb4   : > { %1627 = vrot.lane.b32.xlu0 %v1538_v5, %s11545_s20  ;;  %1912 = vrot.lane.b32.xlu2 %v11772_v6, %s11547_s22  ;;  %v1115_v5 = vsel %vm1007_vm3, %v1110_v1, %v1114_v2 }
  0xbc   : > { %1404 = vrot.lane.b32.xlu0 %v1091_v11, %s11546_s21  ;;  %1849 = vrot.lane.b32.xlu2 %v11772_v6, %s11548_s23  ;;  %v386_v11 = vld [vmem:[%s11621_s19 + $0xb0] sm:$0xff] }
  0xbd   : > { %v450_v20 = vpack.c.bf16 %v386_v11, %v386_v11 }
  0xbf   : > { %v578_v26 = vunpack.c.l.b16 %v450_v20 }
  0xc1   : > { %v631_v35 = vpack.c.b16 %v579_v27, %v578_v26 }
  0xc3   : > { %v730_v40 = vshrl.u32 %v631_v35, 16  ;;  %v733_v52 = vshll.u32 %v631_v35, 16  ;;  %v388_v35 = vld [vmem:[%s11621_s19 + $0xc0] sm:$0xff] }
  0xc4   : > { %1631 = vrot.lane.b32.xlu2 %v1544_v14, %s11545_s20  ;;  %v1117_v14 = vshrl.u32 %v11818_v4, 16  ;;  %v452_v37 = vpack.c.bf16 %v388_v35, %v388_v35 }
  0xc5   : > { %v732_v51 = vrot.slane %v730_v40, 7 }
  0xc6   : > { %v1122_v23 = vor.u32 %v1121_v16, %v1117_v14 }
  0xc7   : > { %v735_v56 = vor.u32 %v733_v52, %v732_v51  ;;  %v986_v63 = vsel %vm11631_vm2, %v732_v51, 0 }
  0xc8   : > { %v1127_v30 = vsel %vm1007_vm3, %v1122_v23, %v1126_v24  ;;  %v1148_v29 = vshll.u32 %v986_v63, 16 }
  0xc9   : > { %v11862_v62 = vsel %vm11631_vm2, 0, %v735_v56 }
  0xca   : > { %v1141_v27 = vshrl.u32 %v11862_v62, 16 }
  0xcc   : > { %1408 = vrot.lane.b32.xlu2 %v1115_v5, %s11546_s21 }
  0xf6   : > { %v1844_v47 = vpop.permute.xlu2 %1843 }
  0xf7   : > { %v1973_v31 = vsel %vm1970_vm9, 0, %v1844_v47 }
  0xfc   : > { %v11801_v54 = vpop.permute.xlu1 %1910 }
  0xfe   : > { %v1626_v55 = vpop.permute.xlu2 %1625 }
  0xff   : > { %v11804_v59 = vsel %vm1746_vm6, %v1691_v53, %v1626_v55  ;;  %v630_v53 = vpack.c.b16 %v577_v48, %v576_v46 }
 0x100   : > { %1914 = vrot.lane.b32.xlu0 %v11804_v59, %s11547_s22 }
 0x101   : > { %v723_v58 = vshrl.u32 %v630_v53, 16  ;;  %v726_v57 = vshll.u32 %v630_v53, 16 }
 0x103   : > { %v725_v0 = vrot.slane %v723_v58, 7 }
 0x104   : > { %v11821_v7 = vpop.permute.xlu1 %1847 }
 0x105   : > { %v1977_v20 = vsel %vm1970_vm9, %v11757_v44, %v11821_v7  ;;  %v1143_v44 = vshll.u32 %v11862_v62, 16 }
 0x106   : > { %v1403_v3 = vpop.permute.xlu2 %1402 }
 0x107   : > { %v1693_v61 = vsel %vm1681_vm5, %v11738_v42, %v1403_v3  ;;  %v1554_v42 = vrot.slane %v11862_v62, 1  ;;  %v728_v3 = vor.u32 %v726_v57, %v725_v0  ;;  %v1145_v28 = vrot.slane %v1143_v44, 1 }
 0x108   : > { %1851 = vrot.lane.b32.xlu0 %v11804_v59, %s11548_s23 }
 0x10c   : > { %v1630_v22 = vpop.permute.xlu1 %1629 }
 0x10e   : > { %v11837_v18 = vpop.permute.xlu2 %1912 }
 0x110   : > { %1633 = vrot.lane.b32.xlu0 %v1547_v13, %s11545_s20  ;;  %v1549_v13 = vrot.slane %v11830_v15, 1 }
 0x112   : > { %v1550_v21 = vsel %vm1520_vm4, %v1548_v12, %v1549_v13 }
 0x114   : > { %v1407_v39 = vpop.permute.xlu1 %1406 }
 0x115   : > { %v1697_v50 = vsel %vm1681_vm5, %v11723_v25, %v1407_v39  ;;  %v580_v39 = vunpack.c.l.b16 %v452_v37  ;;  %v393_v37 = vld [vmem:[%s11621_s19 + $0xe8] sm:$0xff] }
 0x116   : > { %v11844_v32 = vpop.permute.xlu2 %1849  ;;  %v1909_v33 = vpop.permute.xlu0 %1908 }
 0x117   : > { %v2038_v38 = vsel %vm2036_vm10, %v1973_v31, %v1909_v33  ;;  %v1150_v31 = vrot.slane %v1148_v29, 1  ;;  %v1979_v57 = vsel %vm1970_vm9, %v11711_v19, %v11844_v32 }
 0x118   : > { %1410 = vrot.lane.b32.xlu0 %v1127_v30, %s11546_s21  ;;  %9968 = vmatmul.msk.bf16.vlgmr.msra.gmra.mxu0 %vm2119_vm11, %v2038_v38  ;;  %v1146_v30 = vor.u32 %v1145_v28, %v1141_v27  ;;  %v453_v38 = vpack.c.bf16 %v389_v36, %v389_v36  ;;  %v392_v36 = vld [vmem:[%s11621_s19 + $0xe0] sm:$0xff] }
 0x11a   : > { %v1151_v33 = vsel %vm1007_vm3, %v1146_v30, %v1150_v31  ;;  %v581_v40 = vunpack.c.l.b16 %v453_v38 }
 0x11c   : > { %v632_v46 = vpack.c.b16 %v581_v40, %v580_v39 }
 0x11e   : > { %v1632_v47 = vpop.permute.xlu2 %1631  ;;  %v1846_v49 = vpop.permute.xlu0 %1845  ;;  %v737_v48 = vshrl.u32 %v632_v46, 16 }
 0x11f   : > { %v11852_v55 = vsel %vm1746_vm6, %v1697_v50, %v1632_v47  ;;  %v1975_v41 = vsel %vm1970_vm9, %v11741_v45, %v1846_v49  ;;  %v1555_v45 = vrot.slane %v986_v63, 1  ;;  %v740_v47 = vshll.u32 %v632_v46, 16 }
 0x120   : > { %1920 = vrot.lane.b32.xlu0 %v11852_v55, %s11547_s22  ;;  %v2040_v1 = vsel %vm2036_vm10, %v1975_v41, %v11801_v54  ;;  %v11880_v54 = vsel %vm11631_vm2, 0, %v728_v3  ;;  %v739_v50 = vrot.slane %v737_v48, 7  ;;  %v390_v41 = vld [vmem:[%s11621_s19 + $0xd0] sm:$0xff]  ;;  %v456_v48 = vpack.c.bf16 %v392_v36, %v392_v36 }
 0x121   : > { %v1556_v5 = vsel %vm1520_vm4, %v1554_v42, %v1555_v45  ;;  %v1131_v11 = vshll.u32 %v11880_v54, 16  ;;  %v1129_v14 = vshrl.u32 %v11880_v54, 16  ;;  %v1551_v24 = vrot.slane %v11880_v54, 1 }
 0x122   : > { %v742_v49 = vor.u32 %v740_v47, %v739_v50  ;;  %v987_v53 = vsel %vm11631_vm2, %v739_v50, 0  ;;  %v454_v42 = vpack.c.bf16 %v390_v41, %v390_v41  ;;  %v457_v50 = vpack.c.bf16 %v393_v37, %v393_v37  ;;  %v394_v47 = vld [vmem:[%s11621_s19 + $0xf0] sm:$0xff] }
 0x123   : > { %v1133_v16 = vrot.slane %v1131_v11, 1 }
 0x124   : > { %v11921_v51 = vsel %vm11631_vm2, 0, %v742_v49  ;;  %v395_v49 = vld [vmem:[%s11621_s19 + $0xf8] sm:$0xff] }
 0x125   : > { %v1134_v15 = vor.u32 %v1133_v16, %v1129_v14  ;;  %v1155_v52 = vshll.u32 %v11921_v51, 16  ;;  %v1153_v56 = vshrl.u32 %v11921_v51, 16 }
 0x126   : > { %v1628_v25 = vpop.permute.xlu0 %1627  ;;  %v1409_v13 = vpop.permute.xlu2 %1408 }
 0x127   : > { %v11869_v2 = vsel %vm1746_vm6, %v1693_v61, %v1628_v25  ;;  %v1157_v58 = vrot.slane %v1155_v52, 1  ;;  %v1160_v61 = vshll.u32 %v987_v53, 16  ;;  %v391_v25 = vld [vmem:[%s11621_s19 + $0xd8] sm:$0xff]  ;;  %v1699_v19 = vsel %vm1681_vm5, %v11808_v60, %v1409_v13 }
 0x128   : > { %1857 = vrot.lane.b32.xlu0 %v11852_v55, %s11548_s23  ;;  %9969 = vmatmul.msk.bf16.gmra.mxu0 %vm2119_vm11, %v2040_v1  ;;  %v455_v45 = vpack.c.bf16 %v391_v25, %v391_v25  ;;  %v1557_v60 = vrot.slane %v11921_v51, 1  ;;  %v584_v52 = vunpack.c.l.b16 %v456_v48 }
 0x129   : > { %1916 = vrot.lane.b32.xlu1 %v11869_v2, %s11547_s22  ;;  %v1158_v63 = vor.u32 %v1157_v58, %v1153_v56  ;;  %v458_v56 = vpack.c.bf16 %v394_v47, %v394_v47  ;;  %v459_v58 = vpack.c.bf16 %v395_v49, %v395_v49 }
 0x12e   : > { %v1405_v8 = vpop.permute.xlu0 %1404 }
 0x12f   : > { %v1695_v9 = vsel %vm1681_vm5, %v11717_v43, %v1405_v8  ;;  %v985_v43 = vsel %vm11631_vm2, %v725_v0, 0  ;;  %v1162_v0 = vrot.slane %v1160_v61, 1  ;;  %v582_v8 = vunpack.c.l.b16 %v454_v42 }
 0x130   : > { %v11885_v10 = vsel %vm1746_vm6, %v1695_v9, %v1630_v22  ;;  %1639 = vrot.lane.b32.xlu0 %v1556_v5, %s11545_s20  ;;  %v1136_v17 = vshll.u32 %v985_v43, 16  ;;  %v2042_v22 = vsel %vm2036_vm10, %v1977_v20, %v11837_v18  ;;  %v1552_v26 = vrot.slane %v985_v43, 1 }
 0x131   : > { %1853 = vrot.lane.b32.xlu1 %v11869_v2, %s11548_s23  ;;  %1918 = vrot.lane.b32.xlu2 %v11885_v10, %s11547_s22  ;;  %v1163_v5 = vsel %vm1007_vm3, %v1158_v63, %v1162_v0  ;;  %v583_v9 = vunpack.c.l.b16 %v455_v45  ;;  %v587_v63 = vunpack.c.l.b16 %v459_v58  ;;  %v398_v58 = vld [vmem:[%s11621_s19 + $0x110] sm:$0xff] }
 0x132   : > { %v1138_v23 = vrot.slane %v1136_v17, 1  ;;  %v1553_v18 = vsel %vm1520_vm4, %v1551_v24, %v1552_v26 }
 0x133   : > { %v633_v12 = vpack.c.b16 %v583_v9, %v582_v8 }
 0x134   : > { %v1139_v7 = vsel %vm1007_vm3, %v1134_v15, %v1138_v23  ;;  %v1558_v23 = vrot.slane %v987_v53, 1  ;;  %v585_v53 = vunpack.c.l.b16 %v457_v50 }
 0x135   : > { %v744_v43 = vshrl.u32 %v633_v12, 16  ;;  %v747_v16 = vshll.u32 %v633_v12, 16 }
 0x136   : > { %v1559_v44 = vsel %vm1520_vm4, %v1557_v60, %v1558_v23 }
 0x137   : > { %v746_v14 = vrot.slane %v744_v43, 7 }
 0x138   : > { %9970 = vmatmul.msk.bf16.gmra.mxu0 %vm2119_vm11, %v2042_v22  ;;  %1416 = vrot.lane.b32.xlu0 %v1163_v5, %s11546_s21 }
 0x139   : > { %1635 = vrot.lane.b32.xlu1 %v1550_v21, %s11545_s20  ;;  %1855 = vrot.lane.b32.xlu2 %v11885_v10, %s11548_s23  ;;  %v749_v20 = vor.u32 %v747_v16, %v746_v14  ;;  %v11953_v26 = vsel %vm11631_vm2, %v746_v14, 0 }
 0x13a   : > { %v1172_v27 = vshll.u32 %v11953_v26, 16 }
 0x13b   : > { %v11945_v22 = vsel %vm11631_vm2, 0, %v749_v20 }
 0x13c   : > { %v1167_v24 = vshll.u32 %v11945_v22, 16  ;;  %v1174_v31 = vrot.slane %v1172_v27, 1 }
 0x141   : > { %1412 = vrot.lane.b32.xlu1 %v1139_v7, %s11546_s21  ;;  %1637 = vrot.lane.b32.xlu2 %v1553_v18, %s11545_s20  ;;  %v1165_v7 = vshrl.u32 %v11945_v22, 16  ;;  %v1169_v18 = vrot.slane %v1167_v24, 1 }
 0x143   : > { %v1170_v30 = vor.u32 %v1169_v18, %v1165_v7  ;;  %v1561_v7 = vrot.slane %v11953_v26, 1 }
 0x149   : > { %1414 = vrot.lane.b32.xlu2 %v1151_v33, %s11546_s21  ;;  %v1175_v33 = vsel %vm1007_vm3, %v1170_v30, %v1174_v31 }
 0x172   : > { %v1915_v1 = vpop.permute.xlu0 %1914 }
 0x173   : > { %v2044_v3 = vsel %vm2036_vm10, %v1979_v57, %v1915_v1  ;;  %v634_v1 = vpack.c.b16 %v585_v53, %v584_v52  ;;  %v396_v53 = vld [vmem:[%s11621_s19 + $0x100] sm:$0xff] }
 0x174   : > { %9971 = vmatmul.msk.bf16.gmra.mxu0 %vm2119_vm11, %v2044_v3 }
 0x175   : > { %v751_v8 = vshrl.u32 %v634_v1, 16 }
 0x17a   : > { %v1852_v11 = vpop.permute.xlu0 %1851 }
 0x17b   : > { %v1981_v38 = vsel %vm1970_vm9, %v11772_v6, %v1852_v11  ;;  %v586_v6 = vunpack.c.l.b16 %v458_v56  ;;  %v397_v56 = vld [vmem:[%s11621_s19 + $0x108] sm:$0xff] }
 0x17d   : > { %v635_v42 = vpack.c.b16 %v587_v63, %v586_v6  ;;  %v460_v6 = vpack.c.bf16 %v396_v53, %v396_v53  ;;  %v461_v63 = vpack.c.bf16 %v397_v56, %v397_v56 }
 0x17f   : > { %v758_v45 = vshrl.u32 %v635_v42, 16  ;;  %v761_v11 = vshll.u32 %v635_v42, 16 }
 0x181   : > { %v760_v9 = vrot.slane %v758_v45, 7  ;;  %v588_v45 = vunpack.c.l.b16 %v460_v6 }
 0x182   : > { %v1634_v32 = vpop.permute.xlu0 %1633 }
 0x183   : > { %v11939_v17 = vsel %vm1746_vm6, %v1699_v19, %v1634_v32  ;;  %v753_v19 = vrot.slane %v751_v8, 7  ;;  %v990_v32 = vsel %vm11631_vm2, %v760_v9, 0 }
 0x184   : > { %1922 = vrot.lane.b32.xlu1 %v11939_v17, %s11547_s22  ;;  %v1567_v16 = vrot.slane %v990_v32, 1  ;;  %v1196_v50 = vshll.u32 %v990_v32, 16 }
 0x185   : > { %v989_v27 = vsel %vm11631_vm2, %v753_v19, 0 }
 0x186   : > { %v1184_v36 = vshll.u32 %v989_v27, 16  ;;  %v1198_v49 = vrot.slane %v1196_v50, 1 }
 0x18a   : > { %v1411_v21 = vpop.permute.xlu0 %1410 }
 0x18b   : > { %v1919_v15 = vpop.permute.xlu2 %1918  ;;  %v1701_v3 = vsel %vm1681_vm5, %v11818_v4, %v1411_v21  ;;  %v754_v4 = vshll.u32 %v634_v1, 16 }
 0x18c   : > { %1859 = vrot.lane.b32.xlu1 %v11939_v17, %s11548_s23 }
 0x18d   : > { %v756_v20 = vor.u32 %v754_v4, %v753_v19  ;;  %v400_v19 = vld [vmem:[%s11621_s19 + $0x120] sm:$0xff]  ;;  %v401_v4 = vld [vmem:[%s11621_s19 + $0x128] sm:$0xff] }
 0x18f   : > { %v12012_v24 = vsel %vm11631_vm2, 0, %v756_v20 }
 0x190   : > { %v1177_v31 = vshrl.u32 %v12012_v24, 16  ;;  %v1563_v37 = vrot.slane %v12012_v24, 1 }
 0x192   : > { %v11958_v28 = vpop.permute.xlu0 %1920 }
 0x193   : > { %v11960_v29 = vpop.permute.xlu2 %1855 }
 0x194   : > { %1641 = vrot.lane.b32.xlu1 %v1559_v44, %s11545_s20  ;;  %v1560_v44 = vrot.slane %v11945_v22, 1  ;;  %v1985_v18 = vsel %vm1970_vm9, %v11869_v2, %v11960_v29  ;;  %v1186_v29 = vrot.slane %v1184_v36, 1 }
 0x195   : > { %v2050_v26 = vsel %vm2036_vm10, %v1985_v18, %v11958_v28 }
 0x196   : > { %v1562_v30 = vsel %vm1520_vm4, %v1560_v44, %v1561_v7  ;;  %v464_v7 = vpack.c.bf16 %v400_v19, %v400_v19 }
 0x19a   : > { %v11964_v35 = vpop.permute.xlu0 %1857 }
 0x19b   : > { %v1917_v39 = vpop.permute.xlu1 %1916  ;;  %v1638_v40 = vpop.permute.xlu2 %1637 }
 0x19c   : > { %v2046_v46 = vsel %vm2036_vm10, %v1981_v38, %v1917_v39  ;;  %1418 = vrot.lane.b32.xlu1 %v1175_v33, %s11546_s21  ;;  %v1564_v38 = vrot.slane %v989_v27, 1 }
 0x19d   : > { %9972 = vmatmul.msk.bf16.gmra.mxu0 %vm2119_vm11, %v2046_v46 }
 0x1a2   : > { %v1640_v61 = vpop.permute.xlu0 %1639 }
 0x1a3   : > { %v1854_v41 = vpop.permute.xlu1 %1853  ;;  %v1415_v25 = vpop.permute.xlu2 %1414 }
 0x1a4   : > { %v1705_v0 = vsel %vm1681_vm5, %v11862_v62, %v1415_v25  ;;  %v1983_v5 = vsel %vm1970_vm9, %v11804_v59, %v1854_v41  ;;  %v763_v62 = vor.u32 %v761_v11, %v760_v9  ;;  %v1987_v41 = vsel %vm1970_vm9, %v11885_v10, %v11964_v35 }
 0x1a5   : > { %v11978_v57 = vsel %vm1746_vm6, %v1705_v0, %v1640_v61  ;;  %v2048_v13 = vsel %vm2036_vm10, %v1983_v5, %v1919_v15  ;;  %v399_v61 = vld [vmem:[%s11621_s19 + $0x118] sm:$0xff]  ;;  %v462_v0 = vpack.c.bf16 %v398_v58, %v398_v58 }
 0x1a6   : > { %1928 = vrot.lane.b32.xlu1 %v11978_v57, %s11547_s22  ;;  %v11997_v59 = vsel %vm11631_vm2, 0, %v763_v62  ;;  %v463_v1 = vpack.c.bf16 %v399_v61, %v399_v61 }
 0x1a7   : > { %v1566_v14 = vrot.slane %v11997_v59, 1  ;;  %v1191_v39 = vshll.u32 %v11997_v59, 16  ;;  %v1189_v46 = vshrl.u32 %v11997_v59, 16  ;;  %v590_v5 = vunpack.c.l.b16 %v462_v0  ;;  %v402_v0 = vld [vmem:[%s11621_s19 + $0x130] sm:$0xff] }
 0x1a8   : > { %v591_v8 = vunpack.c.l.b16 %v463_v1  ;;  %v403_v1 = vld [vmem:[%s11621_s19 + $0x138] sm:$0xff] }
 0x1a9   : > { %v1568_v15 = vsel %vm1520_vm4, %v1566_v14, %v1567_v16  ;;  %v1193_v48 = vrot.slane %v1191_v39, 1 }
 0x1aa   : > { %v1417_v62 = vpop.permute.xlu0 %1416 }
 0x1ab   : > { %v1636_v12 = vpop.permute.xlu1 %1635  ;;  %v1194_v47 = vor.u32 %v1193_v48, %v1189_v46 }
 0x1ac   : > { %v11988_v43 = vsel %vm1746_vm6, %v1701_v3, %v1636_v12  ;;  %v589_v3 = vunpack.c.l.b16 %v461_v63  ;;  %v637_v12 = vpack.c.b16 %v591_v8, %v590_v5  ;;  %v466_v5 = vpack.c.bf16 %v402_v0, %v402_v0 }
 0x1ad   : > { %9973 = vmatmul.msk.bf16.gmra.mxu0 %vm2119_vm11, %v2048_v13  ;;  %1924 = vrot.lane.b32.xlu2 %v11988_v43, %s11547_s22  ;;  %v1199_v52 = vsel %vm1007_vm3, %v1194_v47, %v1198_v49  ;;  %v1707_v13 = vsel %vm1681_vm5, %v11921_v51, %v1417_v62  ;;  %v467_v8 = vpack.c.bf16 %v403_v1, %v403_v1 }
 0x1ae   : > { %1865 = vrot.lane.b32.xlu1 %v11978_v57, %s11548_s23  ;;  %v636_v11 = vpack.c.b16 %v589_v3, %v588_v45  ;;  %v772_v35 = vshrl.u32 %v637_v12, 16 }
 0x1b0   : > { %v765_v10 = vshrl.u32 %v636_v11, 16  ;;  %v768_v16 = vshll.u32 %v636_v11, 16  ;;  %v774_v20 = vrot.slane %v772_v35, 7  ;;  %v595_v35 = vunpack.c.l.b16 %v467_v8 }
 0x1b2   : > { %v767_v14 = vrot.slane %v765_v10, 7  ;;  %v594_v10 = vunpack.c.l.b16 %v466_v5 }
 0x1b3   : > { %v1413_v21 = vpop.permute.xlu1 %1412 }
 0x1b4   : > { %v1703_v60 = vsel %vm1681_vm5, %v11880_v54, %v1413_v21  ;;  %v1179_v54 = vshll.u32 %v12012_v24, 16  ;;  %v775_v21 = vshll.u32 %v637_v12, 16  ;;  %v770_v51 = vor.u32 %v768_v16, %v767_v14 }
 0x1b5   : > { %1861 = vrot.lane.b32.xlu2 %v11988_v43, %s11548_s23  ;;  %v12008_v23 = vsel %vm1746_vm6, %v1703_v60, %v1638_v40  ;;  %v1565_v40 = vsel %vm1520_vm4, %v1563_v37, %v1564_v38  ;;  %v12078_v37 = vsel %vm11631_vm2, %v767_v14, 0  ;;  %v992_v38 = vsel %vm11631_vm2, %v774_v20, 0 }
 0x1b6   : > { %1926 = vrot.lane.b32.xlu0 %v12008_v23, %s11547_s22  ;;  %1647 = vrot.lane.b32.xlu1 %v1568_v15, %s11545_s20  ;;  %v1181_v33 = vrot.slane %v1179_v54, 1  ;;  %v465_v54 = vpack.c.bf16 %v401_v4, %v401_v4  ;;  %v777_v27 = vor.u32 %v775_v21, %v774_v20  ;;  %v1208_v50 = vshll.u32 %v12078_v37, 16 }
 0x1b7   : > { %v1573_v11 = vrot.slane %v992_v38, 1  ;;  %v639_v20 = vpack.c.b16 %v595_v35, %v594_v10 }
 0x1b8   : > { %v1182_v2 = vor.u32 %v1181_v33, %v1177_v31  ;;  %v593_v31 = vunpack.c.l.b16 %v465_v54  ;;  %v12070_v36 = vsel %vm11631_vm2, 0, %v777_v27 }
 0x1b9   : > { %v1213_v47 = vshrl.u32 %v12070_v36, 16  ;;  %v789_v27 = vshll.u32 %v639_v20, 16 }
 0x1ba   : > { %v1187_v28 = vsel %vm1007_vm3, %v1182_v2, %v1186_v29  ;;  %v1215_v29 = vshll.u32 %v12070_v36, 16 }
 0x1bc   : > { %v1217_v49 = vrot.slane %v1215_v29, 1 }
 0x1bd   : > { %1643 = vrot.lane.b32.xlu2 %v1562_v30, %s11545_s20  ;;  %9974 = vmatmul.msk.bf16.gmra.mxu0 %vm2119_vm11, %v2050_v26  ;;  %v592_v30 = vunpack.c.l.b16 %v464_v7  ;;  %v786_v7 = vshrl.u32 %v639_v20, 16 }
 0x1be   : > { %1863 = vrot.lane.b32.xlu0 %v12008_v23, %s11548_s23 }
 0x1bf   : > { %v638_v26 = vpack.c.b16 %v593_v31, %v592_v30 }
 0x1c1   : > { %v779_v39 = vshrl.u32 %v638_v26, 16  ;;  %v782_v58 = vshll.u32 %v638_v26, 16 }
 0x1c3   : > { %v781_v56 = vrot.slane %v779_v39, 7 }
 0x1c5   : > { %1420 = vrot.lane.b32.xlu2 %v1187_v28, %s11546_s21  ;;  %v784_v63 = vor.u32 %v782_v58, %v781_v56  ;;  %v993_v62 = vsel %vm11631_vm2, %v781_v56, 0 }
 0x1c6   : > { %1645 = vrot.lane.b32.xlu0 %v1565_v40, %s11545_s20 }
 0x1c7   : > { %v12100_v3 = vsel %vm11631_vm2, 0, %v784_v63 }
 0x1c8   : > { %v1227_v12 = vshll.u32 %v12100_v3, 16  ;;  %v1225_v19 = vshrl.u32 %v12100_v3, 16 }
 0x1ca   : > { %v1229_v4 = vrot.slane %v1227_v12, 1  ;;  %v404_v12 = vld [vmem:[%s11621_s19 + $0x140] sm:$0xff] }
 0x1cb   : > { %v468_v10 = vpack.c.bf16 %v404_v12, %v404_v12 }
 0x1ce   : > { %1422 = vrot.lane.b32.xlu0 %v1199_v52, %s11546_s21  ;;  %v1220_v52 = vshll.u32 %v992_v38, 16 }
 0x1d0   : > { %v1222_v6 = vrot.slane %v1220_v52, 1 }
 0x1f6   : > { %v1923_v25 = vpop.permute.xlu1 %1922 }
 0x1f7   : > { %v2052_v42 = vsel %vm2036_vm10, %v1987_v41, %v1923_v25  ;;  %v1210_v41 = vrot.slane %v1208_v50, 1  ;;  %v1218_v25 = vor.u32 %v1217_v49, %v1213_v47 }
 0x1f8   : > { %9975 = vmatmul.msk.bf16.gmra.mxu0 %vm2119_vm11, %v2052_v42 }
 0x1f9   : > { %v1223_v45 = vsel %vm1007_vm3, %v1218_v25, %v1222_v6 }
 0x1fe   : > { %v1860_v9 = vpop.permute.xlu1 %1859 }
 0x1ff   : > { %v1989_v15 = vsel %vm1970_vm9, %v11852_v55, %v1860_v9  ;;  %v12066_v55 = vsel %vm11631_vm2, 0, %v770_v51  ;;  %v1572_v9 = vrot.slane %v12070_v36, 1  ;;  %v788_v51 = vrot.slane %v786_v7, 7  ;;  %v407_v7 = vld [vmem:[%s11621_s19 + $0x158] sm:$0xff] }
 0x200   : > { %v1203_v2 = vshll.u32 %v12066_v55, 16  ;;  %v1201_v46 = vshrl.u32 %v12066_v55, 16 }
 0x201   : > { %v791_v31 = vor.u32 %v789_v27, %v788_v51  ;;  %v994_v50 = vsel %vm11631_vm2, %v788_v51, 0  ;;  %v471_v27 = vpack.c.bf16 %v407_v7, %v407_v7 }
 0x202   : > { %v1205_v48 = vrot.slane %v1203_v2, 1  ;;  %v1244_v56 = vshll.u32 %v994_v50, 16 }
 0x203   : > { %v12123_v29 = vsel %vm11631_vm2, 0, %v791_v31 }
 0x204   : > { %v1237_v52 = vshrl.u32 %v12123_v29, 16  ;;  %v1246_v25 = vrot.slane %v1244_v56, 1  ;;  %v1578_v1 = vrot.slane %v12123_v29, 1 }
 0x206   : > { %v1642_v32 = vpop.permute.xlu1 %1641 }
 0x207   : > { %v1925_v60 = vpop.permute.xlu2 %1924  ;;  %v12058_v44 = vsel %vm1746_vm6, %v1707_v13, %v1642_v32  ;;  %v1574_v13 = vsel %vm1520_vm4, %v1572_v9, %v1573_v11  ;;  %v1232_v32 = vshll.u32 %v993_v62, 16  ;;  %v2200_v9 = vpop.f32.mrf.mxu0 }
 0x208   : > { %v2054_v18 = vsel %vm2036_vm10, %v1989_v15, %v1925_v60  ;;  %1930 = vrot.lane.b32.xlu2 %v12058_v44, %s11547_s22  ;;  %v1230_v15 = vor.u32 %v1229_v4, %v1225_v19 }
 0x209   : > { %9976 = vmatmul.msk.bf16.gmra.mxu0 %vm2119_vm11, %v2054_v18  ;;  %v1234_v60 = vrot.slane %v1232_v32, 1 }
 0x20b   : > { %v1235_v54 = vsel %vm1007_vm3, %v1230_v15, %v1234_v60  ;;  %v406_v60 = vld [vmem:[%s11621_s19 + $0x150] sm:$0xff] }
 0x20c   : > { %v470_v51 = vpack.c.bf16 %v406_v60, %v406_v60 }
 0x20e   : > { %v1419_v28 = vpop.permute.xlu1 %1418 }
 0x20f   : > { %v1862_v33 = vpop.permute.xlu2 %1861  ;;  %v1709_v40 = vsel %vm1681_vm5, %v11945_v22, %v1419_v28  ;;  %v1206_v22 = vor.u32 %v1205_v48, %v1201_v46  ;;  %v17174_v28 = vmov 0   ;;  %v1569_v46 = vrot.slane %v12066_v55, 1  ;;  %v2202_v11 = vpop.f32.mrf.mxu0 }
 0x210   : > { %1867 = vrot.lane.b32.xlu2 %v12058_v44, %s11548_s23  ;;  %v1991_v14 = vsel %vm1970_vm9, %v11939_v17, %v1862_v33  ;;  %v1570_v48 = vrot.slane %v12078_v37, 1 }
 0x211   : > { %v1211_v42 = vsel %vm1007_vm3, %v1206_v22, %v1210_v41 }
 0x212   : > { %v1571_v58 = vsel %vm1520_vm4, %v1569_v46, %v1570_v48 }
 0x217   : > { %v1644_v53 = vpop.permute.xlu2 %1643 }
 0x218   : > { %v12088_v61 = vsel %vm1746_vm6, %v1709_v40, %v1644_v53  ;;  %v1929_v30 = vpop.permute.xlu1 %1928  ;;  %v1239_v40 = vshll.u32 %v12123_v29, 16 }
 0x219   : > { %1932 = vrot.lane.b32.xlu0 %v12088_v61, %s11547_s22  ;;  %1869 = vrot.lane.b32.xlu1 %v12088_v61, %s11548_s23 }
 0x21a   : > { %v1241_v53 = vrot.slane %v1239_v40, 1 }
 0x21c   : > { %v1242_v41 = vor.u32 %v1241_v53, %v1237_v52 }
 0x21e   : > { %v1247_v63 = vsel %vm1007_vm3, %v1242_v41, %v1246_v25 }
 0x21f   : > { %v1421_v17 = vpop.permute.xlu2 %1420 }
 0x220   : > { %v1711_v26 = vsel %vm1681_vm5, %v12012_v24, %v1421_v17  ;;  %v1576_v24 = vrot.slane %v993_v62, 1  ;;  %v1866_v47 = vpop.permute.xlu1 %1865  ;;  %v405_v62 = vld [vmem:[%s11621_s19 + $0x148] sm:$0xff] }
 0x221   : > { %1424 = vrot.lane.b32.xlu0 %v1211_v42, %s11546_s21  ;;  %1426 = vrot.lane.b32.xlu1 %v1223_v45, %s11546_s21  ;;  %v1579_v42 = vrot.slane %v994_v50, 1  ;;  %v469_v35 = vpack.c.bf16 %v405_v62, %v405_v62 }
 0x223   : > { %v1580_v45 = vsel %vm1520_vm4, %v1578_v1, %v1579_v42  ;;  %v597_v19 = vunpack.c.l.b16 %v469_v35 }
 0x228   : > { %v1927_v16 = vpop.permute.xlu0 %1926  ;;  %v1648_v6 = vpop.permute.xlu1 %1647 }
 0x229   : > { %1651 = vrot.lane.b32.xlu0 %v1574_v13, %s11545_s20  ;;  %v2056_v21 = vsel %vm2036_vm10, %v1991_v14, %v1927_v16  ;;  %v596_v13 = vunpack.c.l.b16 %v468_v10  ;;  %v2205_v16 = vpop.f32.mrf.mxu0 }
 0x22a   : > { %9977 = vmatmul.msk.bf16.gmra.mxu0 %vm2119_vm11, %v2056_v21 }
 0x22b   : > { %v640_v4 = vpack.c.b16 %v597_v19, %v596_v13 }
 0x22d   : > { %v793_v32 = vshrl.u32 %v640_v4, 16  ;;  %v796_v21 = vshll.u32 %v640_v4, 16 }
 0x22f   : > { %v795_v20 = vrot.slane %v793_v32, 7 }
 0x230   : > { %v1864_v18 = vpop.permute.xlu0 %1863 }
 0x231   : > { %1428 = vrot.lane.b32.xlu0 %v1235_v54, %s11546_s21  ;;  %v1993_v33 = vsel %vm1970_vm9, %v11988_v43, %v1864_v18  ;;  %v1575_v43 = vrot.slane %v12100_v3, 1  ;;  %v798_v18 = vor.u32 %v796_v21, %v795_v20  ;;  %v12179_v40 = vsel %vm11631_vm2, %v795_v20, 0 }
 0x232   : > { %v2058_v38 = vsel %vm2036_vm10, %v1993_v33, %v1929_v30  ;;  %v598_v33 = vunpack.c.l.b16 %v470_v51 }
 0x233   : > { %v1577_v49 = vsel %vm1520_vm4, %v1575_v43, %v1576_v24  ;;  %v12174_v31 = vsel %vm11631_vm2, 0, %v798_v18 }
 0x234   : > { %v1251_v24 = vshll.u32 %v12174_v31, 16  ;;  %v1249_v48 = vshrl.u32 %v12174_v31, 16 }
 0x236   : > { %v1253_v50 = vrot.slane %v1251_v24, 1  ;;  %v1582_v24 = vrot.slane %v12179_v40, 1 }
 0x238   : > { %v1646_v2 = vpop.permute.xlu0 %1645 }
 0x239   : > { %v12127_v39 = vsel %vm1746_vm6, %v1711_v26, %v1646_v2  ;;  %1938 = vrot.lane.b32.xlu0 %v17174_v28, %s11547_s22  ;;  %v599_v26 = vunpack.c.l.b16 %v471_v27 }
 0x23a   : > { %9978 = vmatmul.msk.bf16.gmra.mxu0 %vm2119_vm11, %v2058_v38  ;;  %1871 = vrot.lane.b32.xlu1 %v12127_v39, %s11548_s23  ;;  %v2207_v38 = vpop.f32.mrf.mxu0 }
 0x23b   : > { %1934 = vrot.lane.b32.xlu2 %v12127_v39, %s11547_s22  ;;  %v641_v53 = vpack.c.b16 %v599_v26, %v598_v33 }
 0x240   : > { %v1423_v22 = vpop.permute.xlu0 %1422 }
 0x241   : > { %v1713_v37 = vsel %vm1681_vm5, %v11997_v59, %v1423_v22  ;;  %v1995_v59 = vsel %vm1970_vm9, %v12008_v23, %v1866_v47  ;;  %v12166_v23 = vld [vmem:[%s17165_s2] ss:$0 sm:$0xff]  ;;  %v1256_v47 = vshll.u32 %v12179_v40, 16  ;;  %v1254_v22 = vor.u32 %v1253_v50, %v1249_v48 }
 0x242   : > { %1653 = vrot.lane.b32.xlu1 %v1577_v49, %s11545_s20  ;;  %v1778_v0 = vsel %vm1746_vm6, %v1713_v37, %v1648_v6  ;;  %v2203_v14 = vadd.f32 %v12166_v23, %v2202_v11  ;;  %v2201_v15 = vadd.f32 %v12166_v23, %v2200_v9  ;;  %v800_v6 = vshrl.u32 %v641_v53, 16 }
 0x243   : > { %1649 = vrot.lane.b32.xlu2 %v1571_v58, %s11545_s20  ;;  %v1258_v41 = vrot.slane %v1256_v47, 1  ;;  %v2206_v35 = vadd.f32 %v12166_v23, %v2205_v16 }
 0x244   : > { %v2361_v54 = vmax.f32 %v2203_v14, 0.0  ;;  %v2360_v30 = vmax.f32 %v2201_v15, 0.0  ;;  %v802_v42 = vrot.slane %v800_v6, 7 }
 0x245   : > { %v2362_v15 = vmax.f32 %v2206_v35, 0.0 }
 0x246   : > { %v2425_v17 = vpack.c.bf16 %v2361_v54, %v2361_v54  ;;  %v2424_v2 = vpack.c.bf16 %v2360_v30, %v2360_v30 }
 0x247   : > { %v2426_v26 = vpack.c.bf16 %v2362_v15, %v2362_v15 }
 0x248   : > { %v2553_v46 = vunpack.c.l.b16 %v2425_v17  ;;  %v2552_v56 = vunpack.c.l.b16 %v2424_v2 }
 0x24a   : > { %1430 = vrot.lane.b32.xlu1 %v1247_v63, %s11546_s21  ;;  %v2616_v25 = vpack.c.b16 %v2553_v46, %v2552_v56  ;;  %v1259_v63 = vsel %vm1007_vm3, %v1254_v22, %v1258_v41  ;;  %v2554_v56 = vunpack.c.l.b16 %v2426_v26 }
 0x24b   : > { %1936 = vrot.lane.b32.xlu2 %v1778_v0, %s11547_s22 }
 0x24c   : > { %v2652_v19 = vshll.u32 %v2616_v25, 16 }
 0x253   : > { %1873 = vrot.lane.b32.xlu2 %v1778_v0, %s11548_s23  ;;  %v2649_v0 = vshrl.u32 %v2616_v25, 16 }
 0x255   : > { %v2651_v11 = vrot.slane %v2649_v0, 7 }
 0x257   : > { %v2654_v14 = vor.u32 %v2652_v19, %v2651_v11  ;;  %v12236_v40 = vsel %vm11631_vm2, %v2651_v11, 0 }
 0x258   : > { %17292 = vst [vmem:[#allocation4_spill] sm:$0xff] %v12236_v40 }
 0x25b   : > { %1655 = vrot.lane.b32.xlu2 %v1580_v45, %s11545_s20  ;;  %v803_v45 = vshll.u32 %v641_v53, 16 }
 0x25d   : > { %v805_v13 = vor.u32 %v803_v45, %v802_v42  ;;  %v3008_v45 = vshll.u32 %v12236_v40, 16 }
 0x25f   : > { %v12201_v16 = vsel %vm11631_vm2, 0, %v805_v13  ;;  %v3010_v35 = vrot.slane %v3008_v45, 1 }
 0x260   : > { %v1263_v17 = vshll.u32 %v12201_v16, 16  ;;  %v1261_v47 = vshrl.u32 %v12201_v16, 16 }
 0x262   : > { %v1931_v5 = vpop.permute.xlu2 %1930 }
 0x263   : > { %v2060_v8 = vsel %vm2036_vm10, %v1995_v59, %v1931_v5  ;;  %1432 = vrot.lane.b32.xlu2 %v1259_v63, %s11546_s21  ;;  %v408_v59 = vld [vmem:[%s11621_s19 + $0x160] sm:$0xff]  ;;  %v409_v5 = vld [vmem:[%s11621_s19 + $0x168] sm:$0xff] }
 0x264   : > { %9979 = vmatmul.msk.bf16.gmra.mxu0 %vm2119_vm11, %v2060_v8  ;;  %v2208_v8 = vadd.f32 %v12166_v23, %v2207_v38  ;;  %v472_v62 = vpack.c.bf16 %v408_v59, %v408_v59  ;;  %v473_v10 = vpack.c.bf16 %v409_v5, %v409_v5  ;;  %v12223_v38 = vsel %vm11631_vm2, %v802_v42, 0 }
 0x266   : > { %v2363_v4 = vmax.f32 %v2208_v8, 0.0  ;;  %v600_v20 = vunpack.c.l.b16 %v472_v62  ;;  %v601_v21 = vunpack.c.l.b16 %v473_v10 }
 0x268   : > { %v2427_v27 = vpack.c.bf16 %v2363_v4, %v2363_v4  ;;  %v642_v33 = vpack.c.b16 %v601_v21, %v600_v20 }
 0x26a   : > { %v1868_v43 = vpop.permute.xlu2 %1867  ;;  %v2555_v46 = vunpack.c.l.b16 %v2427_v27  ;;  %v807_v53 = vshrl.u32 %v642_v33, 16 }
 0x26b   : > { %v1997_v49 = vsel %vm1970_vm9, %v11978_v57, %v1868_v43  ;;  %v2210_v57 = vpop.f32.mrf.mxu0  ;;  %v1581_v43 = vrot.slane %v12174_v31, 1 }
 0x26c   : > { %v2211_v48 = vadd.f32 %v12166_v23, %v2210_v57  ;;  %v2617_v41 = vpack.c.b16 %v2555_v46, %v2554_v56  ;;  %v809_v0 = vrot.slane %v807_v53, 7  ;;  %v810_v57 = vshll.u32 %v642_v33, 16 }
 0x26d   : > { %v1583_v22 = vsel %vm1520_vm4, %v1581_v43, %v1582_v24  ;;  %v1584_v46 = vrot.slane %v12201_v16, 1 }
 0x26e   : > { %v2364_v25 = vmax.f32 %v2211_v48, 0.0  ;;  %v2656_v8 = vshrl.u32 %v2617_v41, 16  ;;  %v812_v11 = vor.u32 %v810_v57, %v809_v0  ;;  %v2659_v15 = vshll.u32 %v2617_v41, 16 }
 0x26f   : > { %v1585_v48 = vrot.slane %v12223_v38, 1 }
 0x270   : > { %v2428_v59 = vpack.c.bf16 %v2364_v25, %v2364_v25  ;;  %v2658_v4 = vrot.slane %v2656_v8, 7  ;;  %v12249_v20 = vsel %vm11631_vm2, 0, %v812_v11 }
 0x271   : > { %v1273_v26 = vshrl.u32 %v12249_v20, 16  ;;  %v1586_v41 = vsel %vm1520_vm4, %v1584_v46, %v1585_v48  ;;  %v1587_v45 = vrot.slane %v12249_v20, 1  ;;  %v11231_v46 = vld [vmem:[%s17166_s3] sm:$0xff] }
 0x272   : > { %v2556_v13 = vunpack.c.l.b16 %v2428_v59 }
 0x273   : > { %v2212_v18 = vpop.f32.mrf.mxu0 }
 0x274   : > { %v2213_v2 = vadd.f32 %v12166_v23, %v2212_v18  ;;  %v997_v18 = vsel %vm11631_vm2, %v809_v0, 0 }
 0x275   : > { %v1280_v43 = vshll.u32 %v997_v18, 16  ;;  %v1588_v59 = vrot.slane %v997_v18, 1  ;;  %v411_v18 = vld [vmem:[%s11621_s19 + $0x178] sm:$0xff] }
 0x28b   : > { %v1933_v52 = vpop.permute.xlu0 %1932  ;;  %v1870_v37 = vpop.permute.xlu1 %1869 }
 0x28c   : > { %v2062_v58 = vsel %vm2036_vm10, %v1997_v49, %v1933_v52  ;;  %v1999_v60 = vsel %vm1970_vm9, %v12058_v44, %v1870_v37  ;;  %v12212_v44 = vsel %vm11631_vm2, 0, %v2654_v14  ;;  %v1265_v49 = vrot.slane %v1263_v17, 1  ;;  %v12258_v17 = vpop.f32.mrf.mxu0 }
 0x28d   : > { %9980 = vmatmul.msk.bf16.gmra.mxu0 %vm2119_vm11, %v2062_v58  ;;  %17291 = vst [vmem:[#allocation3_spill] sm:$0xff] %v12212_v44  ;;  %v3003_v50 = vshll.u32 %v12212_v44, 16  ;;  %v1268_v52 = vshll.u32 %v12223_v38, 16  ;;  %v2365_v58 = vmax.f32 %v2213_v2, 0.0  ;;  %v3001_v42 = vshrl.u32 %v12212_v44, 16 }
 0x28e   : > { %v1266_v6 = vor.u32 %v1265_v49, %v1261_v47  ;;  %v1282_v49 = vrot.slane %v1280_v43, 1 }
 0x28f   : > { %v3005_v37 = vrot.slane %v3003_v50, 1  ;;  %v1270_v63 = vrot.slane %v1268_v52, 1 }
 0x293   : > { %v1425_v1 = vpop.permute.xlu0 %1424  ;;  %v1427_v12 = vpop.permute.xlu1 %1426 }
 0x294   : > { %v1717_v32 = vsel %vm1681_vm5, %v12070_v36, %v1427_v12  ;;  %v1715_v7 = vsel %vm1681_vm5, %v12066_v55, %v1425_v1  ;;  %v2429_v1 = vpack.c.bf16 %v2365_v58, %v2365_v58  ;;  %v3006_v12 = vor.u32 %v3005_v37, %v3001_v42 }
 0x295   : > { %v1935_v9 = vpop.permute.xlu2 %1934  ;;  %v12282_v37 = vsel %vm11631_vm2, %v2658_v4, 0 }
 0x296   : > { %v2064_v51 = vsel %vm2036_vm10, %v1999_v60, %v1935_v9  ;;  %v1271_v9 = vsel %vm1007_vm3, %v1266_v6, %v1270_v63  ;;  %v2557_v62 = vunpack.c.l.b16 %v2429_v1  ;;  %17295 = vst [vmem:[#allocation7_spill] sm:$0xff] %v12282_v37  ;;  %v12297_v1 = vpop.f32.mrf.mxu0  ;;  %v3020_v42 = vshll.u32 %v12282_v37, 16 }
 0x298   : > { %v2618_v21 = vpack.c.b16 %v2557_v62, %v2556_v13 }
 0x29a   : > { %v2666_v50 = vshll.u32 %v2618_v21, 16 }
 0x29b   : > { %v1652_v54 = vpop.permute.xlu0 %1651 }
 0x29c   : > { %v12205_v36 = vsel %vm1746_vm6, %v1717_v32, %v1652_v54  ;;  %v3011_v32 = vsel %vm1007_vm3, %v3006_v12, %v3010_v35  ;;  %v1589_v12 = vsel %vm1520_vm4, %v1587_v45, %v1588_v59  ;;  %v2218_v45 = vadd.f32 %v12166_v23, %v12297_v1 }
 0x29d   : > { %v1650_v30 = vpop.permute.xlu2 %1649  ;;  %9981 = vmatmul.msk.bf16.gmra.mxu0 %vm2119_vm11, %v2064_v51  ;;  %1940 = vrot.lane.b32.xlu1 %v12205_v36, %s11547_s22  ;;  %v2663_v51 = vshrl.u32 %v2618_v21, 16  ;;  %v11237_v21 = vld [vmem:[%s17166_s3 + $0x30] sm:$0xff] }
 0x29e   : > { %v12215_v55 = vsel %vm1746_vm6, %v1715_v7, %v1650_v30  ;;  %v2661_v7 = vor.u32 %v2659_v15, %v2658_v4  ;;  %v11236_v15 = vld [vmem:[%s17166_s3 + $0x28] sm:$0xff] }
 0x29f   : > { %1875 = vrot.lane.b32.xlu0 %v12215_v55, %s11548_s23 }
 0x2a0   : > { %v12266_v24 = vsel %vm11631_vm2, 0, %v2661_v7  ;;  %v11233_v7 = vld [vmem:[%s17166_s3 + $0x10] sm:$0xff] }
 0x2a1   : > { %17293 = vst [vmem:[#allocation5_spill] sm:$0xff] %v12266_v24  ;;  %v3015_v52 = vshll.u32 %v12266_v24, 16 }
 0x2a3   : > { %v1429_v60 = vpop.permute.xlu0 %1428  ;;  %v3017_v63 = vrot.slane %v3015_v52, 1 }
 0x2a4   : > { %v1719_v54 = vsel %vm1681_vm5, %v12100_v3, %v1429_v60  ;;  %v2665_v3 = vrot.slane %v2663_v51, 7  ;;  %v11235_v60 = vld [vmem:[%s17166_s3 + $0x20] sm:$0xff] }
 0x2a5   : > { %1877 = vrot.lane.b32.xlu1 %v12205_v36, %s11548_s23  ;;  %v1937_v5 = vpop.permute.xlu2 %1936 }
 0x2a6   : > { %v2668_v53 = vor.u32 %v2666_v50, %v2665_v3  ;;  %v12311_v62 = vsel %vm11631_vm2, %v2665_v3, 0 }
 0x2a7   : > { %1657 = vrot.lane.b32.xlu0 %v1583_v22, %s11545_s20  ;;  %17297 = vst [vmem:[#allocation9_spill] sm:$0xff] %v12311_v62  ;;  %v3032_v13 = vshll.u32 %v12311_v62, 16 }
 0x2a8   : > { %v12295_v57 = vsel %vm11631_vm2, 0, %v2668_v53 }
 0x2a9   : > { %17296 = vst [vmem:[#allocation8_spill] sm:$0xff] %v12295_v57  ;;  %v3027_v8 = vshll.u32 %v12295_v57, 16  ;;  %v3025_v35 = vshrl.u32 %v12295_v57, 16  ;;  %v3034_v4 = vrot.slane %v3032_v13, 1 }
 0x2ab   : > { %v12277_v58 = vpop.permute.xlu0 %1938 }
 0x2ac   : > { %v1872_v10 = vpop.permute.xlu1 %1871  ;;  %17294 = vst [vmem:[#allocation6_spill] sm:$0xff] %v12277_v58 }
 0x2ad   : > { %v2001_v19 = vsel %vm1970_vm9, %v12088_v61, %v1872_v10  ;;  %1434 = vrot.lane.b32.xlu1 %v1271_v9, %s11546_s21  ;;  %v1275_v61 = vshll.u32 %v12249_v20, 16  ;;  %v1874_v27 = vpop.permute.xlu2 %1873  ;;  %v3022_v9 = vrot.slane %v3020_v42, 1  ;;  %v3029_v10 = vrot.slane %v3027_v8, 1 }
 0x2ae   : > { %v2066_v14 = vsel %vm2036_vm10, %v2001_v19, %v1937_v5  ;;  %v2003_v56 = vsel %vm1970_vm9, %v12127_v39, %v1874_v27  ;;  %v475_v27 = vpack.c.bf16 %v411_v18, %v411_v18 }
 0x2af   : > { %3384 = vrot.lane.b32.xlu0 %v3011_v32, %s11551_s12  ;;  %9982 = vmatmul.msk.bf16.gmra.mxu0 %vm2119_vm11, %v2066_v14  ;;  %v1277_v2 = vrot.slane %v1275_v61, 1  ;;  %v2068_v0 = vsel %vm2036_vm10, %v2003_v56, %v12277_v58  ;;  %v3030_v19 = vor.u32 %v3029_v10, %v3025_v35  ;;  %v11238_v14 = vld [vmem:[%s17166_s3 + $0x38] sm:$0xff]  ;;  %v412_v56 = vld [vmem:[%s11621_s19 + $0x180] sm:$0xff] }
 0x2b0   : > { %4412 = vmatpush.bf16.msra.mxu1 %v11238_v14  ;;  %11505 = vmatpush.bf16.msra.mxu2 %v11238_v14  ;;  %v11234_v61 = vld [vmem:[%s17166_s3 + $0x18] sm:$0xff] }
 0x2b1   : > { %v1278_v47 = vor.u32 %v1277_v2, %v1273_v26  ;;  %v3035_v32 = vsel %vm1007_vm3, %v3030_v19, %v3034_v4  ;;  %v603_v26 = vunpack.c.l.b16 %v475_v27  ;;  %v11232_v2 = vld [vmem:[%s17166_s3 + $0x8] sm:$0xff] }
 0x2b3   : > { %v1283_v6 = vsel %vm1007_vm3, %v1278_v47, %v1282_v49  ;;  %v2220_v49 = vpop.f32.mrf.mxu0 }
 0x2b4   : > { %v1654_v30 = vpop.permute.xlu1 %1653  ;;  %4413 = vmatpush.bf16.msra.mxu1 %v11237_v21  ;;  %11506 = vmatpush.bf16.msra.mxu2 %v11237_v21  ;;  %v2221_v4 = vadd.f32 %v12166_v23, %v2220_v49 }
 0x2b5   : > { %v12261_v33 = vsel %vm1746_vm6, %v1719_v54, %v1654_v30  ;;  %v1656_v22 = vpop.permute.xlu2 %1655  ;;  %v410_v54 = vld [vmem:[%s11621_s19 + $0x170] sm:$0xff] }
 0x2b6   : > { %1942 = vrot.lane.b32.xlu2 %v12261_v33, %s11547_s22  ;;  %v474_v51 = vpack.c.bf16 %v410_v54, %v410_v54 }
 0x2b7   : > { %1879 = vrot.lane.b32.xlu0 %v12261_v33, %s11548_s23 }
 0x2b8   : > { %4414 = vmatpush.bf16.msra.mxu1 %v11236_v15  ;;  %11507 = vmatpush.bf16.msra.mxu2 %v11236_v15  ;;  %v602_v30 = vunpack.c.l.b16 %v474_v51 }
 0x2ba   : > { %v643_v43 = vpack.c.b16 %v603_v26, %v602_v30 }
 0x2bc   : > { %v1431_v25 = vpop.permute.xlu1 %1430  ;;  %4415 = vmatpush.bf16.msra.mxu1 %v11235_v60  ;;  %11508 = vmatpush.bf16.msra.mxu2 %v11235_v60  ;;  %v814_v3 = vshrl.u32 %v643_v43, 16  ;;  %v817_v50 = vshll.u32 %v643_v43, 16 }
 0x2bd   : > { %v1721_v38 = vsel %vm1681_vm5, %v12123_v29, %v1431_v25  ;;  %v3013_v29 = vshrl.u32 %v12266_v24, 16  ;;  %v1433_v27 = vpop.permute.xlu2 %1432 }
 0x2be   : > { %1659 = vrot.lane.b32.xlu2 %v1586_v41, %s11545_s20  ;;  %v12289_v39 = vsel %vm1746_vm6, %v1721_v38, %v1656_v22  ;;  %v816_v48 = vrot.slane %v814_v3, 7  ;;  %v413_v22 = vld [vmem:[%s11621_s19 + $0x188] sm:$0xff] }
 0x2bf   : > { %1944 = vrot.lane.b32.xlu1 %v12289_v39, %s11547_s22  ;;  %9983 = vmatmul.msk.bf16.gmra.mxu0 %vm2119_vm11, %v2068_v0  ;;  %v3018_v5 = vor.u32 %v3017_v63, %v3013_v29  ;;  %v476_v63 = vpack.c.bf16 %v412_v56, %v412_v56  ;;  %v477_v0 = vpack.c.bf16 %v413_v22, %v413_v22 }
 0x2c0   : > { %1436 = vrot.lane.b32.xlu0 %v1283_v6, %s11546_s21  ;;  %4416 = vmatpush.bf16.msra.mxu1 %v11234_v61  ;;  %v819_v47 = vor.u32 %v817_v50, %v816_v48  ;;  %v12357_v41 = vsel %vm11631_vm2, %v816_v48, 0  ;;  %v415_v48 = vld [vmem:[%s11621_s19 + $0x198] sm:$0xff] }
 0x2c1   : > { %v3023_v11 = vsel %vm1007_vm3, %v3018_v5, %v3022_v9  ;;  %11509 = vmatpush.bf16.msra.mxu2 %v11234_v61  ;;  %v1292_v6 = vshll.u32 %v12357_v41, 16  ;;  %v2216_v5 = vadd.f32 %v12166_v23, %v12258_v17  ;;  %v604_v8 = vunpack.c.l.b16 %v476_v63 }
 0x2c2   : > { %v12350_v52 = vsel %vm11631_vm2, 0, %v819_v47  ;;  %v605_v9 = vunpack.c.l.b16 %v477_v0  ;;  %v2368_v17 = vmax.f32 %v2221_v4, 0.0 }
 0x2c3   : > { %v1287_v53 = vshll.u32 %v12350_v52, 16  ;;  %v1285_v25 = vshrl.u32 %v12350_v52, 16  ;;  %v1294_v42 = vrot.slane %v1292_v6, 1  ;;  %v2366_v10 = vmax.f32 %v2216_v5, 0.0 }
 0x2c4   : > { %4417 = vmatpush.bf16.msra.mxu1 %v11233_v7  ;;  %v644_v13 = vpack.c.b16 %v605_v9, %v604_v8  ;;  %v2432_v51 = vpack.c.bf16 %v2368_v17, %v2368_v17  ;;  %v1723_v9 = vsel %vm1681_vm5, %v12174_v31, %v1433_v27 }
 0x2c5   : > { %11510 = vmatpush.bf16.msra.mxu2 %v11233_v7  ;;  %v1289_v38 = vrot.slane %v1287_v53, 1 }
 0x2c6   : > { %3386 = vrot.lane.b32.xlu2 %v3023_v11, %s11551_s12  ;;  %v2367_v11 = vmax.f32 %v2218_v45, 0.0  ;;  %v821_v14 = vshrl.u32 %v644_v13, 16  ;;  %v824_v54 = vshll.u32 %v644_v13, 16  ;;  %v2560_v43 = vunpack.c.l.b16 %v2432_v51 }
 0x2c7   : > { %1661 = vrot.lane.b32.xlu1 %v1589_v12, %s11545_s20  ;;  %v1290_v29 = vor.u32 %v1289_v38, %v1285_v25  ;;  %v2222_v12 = vpop.f32.mrf.mxu0  ;;  %v479_v25 = vpack.c.bf16 %v415_v48, %v415_v48 }
 0x2c8   : > { %4418 = vmatpush.bf16.msra.mxu1 %v11232_v2  ;;  %v2223_v35 = vadd.f32 %v12166_v23, %v2222_v12  ;;  %v2431_v19 = vpack.c.bf16 %v2367_v11, %v2367_v11  ;;  %v823_v7 = vrot.slane %v821_v14, 7 }
 0x2c9   : > { %11511 = vmatpush.bf16.msra.mxu2 %v11232_v2  ;;  %v1295_v59 = vsel %vm1007_vm3, %v1290_v29, %v1294_v42  ;;  %v607_v5 = vunpack.c.l.b16 %v479_v25 }
 0x2ca   : > { %v2369_v1 = vmax.f32 %v2223_v35, 0.0  ;;  %v2559_v21 = vunpack.c.l.b16 %v2431_v19  ;;  %v826_v26 = vor.u32 %v824_v54, %v823_v7  ;;  %v12381_v42 = vsel %vm11631_vm2, %v823_v7, 0 }
 0x2cb   : > { %v1304_v35 = vshll.u32 %v12381_v42, 16  ;;  %v1591_v7 = vrot.slane %v12357_v41, 1 }
 0x2cc   : > { %4419 = vmatpush.bf16.msra.mxu1 %v11231_v46  ;;  %v2433_v61 = vpack.c.bf16 %v2369_v1, %v2369_v1  ;;  %v12373_v49 = vsel %vm11631_vm2, 0, %v826_v26 }
 0x2cd   : > { %11512 = vmatpush.bf16.msra.mxu2 %v11231_v46  ;;  %v414_v46 = vld [vmem:[%s11621_s19 + $0x190] sm:$0xff]  ;;  %v1299_v63 = vshll.u32 %v12373_v49, 16  ;;  %v1297_v11 = vshrl.u32 %v12373_v49, 16 }
 0x2ce   : > { %1881 = vrot.lane.b32.xlu2 %v12289_v39, %s11548_s23  ;;  %v2561_v30 = vunpack.c.l.b16 %v2433_v61  ;;  %v478_v22 = vpack.c.bf16 %v414_v46, %v414_v46  ;;  %v1590_v61 = vrot.slane %v12350_v52, 1 }
 0x2cf   : > { %3388 = vrot.lane.b32.xlu1 %v3035_v32, %s11551_s12  ;;  %4420 = vmatmul.bf16.vlgmr.msra.gmra.mxu1 %v17174_v28  ;;  %v2430_v32 = vpack.c.bf16 %v2366_v10, %v2366_v10  ;;  %v2225_v15 = vpop.f32.mrf.mxu0  ;;  %v1301_v10 = vrot.slane %v1299_v63, 1  ;;  %v1594_v63 = vrot.slane %v12381_v42, 1 }
 0x2d0   : > { %v2620_v50 = vpack.c.b16 %v2561_v30, %v2560_v43  ;;  %v1592_v41 = vsel %vm1520_vm4, %v1590_v61, %v1591_v7 }
 0x2d1   : > { %v2558_v60 = vunpack.c.l.b16 %v2430_v32  ;;  %v1302_v17 = vor.u32 %v1301_v10, %v1297_v11 }
 0x2d2   : > { %v2677_v29 = vshrl.u32 %v2620_v50, 16  ;;  %v2680_v14 = vshll.u32 %v2620_v50, 16 }
 0x2d3   : > { %v2619_v18 = vpack.c.b16 %v2559_v21, %v2558_v60  ;;  %v1306_v60 = vrot.slane %v1304_v35, 1 }
 0x2d4   : > { %v2679_v13 = vrot.slane %v2677_v29, 7 }
 0x2d5   : > { %v2670_v2 = vshrl.u32 %v2619_v18, 16  ;;  %v2673_v0 = vshll.u32 %v2619_v18, 16  ;;  %v2226_v18 = vadd.f32 %v12166_v23, %v2225_v15  ;;  %v1307_v46 = vsel %vm1007_vm3, %v1302_v17, %v1306_v60 }
 0x2d6   : > { %1438 = vrot.lane.b32.xlu2 %v1295_v59, %s11546_s21  ;;  %v606_v59 = vunpack.c.l.b16 %v478_v22  ;;  %v2682_v54 = vor.u32 %v2680_v14, %v2679_v13  ;;  %v12443_v42 = vsel %vm11631_vm2, %v2679_v13, 0 }
 0x2d7   : > { %v2227_v53 = vpop.f32.mrf.mxu0  ;;  %v2672_v38 = vrot.slane %v2670_v2, 7  ;;  %v2370_v48 = vmax.f32 %v2226_v18, 0.0  ;;  %17302 = vst [vmem:[#allocation14_spill] sm:$0xff] %v12443_v42 }
 0x2d8   : > { %v645_v32 = vpack.c.b16 %v607_v5, %v606_v59  ;;  %v2228_v21 = vadd.f32 %v12166_v23, %v2227_v53  ;;  %v12413_v15 = vsel %vm11631_vm2, 0, %v2682_v54 }
 0x2d9   : > { %v2675_v8 = vor.u32 %v2673_v0, %v2672_v38  ;;  %17299 = vst [vmem:[#allocation11_spill] sm:$0xff] %v12413_v15  ;;  %v3051_v59 = vshll.u32 %v12413_v15, 16  ;;  %v2434_v5 = vpack.c.bf16 %v2370_v48, %v2370_v48  ;;  %v3049_v14 = vshrl.u32 %v12413_v15, 16 }
 0x2da   : > { %v828_v27 = vshrl.u32 %v645_v32, 16  ;;  %v2371_v30 = vmax.f32 %v2228_v21, 0.0  ;;  %v831_v22 = vshll.u32 %v645_v32, 16  ;;  %v3056_v21 = vshll.u32 %v12443_v42, 16 }
 0x2db   : > { %v12392_v1 = vsel %vm11631_vm2, 0, %v2675_v8  ;;  %v3053_v35 = vrot.slane %v3051_v59, 1 }
 0x2dc   : > { %17298 = vst [vmem:[#allocation10_spill] sm:$0xff] %v12392_v1  ;;  %v3039_v51 = vshll.u32 %v12392_v1, 16  ;;  %v2435_v25 = vpack.c.bf16 %v2371_v30, %v2371_v30  ;;  %v3037_v0 = vshrl.u32 %v12392_v1, 16  ;;  %v3058_v18 = vrot.slane %v3056_v21, 1 }
 0x2dd   : > { %v3054_v61 = vor.u32 %v3053_v35, %v3049_v14 }
 0x2de   : > { %v3041_v53 = vrot.slane %v3039_v51, 1 }
 0x2df   : > { %v12399_v31 = vpop.f32.mrf.mxu0 }
 0x2e7   : > { %v12438_v8 = vpop.f32.mrf.mxu0 }
 0x2ef   : > { %v12455_v54 = vpop.f32.mrf.mxu0 }
 0x30f   : > { %v1941_v3 = vpop.permute.xlu1 %1940 }
 0x310   : > { %v1943_v45 = vpop.permute.xlu2 %1942 }
 0x311   : > { %v1876_v47 = vpop.permute.xlu0 %1875 }
 0x312   : > { %v2005_v56 = vsel %vm1970_vm9, 0, %v1876_v47 }
 0x313   : > { %v2070_v6 = vsel %vm2036_vm10, %v2005_v56, %v1941_v3  ;;  %v830_v56 = vrot.slane %v828_v27, 7 }
 0x314   : > { %9984 = vmatmul.msk.bf16.gmra.mxu0 %vm2119_vm11, %v2070_v6 }
 0x315   : > { %v1000_v51 = vsel %vm11631_vm2, %v830_v56, 0 }
 0x317   : > { %v1878_v12 = vpop.permute.xlu1 %1877 }
 0x318   : > { %v2007_v2 = vsel %vm1970_vm9, %v12215_v55, %v1878_v12  ;;  %v1660_v43 = vpop.permute.xlu2 %1659  ;;  %v12420_v55 = vsel %vm11631_vm2, %v2672_v38, 0  ;;  %v1593_v38 = vrot.slane %v12373_v49, 1  ;;  %v833_v12 = vor.u32 %v831_v22, %v830_v56 }
 0x319   : > { %v1658_v19 = vpop.permute.xlu0 %1657  ;;  %17300 = vst [vmem:[#allocation12_spill] sm:$0xff] %v12420_v55  ;;  %v2072_v6 = vsel %vm2036_vm10, %v2007_v2, %v1943_v45  ;;  %v3044_v29 = vshll.u32 %v12420_v55, 16  ;;  %v2563_v45 = vunpack.c.l.b16 %v2435_v25 }
 0x31a   : > { %v12388_v4 = vsel %vm1746_vm6, %v1723_v9, %v1658_v19  ;;  %v3042_v9 = vor.u32 %v3041_v53, %v3037_v0  ;;  %v1595_v11 = vsel %vm1520_vm4, %v1593_v38, %v1594_v63  ;;  %v2562_v19 = vunpack.c.l.b16 %v2434_v5  ;;  %v2237_v63 = vpop.f32.mrf.mxu0 }
 0x31b   : > { %1883 = vrot.lane.b32.xlu1 %v12388_v4, %s11548_s23  ;;  %1946 = vrot.lane.b32.xlu0 %v12388_v4, %s11547_s22  ;;  %v3046_v10 = vrot.slane %v3044_v29, 1  ;;  %v12451_v17 = vsel %vm11631_vm2, 0, %v833_v12 }
 0x31c   : > { %v2621_v60 = vpack.c.b16 %v2563_v45, %v2562_v19  ;;  %v1311_v7 = vshll.u32 %v12451_v17, 16 }
 0x31d   : > { %v3047_v32 = vsel %vm1007_vm3, %v3042_v9, %v3046_v10  ;;  %v1597_v9 = vrot.slane %v1000_v51, 1 }
 0x31e   : > { %v2684_v27 = vshrl.u32 %v2621_v60, 16  ;;  %v2687_v56 = vshll.u32 %v2621_v60, 16 }
 0x31f   : > { %v1435_v26 = vpop.permute.xlu1 %1434 }
 0x320   : > { %v1725_v3 = vsel %vm1681_vm5, %v12201_v16, %v1435_v26  ;;  %v3387_v30 = vpop.permute.xlu2 %3386  ;;  %v3059_v26 = vsel %vm1007_vm3, %v3054_v61, %v3058_v18 }
 0x321   : > { %v3385_v50 = vpop.permute.xlu0 %3384  ;;  %v12416_v47 = vsel %vm1746_vm6, %v1725_v3, %v1660_v43  ;;  %v1309_v3 = vshrl.u32 %v12451_v17, 16  ;;  %v12469_v53 = vsel %vm3608_vm12, %v12266_v24, %v3387_v30 }
 0x322   : > { %1948 = vrot.lane.b32.xlu2 %v12416_v47, %s11547_s22  ;;  %v12426_v16 = vsel %vm3608_vm12, %v12212_v44, %v3385_v50  ;;  %v2686_v50 = vrot.slane %v2684_v27, 7  ;;  %v12495_v35 = vpop.f32.mrf.mxu0  ;;  %v417_v27 = vld [vmem:[%s11621_s19 + $0x1a8] sm:$0xff] }
 0x323   : > { %17301 = vst [vmem:[#allocation13_spill] sm:$0xff] %v12426_v16  ;;  %1440 = vrot.lane.b32.xlu1 %v1307_v46, %s11546_s21  ;;  %1663 = vrot.lane.b32.xlu0 %v1592_v41, %s11545_s20  ;;  %v1313_v46 = vrot.slane %v1311_v7, 1  ;;  %v1316_v41 = vshll.u32 %v1000_v51, 16  ;;  %v416_v51 = vld [vmem:[%s11621_s19 + $0x1a0] sm:$0xff] }
 0x324   : > { %4425 = vmatmul.bf16.gmra.mxu1 %v12426_v16  ;;  %9985 = vmatmul.msk.bf16.gmra.mxu0 %vm2119_vm11, %v2072_v6  ;;  %v2689_v6 = vor.u32 %v2687_v56, %v2686_v50  ;;  %v12493_v10 = vsel %vm11631_vm2, %v2686_v50, 0 }
 0x325   : > { %v1314_v22 = vor.u32 %v1313_v46, %v1309_v3  ;;  %v1318_v25 = vrot.slane %v1316_v41, 1  ;;  %17304 = vst [vmem:[#allocation16_spill] sm:$0xff] %v12493_v10  ;;  %v3068_v21 = vshll.u32 %v12493_v10, 16 }
 0x326   : > { %v12481_v5 = vsel %vm11631_vm2, 0, %v2689_v6 }
 0x327   : > { %v1319_v29 = vsel %vm1007_vm3, %v1314_v22, %v1318_v25  ;;  %17303 = vst [vmem:[#allocation15_spill] sm:$0xff] %v12481_v5  ;;  %v3063_v12 = vshll.u32 %v12481_v5, 16  ;;  %v3061_v14 = vshrl.u32 %v12481_v5, 16 }
 0x329   : > { %v1880_v13 = vpop.permute.xlu0 %1879 }
 0x32a   : > { %1665 = vrot.lane.b32.xlu2 %v1595_v11, %s11545_s20  ;;  %v2009_v2 = vsel %vm1970_vm9, %v12205_v36, %v1880_v13  ;;  %v3070_v13 = vrot.slane %v3068_v21, 1  ;;  %v12507_v7 = vpop.f32.mrf.mxu0 }
 0x32b   : > { %3390 = vrot.lane.b32.xlu0 %v3047_v32, %s11551_s12  ;;  %v3065_v32 = vrot.slane %v3063_v12, 1 }
 0x32d   : > { %v3066_v60 = vor.u32 %v3065_v32, %v3061_v14  ;;  %v419_v32 = vld [vmem:[%s11621_s19 + $0x1b8] sm:$0xff] }
 0x32e   : > { %v483_v21 = vpack.c.bf16 %v419_v32, %v419_v32 }
 0x32f   : > { %v3071_v61 = vsel %vm1007_vm3, %v3066_v60, %v3070_v13  ;;  %v2233_v60 = vadd.f32 %v12166_v23, %v12438_v8  ;;  %v2238_v13 = vadd.f32 %v12166_v23, %v2237_v63 }
 0x331   : > { %v1945_v43 = vpop.permute.xlu1 %1944 }
 0x332   : > { %v2074_v48 = vsel %vm2036_vm10, %v2009_v2, %v1945_v43  ;;  %3392 = vrot.lane.b32.xlu2 %v3059_v26, %s11551_s12  ;;  %v1437_v36 = vpop.permute.xlu0 %1436  ;;  %v12509_v18 = vpop.f32.mrf.mxu0  ;;  %v480_v26 = vpack.c.bf16 %v416_v51, %v416_v51  ;;  %v481_v2 = vpack.c.bf16 %v417_v27, %v417_v27  ;;  %v611_v27 = vunpack.c.l.b16 %v483_v21 }
 0x333   : > { %1885 = vrot.lane.b32.xlu0 %v12416_v47, %s11548_s23  ;;  %v1727_v38 = vsel %vm1681_vm5, %v12249_v20, %v1437_v36  ;;  %v1596_v20 = vrot.slane %v12451_v17, 1 }
 0x334   : > { %4430 = vmatmul.bf16.gmra.mxu1 %v12469_v53  ;;  %9986 = vmatmul.msk.bf16.gmra.mxu0 %vm2119_vm11, %v2074_v48  ;;  %v608_v43 = vunpack.c.l.b16 %v480_v26  ;;  %v609_v3 = vunpack.c.l.b16 %v481_v2  ;;  %v2236_v26 = vadd.f32 %v12166_v23, %v12455_v54 }
 0x335   : > { %v1598_v45 = vsel %vm1520_vm4, %v1596_v20, %v1597_v9 }
 0x336   : > { %v646_v46 = vpack.c.b16 %v609_v3, %v608_v43  ;;  %v1882_v43 = vpop.permute.xlu2 %1881  ;;  %v2373_v3 = vmax.f32 %v2233_v60, 0.0 }
 0x338   : > { %v835_v41 = vshrl.u32 %v646_v46, 16  ;;  %v838_v50 = vshll.u32 %v646_v46, 16  ;;  %v2375_v46 = vmax.f32 %v2238_v13, 0.0 }
 0x339   : > { %v1662_v0 = vpop.permute.xlu1 %1661 }
 0x33a   : > { %v12477_v59 = vsel %vm1746_vm6, %v1727_v38, %v1662_v0  ;;  %v12513_v30 = vpop.f32.mrf.mxu0  ;;  %v837_v48 = vrot.slane %v835_v41, 7  ;;  %v2439_v8 = vpack.c.bf16 %v2375_v46, %v2375_v46 }
 0x33b   : > { %1887 = vrot.lane.b32.xlu2 %v12477_v59, %s11548_s23  ;;  %1950 = vrot.lane.b32.xlu1 %v12477_v59, %s11547_s22 }
 0x33c   : > { %1442 = vrot.lane.b32.xlu0 %v1319_v29, %s11546_s21  ;;  %v840_v56 = vor.u32 %v838_v50, %v837_v48  ;;  %v12524_v6 = vsel %vm11631_vm2, %v837_v48, 0  ;;  %v2374_v50 = vmax.f32 %v2236_v26, 0.0  ;;  %v421_v26 = vld [vmem:[%s11621_s19 + $0x1c8] sm:$0xff] }
 0x33d   : > { %v1328_v29 = vshll.u32 %v12524_v6, 16 }
 0x33e   : > { %v12519_v22 = vsel %vm11631_vm2, 0, %v840_v56  ;;  %v2437_v56 = vpack.c.bf16 %v2373_v3, %v2373_v3  ;;  %v2011_v3 = vsel %vm1970_vm9, %v12261_v33, %v1882_v43 }
 0x33f   : > { %v1323_v25 = vshll.u32 %v12519_v22, 16  ;;  %v1321_v38 = vshrl.u32 %v12519_v22, 16  ;;  %v1330_v9 = vrot.slane %v1328_v29, 1  ;;  %v2567_v29 = vunpack.c.l.b16 %v2439_v8 }
 0x340   : > { %v485_v8 = vpack.c.bf16 %v421_v26, %v421_v26 }
 0x341   : > { %v3389_v11 = vpop.permute.xlu1 %3388  ;;  %v1325_v0 = vrot.slane %v1323_v25, 1 }
 0x342   : > { %v12499_v19 = vsel %vm3608_vm12, %v12295_v57, %v3389_v11  ;;  %v12515_v36 = vpop.f32.mrf.mxu0  ;;  %v418_v11 = vld [vmem:[%s11621_s19 + $0x1b0] sm:$0xff] }
 0x343   : > { %1667 = vrot.lane.b32.xlu1 %v1598_v45, %s11545_s20  ;;  %v1326_v20 = vor.u32 %v1325_v0, %v1321_v38  ;;  %v482_v14 = vpack.c.bf16 %v418_v11, %v418_v11  ;;  %v2438_v38 = vpack.c.bf16 %v2374_v50, %v2374_v50  ;;  %v2565_v0 = vunpack.c.l.b16 %v2437_v56 }
 0x344   : > { %4435 = vmatmul.bf16.gmra.mxu1 %v12499_v19 }
 0x345   : > { %v1331_v12 = vsel %vm1007_vm3, %v1326_v20, %v1330_v9  ;;  %v610_v51 = vunpack.c.l.b16 %v482_v14  ;;  %v2566_v11 = vunpack.c.l.b16 %v2438_v38 }
 0x346   : > { %1444 = vrot.lane.b32.xlu2 %v1331_v12, %s11546_s21 }
 0x347   : > { %v647_v48 = vpack.c.b16 %v611_v27, %v610_v51  ;;  %v2623_v14 = vpack.c.b16 %v2567_v29, %v2566_v11  ;;  %v420_v27 = vld [vmem:[%s11621_s19 + $0x1c0] sm:$0xff] }
 0x348   : > { %v484_v56 = vpack.c.bf16 %v420_v27, %v420_v27 }
 0x349   : > { %v842_v63 = vshrl.u32 %v647_v48, 16  ;;  %v845_v12 = vshll.u32 %v647_v48, 16  ;;  %v2698_v13 = vshrl.u32 %v2623_v14, 16  ;;  %v2701_v43 = vshll.u32 %v2623_v14, 16 }
 0x34a   : > { %v12529_v45 = vpop.f32.mrf.mxu0  ;;  %v612_v29 = vunpack.c.l.b16 %v484_v56 }
 0x34b   : > { %3394 = vrot.lane.b32.xlu1 %v3071_v61, %s11551_s12  ;;  %v2231_v61 = vadd.f32 %v12166_v23, %v12399_v31  ;;  %v1439_v31 = vpop.permute.xlu2 %1438  ;;  %v844_v9 = vrot.slane %v842_v63, 7  ;;  %v2700_v63 = vrot.slane %v2698_v13, 7 }
 0x34c   : > { %v1729_v11 = vsel %vm1681_vm5, %v12350_v52, %v1439_v31  ;;  %v2243_v31 = vadd.f32 %v12166_v23, %v12507_v7 }
 0x34d   : > { %v2372_v41 = vmax.f32 %v2231_v61, 0.0  ;;  %v847_v21 = vor.u32 %v845_v12, %v844_v9  ;;  %v1002_v33 = vsel %vm11631_vm2, %v844_v9, 0 }
 0x34e   : > { %v1340_v26 = vshll.u32 %v1002_v33, 16 }
 0x34f   : > { %v2436_v25 = vpack.c.bf16 %v2372_v41, %v2372_v41  ;;  %v12553_v50 = vsel %vm11631_vm2, 0, %v847_v21  ;;  %v2703_v21 = vor.u32 %v2701_v43, %v2700_v63  ;;  %v1600_v43 = vrot.slane %v12524_v6, 1 }
 0x350   : > { %v1335_v38 = vshll.u32 %v12553_v50, 16  ;;  %v1333_v27 = vshrl.u32 %v12553_v50, 16 }
 0x351   : > { %v2564_v54 = vunpack.c.l.b16 %v2436_v25 }
 0x352   : > { %v12541_v2 = vpop.f32.mrf.mxu0 }
 0x353   : > { %v2622_v32 = vpack.c.b16 %v2565_v0, %v2564_v54  ;;  %v613_v54 = vunpack.c.l.b16 %v485_v8  ;;  %v2241_v8 = vadd.f32 %v12166_v23, %v12495_v35 }
 0x355   : > { %v2691_v60 = vshrl.u32 %v2622_v32, 16  ;;  %v2694_v0 = vshll.u32 %v2622_v32, 16 }
 0x357   : > { %v2693_v25 = vrot.slane %v2691_v60, 7  ;;  %v1337_v60 = vrot.slane %v1335_v38, 1  ;;  %v1342_v38 = vrot.slane %v1340_v26, 1 }
 0x359   : > { %v2696_v12 = vor.u32 %v2694_v0, %v2693_v25  ;;  %v1338_v7 = vor.u32 %v1337_v60, %v1333_v27  ;;  %v1599_v0 = vrot.slane %v12519_v22, 1  ;;  %v2376_v27 = vmax.f32 %v2241_v8, 0.0 }
 0x35a   : > { %v12543_v20 = vpop.f32.mrf.mxu0  ;;  %v12614_v8 = vsel %vm11631_vm2, %v2700_v63, 0 }
 0x35b   : > { %v12572_v52 = vsel %vm11631_vm2, 0, %v2696_v12  ;;  %v1343_v23 = vsel %vm1007_vm3, %v1338_v7, %v1342_v38  ;;  %v1601_v26 = vsel %vm1520_vm4, %v1599_v0, %v1600_v43  ;;  %17306 = vst [vmem:[#allocation18_spill] sm:$0xff] %v12614_v8  ;;  %v2440_v7 = vpack.c.bf16 %v2376_v27, %v2376_v27 }
 0x35c   : > { %v3092_v43 = vshll.u32 %v12614_v8, 16 }
 0x362   : > { %v12545_v61 = vpop.f32.mrf.mxu0 }
 0x37c   : > { %v1949_v51 = vpop.permute.xlu2 %1948 }
 0x384   : > { %v1666_v32 = vpop.permute.xlu2 %1665 }
 0x38d   : > { %v1884_v46 = vpop.permute.xlu1 %1883  ;;  %v1947_v41 = vpop.permute.xlu0 %1946 }
 0x38e   : > { %v2076_v48 = vsel %vm2036_vm10, %v2011_v3, %v1947_v41  ;;  %v12563_v41 = vpop.f32.mrf.mxu0 }
 0x38f   : > { %9987 = vmatmul.msk.bf16.gmra.mxu0 %vm2119_vm11, %v2076_v48  ;;  %v648_v48 = vpack.c.b16 %v613_v54, %v612_v29  ;;  %v1602_v29 = vrot.slane %v12553_v50, 1  ;;  %v1603_v54 = vrot.slane %v1002_v33, 1  ;;  %v12603_v33 = vsel %vm11631_vm2, %v2693_v25, 0 }
 0x390   : > { %17305 = vst [vmem:[#allocation17_spill] sm:$0xff] %v12603_v33  ;;  %v3080_v38 = vshll.u32 %v12603_v33, 16  ;;  %v426_v33 = vld [vmem:[%s11621_s19 + $0x1f0] sm:$0xff] }
 0x391   : > { %v849_v12 = vshrl.u32 %v648_v48, 16  ;;  %v1604_v6 = vsel %vm1520_vm4, %v1602_v29, %v1603_v54  ;;  %v490_v55 = vpack.c.bf16 %v426_v33, %v426_v33 }
 0x395   : > { %v1441_v3 = vpop.permute.xlu1 %1440  ;;  %v1664_v13 = vpop.permute.xlu0 %1663 }
 0x396   : > { %v1731_v9 = vsel %vm1681_vm5, %v12373_v49, %v1441_v3  ;;  %v12568_v14 = vsel %vm1746_vm6, %v1729_v11, %v1664_v13  ;;  %v12585_v49 = vsel %vm11631_vm2, 0, %v2703_v21  ;;  %v2377_v11 = vmax.f32 %v2243_v31, 0.0  ;;  %v12616_v25 = vpop.f32.mrf.mxu0 }
 0x397   : > { %1889 = vrot.lane.b32.xlu1 %v12568_v14, %s11548_s23  ;;  %1952 = vrot.lane.b32.xlu0 %v12568_v14, %s11547_s22  ;;  %v12581_v56 = vsel %vm1746_vm6, %v1731_v9, %v1666_v32  ;;  %v2013_v21 = vsel %vm1970_vm9, %v12289_v39, %v1884_v46  ;;  %v3075_v3 = vshll.u32 %v12572_v52, 16  ;;  %v3087_v35 = vshll.u32 %v12585_v49, 16 }
 0x398   : > { %1954 = vrot.lane.b32.xlu2 %v12581_v56, %s11547_s22  ;;  %v2078_v13 = vsel %vm2036_vm10, %v2013_v21, %v1949_v51  ;;  %v851_v46 = vrot.slane %v849_v12, 7  ;;  %v852_v32 = vshll.u32 %v648_v48, 16  ;;  %v2441_v9 = vpack.c.bf16 %v2377_v11, %v2377_v11 }
 0x399   : > { %v3077_v31 = vrot.slane %v3075_v3, 1  ;;  %v3089_v51 = vrot.slane %v3087_v35, 1  ;;  %v3073_v48 = vshrl.u32 %v12572_v52, 16  ;;  %v3085_v0 = vshrl.u32 %v12585_v49, 16 }
 0x39a   : > { %v854_v63 = vor.u32 %v852_v32, %v851_v46  ;;  %v2569_v29 = vunpack.c.l.b16 %v2441_v9  ;;  %v2568_v11 = vunpack.c.l.b16 %v2440_v7  ;;  %v3082_v21 = vrot.slane %v3080_v38, 1 }
 0x39b   : > { %v3078_v54 = vor.u32 %v3077_v31, %v3073_v48  ;;  %v3090_v12 = vor.u32 %v3089_v51, %v3085_v0  ;;  %v3094_v3 = vrot.slane %v3092_v43, 1  ;;  %v1003_v32 = vsel %vm11631_vm2, %v851_v46, 0  ;;  %v3393_v31 = vpop.permute.xlu2 %3392 }
 0x39c   : > { %v2624_v35 = vpack.c.b16 %v2569_v29, %v2568_v11  ;;  %v1352_v0 = vshll.u32 %v1003_v32, 16  ;;  %v12644_v29 = vsel %vm3608_vm12, %v12413_v15, %v3393_v31  ;;  %v427_v15 = vld [vmem:[%s11621_s19 + $0x1f8] sm:$0xff] }
 0x39d   : > { %v3391_v60 = vpop.permute.xlu0 %3390  ;;  %v3083_v27 = vsel %vm1007_vm3, %v3078_v54, %v3082_v21 }
 0x39e   : > { %v12608_v39 = vsel %vm3608_vm12, %v12392_v1, %v3391_v60  ;;  %v2705_v9 = vshrl.u32 %v2624_v35, 16  ;;  %v2708_v46 = vshll.u32 %v2624_v35, 16  ;;  %v1606_v35 = vrot.slane %v1003_v32, 1 }
 0x39f   : > { %9988 = vmatmul.msk.bf16.gmra.mxu0 %vm2119_vm11, %v2078_v13  ;;  %1446 = vrot.lane.b32.xlu1 %v1343_v23, %s11546_s21  ;;  %v12627_v23 = vsel %vm11631_vm2, 0, %v854_v63  ;;  %v12634_v13 = vpop.f32.mrf.mxu0 }
 0x3a0   : > { %1669 = vrot.lane.b32.xlu0 %v1601_v26, %s11545_s20  ;;  %4440 = vmatmul.bf16.gmra.mxu1 %v12608_v39  ;;  %v3095_v26 = vsel %vm1007_vm3, %v3090_v12, %v3094_v3  ;;  %v1345_v48 = vshrl.u32 %v12627_v23, 16  ;;  %v2707_v63 = vrot.slane %v2705_v9, 7  ;;  %v1354_v12 = vrot.slane %v1352_v0, 1 }
 0x3a1   : > { %1671 = vrot.lane.b32.xlu2 %v1604_v6, %s11545_s20  ;;  %v1347_v6 = vshll.u32 %v12627_v23, 16 }
 0x3a2   : > { %v2710_v21 = vor.u32 %v2708_v46, %v2707_v63 }
 0x3a3   : > { %v1349_v38 = vrot.slane %v1347_v6, 1 }
 0x3a4   : > { %v12660_v6 = vsel %vm11631_vm2, 0, %v2710_v21 }
 0x3a5   : > { %v1886_v60 = vpop.permute.xlu0 %1885  ;;  %v1350_v54 = vor.u32 %v1349_v38, %v1345_v48  ;;  %v3099_v9 = vshll.u32 %v12660_v6, 16  ;;  %v12674_v48 = vsel %vm11631_vm2, %v2707_v63, 0  ;;  %v3097_v32 = vshrl.u32 %v12660_v6, 16 }
 0x3a6   : > { %v2015_v51 = vsel %vm1970_vm9, %v12388_v4, %v1886_v60  ;;  %17307 = vst [vmem:[#allocation19_spill] sm:$0xff] %v12674_v48 }
 0x3a7   : > { %v12650_v11 = vpop.f32.mrf.mxu0  ;;  %v1355_v60 = vsel %vm1007_vm3, %v1350_v54, %v1354_v12  ;;  %v3101_v0 = vrot.slane %v3099_v9, 1 }
 0x3a8   : > { %3396 = vrot.lane.b32.xlu0 %v3083_v27, %s11551_s12 }
 0x3a9   : > { %3398 = vrot.lane.b32.xlu2 %v3095_v26, %s11551_s12 }
 0x3ad   : > { %v1951_v7 = vpop.permute.xlu1 %1950 }
 0x3ae   : > { %v2080_v43 = vsel %vm2036_vm10, %v2015_v51, %v1951_v7  ;;  %v1443_v4 = vpop.permute.xlu0 %1442 }
 0x3af   : > { %9989 = vmatmul.msk.bf16.gmra.mxu0 %vm2119_vm11, %v2080_v43  ;;  %v1733_v3 = vsel %vm1681_vm5, %v12451_v17, %v1443_v4  ;;  %v1605_v17 = vrot.slane %v12627_v23, 1  ;;  %v12669_v31 = vpop.f32.mrf.mxu0  ;;  %v3104_v43 = vshll.u32 %v12674_v48, 16  ;;  %v3102_v4 = vor.u32 %v3101_v0, %v3097_v32  ;;  %v1888_v48 = vpop.permute.xlu2 %1887 }
 0x3b0   : > { %1891 = vrot.lane.b32.xlu0 %v12581_v56, %s11548_s23  ;;  %4445 = vmatmul.bf16.gmra.mxu1 %v12644_v29 }
 0x3b1   : > { %v1607_v51 = vsel %vm1520_vm4, %v1605_v17, %v1606_v35  ;;  %v3106_v46 = vrot.slane %v3104_v43, 1 }
 0x3b3   : > { %v3107_v63 = vsel %vm1007_vm3, %v3102_v4, %v3106_v46 }
 0x3b5   : > { %v1668_v27 = vpop.permute.xlu1 %1667 }
 0x3b6   : > { %v12656_v26 = vsel %vm1746_vm6, %v1733_v3, %v1668_v27  ;;  %v422_v3 = vld [vmem:[%s11621_s19 + $0x1d0] sm:$0xff]  ;;  %v423_v27 = vld [vmem:[%s11621_s19 + $0x1d8] sm:$0xff] }
 0x3b7   : > { %1893 = vrot.lane.b32.xlu2 %v12656_v26, %s11548_s23  ;;  %1956 = vrot.lane.b32.xlu1 %v12656_v26, %s11547_s22  ;;  %v12684_v54 = vpop.f32.mrf.mxu0  ;;  %v487_v17 = vpack.c.bf16 %v423_v27, %v423_v27 }
 0x3b8   : > { %1448 = vrot.lane.b32.xlu0 %v1355_v60, %s11546_s21  ;;  %17308 = vst [vmem:[#allocation20_spill] sm:$0xff] %v12684_v54  ;;  %v486_v60 = vpack.c.bf16 %v422_v3, %v422_v3 }
 0x3b9   : > { %v615_v9 = vunpack.c.l.b16 %v487_v17  ;;  %v12710_v17 = vld [vmem:[%s17165_s2] ss:$0 sm:$0xff] }
 0x3ba   : > { %v614_v35 = vunpack.c.l.b16 %v486_v60 }
 0x3bd   : > { %v3395_v7 = vpop.permute.xlu1 %3394 }
 0x3be   : > { %v12678_v38 = vsel %vm3608_vm12, %v12481_v5, %v3395_v7 }
 0x3bf   : > { %1673 = vrot.lane.b32.xlu1 %v1607_v51, %s11545_s20  ;;  %v12688_v12 = vpop.f32.mrf.mxu0  ;;  %v649_v51 = vpack.c.b16 %v615_v9, %v614_v35 }
 0x3c0   : > { %4450 = vmatmul.bf16.gmra.mxu1 %v12678_v38  ;;  %17309 = vst [vmem:[#allocation21_spill] sm:$0xff] %v12688_v12 }
 0x3c1   : > { %v856_v7 = vshrl.u32 %v649_v51, 16  ;;  %v859_v43 = vshll.u32 %v649_v51, 16 }
 0x3c3   : > { %v858_v32 = vrot.slane %v856_v7, 7  ;;  %v2246_v7 = vadd.f32 %v12710_v17, %v12509_v18 }
 0x3c5   : > { %v861_v28 = vor.u32 %v859_v43, %v858_v32 }
 0x3c7   : > { %3400 = vrot.lane.b32.xlu1 %v3107_v63, %s11551_s12  ;;  %v12690_v21 = vpop.f32.mrf.mxu0  ;;  %v12698_v4 = vsel %vm11631_vm2, 0, %v861_v28  ;;  %v12703_v63 = vsel %vm11631_vm2, %v858_v32, 0  ;;  %v2248_v28 = vadd.f32 %v12710_v17, %v12513_v30 }
 0x3c8   : > { %v1359_v46 = vshll.u32 %v12698_v4, 16  ;;  %v1357_v3 = vshrl.u32 %v12698_v4, 16  ;;  %v1364_v60 = vshll.u32 %v12703_v63, 16 }
 0x3c9   : > { %v2379_v43 = vmax.f32 %v2248_v28, 0.0 }
 0x3ca   : > { %v1361_v27 = vrot.slane %v1359_v46, 1  ;;  %v1366_v9 = vrot.slane %v1364_v60, 1  ;;  %v2378_v46 = vmax.f32 %v2246_v7, 0.0 }
 0x3cb   : > { %v2443_v58 = vpack.c.bf16 %v2379_v43, %v2379_v43  ;;  %v618_v43 = vunpack.c.l.b16 %v490_v55  ;;  %v2017_v55 = vsel %vm1970_vm9, %v12416_v47, %v1888_v48 }
 0x3cc   : > { %v1362_v35 = vor.u32 %v1361_v27, %v1357_v3  ;;  %v2442_v8 = vpack.c.bf16 %v2378_v46, %v2378_v46  ;;  %v424_v3 = vld [vmem:[%s11621_s19 + $0x1e0] sm:$0xff]  ;;  %v425_v27 = vld [vmem:[%s11621_s19 + $0x1e8] sm:$0xff] }
 0x3cd   : > { %v2571_v30 = vunpack.c.l.b16 %v2443_v58  ;;  %v488_v10 = vpack.c.bf16 %v424_v3, %v424_v3  ;;  %v489_v37 = vpack.c.bf16 %v425_v27, %v425_v27 }
 0x3ce   : > { %v1367_v32 = vsel %vm1007_vm3, %v1362_v35, %v1366_v9  ;;  %v2570_v60 = vunpack.c.l.b16 %v2442_v8  ;;  %v491_v35 = vpack.c.bf16 %v427_v15, %v427_v15  ;;  %v1445_v9 = vpop.permute.xlu2 %1444  ;;  %v2253_v8 = vadd.f32 %v12710_v17, %v12529_v45 }
 0x3cf   : > { %v12694_v0 = vpop.f32.mrf.mxu0  ;;  %1450 = vrot.lane.b32.xlu2 %v1367_v32, %s11546_s21  ;;  %v616_v32 = vunpack.c.l.b16 %v488_v10  ;;  %v617_v28 = vunpack.c.l.b16 %v489_v37  ;;  %v2251_v37 = vadd.f32 %v12710_v17, %v12515_v36 }
 0x3d0   : > { %v2625_v18 = vpack.c.b16 %v2571_v30, %v2570_v60  ;;  %v619_v46 = vunpack.c.l.b16 %v491_v35  ;;  %v2381_v60 = vmax.f32 %v2253_v8, 0.0 }
 0x3d1   : > { %v650_v24 = vpack.c.b16 %v617_v28, %v616_v32 }
 0x3d2   : > { %v2712_v7 = vshrl.u32 %v2625_v18, 16  ;;  %v651_v1 = vpack.c.b16 %v619_v46, %v618_v43  ;;  %v2715_v54 = vshll.u32 %v2625_v18, 16  ;;  %v2445_v43 = vpack.c.bf16 %v2381_v60, %v2381_v60 }
 0x3d3   : > { %v863_v3 = vshrl.u32 %v650_v24, 16  ;;  %v866_v45 = vshll.u32 %v650_v24, 16  ;;  %v2258_v24 = vadd.f32 %v12710_v17, %v12543_v20 }
 0x3d4   : > { %v2714_v58 = vrot.slane %v2712_v7, 7  ;;  %v870_v15 = vshrl.u32 %v651_v1, 16  ;;  %v873_v36 = vshll.u32 %v651_v1, 16  ;;  %v2380_v7 = vmax.f32 %v2251_v37, 0.0 }
 0x3d5   : > { %v865_v32 = vrot.slane %v863_v3, 7  ;;  %v1735_v3 = vsel %vm1681_vm5, %v12519_v22, %v1445_v9  ;;  %v2573_v37 = vunpack.c.l.b16 %v2445_v43  ;;  %v2256_v22 = vadd.f32 %v12710_v17, %v12541_v2 }
 0x3d6   : > { %v2717_v27 = vor.u32 %v2715_v54, %v2714_v58  ;;  %v872_v28 = vrot.slane %v870_v15, 7  ;;  %v12746_v47 = vsel %vm11631_vm2, %v2714_v58, 0  ;;  %v1609_v2 = vrot.slane %v12703_v63, 1 }
 0x3d7   : > { %v12714_v51 = vpop.f32.mrf.mxu0  ;;  %17310 = vst [vmem:[#allocation22_spill] sm:$0xff] %v12746_v47  ;;  %v868_v46 = vor.u32 %v866_v45, %v865_v32  ;;  %v3116_v1 = vshll.u32 %v12746_v47, 16  ;;  %v1005_v43 = vsel %vm11631_vm2, %v865_v32, 0  ;;  %v2382_v47 = vmax.f32 %v2256_v22, 0.0 }
 0x3d8   : > { %v12741_v54 = vsel %vm11631_vm2, 0, %v2717_v27  ;;  %v875_v8 = vor.u32 %v873_v36, %v872_v28  ;;  %v2444_v27 = vpack.c.bf16 %v2380_v7, %v2380_v7  ;;  %v1608_v7 = vrot.slane %v12698_v4, 1 }
 0x3d9   : > { %v3111_v48 = vshll.u32 %v12741_v54, 16  ;;  %v12760_v45 = vsel %vm11631_vm2, 0, %v868_v46  ;;  %v12792_v32 = vsel %vm11631_vm2, %v872_v28, 0  ;;  %v2446_v22 = vpack.c.bf16 %v2382_v47, %v2382_v47 }
 0x3da   : > { %v12772_v36 = vsel %vm11631_vm2, 0, %v875_v8  ;;  %v1371_v46 = vshll.u32 %v12760_v45, 16  ;;  %v1611_v8 = vrot.slane %v12760_v45, 1  ;;  %v1610_v16 = vsel %vm1520_vm4, %v1608_v7, %v1609_v2 }
 0x3db   : > { %v1369_v62 = vshrl.u32 %v12760_v45, 16  ;;  %v1388_v28 = vshll.u32 %v12792_v32, 16  ;;  %v2261_v7 = vadd.f32 %v12710_v17, %v12545_v61 }
 0x3dc   : > { %v1373_v40 = vrot.slane %v1371_v46, 1 }
 0x3df   : > { %v12720_v42 = vpop.f32.mrf.mxu0 }
 0x3e7   : > { %v12726_v5 = vpop.f32.mrf.mxu0 }
 0x3ef   : > { %v12736_v35 = vpop.f32.mrf.mxu0 }
 0x3f2   : > { %v12730_v30 = vpop.permute.xlu2 %1954 }
 0x409   : > { %v1890_v10 = vpop.permute.xlu1 %1889  ;;  %v1953_v33 = vpop.permute.xlu0 %1952 }
 0x40a   : > { %v2082_v18 = vsel %vm2036_vm10, %v2017_v55, %v1953_v33  ;;  %v1672_v55 = vpop.permute.xlu2 %1671 }
 0x40b   : > { %9990 = vmatmul.msk.bf16.gmra.mxu0 %vm2119_vm11, %v2082_v18  ;;  %v3113_v18 = vrot.slane %v3111_v48, 1  ;;  %v3109_v48 = vshrl.u32 %v12741_v54, 16 }
 0x40c   : > { %v12754_v33 = vpop.f32.mrf.mxu0 }
 0x40d   : > { %v3114_v63 = vor.u32 %v3113_v18, %v3109_v48  ;;  %v1390_v48 = vrot.slane %v1388_v28, 1 }
 0x411   : > { %v1447_v15 = vpop.permute.xlu1 %1446 }
 0x412   : > { %v1737_v58 = vsel %vm1681_vm5, %v12553_v50, %v1447_v15  ;;  %v1670_v60 = vpop.permute.xlu0 %1669  ;;  %v2383_v50 = vmax.f32 %v2258_v24, 0.0  ;;  %v1612_v24 = vrot.slane %v1005_v43, 1  ;;  %v2019_v15 = vsel %vm1970_vm9, %v12477_v59, %v1890_v10  ;;  %v3399_v28 = vpop.permute.xlu2 %3398 }
 0x413   : > { %v12765_v20 = vsel %vm1746_vm6, %v1735_v3, %v1670_v60  ;;  %v12768_v9 = vsel %vm1746_vm6, %v1737_v58, %v1672_v55  ;;  %v2572_v3 = vunpack.c.l.b16 %v2444_v27  ;;  %v1383_v55 = vshll.u32 %v12772_v36, 16 }
 0x414   : > { %1895 = vrot.lane.b32.xlu1 %v12765_v20, %s11548_s23  ;;  %1958 = vrot.lane.b32.xlu0 %v12765_v20, %s11547_s22  ;;  %v3118_v58 = vrot.slane %v3116_v1, 1  ;;  %v2447_v12 = vpack.c.bf16 %v2383_v50, %v2383_v50  ;;  %v1376_v27 = vshll.u32 %v1005_v43, 16  ;;  %v1613_v57 = vsel %vm1520_vm4, %v1611_v8, %v1612_v24  ;;  %v12808_v50 = vpop.f32.mrf.mxu0 }
 0x415   : > { %1960 = vrot.lane.b32.xlu2 %v12768_v9, %s11547_s22  ;;  %v2626_v60 = vpack.c.b16 %v2573_v37, %v2572_v3  ;;  %v2084_v59 = vsel %vm2036_vm10, %v2019_v15, %v12730_v30  ;;  %v1381_v10 = vshrl.u32 %v12772_v36, 16  ;;  %v1385_v1 = vrot.slane %v1383_v55, 1 }
 0x416   : > { %v2263_v37 = vadd.f32 %v12710_v17, %v12563_v41  ;;  %v3119_v30 = vsel %vm1007_vm3, %v3114_v63, %v3118_v58  ;;  %v1374_v41 = vor.u32 %v1373_v40, %v1369_v62  ;;  %v1378_v2 = vrot.slane %v1376_v27, 1 }
 0x417   : > { %v2575_v43 = vunpack.c.l.b16 %v2447_v12  ;;  %v1386_v47 = vor.u32 %v1385_v1, %v1381_v10  ;;  %v2574_v8 = vunpack.c.l.b16 %v2446_v22  ;;  %v2268_v40 = vadd.f32 %v12710_v17, %v12634_v13 }
 0x418   : > { %v2385_v46 = vmax.f32 %v2263_v37, 0.0  ;;  %v1379_v24 = vsel %vm1007_vm3, %v1374_v41, %v1378_v2  ;;  %v2722_v62 = vshll.u32 %v2626_v60, 16  ;;  %v2266_v12 = vadd.f32 %v12710_v17, %v12616_v25 }
 0x419   : > { %v2627_v55 = vpack.c.b16 %v2575_v43, %v2574_v8  ;;  %v1391_v15 = vsel %vm1007_vm3, %v1386_v47, %v1390_v48  ;;  %v2387_v1 = vmax.f32 %v2268_v40, 0.0  ;;  %v12836_v43 = vsel %vm3608_vm12, %v12585_v49, %v3399_v28 }
 0x41a   : > { %v3397_v44 = vpop.permute.xlu0 %3396  ;;  %v2449_v61 = vpack.c.bf16 %v2385_v46, %v2385_v46  ;;  %v2386_v22 = vmax.f32 %v2266_v12, 0.0  ;;  %v2286_v46 = vadd.f32 %v12710_v17, %v12714_v51  ;;  %v1614_v8 = vrot.slane %v12772_v36, 1 }
 0x41b   : > { %9991 = vmatmul.msk.bf16.gmra.mxu0 %vm2119_vm11, %v2084_v59  ;;  %v12806_v18 = vsel %vm3608_vm12, %v12572_v52, %v3397_v44  ;;  %v2719_v44 = vshrl.u32 %v2626_v60, 16  ;;  %v2726_v27 = vshrl.u32 %v2627_v55, 16  ;;  %v2451_v2 = vpack.c.bf16 %v2387_v1, %v2387_v1 }
 0x41c   : > { %1675 = vrot.lane.b32.xlu0 %v1610_v16, %s11545_s20  ;;  %4455 = vmatmul.bf16.gmra.mxu1 %v12806_v18  ;;  %v2384_v16 = vmax.f32 %v2261_v7, 0.0  ;;  %v2300_v59 = vpop.f32.mrf.mxu0  ;;  %v2577_v10 = vunpack.c.l.b16 %v2449_v61  ;;  %v2450_v48 = vpack.c.bf16 %v2386_v22, %v2386_v22 }
 0x41d   : > { %3402 = vrot.lane.b32.xlu2 %v3119_v30, %s11551_s12  ;;  %1677 = vrot.lane.b32.xlu1 %v1613_v57, %s11545_s20  ;;  %v2721_v3 = vrot.slane %v2719_v44, 7  ;;  %v2728_v7 = vrot.slane %v2726_v27, 7  ;;  %v2288_v44 = vadd.f32 %v12710_v17, %v12720_v42  ;;  %v1615_v42 = vrot.slane %v12792_v32, 1 }
 0x41e   : > { %v2448_v57 = vpack.c.bf16 %v2384_v16, %v2384_v16  ;;  %v2579_v61 = vunpack.c.l.b16 %v2451_v2 }
 0x41f   : > { %v2724_v58 = vor.u32 %v2722_v62, %v2721_v3  ;;  %v12852_v51 = vsel %vm11631_vm2, %v2721_v3, 0 }
 0x420   : > { %v2576_v37 = vunpack.c.l.b16 %v2448_v57  ;;  %v2394_v57 = vmax.f32 %v2286_v46, 0.0  ;;  %v3128_v22 = vshll.u32 %v12852_v51, 16 }
 0x421   : > { %v12829_v30 = vsel %vm11631_vm2, 0, %v2724_v58  ;;  %v1616_v58 = vsel %vm1520_vm4, %v1614_v8, %v1615_v42 }
 0x422   : > { %v1892_v63 = vpop.permute.xlu0 %1891  ;;  %v2628_v41 = vpack.c.b16 %v2577_v10, %v2576_v37  ;;  %v3121_v3 = vshrl.u32 %v12829_v30, 16  ;;  %v3130_v8 = vrot.slane %v3128_v22, 1 }
 0x423   : > { %v2021_v13 = vsel %vm1970_vm9, %v12568_v14, %v1892_v63  ;;  %v2729_v14 = vshll.u32 %v2627_v55, 16  ;;  %v2395_v55 = vmax.f32 %v2288_v44, 0.0  ;;  %v2578_v63 = vunpack.c.l.b16 %v2450_v48 }
 0x424   : > { %1452 = vrot.lane.b32.xlu0 %v1379_v24, %s11546_s21  ;;  %v3123_v24 = vshll.u32 %v12829_v30, 16  ;;  %v2302_v62 = vpop.f32.mrf.mxu0 }
 0x425   : > { %1454 = vrot.lane.b32.xlu2 %v1391_v15, %s11546_s21  ;;  %v2731_v16 = vor.u32 %v2729_v14, %v2728_v7  ;;  %v2733_v15 = vshrl.u32 %v2628_v41, 16  ;;  %v2459_v28 = vpack.c.bf16 %v2395_v55, %v2395_v55  ;;  %v2303_v37 = vadd.f32 %v12710_v17, %v2302_v62 }
 0x426   : > { %v3125_v10 = vrot.slane %v3123_v24, 1 }
 0x427   : > { %v12856_v32 = vsel %vm11631_vm2, 0, %v2731_v16  ;;  %v2735_v1 = vrot.slane %v2733_v15, 7  ;;  %v2587_v48 = vunpack.c.l.b16 %v2459_v28  ;;  %v2401_v46 = vmax.f32 %v2303_v37, 0.0 }
 0x428   : > { %v3126_v2 = vor.u32 %v3125_v10, %v3121_v3  ;;  %v3135_v44 = vshll.u32 %v12856_v32, 16  ;;  %v12873_v15 = vsel %vm11631_vm2, %v2728_v7, 0  ;;  %v3133_v7 = vshrl.u32 %v12856_v32, 16 }
 0x429   : > { %v1957_v60 = vpop.permute.xlu1 %1956 }
 0x42a   : > { %v2086_v25 = vsel %vm2036_vm10, %v2021_v13, %v1957_v60  ;;  %v1449_v47 = vpop.permute.xlu0 %1448  ;;  %v2736_v13 = vshll.u32 %v2628_v41, 16  ;;  %v2458_v60 = vpack.c.bf16 %v2394_v57, %v2394_v57  ;;  %v3140_v57 = vshll.u32 %v12873_v15, 16 }
 0x42b   : > { %9992 = vmatmul.msk.bf16.gmra.mxu0 %vm2119_vm11, %v2086_v25  ;;  %v1739_v40 = vsel %vm1681_vm5, %v12627_v23, %v1449_v47  ;;  %v2629_v23 = vpack.c.b16 %v2579_v61, %v2578_v63  ;;  %v2301_v25 = vadd.f32 %v12710_v17, %v2300_v59  ;;  %v3131_v59 = vsel %vm1007_vm3, %v3126_v2, %v3130_v8 }
 0x42c   : > { %1897 = vrot.lane.b32.xlu0 %v12768_v9, %s11548_s23  ;;  %4460 = vmatmul.bf16.gmra.mxu1 %v12836_v43  ;;  %v2738_v14 = vor.u32 %v2736_v13, %v2735_v1  ;;  %v2586_v42 = vunpack.c.l.b16 %v2458_v60  ;;  %v3137_v61 = vrot.slane %v3135_v44, 1  ;;  %v2465_v63 = vpack.c.bf16 %v2401_v46, %v2401_v46 }
 0x42d   : > { %v2740_v47 = vshrl.u32 %v2629_v23, 16  ;;  %v2400_v16 = vmax.f32 %v2301_v25, 0.0  ;;  %v3142_v13 = vrot.slane %v3140_v57, 1  ;;  %v12891_v25 = vsel %vm11631_vm2, %v2735_v1, 0 }
 0x42e   : > { %v12882_v55 = vsel %vm11631_vm2, 0, %v2738_v14  ;;  %v2633_v62 = vpack.c.b16 %v2587_v48, %v2586_v42  ;;  %v3138_v10 = vor.u32 %v3137_v61, %v3133_v7  ;;  %v2593_v22 = vunpack.c.l.b16 %v2465_v63 }
 0x42f   : > { %v3147_v28 = vshll.u32 %v12882_v55, 16  ;;  %v3145_v48 = vshrl.u32 %v12882_v55, 16  ;;  %v3152_v46 = vshll.u32 %v12891_v25, 16 }
 0x430   : > { %v2768_v3 = vshrl.u32 %v2633_v62, 16  ;;  %v3143_v2 = vsel %vm1007_vm3, %v3138_v10, %v3142_v13  ;;  %v2771_v8 = vshll.u32 %v2633_v62, 16 }
 0x431   : > { %v1674_v12 = vpop.permute.xlu1 %1673  ;;  %v3149_v44 = vrot.slane %v3147_v28, 1 }
 0x432   : > { %v12859_v27 = vsel %vm1746_vm6, %v1739_v40, %v1674_v12  ;;  %v2742_v40 = vrot.slane %v2740_v47, 7  ;;  %v2743_v12 = vshll.u32 %v2629_v23, 16  ;;  %v2770_v23 = vrot.slane %v2768_v3, 7 }
 0x433   : > { %1899 = vrot.lane.b32.xlu2 %v12859_v27, %s11548_s23  ;;  %1962 = vrot.lane.b32.xlu1 %v12859_v27, %s11547_s22  ;;  %v3150_v42 = vor.u32 %v3149_v44, %v3145_v48 }
 0x434   : > { %1679 = vrot.lane.b32.xlu0 %v1616_v58, %s11545_s20  ;;  %v2464_v58 = vpack.c.bf16 %v2400_v16, %v2400_v16  ;;  %v2745_v37 = vor.u32 %v2743_v12, %v2742_v40  ;;  %v2773_v16 = vor.u32 %v2771_v8, %v2770_v23  ;;  %v12904_v61 = vsel %vm11631_vm2, %v2742_v40, 0 }
 0x436   : > { %v2592_v60 = vunpack.c.l.b16 %v2464_v58  ;;  %v12896_v14 = vsel %vm11631_vm2, 0, %v2745_v37  ;;  %v12909_v57 = vsel %vm11631_vm2, 0, %v2773_v16  ;;  %v3164_v58 = vshll.u32 %v12904_v61, 16 }
 0x437   : > { %v3159_v1 = vshll.u32 %v12896_v14, 16  ;;  %17311 = vst [vmem:[#allocation23_spill] sm:$0xff] %v12909_v57  ;;  %v3157_v62 = vshrl.u32 %v12896_v14, 16  ;;  %v3207_v37 = vshll.u32 %v12909_v57, 16  ;;  %v3205_v44 = vshrl.u32 %v12909_v57, 16 }
 0x438   : > { %v2636_v47 = vpack.c.b16 %v2593_v22, %v2592_v60  ;;  %v3166_v3 = vrot.slane %v3164_v58, 1  ;;  %v12917_v22 = vsel %vm11631_vm2, %v2770_v23, 0 }
 0x439   : > { %v3401_v24 = vpop.permute.xlu1 %3400  ;;  %v3161_v7 = vrot.slane %v3159_v1, 1  ;;  %17312 = vst [vmem:[#allocation24_spill] sm:$0xff] %v12917_v22  ;;  %v3209_v60 = vrot.slane %v3207_v37, 1 }
 0x43a   : > { %v12877_v41 = vsel %vm3608_vm12, %v12660_v6, %v3401_v24  ;;  %v2789_v24 = vshrl.u32 %v2636_v47, 16  ;;  %v2792_v10 = vshll.u32 %v2636_v47, 16  ;;  %v3212_v47 = vshll.u32 %v12917_v22, 16 }
 0x43b   : > { %3404 = vrot.lane.b32.xlu1 %v3131_v59, %s11551_s12  ;;  %v3154_v59 = vrot.slane %v3152_v46, 1  ;;  %v3162_v28 = vor.u32 %v3161_v7, %v3157_v62  ;;  %v3210_v48 = vor.u32 %v3209_v60, %v3205_v44  ;;  %v2293_v44 = vadd.f32 %v12710_v17, %v12736_v35 }
 0x43c   : > { %4465 = vmatmul.bf16.gmra.mxu1 %v12877_v41  ;;  %v2791_v12 = vrot.slane %v2789_v24, 7  ;;  %v3214_v8 = vrot.slane %v3212_v47, 1 }
 0x43d   : > { %v3155_v63 = vsel %vm1007_vm3, %v3150_v42, %v3154_v59  ;;  %v3167_v13 = vsel %vm1007_vm3, %v3162_v28, %v3166_v3  ;;  %v1894_v59 = vpop.permute.xlu2 %1893  ;;  %v2271_v28 = vadd.f32 %v12710_v17, %v12650_v11  ;;  %v2397_v11 = vmax.f32 %v2293_v44, 0.0 }
 0x43e   : > { %v2794_v40 = vor.u32 %v2792_v10, %v2791_v12  ;;  %v12930_v23 = vsel %vm11631_vm2, %v2791_v12, 0  ;;  %v3215_v42 = vsel %vm1007_vm3, %v3210_v48, %v3214_v8  ;;  %v2273_v12 = vadd.f32 %v12710_v17, %v12669_v31 }
 0x43f   : > { %17314 = vst [vmem:[#allocation26_spill] sm:$0xff] %v12930_v23  ;;  %v3248_v24 = vshll.u32 %v12930_v23, 16  ;;  %v2388_v3 = vmax.f32 %v2271_v28, 0.0  ;;  %v2291_v31 = vadd.f32 %v12710_v17, %v12726_v5  ;;  %v2461_v35 = vpack.c.bf16 %v2397_v11, %v2397_v11 }
 0x440   : > { %v2389_v37 = vmax.f32 %v2273_v12, 0.0  ;;  %v2023_v44 = vsel %vm1970_vm9, %v12581_v56, %v1894_v59 }
 0x441   : > { %v3250_v7 = vrot.slane %v3248_v24, 1  ;;  %v2452_v48 = vpack.c.bf16 %v2388_v3, %v2388_v3 }
 0x442   : > { %v2453_v60 = vpack.c.bf16 %v2389_v37, %v2389_v37  ;;  %v2589_v37 = vunpack.c.l.b16 %v2461_v35  ;;  %v2296_v35 = vadd.f32 %v12710_v17, %v12754_v33 }
 0x443   : > { %3406 = vrot.lane.b32.xlu1 %v3143_v2, %s11551_s12  ;;  %v12922_v2 = vsel %vm11631_vm2, 0, %v2794_v40  ;;  %v2305_v40 = vpop.f32.mrf.mxu0  ;;  %v2580_v8 = vunpack.c.l.b16 %v2452_v48 }
 0x444   : > { %17313 = vst [vmem:[#allocation25_spill] sm:$0xff] %v12922_v2  ;;  %v3243_v46 = vshll.u32 %v12922_v2, 16  ;;  %v3241_v16 = vshrl.u32 %v12922_v2, 16  ;;  %v2306_v28 = vadd.f32 %v12710_v17, %v2305_v40 }
 0x445   : > { %v1451_v58 = vpop.permute.xlu2 %1450 }
 0x446   : > { %v3245_v1 = vrot.slane %v3243_v46, 1  ;;  %v2581_v46 = vunpack.c.l.b16 %v2453_v60 }
 0x448   : > { %v2630_v24 = vpack.c.b16 %v2581_v46, %v2580_v8  ;;  %v2298_v8 = vadd.f32 %v12710_v17, %v12808_v50 }
 0x44a   : > { %v2747_v5 = vshrl.u32 %v2630_v24, 16 }
 0x44b   : > { %3408 = vrot.lane.b32.xlu1 %v3155_v63, %s11551_s12  ;;  %v3246_v63 = vor.u32 %v3245_v1, %v3241_v16  ;;  %v2307_v1 = vpop.f32.mrf.mxu0  ;;  %v2283_v16 = vadd.f32 %v12710_v17, %v12694_v0 }
 0x44d   : > { %v3251_v62 = vsel %vm1007_vm3, %v3246_v63, %v3250_v7  ;;  %v2281_v63 = vadd.f32 %v12710_v17, %v12690_v21  ;;  %v2308_v7 = vadd.f32 %v12710_v17, %v2307_v1  ;;  %v2393_v12 = vmax.f32 %v2283_v16, 0.0 }
 0x44e   : > { %v2749_v21 = vrot.slane %v2747_v5, 7  ;;  %v2750_v16 = vshll.u32 %v2630_v24, 16 }
 0x44f   : > { %v2392_v3 = vmax.f32 %v2281_v63, 0.0  ;;  %v2457_v48 = vpack.c.bf16 %v2393_v12, %v2393_v12  ;;  %v1741_v12 = vsel %vm1681_vm5, %v12698_v4, %v1451_v58 }
 0x450   : > { %v2752_v63 = vor.u32 %v2750_v16, %v2749_v21 }
 0x451   : > { %v2585_v56 = vunpack.c.l.b16 %v2457_v48 }
 0x452   : > { %v12974_v33 = vsel %vm11631_vm2, 0, %v2752_v63 }
 0x453   : > { %3410 = vrot.lane.b32.xlu1 %v3167_v13, %s11551_s12 }
 0x45b   : > { %3418 = vrot.lane.b32.xlu1 %v3215_v42, %s11551_s12  ;;  %v2396_v42 = vmax.f32 %v2291_v31, 0.0  ;;  %v2402_v31 = vmax.f32 %v2306_v28, 0.0 }
 0x45d   : > { %v2466_v59 = vpack.c.bf16 %v2402_v31, %v2402_v31 }
 0x463   : > { %3424 = vrot.lane.b32.xlu1 %v3251_v62, %s11551_s12  ;;  %v2460_v62 = vpack.c.bf16 %v2396_v42, %v2396_v42  ;;  %v2456_v42 = vpack.c.bf16 %v2392_v3, %v2392_v3  ;;  %v2594_v3 = vunpack.c.l.b16 %v2466_v59 }
 0x465   : > { %v2588_v60 = vunpack.c.l.b16 %v2460_v62  ;;  %v2399_v62 = vmax.f32 %v2298_v8, 0.0  ;;  %v2584_v28 = vunpack.c.l.b16 %v2456_v42 }
 0x467   : > { %v2634_v11 = vpack.c.b16 %v2589_v37, %v2588_v60  ;;  %v2398_v37 = vmax.f32 %v2296_v35, 0.0 }
 0x469   : > { %v2778_v31 = vshll.u32 %v2634_v11, 16 }
 0x46f   : > { %v12938_v10 = vpop.permute.xlu2 %1960 }
 0x477   : > { %v3403_v13 = vpop.permute.xlu2 %3402 }
 0x478   : > { %v12948_v47 = vsel %vm3608_vm12, %v12741_v54, %v3403_v13  ;;  %v2403_v13 = vmax.f32 %v2308_v7, 0.0  ;;  %v2775_v7 = vshrl.u32 %v2634_v11, 16  ;;  %v12987_v11 = vsel %vm11631_vm2, %v2749_v21, 0 }
 0x479   : > { %4470 = vmatmul.bf16.gmra.mxu1 %v12948_v47 }
 0x47a   : > { %v2467_v1 = vpack.c.bf16 %v2403_v13, %v2403_v13  ;;  %v2777_v13 = vrot.slane %v2775_v7, 7 }
 0x47c   : > { %v2595_v5 = vunpack.c.l.b16 %v2467_v1  ;;  %v3171_v1 = vshll.u32 %v12974_v33, 16  ;;  %v2780_v16 = vor.u32 %v2778_v31, %v2777_v13  ;;  %v3176_v31 = vshll.u32 %v12987_v11, 16 }
 0x47e   : > { %v2637_v58 = vpack.c.b16 %v2595_v5, %v2594_v3 }
 0x480   : > { %v2796_v63 = vshrl.u32 %v2637_v58, 16 }
 0x486   : > { %v1959_v0 = vpop.permute.xlu0 %1958  ;;  %v1896_v50 = vpop.permute.xlu1 %1895 }
 0x487   : > { %v2088_v46 = vsel %vm2036_vm10, %v2023_v44, %v1959_v0  ;;  %v2632_v44 = vpack.c.b16 %v2585_v56, %v2584_v28  ;;  %v2463_v0 = vpack.c.bf16 %v2399_v62, %v2399_v62  ;;  %v2025_v56 = vsel %vm1970_vm9, %v12656_v26, %v1896_v50 }
 0x488   : > { %9993 = vmatmul.msk.bf16.gmra.mxu0 %vm2119_vm11, %v2088_v46  ;;  %v2310_v40 = vpop.f32.mrf.mxu0  ;;  %v2462_v46 = vpack.c.bf16 %v2398_v37, %v2398_v37  ;;  %v2090_v37 = vsel %vm2036_vm10, %v2025_v56, %v12938_v10  ;;  %v12995_v26 = vsel %vm11631_vm2, 0, %v2780_v16  ;;  %v3169_v10 = vshrl.u32 %v12974_v33, 16 }
 0x489   : > { %v2311_v8 = vadd.f32 %v12710_v17, %v2310_v40  ;;  %v2761_v42 = vshrl.u32 %v2632_v44, 16  ;;  %v2591_v35 = vunpack.c.l.b16 %v2463_v0 }
 0x48a   : > { %v2590_v62 = vunpack.c.l.b16 %v2462_v46 }
 0x48b   : > { %v2763_v5 = vrot.slane %v2761_v42, 7 }
 0x48c   : > { %v2635_v50 = vpack.c.b16 %v2591_v35, %v2590_v62 }
 0x48e   : > { %v1676_v60 = vpop.permute.xlu0 %1675  ;;  %v2782_v16 = vshrl.u32 %v2635_v50, 16 }
 0x48f   : > { %v12970_v24 = vsel %vm1746_vm6, %v1741_v12, %v1676_v60  ;;  %v1678_v7 = vpop.permute.xlu1 %1677  ;;  %v2404_v12 = vmax.f32 %v2311_v8, 0.0  ;;  %v3173_v60 = vrot.slane %v3171_v1, 1  ;;  %v2799_v8 = vshll.u32 %v2637_v58, 16 }
 0x490   : > { %1901 = vrot.lane.b32.xlu2 %v12970_v24, %s11548_s23  ;;  %1964 = vrot.lane.b32.xlu0 %v12970_v24, %s11547_s22  ;;  %v2312_v4 = vpop.f32.mrf.mxu0  ;;  %v3219_v1 = vshll.u32 %v12995_v26, 16 }
 0x491   : > { %v2313_v48 = vadd.f32 %v12710_v17, %v2312_v4  ;;  %v2764_v4 = vshll.u32 %v2632_v44, 16  ;;  %v3174_v35 = vor.u32 %v3173_v60, %v3169_v10  ;;  %v13025_v10 = vpop.f32.mrf.mxu1 }
 0x492   : > { %v3221_v58 = vrot.slane %v3219_v1, 1  ;;  %17317 = vst [vmem:[#allocation29_spill] sm:$0xff] %v13025_v10 }
 0x493   : > { %v2405_v59 = vmax.f32 %v2313_v48, 0.0  ;;  %v2798_v48 = vrot.slane %v2796_v63, 7  ;;  %v2766_v46 = vor.u32 %v2764_v4, %v2763_v5 }
 0x495   : > { %v2469_v3 = vpack.c.bf16 %v2405_v59, %v2405_v59  ;;  %v2801_v56 = vor.u32 %v2799_v8, %v2798_v48  ;;  %v13011_v62 = vsel %vm11631_vm2, 0, %v2766_v46  ;;  %v1455_v8 = vpop.permute.xlu2 %1454 }
 0x496   : > { %v1453_v28 = vpop.permute.xlu0 %1452  ;;  %17315 = vst [vmem:[#allocation27_spill] sm:$0xff] %v13011_v62  ;;  %v3195_v46 = vshll.u32 %v13011_v62, 16 }
 0x497   : > { %v1743_v40 = vsel %vm1681_vm5, %v12760_v45, %v1453_v28  ;;  %v2468_v45 = vpack.c.bf16 %v2404_v12, %v2404_v12  ;;  %v2597_v44 = vunpack.c.l.b16 %v2469_v3  ;;  %v13015_v28 = vsel %vm11631_vm2, %v2777_v13, 0 }
 0x498   : > { %9994 = vmatmul.msk.bf16.gmra.mxu0 %vm2119_vm11, %v2090_v37  ;;  %v2315_v0 = vpop.f32.mrf.mxu0  ;;  %v12999_v21 = vsel %vm1746_vm6, %v1743_v40, %v1678_v7  ;;  %v3178_v7 = vrot.slane %v3176_v31, 1  ;;  %v2784_v40 = vrot.slane %v2782_v16, 7  ;;  %v13020_v60 = vsel %vm11631_vm2, 0, %v2801_v56 }
 0x499   : > { %1903 = vrot.lane.b32.xlu2 %v12999_v21, %s11548_s23  ;;  %1966 = vrot.lane.b32.xlu0 %v12999_v21, %s11547_s22  ;;  %v2316_v42 = vadd.f32 %v12710_v17, %v2315_v0  ;;  %v2596_v59 = vunpack.c.l.b16 %v2468_v45  ;;  %17316 = vst [vmem:[#allocation28_spill] sm:$0xff] %v13020_v60  ;;  %v3217_v45 = vshrl.u32 %v12995_v26, 16  ;;  %v2785_v13 = vshll.u32 %v2635_v50, 16 }
 0x49a   : > { %v3179_v3 = vsel %vm1007_vm3, %v3174_v35, %v3178_v7  ;;  %v3224_v31 = vshll.u32 %v13015_v28, 16  ;;  %v1745_v35 = vsel %vm1681_vm5, %v12772_v36, %v1455_v8  ;;  %v3255_v56 = vshll.u32 %v13020_v60, 16 }
 0x49b   : > { %v2406_v12 = vmax.f32 %v2316_v42, 0.0  ;;  %v2638_v37 = vpack.c.b16 %v2597_v44, %v2596_v59  ;;  %v3222_v16 = vor.u32 %v3221_v58, %v3217_v45  ;;  %v2787_v44 = vor.u32 %v2785_v13, %v2784_v40 }
 0x49c   : > { %v3226_v10 = vrot.slane %v3224_v31, 1  ;;  %v3197_v58 = vrot.slane %v3195_v46, 1  ;;  %v13044_v13 = vsel %vm11631_vm2, %v2798_v48, 0  ;;  %v3257_v31 = vrot.slane %v3255_v56, 1 }
 0x49d   : > { %v2470_v42 = vpack.c.bf16 %v2406_v12, %v2406_v12  ;;  %v13037_v12 = vsel %vm11631_vm2, %v2763_v5, 0  ;;  %17319 = vst [vmem:[#allocation31_spill] sm:$0xff] %v13044_v13  ;;  %v3193_v8 = vshrl.u32 %v13011_v62, 16  ;;  %vm9892_vm5 = vcmask 1046534  }
 0x49e   : > { %v1898_v63 = vpop.permute.xlu0 %1897  ;;  %17318 = vst [vmem:[#allocation30_spill] sm:$0xff] %v13037_v12  ;;  %v3227_v5 = vsel %vm1007_vm3, %v3222_v16, %v3226_v10  ;;  %v3200_v48 = vshll.u32 %v13037_v12, 16  ;;  %v13060_v10 = vpop.f32.mrf.mxu1 }
 0x49f   : > { %v2027_v59 = vsel %vm1970_vm9, %v12765_v20, %v1898_v63  ;;  %v13048_v20 = vsel %vm11631_vm2, 0, %v2787_v44  ;;  %v3260_v44 = vshll.u32 %v13044_v13, 16  ;;  %17321 = vst [vmem:[#allocation33_spill] sm:$0xff] %v13060_v10 }
 0x4a0   : > { %v2317_v0 = vpop.f32.mrf.mxu0  ;;  %17320 = vst [vmem:[#allocation32_spill] sm:$0xff] %v13048_v20 }
 0x4a1   : > { %v2318_v4 = vadd.f32 %v12710_v17, %v2317_v0  ;;  %3412 = vrot.lane.b32.xlu2 %v3179_v3, %s11551_s12  ;;  %v2803_v17 = vshrl.u32 %v2638_v37, 16 }
 0x4a3   : > { %v2407_v1 = vmax.f32 %v2318_v4, 0.0  ;;  %v2598_v4 = vunpack.c.l.b16 %v2470_v42  ;;  %v2805_v63 = vrot.slane %v2803_v17, 7  ;;  %v2806_v42 = vshll.u32 %v2638_v37, 16 }
 0x4a4   : > { %v3198_v17 = vor.u32 %v3197_v58, %v3193_v8  ;;  %v3262_v37 = vrot.slane %v3260_v44, 1 }
 0x4a5   : > { %v2471_v7 = vpack.c.bf16 %v2407_v1, %v2407_v1  ;;  %v1963_v50 = vpop.permute.xlu1 %1962  ;;  %v3253_v1 = vshrl.u32 %v13020_v60, 16  ;;  %v2808_v16 = vor.u32 %v2806_v42, %v2805_v63  ;;  %v3229_v42 = vshrl.u32 %v13048_v20, 16 }
 0x4a6   : > { %v1680_v0 = vpop.permute.xlu0 %1679  ;;  %v2092_v3 = vsel %vm2036_vm10, %v2027_v59, %v1963_v50  ;;  %v3231_v59 = vshll.u32 %v13048_v20, 16 }
 0x4a7   : > { %v2599_v45 = vunpack.c.l.b16 %v2471_v7  ;;  %v13040_v36 = vsel %vm1746_vm6, %v1745_v35, %v1680_v0  ;;  %v3258_v56 = vor.u32 %v3257_v31, %v3253_v1  ;;  %vm9894_vm6 = vcmask 1047559  }
 0x4a8   : > { %1968 = vrot.lane.b32.xlu0 %v13040_v36, %s11547_s22  ;;  %9995 = vmatmul.msk.bf16.gmra.mxu0 %vm2119_vm11, %v2092_v3  ;;  %v3202_v3 = vrot.slane %v3200_v48, 1  ;;  %v3233_v8 = vrot.slane %v3231_v59, 1 }
 0x4a9   : > { %v2639_v46 = vpack.c.b16 %v2599_v45, %v2598_v4  ;;  %3420 = vrot.lane.b32.xlu2 %v3227_v5, %s11551_s12  ;;  %v13068_v45 = vsel %vm11631_vm2, %v2784_v40, 0  ;;  %v3263_v48 = vsel %vm1007_vm3, %v3258_v56, %v3262_v37  ;;  %v13097_v37 = vsel %vm11631_vm2, %v2805_v63, 0 }
 0x4aa   : > { %17322 = vst [vmem:[#allocation34_spill] sm:$0xff] %v13068_v45  ;;  %v3203_v5 = vsel %vm1007_vm3, %v3198_v17, %v3202_v3  ;;  %v3236_v1 = vshll.u32 %v13068_v45, 16  ;;  %v3234_v17 = vor.u32 %v3233_v8, %v3229_v42  ;;  %v3272_v42 = vshll.u32 %v13097_v37, 16 }
 0x4ab   : > { %v2810_v35 = vshrl.u32 %v2639_v46, 16  ;;  %v2813_v50 = vshll.u32 %v2639_v46, 16  ;;  %v13078_v46 = vsel %vm11631_vm2, 0, %v2808_v16  ;;  %17327 = vst [vmem:[#allocation39_spill] sm:$0xff] %v13097_v37 }
 0x4ac   : > { %17324 = vst [vmem:[#allocation36_spill] sm:$0xff] %v13078_v46  ;;  %v3267_v59 = vshll.u32 %v13078_v46, 16 }
 0x4ad   : > { %v2812_v7 = vrot.slane %v2810_v35, 7  ;;  %v3405_v0 = vpop.permute.xlu1 %3404 }
 0x4ae   : > { %v13064_v4 = vsel %vm3608_vm12, %v12829_v30, %v3405_v0 }
 0x4af   : > { %v2815_v58 = vor.u32 %v2813_v50, %v2812_v7  ;;  %4475 = vmatmul.bf16.gmra.mxu1 %v13064_v4  ;;  %v13074_v31 = vsel %vm11631_vm2, %v2812_v7, 0  ;;  %v3238_v7 = vrot.slane %v3236_v1, 1  ;;  %v13093_v50 = vpop.f32.mrf.mxu1 }
 0x4b0   : > { %17323 = vst [vmem:[#allocation35_spill] sm:$0xff] %v13074_v31  ;;  %3416 = vrot.lane.b32.xlu0 %v3203_v5, %s11551_s12  ;;  %v3284_v35 = vshll.u32 %v13074_v31, 16  ;;  %v3269_v5 = vrot.slane %v3267_v59, 1 }
 0x4b1   : > { %v13084_v40 = vsel %vm11631_vm2, 0, %v2815_v58  ;;  %3426 = vrot.lane.b32.xlu2 %v3263_v48, %s11551_s12  ;;  %17326 = vst [vmem:[#allocation38_spill] sm:$0xff] %v13093_v50  ;;  %v3239_v58 = vsel %vm1007_vm3, %v3234_v17, %v3238_v7  ;;  %v3265_v48 = vshrl.u32 %v13078_v46, 16 }
 0x4b2   : > { %17325 = vst [vmem:[#allocation37_spill] sm:$0xff] %v13084_v40  ;;  %v3279_v44 = vshll.u32 %v13084_v40, 16  ;;  %v3277_v16 = vshrl.u32 %v13084_v40, 16  ;;  %v3286_v3 = vrot.slane %v3284_v35, 1  ;;  %v3274_v35 = vrot.slane %v3272_v42, 1 }
 0x4b4   : > { %v3281_v56 = vrot.slane %v3279_v44, 1  ;;  %v3270_v44 = vor.u32 %v3269_v5, %v3265_v48 }
 0x4b5   : > { %v3407_v1 = vpop.permute.xlu1 %3406 }
 0x4b6   : > { %v3282_v0 = vor.u32 %v3281_v56, %v3277_v16  ;;  %v13107_v63 = vsel %vm3608_vm12, %v12856_v32, %v3407_v1  ;;  %v3275_v17 = vsel %vm1007_vm3, %v3270_v44, %v3274_v35  ;;  %v11259_v1 = vld [vmem:[%s17166_s3 + $0xe0] sm:$0xff]  ;;  %v1900_v44 = vpop.permute.xlu2 %1899  ;;  %v11258_v35 = vld [vmem:[%s17166_s3 + $0xd8] sm:$0xff] }
 0x4b7   : > { %v13111_v59 = vpop.f32.mrf.mxu1 }
 0x4b8   : > { %3422 = vrot.lane.b32.xlu0 %v3239_v58, %s11551_s12  ;;  %v3287_v8 = vsel %vm1007_vm3, %v3282_v0, %v3286_v3  ;;  %17328 = vst [vmem:[#allocation40_spill] sm:$0xff] %v13111_v59  ;;  %v11262_v3 = vld [vmem:[%s17166_s3 + $0xf8] sm:$0xff]  ;;  %v11261_v58 = vld [vmem:[%s17166_s3 + $0xf0] sm:$0xff] }
 0x4b9   : > { %3430 = vrot.lane.b32.xlu2 %v3287_v8, %s11551_s12  ;;  %4919 = vmatpush.bf16.msrb.mxu0 %v11262_v3  ;;  %v11260_v8 = vld [vmem:[%s17166_s3 + $0xe8] sm:$0xff] }
 0x4bd   : > { %v3409_v56 = vpop.permute.xlu1 %3408  ;;  %4920 = vmatpush.bf16.msrb.mxu0 %v11261_v58  ;;  %v11256_v58 = vld [vmem:[%s17166_s3 + $0xc8] sm:$0xff] }
 0x4be   : > { %v13118_v7 = vsel %vm3608_vm12, %v12882_v55, %v3409_v56  ;;  %v11257_v56 = vld [vmem:[%s17166_s3 + $0xd0] sm:$0xff] }
 0x4bf   : > { %4480 = vmatmul.bf16.gmra.mxu1 %v13107_v63  ;;  %v13114_v16 = vpop.f32.mrf.mxu1 }
 0x4c0   : > { %3428 = vrot.lane.b32.xlu0 %v3275_v17, %s11551_s12  ;;  %17329 = vst [vmem:[#allocation41_spill] sm:$0xff] %v13114_v16 }
 0x4c1   : > { %4921 = vmatpush.bf16.msrb.mxu0 %v11260_v8  ;;  %v11255_v8 = vld [vmem:[%s17166_s3 + $0xc0] sm:$0xff] }
 0x4c5   : > { %v3411_v5 = vpop.permute.xlu1 %3410  ;;  %4922 = vmatpush.bf16.msrb.mxu0 %v11259_v1  ;;  %v2320_v1 = vpop.f32.mrf.mxu0 }
 0x4c6   : > { %v13136_v42 = vsel %vm3608_vm12, %v12896_v14, %v3411_v5 }
 0x4c7   : > { %v13121_v0 = vpop.f32.mrf.mxu1 }
 0x4c8   : > { %17330 = vst [vmem:[#allocation42_spill] sm:$0xff] %v13121_v0 }
 0x4c9   : > { %4923 = vmatpush.bf16.msrb.mxu0 %v11258_v35 }
 0x4cd   : > { %4924 = vmatpush.bf16.msrb.mxu0 %v11257_v56  ;;  %v2322_v0 = vpop.f32.mrf.mxu0 }
 0x4cf   : > { %4485 = vmatmul.bf16.gmra.mxu1 %v13118_v7  ;;  %v13132_v48 = vpop.f32.mrf.mxu1 }
 0x4d0   : > { %17331 = vst [vmem:[#allocation43_spill] sm:$0xff] %v13132_v48 }
 0x4d1   : > { %4925 = vmatpush.bf16.msrb.mxu0 %v11256_v58  ;;  %v2029_v58 = vsel %vm1970_vm9, %v12768_v9, %v1900_v44  ;;  %v17336_v9 = vmov 0  }
 0x4d5   : > { %4926 = vmatpush.bf16.msrb.mxu0 %v11255_v8 }
 0x4d7   : > { %v13145_v17 = vpop.f32.mrf.mxu1 }
 0x4d8   : > { %17332 = vst [vmem:[#allocation44_spill] sm:$0xff] %v13145_v17 }
 0x4df   : > { %4490 = vmatmul.bf16.gmra.mxu1 %v13136_v42  ;;  %v13153_v5 = vpop.f32.mrf.mxu1 }
 0x4e0   : > { %17333 = vst [vmem:[#allocation45_spill] sm:$0xff] %v13153_v5 }
 0x4e7   : > { %v13158_v17 = vpop.f32.mrf.mxu1 }
 0x4e8   : > { %17334 = vst [vmem:[#allocation46_spill] sm:$0xff] %v13158_v17 }
 0x4ea   : > { %v1902_v3 = vpop.permute.xlu2 %1901 }
 0x4eb   : > { %v2031_v17 = vsel %vm1970_vm9, %v12859_v27, %v1902_v3 }
 0x4ef   : > { %v13168_v59 = vpop.f32.mrf.mxu1 }
 0x4f0   : > { %17335 = vst [vmem:[#allocation47_spill] sm:$0xff] %v13168_v59 }
 0x4f3   : > { %v1904_v35 = vpop.permute.xlu2 %1903 }
 0x4f4   : > { %v2033_v27 = vsel %vm1970_vm9, %v12970_v24, %v1904_v35 }
 0x4f7   : > { %v13180_v44 = vpop.f32.mrf.mxu1 }
 0x4f8   : > { %17337 = vst [vmem:[#allocation48_spill] sm:$0xff] %v13180_v44 }
 0x4fb   : > { %v3413_v48 = vpop.permute.xlu2 %3412 }
 0x4fc   : > { %v13162_v56 = vsel %vm3608_vm12, %v12974_v33, %v3413_v48 }
 0x4fd   : > { %4495 = vmatmul.bf16.gmra.mxu1 %v13162_v56 }
 0x502   : > { %v1965_v5 = vpop.permute.xlu0 %1964 }
 0x503   : > { %v2094_v16 = vsel %vm2036_vm10, %v2029_v58, %v1965_v5 }
 0x504   : > { %9996 = vmatmul.msk.bf16.gmra.mxu0 %vm2119_vm11, %v2094_v16  ;;  %v13185_v16 = vpop.f32.mrf.mxu1 }
 0x505   : > { %v13171_v8 = vpop.f32.mrf.mxu0  ;;  %17338 = vst [vmem:[#allocation49_spill] sm:$0xff] %v13185_v16 }
 0x50b   : > { %v1967_v48 = vpop.permute.xlu0 %1966 }
 0x50c   : > { %v2096_v50 = vsel %vm2036_vm10, %v2031_v17, %v1967_v48  ;;  %v13200_v44 = vpop.f32.mrf.mxu1 }
 0x50d   : > { %v13176_v10 = vpop.f32.mrf.mxu0  ;;  %9997 = vmatmul.msk.bf16.vlgmr.msra.gmra.mxu3 %vm2119_vm11, %v2096_v50  ;;  %4500 = vmatmul.bf16.gmra.mxu1 %v17336_v9  ;;  %v13196_v50 = vld [vmem:[%s17165_s2] ss:$0 sm:$0xff]  ;;  %17339 = vst [vmem:[#allocation50_spill] sm:$0xff] %v13200_v44 }
 0x50e   : > { %v2323_v48 = vadd.f32 %v13196_v50, %v2322_v0  ;;  %v2321_v59 = vadd.f32 %v13196_v50, %v2320_v1 }
 0x510   : > { %v2409_v16 = vmax.f32 %v2323_v48, 0.0 }
 0x514   : > { %4927 = vmatmul.bf16.vlgmr.msrb.gmra.mxu0 %v12469_v53  ;;  %v13209_v45 = vpop.f32.mrf.mxu1 }
 0x515   : > { %v13183_v5 = vpop.f32.mrf.mxu0  ;;  %17340 = vst [vmem:[#allocation51_spill] sm:$0xff] %v13209_v45 }
 0x51a   : > { %v1969_v3 = vpop.permute.xlu0 %1968 }
 0x51b   : > { %v2098_v17 = vsel %vm2036_vm10, %v2033_v27, %v1969_v3  ;;  %v2408_v27 = vmax.f32 %v2321_v59, 0.0 }
 0x51d   : > { %v13190_v58 = vpop.f32.mrf.mxu0  ;;  %9998 = vmatmul.msk.bf16.gmra.mxu3 %vm2119_vm11, %v2098_v17  ;;  %v2473_v17 = vpack.c.bf16 %v2409_v16, %v2409_v16  ;;  %v2472_v37 = vpack.c.bf16 %v2408_v27, %v2408_v27  ;;  %v13216_v27 = vpop.f32.mrf.mxu1 }
 0x51e   : > { %17341 = vst [vmem:[#allocation52_spill] sm:$0xff] %v13216_v27 }
 0x51f   : > { %v2601_v1 = vunpack.c.l.b16 %v2473_v17  ;;  %v2600_v44 = vunpack.c.l.b16 %v2472_v37 }
 0x521   : > { %v2640_v12 = vpack.c.b16 %v2601_v1, %v2600_v44 }
 0x522   : > { %v3417_v24 = vpop.permute.xlu0 %3416 }
 0x523   : > { %v13204_v35 = vsel %vm3608_vm12, %v13011_v62, %v3417_v24  ;;  %v3419_v62 = vpop.permute.xlu1 %3418  ;;  %v2817_v23 = vshrl.u32 %v2640_v12, 16 }
 0x524   : > { %4505 = vmatmul.bf16.gmra.mxu1 %v13204_v35  ;;  %4932 = vmatmul.bf16.gmra.mxu0 %v12499_v19  ;;  %v13214_v16 = vsel %vm3608_vm12, %v12909_v57, %v3419_v62 }
 0x525   : > { %v2335_v3 = vpop.f32.mrf.mxu0  ;;  %v2819_v37 = vrot.slane %v2817_v23, 7 }
 0x526   : > { %v2336_v0 = vadd.f32 %v13196_v50, %v2335_v3 }
 0x528   : > { %v2414_v48 = vmax.f32 %v2336_v0, 0.0 }
 0x52a   : > { %v2478_v59 = vpack.c.bf16 %v2414_v48, %v2414_v48 }
 0x52c   : > { %v2606_v3 = vunpack.c.l.b16 %v2478_v59  ;;  %v3421_v59 = vpop.permute.xlu2 %3420 }
 0x52d   : > { %v2337_v9 = vpop.f32.mrf.mxu0 }
 0x52e   : > { %v2338_v24 = vadd.f32 %v13196_v50, %v2337_v9  ;;  %v2820_v9 = vshll.u32 %v2640_v12, 16 }
 0x530   : > { %v2415_v31 = vmax.f32 %v2338_v24, 0.0  ;;  %v2822_v0 = vor.u32 %v2820_v9, %v2819_v37  ;;  %v13224_v24 = vpop.f32.mrf.mxu1 }
 0x531   : > { %17343 = vst [vmem:[#allocation54_spill] sm:$0xff] %v13224_v24 }
 0x532   : > { %v2479_v13 = vpack.c.bf16 %v2415_v31, %v2415_v31 }
 0x534   : > { %v2607_v45 = vunpack.c.l.b16 %v2479_v13  ;;  %4510 = vmatmul.bf16.gmra.mxu1 %v13214_v16  ;;  %4937 = vmatmul.bf16.gmra.mxu0 %v12608_v39  ;;  %v13228_v13 = vsel %vm11631_vm2, 0, %v2822_v0 }
 0x535   : > { %v3291_v9 = vshll.u32 %v13228_v13, 16 }
 0x536   : > { %v2643_v44 = vpack.c.b16 %v2607_v45, %v2606_v3 }
 0x537   : > { %v3293_v24 = vrot.slane %v3291_v9, 1 }
 0x538   : > { %v2838_v17 = vshrl.u32 %v2643_v44, 16  ;;  %v2841_v48 = vshll.u32 %v2643_v44, 16  ;;  %v13252_v27 = vpop.f32.mrf.mxu1 }
 0x539   : > { %17346 = vst [vmem:[#allocation57_spill] sm:$0xff] %v13252_v27  ;;  %v2333_v27 = vadd.f32 %v13196_v50, %v13190_v58 }
 0x53a   : > { %v2840_v1 = vrot.slane %v2838_v17, 7  ;;  %v13240_v17 = vsel %vm3608_vm12, %v12995_v26, %v3421_v59 }
 0x53b   : > { %17344 = vst [vmem:[#allocation55_spill] sm:$0xff] %v13240_v17 }
 0x53c   : > { %v2843_v31 = vor.u32 %v2841_v48, %v2840_v1  ;;  %v13222_v62 = vsel %vm11631_vm2, %v2840_v1, 0  ;;  %v13246_v48 = vsel %vm11631_vm2, %v2819_v37, 0 }
 0x53d   : > { %17342 = vst [vmem:[#allocation53_spill] sm:$0xff] %v13222_v62  ;;  %v3332_v45 = vshll.u32 %v13222_v62, 16  ;;  %v3296_v59 = vshll.u32 %v13246_v48, 16 }
 0x53e   : > { %v13232_v23 = vsel %vm11631_vm2, 0, %v2843_v31  ;;  %17345 = vst [vmem:[#allocation56_spill] sm:$0xff] %v13246_v48 }
 0x53f   : > { %v3327_v12 = vshll.u32 %v13232_v23, 16  ;;  %v3325_v3 = vshrl.u32 %v13232_v23, 16  ;;  %v3334_v1 = vrot.slane %v3332_v45, 1 }
 0x540   : > { %v13256_v37 = vpop.f32.mrf.mxu1 }
 0x541   : > { %v3329_v44 = vrot.slane %v3327_v12, 1  ;;  %v3289_v12 = vshrl.u32 %v13228_v13, 16  ;;  %17347 = vst [vmem:[#allocation58_spill] sm:$0xff] %v13256_v37 }
 0x543   : > { %v3330_v0 = vor.u32 %v3329_v44, %v3325_v3  ;;  %v3294_v45 = vor.u32 %v3293_v24, %v3289_v12  ;;  %v3298_v3 = vrot.slane %v3296_v59, 1 }
 0x544   : > { %4515 = vmatmul.bf16.gmra.mxu1 %v13240_v17  ;;  %4942 = vmatmul.bf16.gmra.mxu0 %v12644_v29  ;;  %v3423_v17 = vpop.permute.xlu0 %3422 }
 0x545   : > { %v3335_v31 = vsel %vm1007_vm3, %v3330_v0, %v3334_v1  ;;  %v3299_v44 = vsel %vm1007_vm3, %v3294_v45, %v3298_v3  ;;  %v13260_v9 = vsel %vm3608_vm12, %v13048_v20, %v3423_v17  ;;  %v3425_v1 = vpop.permute.xlu1 %3424  ;;  %v3427_v17 = vpop.permute.xlu2 %3426  ;;  %v2328_v3 = vadd.f32 %v13196_v50, %v13176_v10 }
 0x546   : > { %3438 = vrot.lane.b32.xlu1 %v3335_v31, %s11551_s12  ;;  %17348 = vst [vmem:[#allocation59_spill] sm:$0xff] %v13260_v9  ;;  %v13268_v24 = vsel %vm3608_vm12, %v12922_v2, %v3425_v1  ;;  %v13278_v59 = vsel %vm3608_vm12, %v13020_v60, %v3427_v17  ;;  %v2331_v10 = vadd.f32 %v13196_v50, %v13183_v5 }
 0x547   : > { %17350 = vst [vmem:[#allocation61_spill] sm:$0xff] %v13268_v24  ;;  %v2411_v1 = vmax.f32 %v2328_v3, 0.0 }
 0x548   : > { %v13264_v0 = vpop.f32.mrf.mxu1  ;;  %17353 = vst [vmem:[#allocation64_spill] sm:$0xff] %v13278_v59 }
 0x549   : > { %17349 = vst [vmem:[#allocation60_spill] sm:$0xff] %v13264_v0  ;;  %v2475_v17 = vpack.c.bf16 %v2411_v1, %v2411_v1 }
 0x54b   : > { %v2603_v3 = vunpack.c.l.b16 %v2475_v17 }
 0x54d   : > { %v3431_v22 = vpop.permute.xlu2 %3430 }
 0x54e   : > { %3432 = vrot.lane.b32.xlu1 %v3299_v44, %s11551_s12  ;;  %v2326_v44 = vadd.f32 %v13196_v50, %v13171_v8 }
 0x550   : > { %v13270_v31 = vpop.f32.mrf.mxu1 }
 0x551   : > { %17351 = vst [vmem:[#allocation62_spill] sm:$0xff] %v13270_v31  ;;  %v2410_v31 = vmax.f32 %v2326_v44, 0.0  ;;  %v2413_v44 = vmax.f32 %v2333_v27, 0.0 }
 0x553   : > { %v2477_v48 = vpack.c.bf16 %v2413_v44, %v2413_v44  ;;  %v13307_v44 = vsel %vm3608_vm12, %v13084_v40, %v3431_v22 }
 0x554   : > { %4520 = vmatmul.bf16.gmra.mxu1 %v13260_v9  ;;  %4947 = vmatmul.bf16.gmra.mxu0 %v12678_v38  ;;  %17358 = vst [vmem:[#allocation69_spill] sm:$0xff] %v13307_v44 }
 0x555   : > { %v2605_v9 = vunpack.c.l.b16 %v2477_v48 }
 0x558   : > { %v13274_v12 = vpop.f32.mrf.mxu1 }
 0x559   : > { %17352 = vst [vmem:[#allocation63_spill] sm:$0xff] %v13274_v12  ;;  %v3429_v12 = vpop.permute.xlu0 %3428 }
 0x560   : > { %v13282_v45 = vpop.f32.mrf.mxu1 }
 0x561   : > { %17354 = vst [vmem:[#allocation65_spill] sm:$0xff] %v13282_v45  ;;  %v2474_v45 = vpack.c.bf16 %v2410_v31, %v2410_v31 }
 0x563   : > { %v2602_v1 = vunpack.c.l.b16 %v2474_v45 }
 0x564   : > { %4525 = vmatmul.bf16.gmra.mxu1 %v13268_v24  ;;  %4952 = vmatmul.bf16.gmra.mxu0 %v12806_v18 }
 0x565   : > { %v2641_v62 = vpack.c.b16 %v2603_v3, %v2602_v1 }
 0x568   : > { %v13288_v0 = vpop.f32.mrf.mxu1 }
 0x569   : > { %17355 = vst [vmem:[#allocation66_spill] sm:$0xff] %v13288_v0  ;;  %v2412_v0 = vmax.f32 %v2331_v10, 0.0 }
 0x574   : > { %4530 = vmatmul.bf16.gmra.mxu1 %v13278_v59  ;;  %4957 = vmatmul.bf16.gmra.mxu0 %v12836_v43  ;;  %v13294_v59 = vsel %vm3608_vm12, %v13078_v46, %v3429_v12  ;;  %v13301_v12 = vpop.f32.mrf.mxu1  ;;  %v2476_v46 = vpack.c.bf16 %v2412_v0, %v2412_v0  ;;  %v2827_v0 = vshll.u32 %v2641_v62, 16 }
 0x575   : > { %17356 = vst [vmem:[#allocation67_spill] sm:$0xff] %v13294_v59 }
 0x576   : > { %17357 = vst [vmem:[#allocation68_spill] sm:$0xff] %v13301_v12  ;;  %v2604_v60 = vunpack.c.l.b16 %v2476_v46 }
 0x581   : > { %v2340_v37 = vpop.f32.mrf.mxu0 }
 0x582   : > { %v2341_v8 = vadd.f32 %v13196_v50, %v2340_v37  ;;  %v2824_v37 = vshrl.u32 %v2641_v62, 16 }
 0x584   : > { %4535 = vmatmul.bf16.gmra.mxu1 %v13294_v59  ;;  %4962 = vmatmul.bf16.gmra.mxu0 %v12877_v41  ;;  %v2416_v20 = vmax.f32 %v2341_v8, 0.0  ;;  %v2826_v10 = vrot.slane %v2824_v37, 7  ;;  %v2642_v8 = vpack.c.b16 %v2605_v9, %v2604_v60 }
 0x586   : > { %v2480_v5 = vpack.c.bf16 %v2416_v20, %v2416_v20  ;;  %v13309_v20 = vpop.f32.mrf.mxu1  ;;  %v2831_v46 = vshrl.u32 %v2642_v8, 16 }
 0x587   : > { %17359 = vst [vmem:[#allocation70_spill] sm:$0xff] %v13309_v20 }
 0x588   : > { %v2608_v17 = vunpack.c.l.b16 %v2480_v5  ;;  %v2833_v5 = vrot.slane %v2831_v46, 7 }
 0x589   : > { %v2342_v58 = vpop.f32.mrf.mxu0 }
 0x58a   : > { %v2343_v31 = vadd.f32 %v13196_v50, %v2342_v58 }
 0x58c   : > { %v2417_v2 = vmax.f32 %v2343_v31, 0.0 }
 0x58e   : > { %v2481_v59 = vpack.c.bf16 %v2417_v2, %v2417_v2  ;;  %v2829_v2 = vor.u32 %v2827_v0, %v2826_v10 }
 0x590   : > { %v2609_v27 = vunpack.c.l.b16 %v2481_v59  ;;  %v2345_v45 = vpop.f32.mrf.mxu3  ;;  %v13320_v62 = vsel %vm11631_vm2, 0, %v2829_v2 }
 0x591   : > { %v2346_v3 = vadd.f32 %v13196_v50, %v2345_v45 }
 0x592   : > { %v2644_v57 = vpack.c.b16 %v2609_v27, %v2608_v17 }
 0x593   : > { %v2418_v60 = vmax.f32 %v2346_v3, 0.0  ;;  %v2834_v3 = vshll.u32 %v2642_v8, 16 }
 0x594   : > { %v2845_v1 = vshrl.u32 %v2644_v57, 16  ;;  %4540 = vmatmul.bf16.gmra.mxu1 %v13307_v44  ;;  %4967 = vmatmul.bf16.gmra.mxu0 %v12948_v47  ;;  %v2848_v59 = vshll.u32 %v2644_v57, 16 }
 0x595   : > { %v2482_v17 = vpack.c.bf16 %v2418_v60, %v2418_v60  ;;  %v2836_v2 = vor.u32 %v2834_v3, %v2833_v5 }
 0x596   : > { %v2847_v48 = vrot.slane %v2845_v1, 7 }
 0x597   : > { %v2610_v46 = vunpack.c.l.b16 %v2482_v17 }
 0x598   : > { %v2850_v9 = vor.u32 %v2848_v59, %v2847_v48  ;;  %v2347_v58 = vpop.f32.mrf.mxu3  ;;  %v13315_v31 = vsel %vm11631_vm2, %v2847_v48, 0  ;;  %v3303_v59 = vshll.u32 %v13320_v62, 16 }
 0x599   : > { %17360 = vst [vmem:[#allocation71_spill] sm:$0xff] %v13315_v31  ;;  %v2348_v22 = vadd.f32 %v13196_v50, %v2347_v58  ;;  %v3344_v45 = vshll.u32 %v13315_v31, 16  ;;  %v13330_v58 = vpop.f32.mrf.mxu1 }
 0x59a   : > { %v13324_v37 = vsel %vm11631_vm2, 0, %v2850_v9  ;;  %17361 = vst [vmem:[#allocation72_spill] sm:$0xff] %v13330_v58 }
 0x59b   : > { %v2419_v57 = vmax.f32 %v2348_v22, 0.0  ;;  %v3339_v27 = vshll.u32 %v13324_v37, 16  ;;  %v3337_v1 = vshrl.u32 %v13324_v37, 16  ;;  %v3346_v12 = vrot.slane %v3344_v45, 1 }
 0x59c   : > { %v13334_v22 = vsel %vm11631_vm2, %v2826_v10, 0  ;;  %v3301_v45 = vshrl.u32 %v13320_v62, 16 }
 0x59d   : > { %v2483_v0 = vpack.c.bf16 %v2419_v57, %v2419_v57  ;;  %v3341_v48 = vrot.slane %v3339_v27, 1  ;;  %17362 = vst [vmem:[#allocation73_spill] sm:$0xff] %v13334_v22  ;;  %v3305_v57 = vrot.slane %v3303_v59, 1  ;;  %v13339_v27 = vsel %vm11631_vm2, 0, %v2836_v2 }
 0x59f   : > { %v2611_v20 = vunpack.c.l.b16 %v2483_v0  ;;  %v3342_v9 = vor.u32 %v3341_v48, %v3337_v1  ;;  %v3308_v0 = vshll.u32 %v13334_v22, 16  ;;  %v3306_v1 = vor.u32 %v3305_v57, %v3301_v45 }
 0x5a0   : > { %v2350_v60 = vpop.f32.mrf.mxu3 }
 0x5a1   : > { %v2645_v31 = vpack.c.b16 %v2611_v20, %v2610_v46  ;;  %v3347_v8 = vsel %vm1007_vm3, %v3342_v9, %v3346_v12  ;;  %v2351_v17 = vadd.f32 %v13196_v50, %v2350_v60  ;;  %v3315_v12 = vshll.u32 %v13339_v27, 16  ;;  %v13351_v9 = vpop.f32.mrf.mxu1 }
 0x5a2   : > { %3440 = vrot.lane.b32.xlu0 %v3347_v8, %s11551_s12  ;;  %v3310_v2 = vrot.slane %v3308_v0, 1  ;;  %17364 = vst [vmem:[#allocation75_spill] sm:$0xff] %v13351_v9  ;;  %v13355_v8 = vsel %vm11631_vm2, %v2833_v5, 0  ;;  %v3313_v5 = vshrl.u32 %v13339_v27, 16 }
 0x5a3   : > { %v2852_v3 = vshrl.u32 %v2645_v31, 16  ;;  %v2855_v20 = vshll.u32 %v2645_v31, 16  ;;  %v2420_v59 = vmax.f32 %v2351_v17, 0.0  ;;  %v3317_v17 = vrot.slane %v3315_v12, 1 }
 0x5a4   : > { %4972 = vmatmul.bf16.gmra.mxu0 %v13064_v4  ;;  %v3320_v58 = vshll.u32 %v13355_v8, 16 }
 0x5a5   : > { %v2854_v10 = vrot.slane %v2852_v3, 7  ;;  %v3311_v3 = vsel %vm1007_vm3, %v3306_v1, %v3310_v2 }
 0x5a7   : > { %v2857_v48 = vor.u32 %v2855_v20, %v2854_v10  ;;  %v13349_v46 = vsel %vm11631_vm2, %v2854_v10, 0  ;;  %v2484_v10 = vpack.c.bf16 %v2420_v59, %v2420_v59 }
 0x5a8   : > { %17363 = vst [vmem:[#allocation74_spill] sm:$0xff] %v13349_v46  ;;  %v2352_v60 = vpop.f32.mrf.mxu3  ;;  %v3356_v0 = vshll.u32 %v13349_v46, 16 }
 0x5a9   : > { %v13359_v31 = vsel %vm11631_vm2, 0, %v2857_v48  ;;  %v2353_v57 = vadd.f32 %v13196_v50, %v2352_v60  ;;  %v3318_v60 = vor.u32 %v3317_v17, %v3313_v5  ;;  %v2612_v12 = vunpack.c.l.b16 %v2484_v10  ;;  %v17367_v10 = vld [vmem:[#allocation3_spill] sm:$0xff] }
 0x5aa   : > { %3434 = vrot.lane.b32.xlu0 %v3311_v3, %s11551_s12  ;;  %v3351_v45 = vshll.u32 %v13359_v31, 16  ;;  %v3349_v48 = vshrl.u32 %v13359_v31, 16  ;;  %v3358_v1 = vrot.slane %v3356_v0, 1  ;;  %v3322_v3 = vrot.slane %v3320_v58, 1 }
 0x5ab   : > { %v2421_v20 = vmax.f32 %v2353_v57, 0.0  ;;  %v13372_v57 = vpop.f32.mrf.mxu1 }
 0x5ac   : > { %v3353_v9 = vrot.slane %v3351_v45, 1  ;;  %v3323_v59 = vsel %vm1007_vm3, %v3318_v60, %v3322_v3  ;;  %17365 = vst [vmem:[#allocation76_spill] sm:$0xff] %v13372_v57  ;;  %v17381_v57 = vld [vmem:[#allocation7_spill] sm:$0xff] }
 0x5ad   : > { %v2485_v22 = vpack.c.bf16 %v2421_v20, %v2421_v20  ;;  %v3512_v20 = vrot.slane %v17367_v10, 1  ;;  %v13422_v10 = vpop.f32.mrf.mxu0 }
 0x5ae   : > { %v3354_v40 = vor.u32 %v3353_v9, %v3349_v48  ;;  %v17368_v48 = vld [vmem:[#allocation8_spill] sm:$0xff] }
 0x5af   : > { %v2613_v2 = vunpack.c.l.b16 %v2485_v22  ;;  %v3518_v60 = vrot.slane %v17368_v48, 1  ;;  %17372 = vst [vmem:[#allocation8_spill] sm:$0xff] %v13422_v10  ;;  %v17375_v48 = vld [vmem:[#allocation20_spill] sm:$0xff] }
 0x5b0   : > { %v3359_v44 = vsel %vm1007_vm3, %v3354_v40, %v3358_v1  ;;  %v17369_v1 = vld [vmem:[#allocation4_spill] sm:$0xff] }
 0x5b1   : > { %v2646_v24 = vpack.c.b16 %v2613_v2, %v2612_v12  ;;  %3442 = vrot.lane.b32.xlu2 %v3359_v44, %s11551_s12  ;;  %v3513_v12 = vrot.slane %v17369_v1, 1  ;;  %v17376_v1 = vld [vmem:[#allocation10_spill] sm:$0xff] }
 0x5b2   : > { %3436 = vrot.lane.b32.xlu0 %v3323_v59, %s11551_s12 }
 0x5b3   : > { %v2859_v46 = vshrl.u32 %v2646_v24, 16  ;;  %v2862_v9 = vshll.u32 %v2646_v24, 16  ;;  %v13395_v0 = vpop.f32.mrf.mxu1 }
 0x5b4   : > { %4977 = vmatmul.bf16.gmra.mxu0 %v13107_v63  ;;  %17366 = vst [vmem:[#allocation77_spill] sm:$0xff] %v13395_v0  ;;  %v3516_v0 = vrot.slane %v17381_v57, 1 }
 0x5b5   : > { %v2861_v17 = vrot.slane %v2859_v46, 7 }
 0x5b7   : > { %v2864_v45 = vor.u32 %v2862_v9, %v2861_v17  ;;  %v13378_v58 = vsel %vm11631_vm2, %v2861_v17, 0  ;;  %v13403_v9 = vsel %vm1520_vm4, %v3512_v20, %v3513_v12  ;;  %v17373_v20 = vld [vmem:[#allocation13_spill] sm:$0xff]  ;;  %v3521_v12 = vrot.slane %v17376_v1, 1 }
 0x5b8   : > { %v3439_v40 = vpop.permute.xlu1 %3438  ;;  %v3368_v46 = vshll.u32 %v13378_v58, 16 }
 0x5b9   : > { %v13382_v44 = vsel %vm11631_vm2, 0, %v2864_v45  ;;  %1905 = vrot.lane.b32.xlu2 %v13040_v36, %s11548_s23  ;;  %v13388_v22 = vsel %vm3608_vm12, %v13232_v23, %v3439_v40 }
 0x5ba   : > { %3741 = vrot.lane.b32.xlu0 %v12469_v53, %s11551_s12  ;;  %4560 = vmatmul.bf16.vlgmr.msra.gmra.mxu2 %v13388_v22  ;;  %v3363_v24 = vshll.u32 %v13382_v44, 16  ;;  %v3361_v5 = vshrl.u32 %v13382_v44, 16  ;;  %v3370_v3 = vrot.slane %v3368_v46, 1  ;;  %v17370_v53 = vld [vmem:[#allocation9_spill] sm:$0xff] }
 0x5bb   : > { %v3519_v59 = vrot.slane %v17370_v53, 1  ;;  %v13419_v46 = vpop.f32.mrf.mxu1  ;;  %v17378_v53 = vld [vmem:[#allocation15_spill] sm:$0xff] }
 0x5bc   : > { %v3365_v36 = vrot.slane %v3363_v24, 1  ;;  %17371 = vst [vmem:[#allocation3_spill] sm:$0xff] %v13419_v46 }
 0x5bd   : > { %v13410_v40 = vsel %vm1520_vm4, %v3518_v60, %v3519_v59  ;;  %v2276_v60 = vadd.f32 %v13196_v50, %v17375_v48  ;;  %v3527_v59 = vrot.slane %v17378_v53, 1  ;;  %v17384_v53 = vld [vmem:[#allocation11_spill] sm:$0xff] }
 0x5be   : > { %v3366_v2 = vor.u32 %v3365_v36, %v3361_v5  ;;  %v17374_v5 = vld [vmem:[#allocation21_spill] sm:$0xff] }
 0x5bf   : > { %v2278_v36 = vadd.f32 %v13196_v50, %v17374_v5  ;;  %v17382_v5 = vld [vmem:[#allocation16_spill] sm:$0xff]  ;;  %v2390_v10 = vmax.f32 %v2276_v60, 0.0  ;;  %v11266_v60 = vld [vmem:[%s17166_s3 + $0x118] sm:$0xff] }
 0x5c0   : > { %v3433_v17 = vpop.permute.xlu1 %3432  ;;  %v3371_v45 = vsel %vm1007_vm3, %v3366_v2, %v3370_v3  ;;  %v17377_v2 = vld [vmem:[#allocation5_spill] sm:$0xff]  ;;  %v3528_v46 = vrot.slane %v17382_v5, 1  ;;  %5092 = vmatpush.bf16.msrb.mxu1 %v11266_v60  ;;  %v17387_v60 = vld [vmem:[#allocation19_spill] sm:$0xff] }
 0x5c1   : > { %3739 = vrot.lane.b32.xlu2 %v13403_v9, %s11551_s12  ;;  %3444 = vrot.lane.b32.xlu1 %v3371_v45, %s11551_s12  ;;  %v13414_v24 = vsel %vm3608_vm12, %v13228_v13, %v3433_v17  ;;  %v3515_v3 = vrot.slane %v17377_v2, 1  ;;  %v2391_v17 = vmax.f32 %v2278_v36, 0.0  ;;  %v17380_v45 = vld [vmem:[#allocation12_spill] sm:$0xff]  ;;  %v2454_v1 = vpack.c.bf16 %v2390_v10, %v2390_v10 }
 0x5c2   : > { %3747 = vrot.lane.b32.xlu0 %v13410_v40, %s11551_s12  ;;  %4545 = vmatmul.bf16.gmra.mxu1 %v13414_v24  ;;  %v13455_v36 = vsel %vm1520_vm4, %v3527_v59, %v3528_v46  ;;  %v3530_v10 = vrot.slane %v12572_v52, 1  ;;  %v3524_v59 = vrot.slane %v17384_v53, 1 }
 0x5c3   : > { %v13448_v48 = vsel %vm1520_vm4, %v3515_v3, %v3516_v0  ;;  %v2455_v57 = vpack.c.bf16 %v2391_v17, %v2391_v17  ;;  %v2582_v2 = vunpack.c.l.b16 %v2454_v1  ;;  %v3536_v17 = vrot.slane %v12660_v6, 1 }
 0x5c4   : > { %4982 = vmatmul.bf16.gmra.mxu0 %v13118_v7  ;;  %v3537_v1 = vrot.slane %v17387_v60, 1  ;;  %v3546_v60 = vrot.slane %v12873_v15, 1 }
 0x5c5   : > { %v2583_v0 = vunpack.c.l.b16 %v2455_v57  ;;  %v17386_v57 = vld [vmem:[#allocation14_spill] sm:$0xff] }
 0x5c6   : > { %v13492_v52 = vsel %vm1520_vm4, %v3536_v17, %v3537_v1 }
 0x5c7   : > { %v2631_v46 = vpack.c.b16 %v2583_v0, %v2582_v2 }
 0x5c9   : > { %3745 = vrot.lane.b32.xlu2 %v12499_v19, %s11551_s12  ;;  %3737 = vrot.lane.b32.xlu1 %v17373_v20, %s11551_s12  ;;  %v13437_v19 = vpop.f32.mrf.mxu1  ;;  %v3522_v20 = vrot.slane %v17380_v45, 1  ;;  %v2754_v45 = vshrl.u32 %v2631_v46, 16  ;;  %v2757_v2 = vshll.u32 %v2631_v46, 16  ;;  %v3539_v46 = vrot.slane %v12741_v54, 1 }
 0x5ca   : > { %3753 = vrot.lane.b32.xlu0 %v12644_v29, %s11551_s12  ;;  %17379 = vst [vmem:[#allocation4_spill] sm:$0xff] %v13437_v19  ;;  %v13442_v29 = vpop.f32.mrf.mxu0 }
 0x5cb   : > { %v13445_v50 = vsel %vm1520_vm4, %v3521_v12, %v3522_v20  ;;  %v17385_v20 = vld [vmem:[#allocation17_spill] sm:$0xff]  ;;  %v2756_v6 = vrot.slane %v2754_v45, 7  ;;  %v3533_v45 = vrot.slane %v12585_v49, 1 }
 0x5cc   : > { %v3531_v5 = vrot.slane %v17385_v20, 1  ;;  %v3545_v20 = vrot.slane %v12856_v32, 1 }
 0x5cd   : > { %v2983_v54 = vsel %vm11631_vm2, %v2756_v6, 0 }
 0x5ce   : > { %v13482_v0 = vsel %vm1520_vm4, %v3530_v10, %v3531_v5  ;;  %v2759_v10 = vor.u32 %v2757_v2, %v2756_v6  ;;  %v17390_v5 = vld [vmem:[#allocation22_spill] sm:$0xff]  ;;  %v13531_v49 = vsel %vm1520_vm4, %v3545_v20, %v3546_v60  ;;  %v3548_v20 = vrot.slane %v12882_v55, 1 }
 0x5cf   : > { %v3552_v60 = vrot.slane %v12904_v61, 1  ;;  %v11251_v61 = vld [vmem:[%s17166_s3 + $0xa0] sm:$0xff] }
 0x5d1   : > { %3751 = vrot.lane.b32.xlu2 %v13445_v50, %s11551_s12  ;;  %3743 = vrot.lane.b32.xlu1 %v13448_v48, %s11551_s12  ;;  %v13463_v12 = vpop.f32.mrf.mxu1 }
 0x5d2   : > { %3759 = vrot.lane.b32.xlu0 %v13455_v36, %s11551_s12  ;;  %17383 = vst [vmem:[#allocation9_spill] sm:$0xff] %v13463_v12  ;;  %v13469_v3 = vpop.f32.mrf.mxu0  ;;  %v17422_v12 = vld [vmem:[#allocation53_spill] sm:$0xff] }
 0x5d3   : > { %v3594_v19 = vrot.slane %v17422_v12, 1 }
 0x5d4   : > { %4987 = vmatmul.bf16.gmra.mxu0 %v13136_v42 }
 0x5d9   : > { %3757 = vrot.lane.b32.xlu2 %v12678_v38, %s11551_s12  ;;  %3749 = vrot.lane.b32.xlu1 %v12608_v39, %s11551_s12  ;;  %v3525_v38 = vrot.slane %v17386_v57, 1  ;;  %v13479_v39 = vpop.f32.mrf.mxu1  ;;  %v3540_v57 = vrot.slane %v17390_v5, 1  ;;  %v11254_v5 = vld [vmem:[%s17166_s3 + $0xb8] sm:$0xff] }
 0x5da   : > { %3765 = vrot.lane.b32.xlu0 %v12836_v43, %s11551_s12  ;;  %17388 = vst [vmem:[#allocation13_spill] sm:$0xff] %v13479_v39  ;;  %v13496_v53 = vpop.f32.mrf.mxu0  ;;  %4750 = vmatpush.bf16.msrb.mxu3 %v11254_v5  ;;  %v11265_v5 = vld [vmem:[%s17166_s3 + $0x110] sm:$0xff] }
 0x5db   : > { %v13485_v43 = vsel %vm1520_vm4, %v3524_v59, %v3525_v38  ;;  %v13505_v59 = vsel %vm11631_vm2, 0, %v2759_v10  ;;  %v13519_v1 = vsel %vm1520_vm4, %v3539_v46, %v3540_v57  ;;  %5093 = vmatpush.bf16.msrb.mxu1 %v11265_v5  ;;  %v11240_v5 = vld [vmem:[%s17166_s3 + $0x48] sm:$0xff] }
 0x5dc   : > { %v3181_v15 = vshrl.u32 %v13505_v59, 16  ;;  %v3557_v55 = vrot.slane %v13505_v59, 1 }
 0x5e1   : > { %3763 = vrot.lane.b32.xlu2 %v13482_v0, %s11551_s12  ;;  %3755 = vrot.lane.b32.xlu1 %v13485_v43, %s11551_s12  ;;  %v13507_v17 = vpop.f32.mrf.mxu1 }
 0x5e2   : > { %3771 = vrot.lane.b32.xlu0 %v13492_v52, %s11551_s12  ;;  %17389 = vst [vmem:[#allocation21_spill] sm:$0xff] %v13507_v17  ;;  %v17421_v17 = vld [vmem:[#allocation35_spill] sm:$0xff] }
 0x5e3   : > { %v3582_v39 = vrot.slane %v17421_v17, 1 }
 0x5e4   : > { %4992 = vmatmul.bf16.gmra.mxu0 %v13162_v56 }
 0x5e9   : > { %3769 = vrot.lane.b32.xlu2 %v12877_v41, %s11551_s12  ;;  %3761 = vrot.lane.b32.xlu1 %v12806_v18, %s11551_s12  ;;  %v3183_v41 = vshll.u32 %v13505_v59, 16  ;;  %v17391_v18 = vld [vmem:[#allocation18_spill] sm:$0xff]  ;;  %v13536_v10 = vpop.f32.mrf.mxu1 }
 0x5ea   : > { %3777 = vrot.lane.b32.xlu0 %v13064_v4, %s11551_s12  ;;  %v3534_v38 = vrot.slane %v17391_v18, 1  ;;  %v3188_v4 = vshll.u32 %v2983_v54, 16  ;;  %17392 = vst [vmem:[#allocation20_spill] sm:$0xff] %v13536_v10  ;;  %v3549_v18 = vrot.slane %v12891_v25, 1  ;;  %v11252_v25 = vld [vmem:[%s17166_s3 + $0xa8] sm:$0xff] }
 0x5eb   : > { %v3185_v32 = vrot.slane %v3183_v41, 1  ;;  %v3542_v41 = vrot.slane %v12829_v30, 1  ;;  %v11253_v30 = vld [vmem:[%s17166_s3 + $0xb0] sm:$0xff] }
 0x5ec   : > { %v13522_v2 = vsel %vm1520_vm4, %v3533_v45, %v3534_v38  ;;  %v3190_v6 = vrot.slane %v3188_v4, 1  ;;  %4751 = vmatpush.bf16.msrb.mxu3 %v11253_v30  ;;  %v3554_v30 = vrot.slane %v12974_v33, 1  ;;  %v3555_v33 = vrot.slane %v12987_v11, 1 }
 0x5ed   : > { %v3186_v46 = vor.u32 %v3185_v32, %v3181_v15  ;;  %v11246_v32 = vld [vmem:[%s17166_s3 + $0x78] sm:$0xff]  ;;  %v3558_v15 = vrot.slane %v2983_v54, 1  ;;  %v11245_v54 = vld [vmem:[%s17166_s3 + $0x70] sm:$0xff] }
 0x5ee   : > { %4581 = vmatpush.bf16.msrb.mxu2 %v11246_v32  ;;  %v11248_v32 = vld [vmem:[%s17166_s3 + $0x88] sm:$0xff] }
 0x5ef   : > { %v3191_v45 = vsel %vm1007_vm3, %v3186_v46, %v3190_v6  ;;  %v11244_v6 = vld [vmem:[%s17166_s3 + $0x68] sm:$0xff] }
 0x5f0   : > { %4752 = vmatpush.bf16.msrb.mxu3 %v11252_v25 }
 0x5f1   : > { %3775 = vrot.lane.b32.xlu2 %v13519_v1, %s11551_s12  ;;  %3767 = vrot.lane.b32.xlu1 %v13522_v2, %s11551_s12  ;;  %v13549_v57 = vpop.f32.mrf.mxu1 }
 0x5f2   : > { %3783 = vrot.lane.b32.xlu0 %v13531_v49, %s11551_s12  ;;  %17393 = vst [vmem:[#allocation10_spill] sm:$0xff] %v13549_v57  ;;  %4582 = vmatpush.bf16.msrb.mxu2 %v11245_v54  ;;  %v11247_v54 = vld [vmem:[%s17166_s3 + $0x80] sm:$0xff] }
 0x5f4   : > { %4753 = vmatpush.bf16.msrb.mxu3 %v11251_v61  ;;  %v13642_v61 = vsel %vm1520_vm4, %v3554_v30, %v3555_v33 }
 0x5f6   : > { %4583 = vmatpush.bf16.msrb.mxu2 %v11244_v6 }
 0x5f9   : > { %3781 = vrot.lane.b32.xlu2 %v13107_v63, %s11551_s12  ;;  %3773 = vrot.lane.b32.xlu1 %v12948_v47, %s11551_s12  ;;  %v3543_v63 = vrot.slane %v12852_v51, 1  ;;  %v13554_v47 = vsel %vm1520_vm4, %v3548_v20, %v3549_v18  ;;  %v3551_v51 = vrot.slane %v12896_v14, 1  ;;  %v13577_v4 = vpop.f32.mrf.mxu1  ;;  %v13587_v14 = vsel %vm1520_vm4, %v3557_v55, %v3558_v15  ;;  %v11264_v15 = vld [vmem:[%s17166_s3 + $0x108] sm:$0xff] }
 0x5fa   : > { %3414 = vrot.lane.b32.xlu0 %v3191_v45, %s11551_s12  ;;  %17394 = vst [vmem:[#allocation5_spill] sm:$0xff] %v13577_v4  ;;  %v11249_v45 = vld [vmem:[%s17166_s3 + $0x90] sm:$0xff]  ;;  %5094 = vmatpush.bf16.msrb.mxu1 %v11264_v15 }
 0x5fb   : > { %v13557_v38 = vsel %vm1520_vm4, %v3542_v41, %v3543_v63  ;;  %v11243_v41 = vld [vmem:[%s17166_s3 + $0x60] sm:$0xff] }
 0x5fc   : > { %4584 = vmatpush.bf16.msrb.mxu2 %v11243_v41 }
 0x601   : > { %3787 = vrot.lane.b32.xlu2 %v13554_v47, %s11551_s12  ;;  %3779 = vrot.lane.b32.xlu1 %v13557_v38, %s11551_s12  ;;  %v13608_v20 = vpop.f32.mrf.mxu1 }
 0x602   : > { %3793 = vrot.lane.b32.xlu0 %v13162_v56, %s11551_s12  ;;  %v13580_v56 = vsel %vm1520_vm4, %v3551_v51, %v3552_v60  ;;  %17395 = vst [vmem:[#allocation15_spill] sm:$0xff] %v13608_v20  ;;  %v17396_v51 = vld [vmem:[#allocation6_spill] sm:$0xff]  ;;  %v3566_v60 = vrot.slane %v12995_v26, 1  ;;  %v3567_v26 = vrot.slane %v13015_v28, 1  ;;  %v11241_v28 = vld [vmem:[%s17166_s3 + $0x50] sm:$0xff] }
 0x604   : > { %v13647_v11 = vsel %vm1520_vm4, %v3566_v60, %v3567_v26  ;;  %v17405_v26 = vld [vmem:[#allocation31_spill] sm:$0xff] }
 0x605   : > { %17397 = vst [vmem:[#allocation12_spill] sm:$0xff] %v13647_v11 }
 0x609   : > { %3791 = vrot.lane.b32.xlu2 %v13580_v56, %s11551_s12  ;;  %3785 = vrot.lane.b32.xlu1 %v13118_v7, %s11551_s12  ;;  %v11250_v7 = vld [vmem:[%s17166_s3 + $0x98] sm:$0xff]  ;;  %v13660_v6 = vpop.f32.mrf.mxu1 }
 0x60a   : > { %3799 = vrot.lane.b32.xlu0 %v13587_v14, %s11551_s12  ;;  %4754 = vmatpush.bf16.msrb.mxu3 %v11250_v7  ;;  %v11263_v7 = vld [vmem:[%s17166_s3 + $0x100] sm:$0xff]  ;;  %17398 = vst [vmem:[#allocation7_spill] sm:$0xff] %v13660_v6  ;;  %v17412_v6 = vld [vmem:[#allocation56_spill] sm:$0xff] }
 0x60b   : > { %v3443_v46 = vpop.permute.xlu2 %3442  ;;  %5095 = vmatpush.bf16.msrb.mxu1 %v11263_v7  ;;  %v3585_v20 = vrot.slane %v17412_v6, 1 }
 0x60c   : > { %v13682_v60 = vsel %vm3608_vm12, %v13359_v31, %v3443_v46 }
 0x60d   : > { %17401 = vst [vmem:[#allocation16_spill] sm:$0xff] %v13682_v60 }
 0x60e   : > { %4755 = vmatpush.bf16.msrb.mxu3 %v11249_v45 }
 0x611   : > { %3789 = vrot.lane.b32.xlu1 %v13136_v42, %s11551_s12 }
 0x612   : > { %3805 = vrot.lane.b32.xlu0 %v13214_v16, %s11551_s12  ;;  %4756 = vmatpush.bf16.msrb.mxu3 %v11248_v32  ;;  %v17402_v32 = vld [vmem:[#allocation28_spill] sm:$0xff] }
 0x613   : > { %v1906_v18 = vpop.permute.xlu2 %1905  ;;  %v3575_v33 = vrot.slane %v17402_v32, 1 }
 0x614   : > { %v2035_v42 = vsel %vm1970_vm9, %v12999_v21, %v1906_v18  ;;  %v3441_v63 = vpop.permute.xlu0 %3440  ;;  %v11242_v21 = vld [vmem:[%s17166_s3 + $0x58] sm:$0xff]  ;;  %v13672_v18 = vpop.f32.mrf.mxu0 }
 0x615   : > { %v2099_v55 = vsel %vm2036_vm10, %v2035_v42, %v17396_v51  ;;  %v13625_v25 = vsel %vm3608_vm12, %v13324_v37, %v3441_v63  ;;  %4585 = vmatpush.bf16.msrb.mxu2 %v11242_v21  ;;  %v17399_v42 = vld [vmem:[#allocation61_spill] sm:$0xff]  ;;  %v11239_v63 = vld [vmem:[%s17166_s3 + $0x40] sm:$0xff]  ;;  %v17400_v51 = vld [vmem:[#allocation23_spill] sm:$0xff] }
 0x616   : > { %9999 = vmatmul.msk.bf16.gmra.mxu3 %vm2119_vm11, %v2099_v55  ;;  %4565 = vmatmul.bf16.gmra.mxu2 %v13625_v25  ;;  %v3563_v55 = vrot.slane %v17400_v51, 1  ;;  %v17404_v21 = vld [vmem:[#allocation24_spill] sm:$0xff]  ;;  %v17408_v51 = vld [vmem:[#allocation59_spill] sm:$0xff] }
 0x617   : > { %4757 = vmatpush.bf16.msrb.mxu3 %v11247_v54  ;;  %v3564_v15 = vrot.slane %v17404_v21, 1  ;;  %v3576_v54 = vrot.slane %v17405_v26, 1 }
 0x619   : > { %3795 = vrot.lane.b32.xlu1 %v13642_v61, %s11551_s12  ;;  %4586 = vmatpush.bf16.msrb.mxu2 %v11241_v28  ;;  %v13691_v28 = vsel %vm1520_vm4, %v3563_v55, %v3564_v15  ;;  %v13696_v7 = vsel %vm1520_vm4, %v3575_v33, %v3576_v54  ;;  %v17409_v55 = vld [vmem:[#allocation69_spill] sm:$0xff] }
 0x61a   : > { %3811 = vrot.lane.b32.xlu0 %v13647_v11, %s11551_s12  ;;  %17406 = vst [vmem:[#allocation17_spill] sm:$0xff] %v13696_v7  ;;  %v17410_v15 = vld [vmem:[#allocation25_spill] sm:$0xff] }
 0x61b   : > { %v3572_v26 = vrot.slane %v17410_v15, 1 }
 0x61c   : > { %v3435_v45 = vpop.permute.xlu0 %3434  ;;  %v13700_v46 = vpop.f32.mrf.mxu0 }
 0x61d   : > { %v13664_v41 = vsel %vm3608_vm12, %v13320_v62, %v3435_v45  ;;  %4587 = vmatpush.bf16.msrb.mxu2 %v11240_v5 }
 0x61e   : > { %4550 = vmatmul.bf16.gmra.mxu1 %v13664_v41 }
 0x621   : > { %3801 = vrot.lane.b32.xlu1 %v13204_v35, %s11551_s12  ;;  %4588 = vmatpush.bf16.msrb.mxu2 %v11239_v63  ;;  %v13685_v35 = vpop.f32.mrf.mxu1 }
 0x622   : > { %3817 = vrot.lane.b32.xlu0 %v17399_v42, %s11551_s12  ;;  %17403 = vst [vmem:[#allocation11_spill] sm:$0xff] %v13685_v35 }
 0x624   : > { %v3437_v30 = vpop.permute.xlu0 %3436  ;;  %v13719_v54 = vpop.f32.mrf.mxu0 }
 0x625   : > { %v13704_v5 = vsel %vm3608_vm12, %v13339_v27, %v3437_v30  ;;  %v3584_v30 = vrot.slane %v13228_v13, 1  ;;  %v3740_v13 = vpop.permute.xlu2 %3739 }
 0x626   : > { %4570 = vmatmul.bf16.gmra.mxu2 %v13682_v60 }
 0x629   : > { %3807 = vrot.lane.b32.xlu1 %v13691_v28, %s11551_s12  ;;  %v13707_v63 = vpop.f32.mrf.mxu1 }
 0x62a   : > { %3823 = vrot.lane.b32.xlu0 %v13696_v7, %s11551_s12  ;;  %17407 = vst [vmem:[#allocation14_spill] sm:$0xff] %v13707_v63  ;;  %v17411_v63 = vld [vmem:[#allocation26_spill] sm:$0xff] }
 0x62b   : > { %v3573_v35 = vrot.slane %v17411_v63, 1 }
 0x62c   : > { %v3742_v45 = vpop.permute.xlu0 %3741 }
 0x62d   : > { %v13725_v4 = vsel %vm1520_vm4, %v3572_v26, %v3573_v35  ;;  %v13741_v35 = vpop.f32.mrf.mxu0 }
 0x62e   : > { %4555 = vmatmul.bf16.gmra.mxu1 %v13704_v5  ;;  %17413 = vst [vmem:[#allocation19_spill] sm:$0xff] %v13725_v4 }
 0x631   : > { %3813 = vrot.lane.b32.xlu1 %v17408_v51, %s11551_s12  ;;  %v13732_v15 = vpop.f32.mrf.mxu1 }
 0x632   : > { %3829 = vrot.lane.b32.xlu0 %v17409_v55, %s11551_s12  ;;  %17415 = vst [vmem:[#allocation18_spill] sm:$0xff] %v13732_v15  ;;  %v3593_v15 = vrot.slane %v13232_v23, 1 }
 0x633   : > { %v3445_v32 = vpop.permute.xlu1 %3444 }
 0x634   : > { %v3748_v33 = vpop.permute.xlu0 %3747  ;;  %v13715_v21 = vsel %vm3608_vm12, %v13382_v44, %v3445_v32  ;;  %v13730_v32 = vsel %vm1520_vm4, %v3584_v30, %v3585_v20  ;;  %v17416_v20 = vld [vmem:[#allocation67_spill] sm:$0xff]  ;;  %v17419_v30 = vld [vmem:[#allocation37_spill] sm:$0xff] }
 0x635   : > { %17414 = vst [vmem:[#allocation22_spill] sm:$0xff] %v13730_v32 }
 0x636   : > { %4575 = vmatmul.bf16.gmra.mxu2 %v13715_v21 }
 0x639   : > { %3819 = vrot.lane.b32.xlu1 %v13725_v4, %s11551_s12 }
 0x63a   : > { %3835 = vrot.lane.b32.xlu0 %v13730_v32, %s11551_s12 }
 0x63b   : > { %v3738_v57 = vpop.permute.xlu1 %3737 }
 0x63c   : > { %v13736_v10 = vpop.permute.xlu0 %3753  ;;  %v3866_v6 = vsel %vm3608_vm12, %v3738_v57, %v3740_v13  ;;  %v3581_v13 = vrot.slane %v17419_v30, 1  ;;  %v13768_v30 = vsel %vm1520_vm4, %v3593_v15, %v3594_v19  ;;  %v3935_v15 = vsel %vm3608_vm12, %v13403_v9, %v3742_v45 }
 0x63d   : > { %4758 = vmatmul.bf16.vlgmr.msrb.gmra.mxu3 %v3866_v6  ;;  %v13755_v6 = vpop.f32.mrf.mxu1  ;;  %17424 = vst [vmem:[#allocation23_spill] sm:$0xff] %v13768_v30 }
 0x63e   : > { %10148 = vmatmul.msk.bf16.vlgmr.msrb.gmra.mxu1 %vm3608_vm12, %v13448_v48  ;;  %17420 = vst [vmem:[#allocation6_spill] sm:$0xff] %v13755_v6  ;;  %v13763_v32 = vsel %vm1520_vm4, %v3581_v13, %v3582_v39  ;;  %v13770_v6 = vpop.f32.mrf.mxu0 }
 0x63f   : > { %17423 = vst [vmem:[#allocation61_spill] sm:$0xff] %v13763_v32 }
 0x641   : > { %3825 = vrot.lane.b32.xlu1 %v17416_v20, %s11551_s12 }
 0x642   : > { %3841 = vrot.lane.b32.xlu0 %v13704_v5, %s11551_s12 }
 0x643   : > { %v3744_v7 = vpop.permute.xlu1 %3743 }
 0x644   : > { %v13752_v26 = vpop.permute.xlu0 %3759  ;;  %v3867_v17 = vsel %vm3608_vm12, %v3742_v45, %v3744_v7  ;;  %v3591_v7 = vrot.slane %v13355_v8, 1 }
 0x645   : > { %v13779_v12 = vpop.f32.mrf.mxu1 }
 0x646   : > { %10145 = vmatmul.msk.bf16.vlgmr.msrb.gmra.mxu2 %vm13748_vm13, %v3738_v57  ;;  %17425 = vst [vmem:[#allocation28_spill] sm:$0xff] %v13779_v12  ;;  %v13783_v19 = vpop.f32.mrf.mxu0  ;;  %v3590_v57 = vrot.slane %v13339_v27, 1  ;;  %v3746_v12 = vpop.permute.xlu2 %3745 }
 0x647   : > { %17426 = vst [vmem:[#allocation24_spill] sm:$0xff] %v13783_v19  ;;  %v3939_v45 = vsel %vm3608_vm12, %v13448_v48, %v3746_v12  ;;  %v3603_v48 = vrot.slane %v13378_v58, 1 }
 0x648   : > { %v13792_v13 = vsel %vm1520_vm4, %v3590_v57, %v3591_v7 }
 0x649   : > { %3831 = vrot.lane.b32.xlu1 %v13763_v32, %s11551_s12  ;;  %17427 = vst [vmem:[#allocation31_spill] sm:$0xff] %v13792_v13  ;;  %v3868_v32 = vsel %vm3608_vm12, %v3746_v12, %v3748_v33 }
 0x64a   : > { %3847 = vrot.lane.b32.xlu0 %v13768_v30, %s11551_s12 }
 0x64b   : > { %v3750_v33 = vpop.permute.xlu1 %3749 }
 0x64c   : > { %v13774_v23 = vpop.permute.xlu0 %3765 }
 0x64d   : > { %4763 = vmatmul.bf16.gmra.mxu3 %v3867_v17  ;;  %v13794_v17 = vpop.f32.mrf.mxu1 }
 0x64e   : > { %10149 = vmatmul.msk.bf16.gmra.mxu1 %vm3608_vm12, %v13410_v40  ;;  %17428 = vst [vmem:[#allocation59_spill] sm:$0xff] %v13794_v17  ;;  %v13801_v27 = vpop.f32.mrf.mxu0  ;;  %v3602_v17 = vrot.slane %v13382_v44, 1  ;;  %v17433_v44 = vld [vmem:[#allocation27_spill] sm:$0xff] }
 0x64f   : > { %17429 = vst [vmem:[#allocation69_spill] sm:$0xff] %v13801_v27 }
 0x650   : > { %v13828_v12 = vsel %vm1520_vm4, %v3602_v17, %v3603_v48 }
 0x651   : > { %3837 = vrot.lane.b32.xlu1 %v13664_v41, %s11551_s12  ;;  %17432 = vst [vmem:[#allocation56_spill] sm:$0xff] %v13828_v12 }
 0x654   : > { %v13785_v39 = vpop.permute.xlu0 %3771 }
 0x655   : > { %v13807_v8 = vpop.f32.mrf.mxu1 }
 0x656   : > { %4594 = vmatmul.bf16.gmra.mxu2 %v3935_v15  ;;  %17430 = vst [vmem:[#allocation25_spill] sm:$0xff] %v13807_v8  ;;  %v13813_v57 = vpop.f32.mrf.mxu0 }
 0x659   : > { %3843 = vrot.lane.b32.xlu1 %v13792_v13, %s11551_s12 }
 0x65c   : > { %v13798_v30 = vpop.permute.xlu0 %3777 }
 0x65d   : > { %4768 = vmatmul.bf16.gmra.mxu3 %v3868_v32  ;;  %v3752_v32 = vpop.permute.xlu2 %3751  ;;  %v13819_v13 = vpop.f32.mrf.mxu1 }
 0x65e   : > { %10150 = vmatmul.msk.bf16.gmra.mxu1 %vm3608_vm12, %v13445_v50  ;;  %v3869_v7 = vsel %vm3608_vm12, %v3750_v33, %v3752_v32  ;;  %17431 = vst [vmem:[#allocation26_spill] sm:$0xff] %v13819_v13  ;;  %v13833_v32 = vpop.f32.mrf.mxu0  ;;  %v3943_v13 = vsel %vm3608_vm12, %v13410_v40, %v3750_v33  ;;  %v17436_v40 = vld [vmem:[#allocation55_spill] sm:$0xff] }
 0x661   : > { %3849 = vrot.lane.b32.xlu1 %v13625_v25, %s11551_s12 }
 0x664   : > { %v13809_v9 = vpop.permute.xlu0 %3783 }
 0x665   : > { %v13842_v17 = vpop.f32.mrf.mxu1 }
 0x666   : > { %4599 = vmatmul.bf16.gmra.mxu2 %v3939_v45  ;;  %v3560_v45 = vrot.slane %v17433_v44, 1  ;;  %17435 = vst [vmem:[#allocation67_spill] sm:$0xff] %v13842_v17  ;;  %v13844_v48 = vpop.f32.mrf.mxu0  ;;  %v17440_v17 = vld [vmem:[#allocation34_spill] sm:$0xff] }
 0x669   : > { %3853 = vrot.lane.b32.xlu1 %v13682_v60, %s11551_s12 }
 0x66c   : > { %v3415_v15 = vpop.permute.xlu0 %3414 }
 0x66d   : > { %v3655_v8 = vsel %vm3608_vm12, %v13505_v59, %v3415_v15  ;;  %4773 = vmatmul.bf16.gmra.mxu3 %v3869_v7  ;;  %v17434_v59 = vld [vmem:[#allocation30_spill] sm:$0xff]  ;;  %v13855_v33 = vpop.f32.mrf.mxu1 }
 0x66e   : > { %10151 = vmatmul.msk.bf16.gmra.mxu1 %vm3608_vm12, %v13485_v43  ;;  %3797 = vrot.lane.b32.xlu2 %v3655_v8, %s11551_s12  ;;  %v3561_v15 = vrot.slane %v17434_v59, 1  ;;  %17438 = vst [vmem:[#allocation37_spill] sm:$0xff] %v13855_v33  ;;  %v13871_v11 = vpop.f32.mrf.mxu0  ;;  %v3758_v33 = vpop.permute.xlu2 %3757 }
 0x66f   : > { %4997 = vmatmul.bf16.gmra.mxu0 %v3655_v8  ;;  %v3756_v8 = vpop.permute.xlu1 %3755 }
 0x670   : > { %v3562_v58 = vsel %vm1520_vm4, %v3560_v45, %v3561_v15  ;;  %v3870_v59 = vsel %vm3608_vm12, %v13736_v10, %v3756_v8  ;;  %v17439_v45 = vld [vmem:[#allocation32_spill] sm:$0xff]  ;;  %v3947_v8 = vsel %vm3608_vm12, %v13445_v50, %v13736_v10  ;;  %v3871_v50 = vsel %vm3608_vm12, %v3758_v33, %v13752_v26 }
 0x671   : > { %3859 = vrot.lane.b32.xlu1 %v13828_v12, %s11551_s12  ;;  %v3569_v15 = vrot.slane %v17439_v45, 1  ;;  %v3570_v12 = vrot.slane %v17440_v17, 1  ;;  %v13875_v17 = vpop.f32.mrf.mxu2  ;;  %v17446_v10 = vld [vmem:[#allocation64_spill] sm:$0xff]  ;;  %v3951_v26 = vsel %vm3608_vm12, %v13485_v43, %v3758_v33  ;;  %v11534_v43 = vld [vmem:[%s17165_s2] ss:$0 sm:$0xff] }
 0x672   : > { %17444 = vst [vmem:[#allocation30_spill] sm:$0xff] %v13875_v17 }
 0x674   : > { %v13836_v7 = vpop.permute.xlu0 %3793 }
 0x675   : > { %v13877_v45 = vpop.f32.mrf.mxu1 }
 0x676   : > { %4604 = vmatmul.bf16.gmra.mxu2 %v3943_v13  ;;  %3803 = vrot.lane.b32.xlu2 %v3562_v58, %s11551_s12  ;;  %v17437_v13 = vmov 0   ;;  %17445 = vst [vmem:[#allocation55_spill] sm:$0xff] %v13877_v45  ;;  %v17450_v45 = vld [vmem:[#allocation39_spill] sm:$0xff] }
 0x67c   : > { %v13846_v44 = vpop.permute.xlu0 %3799 }
 0x67d   : > { %4778 = vmatmul.bf16.gmra.mxu3 %v3870_v59  ;;  %v13865_v59 = vsel %vm1520_vm4, %v3569_v15, %v3570_v12  ;;  %v13886_v12 = vpop.f32.mrf.mxu0  ;;  %v17448_v15 = vld [vmem:[#allocation36_spill] sm:$0xff]  ;;  %v13891_v17 = vpop.f32.mrf.mxu1 }
 0x67e   : > { %10152 = vmatmul.msk.bf16.gmra.mxu1 %vm3608_vm12, %v13455_v36  ;;  %3809 = vrot.lane.b32.xlu2 %v17436_v40, %s11551_s12  ;;  %17442 = vst [vmem:[#allocation53_spill] sm:$0xff] %v13865_v59 }
 0x67f   : > { %5002 = vmatmul.bf16.gmra.mxu0 %v17437_v13  ;;  %17449 = vst [vmem:[#allocation34_spill] sm:$0xff] %v13891_v17 }
 0x684   : > { %v13859_v4 = vpop.permute.xlu0 %3805 }
 0x685   : > { %17441 = vst [vmem:[#allocation35_spill] sm:$0xff] %v13859_v4  ;;  %v13869_v60 = vsel %vm3608_vm12, %v3562_v58, %v13859_v4  ;;  %v13888_v58 = vpop.f32.mrf.mxu2 }
 0x686   : > { %17443 = vst [vmem:[#allocation27_spill] sm:$0xff] %v13869_v60  ;;  %4609 = vmatmul.bf16.gmra.mxu2 %v3947_v8  ;;  %3815 = vrot.lane.b32.xlu2 %v13865_v59, %s11551_s12  ;;  %v3578_v8 = vrot.slane %v17448_v15, 1  ;;  %v3579_v59 = vrot.slane %v17450_v45, 1  ;;  %v3764_v15 = vpop.permute.xlu2 %3763 }
 0x687   : > { %17447 = vst [vmem:[#allocation32_spill] sm:$0xff] %v13888_v58  ;;  %v13903_v58 = vpop.f32.mrf.mxu0 }
 0x688   : > { %17453 = vst [vmem:[#allocation39_spill] sm:$0xff] %v13903_v58 }
 0x68d   : > { %4783 = vmatmul.bf16.gmra.mxu3 %v3871_v50  ;;  %v13897_v50 = vsel %vm1520_vm4, %v3578_v8, %v3579_v59 }
 0x68e   : > { %10153 = vmatmul.msk.bf16.gmra.mxu1 %vm3608_vm12, %v13482_v0  ;;  %3821 = vrot.lane.b32.xlu2 %v17446_v10, %s11551_s12  ;;  %17451 = vst [vmem:[#allocation64_spill] sm:$0xff] %v13897_v50 }
 0x68f   : > { %5007 = vmatmul.bf16.gmra.mxu0 %v13214_v16  ;;  %v3762_v16 = vpop.permute.xlu1 %3761 }
 0x690   : > { %v3872_v59 = vsel %vm3608_vm12, %v3762_v16, %v3764_v15  ;;  %v3955_v27 = vsel %vm3608_vm12, %v13455_v36, %v3762_v16 }
 0x696   : > { %4614 = vmatmul.bf16.gmra.mxu2 %v3951_v26  ;;  %3827 = vrot.lane.b32.xlu2 %v13897_v50, %s11551_s12 }
 0x699   : > { %v2355_v60 = vpop.f32.mrf.mxu3  ;;  %v13901_v19 = vpop.f32.mrf.mxu2 }
 0x69a   : > { %17452 = vst [vmem:[#allocation36_spill] sm:$0xff] %v13901_v19  ;;  %v2356_v33 = vadd.f32 %v11534_v43, %v2355_v60  ;;  %v3587_v19 = vrot.slane %v13320_v62, 1  ;;  %v17457_v60 = vld [vmem:[#allocation73_spill] sm:$0xff] }
 0x69b   : > { %v13905_v17 = vpop.f32.mrf.mxu1  ;;  %v3588_v15 = vrot.slane %v17457_v60, 1 }
 0x69c   : > { %17454 = vst [vmem:[#allocation78_spill] sm:$0xff] %v13905_v17  ;;  %v2422_v45 = vmax.f32 %v2356_v33, 0.0 }
 0x69d   : > { %4788 = vmatmul.bf16.gmra.mxu3 %v3872_v59  ;;  %v13922_v59 = vpop.f32.mrf.mxu0 }
 0x69e   : > { %10154 = vmatmul.msk.bf16.gmra.mxu1 %vm3608_vm12, %v13522_v2  ;;  %3833 = vrot.lane.b32.xlu2 %v13414_v24, %s11551_s12  ;;  %v2486_v58 = vpack.c.bf16 %v2422_v45, %v2422_v45 }
 0x69f   : > { %5012 = vmatmul.bf16.gmra.mxu0 %v17436_v40  ;;  %v13927_v40 = vsel %vm1520_vm4, %v3587_v19, %v3588_v15  ;;  %v3596_v15 = vrot.slane %v13324_v37, 1 }
 0x6a0   : > { %17458 = vst [vmem:[#allocation73_spill] sm:$0xff] %v13927_v40  ;;  %v2614_v62 = vunpack.c.l.b16 %v2486_v58 }
 0x6a1   : > { %v2357_v8 = vpop.f32.mrf.mxu3  ;;  %v13916_v26 = vpop.f32.mrf.mxu2 }
 0x6a2   : > { %17455 = vst [vmem:[#allocation79_spill] sm:$0xff] %v13916_v26  ;;  %v2358_v17 = vadd.f32 %v11534_v43, %v2357_v8  ;;  %v3768_v8 = vpop.permute.xlu1 %3767 }
 0x6a3   : > { %v13919_v50 = vpop.f32.mrf.mxu1  ;;  %v3873_v36 = vsel %vm3608_vm12, %v13774_v23, %v3768_v8 }
 0x6a4   : > { %17456 = vst [vmem:[#allocation80_spill] sm:$0xff] %v13919_v50  ;;  %v2423_v4 = vmax.f32 %v2358_v17, 0.0 }
 0x6a5   : > { %v13937_v19 = vpop.f32.mrf.mxu0 }
 0x6a6   : > { %v2487_v33 = vpack.c.bf16 %v2423_v4, %v2423_v4  ;;  %4619 = vmatmul.bf16.gmra.mxu2 %v3955_v27  ;;  %3839 = vrot.lane.b32.xlu2 %v13927_v40, %s11551_s12 }
 0x6a8   : > { %v2615_v43 = vunpack.c.l.b16 %v2487_v33 }
 0x6a9   : > { %v13931_v26 = vpop.f32.mrf.mxu2 }
 0x6aa   : > { %17459 = vst [vmem:[#allocation81_spill] sm:$0xff] %v13931_v26  ;;  %v2647_v60 = vpack.c.b16 %v2615_v43, %v2614_v62  ;;  %v17463_v43 = vld [vmem:[#allocation71_spill] sm:$0xff] }
 0x6ab   : > { %v13933_v50 = vpop.f32.mrf.mxu1  ;;  %v3597_v8 = vrot.slane %v17463_v43, 1 }
 0x6ac   : > { %17460 = vst [vmem:[#allocation82_spill] sm:$0xff] %v13933_v50  ;;  %v2866_v17 = vshrl.u32 %v2647_v60, 16  ;;  %v2869_v27 = vshll.u32 %v2647_v60, 16 }
 0x6ad   : > { %4793 = vmatmul.bf16.gmra.mxu3 %v3873_v36  ;;  %v13961_v36 = vsel %vm1520_vm4, %v3596_v15, %v3597_v8  ;;  %v13966_v43 = vpop.f32.mrf.mxu0  ;;  %v17466_v8 = vld [vmem:[#allocation74_spill] sm:$0xff] }
 0x6ae   : > { %v2868_v4 = vrot.slane %v2866_v17, 7  ;;  %10155 = vmatmul.msk.bf16.gmra.mxu1 %vm3608_vm12, %v13492_v52  ;;  %3845 = vrot.lane.b32.xlu2 %v13388_v22, %s11551_s12  ;;  %17464 = vst [vmem:[#allocation71_spill] sm:$0xff] %v13961_v36 }
 0x6af   : > { %5017 = vmatmul.bf16.gmra.mxu0 %v17408_v51  ;;  %v3959_v51 = vsel %vm3608_vm12, %v13482_v0, %v13774_v23  ;;  %v3599_v0 = vrot.slane %v13359_v31, 1  ;;  %v3770_v23 = vpop.permute.xlu2 %3769 }
 0x6b0   : > { %v2871_v58 = vor.u32 %v2869_v27, %v2868_v4  ;;  %v2999_v16 = vsel %vm11631_vm2, %v2868_v4, 0 }
 0x6b1   : > { %v13946_v45 = vpop.f32.mrf.mxu2  ;;  %v3380_v17 = vshll.u32 %v2999_v16, 16 }
 0x6b2   : > { %17461 = vst [vmem:[#allocation83_spill] sm:$0xff] %v13946_v45  ;;  %v13951_v33 = vsel %vm11631_vm2, 0, %v2871_v58 }
 0x6b3   : > { %v13953_v62 = vpop.f32.mrf.mxu1  ;;  %v3375_v60 = vshll.u32 %v13951_v33, 16  ;;  %v3373_v37 = vshrl.u32 %v13951_v33, 16  ;;  %v3382_v58 = vrot.slane %v3380_v17, 1 }
 0x6b4   : > { %17462 = vst [vmem:[#allocation84_spill] sm:$0xff] %v13953_v62 }
 0x6b5   : > { %v3377_v4 = vrot.slane %v3375_v60, 1  ;;  %v3600_v60 = vrot.slane %v17466_v8, 1 }
 0x6b6   : > { %4624 = vmatmul.bf16.gmra.mxu2 %v3959_v51  ;;  %3851 = vrot.lane.b32.xlu2 %v13961_v36, %s11551_s12  ;;  %v3874_v51 = vsel %vm3608_vm12, %v3770_v23, %v13785_v39 }
 0x6b7   : > { %v3378_v27 = vor.u32 %v3377_v4, %v3373_v37  ;;  %v13977_v17 = vsel %vm1520_vm4, %v3599_v0, %v3600_v60  ;;  %v13986_v37 = vpop.f32.mrf.mxu0  ;;  %v3963_v4 = vsel %vm3608_vm12, %v13522_v2, %v3770_v23  ;;  %v17469_v0 = vld [vmem:[#allocation29_spill] sm:$0xff]  ;;  %v3776_v2 = vpop.permute.xlu2 %3775 }
 0x6b8   : > { %17467 = vst [vmem:[#allocation74_spill] sm:$0xff] %v13977_v17 }
 0x6b9   : > { %v13968_v34 = vpop.f32.mrf.mxu2  ;;  %v3383_v45 = vsel %vm1007_vm3, %v3378_v27, %v3382_v58  ;;  %v3605_v27 = vrot.slane %v13951_v33, 1  ;;  %v13996_v58 = vld [vmem:[%s17167_s4] ss:$0 sm:$0xff]  ;;  %vm9888_vm3 = vcmask 1044484  }
 0x6ba   : > { %17465 = vst [vmem:[#allocation85_spill] sm:$0xff] %v13968_v34  ;;  %3446 = vrot.lane.b32.xlu0 %v3383_v45, %s11551_s12  ;;  %v4422_v8 = vadd.f32 %v13996_v58, %v17469_v0 }
 0x6bb   : > { %v5097_v15 = vpop.f32.mrf.mxu1 }
 0x6bd   : > { %4798 = vmatmul.bf16.gmra.mxu3 %v3874_v51  ;;  %v3774_v51 = vpop.permute.xlu1 %3773 }
 0x6be   : > { %10156 = vmatmul.msk.bf16.gmra.mxu1 %vm3608_vm12, %v13519_v1  ;;  %3855 = vrot.lane.b32.xlu2 %v13977_v17, %s11551_s12 }
 0x6bf   : > { %5022 = vmatmul.bf16.gmra.mxu0 %v17399_v42  ;;  %v3606_v42 = vrot.slane %v2999_v16, 1  ;;  %v14005_v62 = vpop.f32.mrf.mxu0  ;;  %v3875_v16 = vsel %vm3608_vm12, %v3774_v51, %v3776_v2  ;;  %v17474_v2 = vld [vmem:[#allocation38_spill] sm:$0xff] }
 0x6c0   : > { %v4759_v31 = vpop.f32.mrf.mxu3  ;;  %17471 = vst [vmem:[#allocation87_spill] sm:$0xff] %v14005_v62 }
 0x6c1   : > { %v13984_v45 = vpop.f32.mrf.mxu2  ;;  %v14001_v34 = vsel %vm1520_vm4, %v3605_v27, %v3606_v42  ;;  %v17473_v27 = vld [vmem:[#allocation33_spill] sm:$0xff]  ;;  %vm9890_vm4 = vcmask 1045509  }
 0x6c2   : > { %17468 = vst [vmem:[#allocation86_spill] sm:$0xff] %v13984_v45  ;;  %3857 = vrot.lane.b32.xlu0 %v13715_v21, %s11551_s12 }
 0x6c3   : > { %v5099_v39 = vpop.f32.mrf.mxu1  ;;  %17470 = vst [vmem:[#allocation29_spill] sm:$0xff] %v14001_v34 }
 0x6c6   : > { %4629 = vmatmul.bf16.gmra.mxu2 %v3963_v4  ;;  %v17472_v4 = vld [vmem:[#allocation8_spill] sm:$0xff] }
 0x6c8   : > { %v4761_v60 = vpop.f32.mrf.mxu3 }
 0x6c9   : > { %v4590_v45 = vpop.f32.mrf.mxu2 }
 0x6ca   : > { %v4591_v26 = vadd.f32 %v4590_v45, %v4422_v8  ;;  %3863 = vrot.lane.b32.xlu0 %v14001_v34, %s11551_s12  ;;  %v4424_v45 = vadd.f32 %v13996_v58, %v17473_v27  ;;  %v3780_v27 = vpop.permute.xlu1 %3779 }
 0x6cb   : > { %v5102_v23 = vpop.f32.mrf.mxu1 }
 0x6cc   : > { %v4760_v50 = vadd.f32 %v4759_v31, %v4591_v26  ;;  %v3967_v26 = vsel %vm3608_vm12, %v13492_v52, %v3774_v51  ;;  %v14016_v31 = vpop.f32.mrf.mxu0  ;;  %v3876_v52 = vsel %vm3608_vm12, %v13798_v30, %v3780_v27  ;;  %v14039_v27 = vpop.permute.xlu0 %3811 }
 0x6cd   : > { %4803 = vmatmul.bf16.gmra.mxu3 %v3875_v16 }
 0x6ce   : > { %v4929_v0 = vadd.f32 %v17472_v4, %v4760_v50  ;;  %10157 = vmatmul.msk.bf16.gmra.mxu1 %vm3608_vm12, %v13557_v38 }
 0x6cf   : > { %5027 = vmatmul.bf16.gmra.mxu0 %v17446_v10  ;;  %v4427_v10 = vadd.f32 %v13996_v58, %v17474_v2 }
 0x6d0   : > { %v5098_v42 = vadd.f32 %v5097_v15, %v4929_v0  ;;  %v4764_v8 = vpop.f32.mrf.mxu3 }
 0x6d1   : > { %v4592_v34 = vpop.f32.mrf.mxu2 }
 0x6d2   : > { %v4593_v17 = vadd.f32 %v4592_v34, %v4424_v45  ;;  %v5257_v0 = vmax.f32 %v5098_v42, 0.0 }
 0x6d3   : > { %v5104_v36 = vpop.f32.mrf.mxu1 }
 0x6d4   : > { %v4762_v40 = vadd.f32 %v4761_v60, %v4593_v17  ;;  %v14031_v51 = vpop.f32.mrf.mxu0 }
 0x6d6   : > { %v4931_v50 = vadd.f32 %v13442_v29, %v4762_v40  ;;  %4634 = vmatmul.bf16.gmra.mxu2 %v3967_v26  ;;  %v17476_v40 = vld [vmem:[#allocation40_spill] sm:$0xff] }
 0x6d8   : > { %v5100_v16 = vadd.f32 %v5099_v39, %v4931_v50  ;;  %v4766_v4 = vpop.f32.mrf.mxu3  ;;  %v4429_v39 = vadd.f32 %v13996_v58, %v17476_v40 }
 0x6d9   : > { %v4595_v15 = vpop.f32.mrf.mxu2 }
 0x6da   : > { %v5258_v62 = vmax.f32 %v5100_v16, 0.0  ;;  %v4596_v34 = vadd.f32 %v4595_v15, %v4427_v10  ;;  %v17477_v16 = vld [vmem:[#allocation41_spill] sm:$0xff] }
 0x6db   : > { %v5107_v45 = vpop.f32.mrf.mxu1 }
 0x6dc   : > { %v4765_v17 = vadd.f32 %v4764_v8, %v4596_v34  ;;  %v14023_v60 = vpack.c.bf16 %v5258_v62, %v5257_v0  ;;  %v14041_v34 = vpop.f32.mrf.mxu0 }
 0x6dd   : > { %4808 = vmatmul.bf16.gmra.mxu3 %v3876_v52 }
 0x6de   : > { %17475 = vst [vmem:[#allocation8_spill] sm:$0xff] %v14023_v60  ;;  %v4934_v29 = vadd.f32 %v13469_v3, %v4765_v17  ;;  %10158 = vmatmul.msk.bf16.gmra.mxu1 %vm3608_vm12, %v13531_v49  ;;  %v3971_v3 = vsel %vm3608_vm12, %v13519_v1, %v13798_v30 }
 0x6df   : > { %5032 = vmatmul.bf16.gmra.mxu0 %v17416_v20  ;;  %v4432_v20 = vadd.f32 %v13996_v58, %v17477_v16 }
 0x6e0   : > { %v5103_v42 = vadd.f32 %v5102_v23, %v4934_v29  ;;  %v4769_v8 = vpop.f32.mrf.mxu3  ;;  %v3782_v29 = vpop.permute.xlu2 %3781 }
 0x6e1   : > { %v4597_v26 = vpop.f32.mrf.mxu2 }
 0x6e2   : > { %v4598_v50 = vadd.f32 %v4597_v26, %v4429_v39  ;;  %v5259_v17 = vmax.f32 %v5103_v42, 0.0 }
 0x6e3   : > { %v5109_v2 = vpop.f32.mrf.mxu1 }
 0x6e4   : > { %v4767_v62 = vadd.f32 %v4766_v4, %v4598_v50 }
 0x6e6   : > { %v4936_v10 = vadd.f32 %v13496_v53, %v4767_v62  ;;  %4639 = vmatmul.bf16.gmra.mxu2 %v3971_v3  ;;  %v3877_v53 = vsel %vm3608_vm12, %v3782_v29, %v13809_v9 }
 0x6e8   : > { %v5105_v15 = vadd.f32 %v5104_v36, %v4936_v10  ;;  %v4771_v0 = vpop.f32.mrf.mxu3  ;;  %v17479_v36 = vld [vmem:[#allocation42_spill] sm:$0xff]  ;;  %v14055_v10 = vpop.f32.mrf.mxu0 }
 0x6e9   : > { %v4600_v23 = vpop.f32.mrf.mxu2  ;;  %v4434_v42 = vadd.f32 %v13996_v58, %v17479_v36  ;;  %17480 = vst [vmem:[#allocation38_spill] sm:$0xff] %v14055_v10  ;;  %v17498_v10 = vld [vmem:[#allocation50_spill] sm:$0xff] }
 0x6ea   : > { %v5260_v52 = vmax.f32 %v5105_v15, 0.0  ;;  %v4601_v4 = vadd.f32 %v4600_v23, %v4432_v20 }
 0x6eb   : > { %v5112_v40 = vpop.f32.mrf.mxu1 }
 0x6ec   : > { %v4770_v39 = vadd.f32 %v4769_v8, %v4601_v4  ;;  %v14045_v1 = vpack.c.bf16 %v5260_v52, %v5259_v17  ;;  %v14053_v8 = vpop.permute.xlu0 %3817  ;;  %v3786_v17 = vpop.permute.xlu1 %3785 }
 0x6ed   : > { %4813 = vmatmul.bf16.gmra.mxu3 %v3877_v53 }
 0x6ee   : > { %17478 = vst [vmem:[#allocation33_spill] sm:$0xff] %v14045_v1  ;;  %v4939_v30 = vadd.f32 %v13672_v18, %v4770_v39  ;;  %10159 = vmatmul.msk.bf16.gmra.mxu1 %vm3608_vm12, %v13554_v47  ;;  %v3975_v18 = vsel %vm3608_vm12, %v13557_v38, %v3782_v29 }
 0x6ef   : > { %5037 = vmatmul.bf16.gmra.mxu0 %v17409_v55  ;;  %v17481_v55 = vld [vmem:[#allocation43_spill] sm:$0xff] }
 0x6f0   : > { %v5108_v26 = vadd.f32 %v5107_v45, %v4939_v30  ;;  %v4774_v50 = vpop.f32.mrf.mxu3  ;;  %v4437_v15 = vadd.f32 %v13996_v58, %v17481_v55  ;;  %v3788_v30 = vpop.permute.xlu2 %3787 }
 0x6f1   : > { %v4602_v62 = vpop.f32.mrf.mxu2  ;;  %v3878_v38 = vsel %vm3608_vm12, %v3786_v17, %v3788_v30 }
 0x6f2   : > { %v4603_v3 = vadd.f32 %v4602_v62, %v4434_v42  ;;  %v5261_v4 = vmax.f32 %v5108_v26, 0.0  ;;  %v17484_v26 = vld [vmem:[#allocation44_spill] sm:$0xff] }
 0x6f3   : > { %v5114_v9 = vpop.f32.mrf.mxu1  ;;  %v4439_v62 = vadd.f32 %v13996_v58, %v17484_v26 }
 0x6f4   : > { %v4772_v16 = vadd.f32 %v4771_v0, %v4603_v3  ;;  %v14062_v42 = vpop.permute.xlu0 %3823 }
 0x6f6   : > { %v4941_v20 = vadd.f32 %v13700_v46, %v4772_v16  ;;  %4644 = vmatmul.bf16.gmra.mxu2 %v3975_v18  ;;  %v14067_v46 = vpop.f32.mrf.mxu0 }
 0x6f7   : > { %17483 = vst [vmem:[#allocation41_spill] sm:$0xff] %v14067_v46  ;;  %v4454_v46 = vadd.f32 %v13996_v58, %v17498_v10  ;;  %v17501_v10 = vld [vmem:[#allocation52_spill] sm:$0xff] }
 0x6f8   : > { %v5110_v23 = vadd.f32 %v5109_v2, %v4941_v20  ;;  %v4776_v45 = vpop.f32.mrf.mxu3 }
 0x6f9   : > { %v4605_v52 = vpop.f32.mrf.mxu2 }
 0x6fa   : > { %v5262_v39 = vmax.f32 %v5110_v23, 0.0  ;;  %v4606_v53 = vadd.f32 %v4605_v52, %v4437_v15  ;;  %v3979_v15 = vsel %vm3608_vm12, %v13531_v49, %v3786_v17  ;;  %v17486_v52 = vld [vmem:[#allocation45_spill] sm:$0xff] }
 0x6fb   : > { %v5117_v36 = vpop.f32.mrf.mxu1 }
 0x6fc   : > { %v4775_v0 = vadd.f32 %v4774_v50, %v4606_v53  ;;  %v14065_v29 = vpack.c.bf16 %v5262_v39, %v5261_v4  ;;  %v14079_v23 = vpop.permute.xlu0 %3829  ;;  %v3790_v53 = vpop.permute.xlu1 %3789 }
 0x6fd   : > { %4818 = vmatmul.bf16.gmra.mxu3 %v3878_v38  ;;  %17485 = vst [vmem:[#allocation42_spill] sm:$0xff] %v14079_v23 }
 0x6fe   : > { %17482 = vst [vmem:[#allocation40_spill] sm:$0xff] %v14065_v29  ;;  %v4944_v2 = vadd.f32 %v13719_v54, %v4775_v0  ;;  %10160 = vmatmul.msk.bf16.gmra.mxu1 %vm3608_vm12, %v13580_v56  ;;  %v14084_v4 = vpop.f32.mrf.mxu0 }
 0x6ff   : > { %5042 = vmatmul.bf16.gmra.mxu0 %v13414_v24  ;;  %v4442_v24 = vadd.f32 %v13996_v58, %v17486_v52  ;;  %17487 = vst [vmem:[#allocation43_spill] sm:$0xff] %v14084_v4 }
 0x700   : > { %v5113_v3 = vadd.f32 %v5112_v40, %v4944_v2  ;;  %v4779_v16 = vpop.f32.mrf.mxu3  ;;  %v3792_v2 = vpop.permute.xlu2 %3791 }
 0x701   : > { %v4607_v50 = vpop.f32.mrf.mxu2 }
 0x702   : > { %v4608_v18 = vadd.f32 %v4607_v50, %v4439_v62  ;;  %v5263_v0 = vmax.f32 %v5113_v3, 0.0 }
 0x703   : > { %v14075_v20 = vpop.f32.mrf.mxu1 }
 0x704   : > { %v4777_v55 = vadd.f32 %v4776_v45, %v4608_v18 }
 0x706   : > { %v4946_v54 = vadd.f32 %v13741_v35, %v4777_v55  ;;  %4649 = vmatmul.bf16.gmra.mxu2 %v3979_v15  ;;  %v3879_v35 = vsel %vm3608_vm12, %v3790_v53, %v3792_v2  ;;  %v14103_v18 = vpop.f32.mrf.mxu0 }
 0x707   : > { %17490 = vst [vmem:[#allocation88_spill] sm:$0xff] %v14103_v18  ;;  %v17499_v18 = vld [vmem:[#allocation49_spill] sm:$0xff] }
 0x708   : > { %v5115_v40 = vadd.f32 %v5114_v9, %v4946_v54  ;;  %v14086_v39 = vpop.f32.mrf.mxu3  ;;  %v14097_v9 = vpop.permute.xlu0 %3835 }
 0x709   : > { %v4610_v30 = vpop.f32.mrf.mxu2  ;;  %17489 = vst [vmem:[#allocation45_spill] sm:$0xff] %v14097_v9  ;;  %v3796_v54 = vpop.permute.xlu1 %3795 }
 0x70a   : > { %v5264_v45 = vmax.f32 %v5115_v40, 0.0  ;;  %v4611_v38 = vadd.f32 %v4610_v30, %v4442_v24  ;;  %v3880_v40 = vsel %vm3608_vm12, %v13836_v7, %v3796_v54 }
 0x70b   : > { %v14088_v49 = vpop.f32.mrf.mxu1 }
 0x70c   : > { %v4780_v17 = vadd.f32 %v4779_v16, %v4611_v38  ;;  %v14091_v26 = vpack.c.bf16 %v5264_v45, %v5263_v0  ;;  %v3987_v38 = vsel %vm3608_vm12, %v13580_v56, %v13836_v7 }
 0x70d   : > { %4823 = vmatmul.bf16.gmra.mxu3 %v3879_v35 }
 0x70e   : > { %17488 = vst [vmem:[#allocation44_spill] sm:$0xff] %v14091_v26  ;;  %v4949_v62 = vadd.f32 %v13770_v6, %v4780_v17  ;;  %10161 = vmatmul.msk.bf16.gmra.mxu1 %vm3608_vm12, %v13642_v61  ;;  %v3983_v6 = vsel %vm3608_vm12, %v13554_v47, %v3790_v53  ;;  %v3798_v17 = vpop.permute.xlu2 %3797 }
 0x70f   : > { %5047 = vmatmul.bf16.gmra.mxu0 %v13664_v41 }
 0x710   : > { %v14099_v3 = vadd.f32 %v5117_v36, %v4949_v62  ;;  %v14101_v50 = vpop.f32.mrf.mxu3  ;;  %v14113_v52 = vpop.permute.xlu0 %3841 }
 0x711   : > { %v14105_v16 = vpop.f32.mrf.mxu2  ;;  %17491 = vst [vmem:[#allocation89_spill] sm:$0xff] %v14113_v52  ;;  %v14115_v36 = vpop.f32.mrf.mxu0 }
 0x712   : > { %17492 = vst [vmem:[#allocation90_spill] sm:$0xff] %v14115_v36  ;;  %v4452_v36 = vadd.f32 %v13996_v58, %v17499_v18  ;;  %v17502_v18 = vld [vmem:[#allocation47_spill] sm:$0xff] }
 0x713   : > { %v14107_v55 = vpop.f32.mrf.mxu1 }
 0x716   : > { %4654 = vmatmul.bf16.gmra.mxu2 %v3983_v6 }
 0x718   : > { %v14111_v15 = vpop.f32.mrf.mxu3  ;;  %v14126_v0 = vpop.permute.xlu0 %3847 }
 0x719   : > { %v4615_v41 = vpop.f32.mrf.mxu2  ;;  %17493 = vst [vmem:[#allocation91_spill] sm:$0xff] %v14126_v0  ;;  %v14128_v45 = vpop.f32.mrf.mxu0 }
 0x71a   : > { %17494 = vst [vmem:[#allocation92_spill] sm:$0xff] %v14128_v45 }
 0x71b   : > { %v14117_v24 = vpop.f32.mrf.mxu1 }
 0x71d   : > { %4828 = vmatmul.bf16.gmra.mxu3 %v3880_v40 }
 0x71e   : > { %10162 = vmatmul.msk.bf16.gmra.mxu1 %vm3608_vm12, %v13587_v14 }
 0x71f   : > { %5052 = vmatmul.bf16.gmra.mxu0 %v13704_v5  ;;  %v3881_v5 = vsel %vm3608_vm12, %v3798_v17, %v13846_v44  ;;  %v3991_v44 = vsel %vm3608_vm12, %v13642_v61, %v3798_v17 }
 0x720   : > { %v4789_v47 = vpop.f32.mrf.mxu3 }
 0x721   : > { %v4617_v53 = vpop.f32.mrf.mxu2  ;;  %v14142_v56 = vpop.f32.mrf.mxu0 }
 0x722   : > { %17495 = vst [vmem:[#allocation93_spill] sm:$0xff] %v14142_v56 }
 0x723   : > { %v14124_v30 = vpop.f32.mrf.mxu1 }
 0x726   : > { %4659 = vmatmul.bf16.gmra.mxu2 %v3987_v38  ;;  %v17496_v38 = vld [vmem:[#allocation51_spill] sm:$0xff] }
 0x728   : > { %v4791_v2 = vpop.f32.mrf.mxu3 }
 0x729   : > { %v4620_v35 = vpop.f32.mrf.mxu2  ;;  %v14149_v0 = vpop.f32.mrf.mxu0 }
 0x72a   : > { %17497 = vst [vmem:[#allocation51_spill] sm:$0xff] %v14149_v0  ;;  %v4621_v17 = vadd.f32 %v4620_v35, %v4452_v36 }
 0x72b   : > { %v5132_v62 = vpop.f32.mrf.mxu1 }
 0x72c   : > { %v3447_v14 = vpop.permute.xlu0 %3446  ;;  %v4790_v36 = vadd.f32 %v4789_v47, %v4621_v17  ;;  %v17504_v17 = vld [vmem:[#allocation54_spill] sm:$0xff] }
 0x72d   : > { %v14137_v6 = vsel %vm3608_vm12, %v13951_v33, %v3447_v14  ;;  %4833 = vmatmul.bf16.gmra.mxu3 %v3881_v5  ;;  %v4457_v33 = vadd.f32 %v13996_v58, %v17496_v38  ;;  %v3804_v14 = vpop.permute.xlu2 %3803  ;;  %v17500_v38 = vld [vmem:[#allocation48_spill] sm:$0xff] }
 0x72e   : > { %5171 = vmatmul.bf16.gmra.mxu1 %v17437_v13  ;;  %3861 = vrot.lane.b32.xlu2 %v14137_v6, %s11551_s12  ;;  %v4449_v0 = vadd.f32 %v13996_v58, %v17500_v38 }
 0x72f   : > { %5057 = vmatmul.bf16.gmra.mxu0 %v13388_v22  ;;  %v3802_v22 = vpop.permute.xlu1 %3801 }
 0x730   : > { %v4794_v7 = vpop.f32.mrf.mxu3  ;;  %v3882_v61 = vsel %vm3608_vm12, %v3802_v22, %v3804_v14 }
 0x731   : > { %v4622_v54 = vpop.f32.mrf.mxu2  ;;  %v14168_v38 = vpop.f32.mrf.mxu0 }
 0x732   : > { %v4623_v45 = vadd.f32 %v4622_v54, %v4454_v46  ;;  %v4447_v46 = vadd.f32 %v13996_v58, %v17502_v18  ;;  %v4618_v54 = vadd.f32 %v4617_v53, %v4449_v0  ;;  %v4959_v53 = vadd.f32 %v13833_v32, %v4790_v36  ;;  %v17506_v36 = vld [vmem:[#allocation35_spill] sm:$0xff] }
 0x733   : > { %v5134_v40 = vpop.f32.mrf.mxu1 }
 0x734   : > { %v4787_v18 = vadd.f32 %v14111_v15, %v4618_v54 }
 0x736   : > { %4664 = vmatmul.bf16.gmra.mxu2 %v3991_v44  ;;  %v4956_v32 = vadd.f32 %v13813_v57, %v4787_v18 }
 0x738   : > { %v4796_v5 = vpop.f32.mrf.mxu3  ;;  %v5125_v57 = vadd.f32 %v14107_v55, %v4956_v32  ;;  %v5265_v32 = vmax.f32 %v14099_v3, 0.0 }
 0x739   : > { %v4625_v52 = vpop.f32.mrf.mxu2 }
 0x73a   : > { %v4626_v4 = vadd.f32 %v4625_v52, %v4457_v33  ;;  %v4459_v52 = vadd.f32 %v13996_v58, %v17501_v10  ;;  %v4792_v33 = vadd.f32 %v4791_v2, %v4623_v45 }
 0x73b   : > { %v5137_v56 = vpop.f32.mrf.mxu1 }
 0x73c   : > { %v4795_v44 = vadd.f32 %v4794_v7, %v4626_v4  ;;  %v17503_v7 = vld [vmem:[#allocation46_spill] sm:$0xff]  ;;  %v4961_v10 = vadd.f32 %v13844_v48, %v4792_v33  ;;  %v17505_v33 = vld [vmem:[#allocation69_spill] sm:$0xff] }
 0x73d   : > { %4838 = vmatmul.bf16.gmra.mxu3 %v3882_v61  ;;  %v4444_v61 = vadd.f32 %v13996_v58, %v17503_v7  ;;  %v17508_v7 = vld [vmem:[#allocation39_spill] sm:$0xff] }
 0x73e   : > { %10163 = vmatmul.msk.bf16.gmra.mxu1 %vm3608_vm12, %v13691_v28  ;;  %v4964_v4 = vadd.f32 %v13871_v11, %v4795_v44  ;;  %v5130_v48 = vadd.f32 %v14124_v30, %v4961_v10  ;;  %v17510_v10 = vld [vmem:[#allocation16_spill] sm:$0xff] }
 0x73f   : > { %5062 = vmatmul.bf16.gmra.mxu0 %v13625_v25  ;;  %v4616_v25 = vadd.f32 %v4615_v41, %v4447_v46  ;;  %v4613_v2 = vadd.f32 %v14105_v16, %v4444_v61  ;;  %v4462_v41 = vadd.f32 %v13996_v58, %v17504_v17  ;;  %v3808_v16 = vpop.permute.xlu1 %3807 }
 0x740   : > { %v4799_v9 = vpop.f32.mrf.mxu3  ;;  %v5133_v47 = vadd.f32 %v5132_v62, %v4964_v4  ;;  %v5270_v54 = vmax.f32 %v5130_v48, 0.0  ;;  %v3883_v30 = vsel %vm3608_vm12, %v17506_v36, %v3808_v16  ;;  %v17507_v4 = vld [vmem:[#allocation24_spill] sm:$0xff] }
 0x741   : > { %v4627_v14 = vpop.f32.mrf.mxu2  ;;  %v4785_v0 = vadd.f32 %v14101_v50, %v4616_v25  ;;  %v4782_v15 = vadd.f32 %v14086_v39, %v4613_v2  ;;  %v17509_v25 = vld [vmem:[#allocation12_spill] sm:$0xff] }
 0x742   : > { %v4628_v35 = vadd.f32 %v4627_v14, %v4459_v52  ;;  %v5271_v52 = vmax.f32 %v5133_v47, 0.0 }
 0x743   : > { %v5139_v23 = vpop.f32.mrf.mxu1  ;;  %v4954_v50 = vadd.f32 %v17505_v33, %v4785_v0  ;;  %v4951_v39 = vadd.f32 %v17507_v4, %v4782_v15  ;;  %v17512_v15 = vld [vmem:[#allocation27_spill] sm:$0xff]  ;;  %v17515_v4 = vld [vmem:[#allocation53_spill] sm:$0xff] }
 0x744   : > { %v4797_v45 = vadd.f32 %v4796_v5, %v4628_v35  ;;  %v14190_v35 = vpop.f32.mrf.mxu0 }
 0x745   : > { %v5120_v47 = vadd.f32 %v14075_v20, %v4951_v39  ;;  %v17516_v39 = vld [vmem:[#allocation60_spill] sm:$0xff] }
 0x746   : > { %v4966_v11 = vadd.f32 %v13886_v12, %v4797_v45  ;;  %10147 = vmatmul.msk.bf16.gmra.mxu2 %vm13748_vm13, %v3802_v22  ;;  %v5128_v12 = vadd.f32 %v14117_v24, %v4959_v53  ;;  %v17511_v45 = vld [vmem:[#allocation57_spill] sm:$0xff] }
 0x747   : > { %v4464_v2 = vadd.f32 %v13996_v58, %v17511_v45 }
 0x748   : > { %v5135_v5 = vadd.f32 %v5134_v40, %v4966_v11  ;;  %v4801_v44 = vpop.f32.mrf.mxu3  ;;  %v5269_v24 = vmax.f32 %v5128_v12, 0.0  ;;  %v5268_v11 = vmax.f32 %v5125_v57, 0.0  ;;  %v4469_v57 = vadd.f32 %v13996_v58, %v17516_v39 }
 0x749   : > { %v4630_v62 = vpop.f32.mrf.mxu2 }
 0x74a   : > { %v5272_v63 = vmax.f32 %v5135_v5, 0.0  ;;  %v4631_v22 = vadd.f32 %v4630_v62, %v4462_v41  ;;  %v14202_v53 = vpack.c.bf16 %v5270_v54, %v5269_v24  ;;  %v5266_v5 = vmax.f32 %v5120_v47, 0.0  ;;  %v17513_v62 = vld [vmem:[#allocation58_spill] sm:$0xff] }
 0x74b   : > { %v5142_v46 = vpop.f32.mrf.mxu1  ;;  %v4467_v12 = vadd.f32 %v13996_v58, %v17513_v62  ;;  %v17519_v62 = vld [vmem:[#allocation63_spill] sm:$0xff] }
 0x74c   : > { %v4800_v14 = vadd.f32 %v4799_v9, %v4631_v22  ;;  %v14187_v40 = vpack.c.bf16 %v5272_v63, %v5271_v52  ;;  %v5123_v9 = vadd.f32 %v14088_v49, %v4954_v50  ;;  %v14212_v20 = vpop.f32.mrf.mxu0  ;;  %v3810_v63 = vpop.permute.xlu2 %3809  ;;  %v14218_v33 = vpack.c.bf16 %v5266_v5, %v5265_v32  ;;  %v17518_v32 = vld [vmem:[#allocation19_spill] sm:$0xff] }
 0x74d   : > { %4843 = vmatmul.bf16.gmra.mxu3 %v3883_v30  ;;  %v3884_v36 = vsel %vm3608_vm12, %v3810_v63, %v14039_v27 }
 0x74e   : > { %v4969_v61 = vadd.f32 %v17508_v7, %v4800_v14  ;;  %10164 = vmatmul.msk.bf16.gmra.mxu1 %vm3608_vm12, %v17509_v25  ;;  %5545 = vmatpush.bf16.msra.mxu2 %v14187_v40  ;;  %v5267_v41 = vmax.f32 %v5123_v9, 0.0 }
 0x74f   : > { %5067 = vmatmul.bf16.gmra.mxu0 %v17510_v10 }
 0x750   : > { %v5138_v18 = vadd.f32 %v5137_v56, %v4969_v61  ;;  %6339 = vmatpush.bf16.msra.mxu0 %v14187_v40  ;;  %v4804_v55 = vpop.f32.mrf.mxu3  ;;  %v14207_v16 = vpack.c.bf16 %v5268_v11, %v5267_v41 }
 0x751   : > { %v4632_v0 = vpop.f32.mrf.mxu2 }
 0x752   : > { %v4633_v17 = vadd.f32 %v4632_v0, %v4464_v2  ;;  %5546 = vmatpush.bf16.msra.mxu2 %v14202_v53  ;;  %v3814_v0 = vpop.permute.xlu1 %3813 }
 0x753   : > { %v5144_v49 = vpop.f32.mrf.mxu1 }
 0x754   : > { %v4802_v48 = vadd.f32 %v4801_v44, %v4633_v17  ;;  %6340 = vmatpush.bf16.msra.mxu0 %v14202_v53  ;;  %v14234_v27 = vpop.f32.mrf.mxu0  ;;  %v3816_v47 = vpop.permute.xlu2 %3815 }
 0x756   : > { %v4971_v56 = vadd.f32 %v13922_v59, %v4802_v48  ;;  %4674 = vmatmul.bf16.gmra.mxu2 %v17512_v15  ;;  %v5273_v59 = vmax.f32 %v5138_v18, 0.0 }
 0x757   : > { %5547 = vmatpush.bf16.msra.mxu2 %v14207_v16 }
 0x758   : > { %v5140_v52 = vadd.f32 %v5139_v23, %v4971_v56  ;;  %6341 = vmatpush.bf16.msra.mxu0 %v14207_v16  ;;  %v4806_v44 = vpop.f32.mrf.mxu3  ;;  %v3885_v56 = vsel %vm3608_vm12, %v3814_v0, %v3816_v47 }
 0x759   : > { %v4635_v22 = vpop.f32.mrf.mxu2 }
 0x75a   : > { %v5274_v50 = vmax.f32 %v5140_v52, 0.0  ;;  %v4636_v54 = vadd.f32 %v4635_v22, %v4467_v12  ;;  %v4474_v12 = vadd.f32 %v13996_v58, %v17519_v62 }
 0x75b   : > { %5548 = vmatpush.bf16.msra.mxu2 %v14218_v33  ;;  %v5147_v3 = vpop.f32.mrf.mxu1 }
 0x75c   : > { %v4805_v14 = vadd.f32 %v4804_v55, %v4636_v54  ;;  %6342 = vmatpush.bf16.msra.mxu0 %v14218_v33  ;;  %v14224_v23 = vpack.c.bf16 %v5274_v50, %v5273_v59  ;;  %v14245_v5 = vpop.f32.mrf.mxu0 }
 0x75d   : > { %4848 = vmatmul.bf16.gmra.mxu3 %v3884_v36  ;;  %v17521_v36 = vld [vmem:[#allocation65_spill] sm:$0xff] }
 0x75e   : > { %17514 = vst [vmem:[#allocation50_spill] sm:$0xff] %v14224_v23  ;;  %v4974_v30 = vadd.f32 %v13937_v19, %v4805_v14  ;;  %10165 = vmatmul.msk.bf16.gmra.mxu1 %vm3608_vm12, %v17515_v4  ;;  %v17520_v14 = vld [vmem:[#allocation87_spill] sm:$0xff] }
 0x75f   : > { %5072 = vmatmul.bf16.gmra.mxu0 %v13715_v21  ;;  %5549 = vmatpush.bf16.msra.mxu2 %v14091_v26  ;;  %v4002_v21 = vsel %vm3608_vm12, %v13691_v28, %v3810_v63 }
 0x760   : > { %v5143_v24 = vadd.f32 %v5142_v46, %v4974_v30  ;;  %6343 = vmatpush.bf16.msra.mxu0 %v14091_v26  ;;  %v4809_v7 = vpop.f32.mrf.mxu3  ;;  %v17517_v46 = vld [vmem:[#allocation62_spill] sm:$0xff] }
 0x761   : > { %v4637_v61 = vpop.f32.mrf.mxu2  ;;  %v4472_v2 = vadd.f32 %v13996_v58, %v17517_v46  ;;  %v17522_v46 = vld [vmem:[#allocation17_spill] sm:$0xff] }
 0x762   : > { %v4638_v9 = vadd.f32 %v4637_v61, %v4469_v57  ;;  %v5275_v17 = vmax.f32 %v5143_v24, 0.0  ;;  %v3820_v57 = vpop.permute.xlu1 %3819 }
 0x763   : > { %5550 = vmatpush.bf16.msra.mxu2 %v14065_v29  ;;  %v5149_v19 = vpop.f32.mrf.mxu1 }
 0x764   : > { %v4807_v10 = vadd.f32 %v4806_v44, %v4638_v9  ;;  %6344 = vmatpush.bf16.msra.mxu0 %v14065_v29  ;;  %v14260_v54 = vpop.f32.mrf.mxu0 }
 0x766   : > { %v4976_v45 = vadd.f32 %v13966_v43, %v4807_v10  ;;  %4679 = vmatmul.bf16.gmra.mxu2 %v4002_v21 }
 0x767   : > { %5551 = vmatpush.bf16.msra.mxu2 %v14045_v1 }
 0x768   : > { %v5145_v18 = vadd.f32 %v5144_v49, %v4976_v45  ;;  %6345 = vmatpush.bf16.msra.mxu0 %v14045_v1  ;;  %v4811_v55 = vpop.f32.mrf.mxu3 }
 0x769   : > { %v4640_v11 = vpop.f32.mrf.mxu2 }
 0x76a   : > { %v5276_v41 = vmax.f32 %v5145_v18, 0.0  ;;  %v4641_v48 = vadd.f32 %v4640_v11, %v4472_v2  ;;  %v17523_v18 = vld [vmem:[#allocation66_spill] sm:$0xff] }
 0x76b   : > { %5552 = vmatpush.bf16.msra.mxu2 %v14023_v60  ;;  %v5152_v28 = vpop.f32.mrf.mxu1 }
 0x76c   : > { %v4810_v43 = vadd.f32 %v4809_v7, %v4641_v48  ;;  %6346 = vmatpush.bf16.msra.mxu0 %v14023_v60  ;;  %v14250_v49 = vpack.c.bf16 %v5276_v41, %v5275_v17  ;;  %v14277_v2 = vpop.f32.mrf.mxu0 }
 0x76d   : > { %4853 = vmatmul.bf16.gmra.mxu3 %v3885_v56  ;;  %v17524_v56 = vld [vmem:[#allocation68_spill] sm:$0xff] }
 0x76e   : > { %v4979_v15 = vadd.f32 %v13986_v37, %v4810_v43  ;;  %10166 = vmatmul.msk.bf16.gmra.mxu1 %vm3608_vm12, %v17518_v32  ;;  %v4006_v37 = vsel %vm3608_vm12, %v17509_v25, %v3814_v0  ;;  %v3886_v25 = vsel %vm3608_vm12, %v14053_v8, %v3820_v57 }
 0x76f   : > { %5077 = vmatmul.bf16.gmra.mxu0 %v14137_v6 }
 0x770   : > { %6728 = vmatpush.bf16.msrb.mxu0 %v14187_v40  ;;  %v5148_v52 = vadd.f32 %v5147_v3, %v4979_v15  ;;  %v4814_v44 = vpop.f32.mrf.mxu3  ;;  %v4477_v3 = vadd.f32 %v13996_v58, %v17521_v36 }
 0x771   : > { %v4642_v63 = vpop.f32.mrf.mxu2 }
 0x772   : > { %v4643_v22 = vadd.f32 %v4642_v63, %v4474_v12  ;;  %v5277_v7 = vmax.f32 %v5148_v52, 0.0  ;;  %v3822_v12 = vpop.permute.xlu2 %3821 }
 0x773   : > { %v5154_v59 = vpop.f32.mrf.mxu1 }
 0x774   : > { %6729 = vmatpush.bf16.msrb.mxu0 %v14202_v53  ;;  %v4812_v50 = vadd.f32 %v4811_v55, %v4643_v22  ;;  %v4479_v55 = vadd.f32 %v13996_v58, %v17523_v18 }
 0x776   : > { %v4981_v6 = vadd.f32 %v17520_v14, %v4812_v50  ;;  %4684 = vmatmul.bf16.gmra.mxu2 %v4006_v37 }
 0x778   : > { %6730 = vmatpush.bf16.msrb.mxu0 %v14207_v16  ;;  %v5150_v30 = vadd.f32 %v5149_v19, %v4981_v6  ;;  %v4816_v39 = vpop.f32.mrf.mxu3 }
 0x779   : > { %v4645_v24 = vpop.f32.mrf.mxu2 }
 0x77a   : > { %v5278_v61 = vmax.f32 %v5150_v30, 0.0  ;;  %v4646_v9 = vadd.f32 %v4645_v24, %v4477_v3  ;;  %v4014_v30 = vsel %vm3608_vm12, %v17518_v32, %v3822_v12  ;;  %v3826_v24 = vpop.permute.xlu1 %3825 }
 0x77b   : > { %v5157_v10 = vpop.f32.mrf.mxu1 }
 0x77c   : > { %6731 = vmatpush.bf16.msrb.mxu0 %v14218_v33  ;;  %v4815_v21 = vadd.f32 %v4814_v44, %v4646_v9  ;;  %v14271_v45 = vpack.c.bf16 %v5278_v61, %v5277_v7  ;;  %v17526_v61 = vld [vmem:[#allocation61_spill] sm:$0xff] }
 0x77d   : > { %4858 = vmatmul.bf16.gmra.mxu3 %v3886_v25  ;;  %v4018_v25 = vsel %vm3608_vm12, %v17522_v46, %v3826_v24 }
 0x77e   : > { %v4984_v19 = vadd.f32 %v14016_v31, %v4815_v21  ;;  %10167 = vmatmul.msk.bf16.gmra.mxu1 %vm3608_vm12, %v17522_v46  ;;  %v4010_v31 = vsel %vm3608_vm12, %v17515_v4, %v14053_v8  ;;  %v17529_v46 = vld [vmem:[#allocation3_spill] sm:$0xff] }
 0x77f   : > { %5082 = vmatmul.bf16.gmra.mxu0 %v17437_v13 }
 0x780   : > { %6732 = vmatpush.bf16.msrb.mxu0 %v14091_v26  ;;  %v5153_v47 = vadd.f32 %v5152_v28, %v4984_v19  ;;  %v4819_v11 = vpop.f32.mrf.mxu3  ;;  %v4482_v28 = vadd.f32 %v13996_v58, %v17524_v56  ;;  %v4497_v56 = vadd.f32 %v13996_v58, %v17529_v46 }
 0x781   : > { %v4647_v0 = vpop.f32.mrf.mxu2 }
 0x782   : > { %v4648_v17 = vadd.f32 %v4647_v0, %v4479_v55  ;;  %v5279_v44 = vmax.f32 %v5153_v47, 0.0  ;;  %v3832_v19 = vpop.permute.xlu1 %3831  ;;  %v17527_v47 = vld [vmem:[#allocation42_spill] sm:$0xff] }
 0x783   : > { %v14283_v41 = vpop.f32.mrf.mxu1  ;;  %v17528_v0 = vld [vmem:[#allocation22_spill] sm:$0xff] }
 0x784   : > { %6733 = vmatpush.bf16.msrb.mxu0 %v14065_v29  ;;  %v4817_v48 = vadd.f32 %v4816_v39, %v4648_v17 }
 0x786   : > { %v4986_v43 = vadd.f32 %v14031_v51, %v4817_v48  ;;  %4689 = vmatmul.bf16.gmra.mxu2 %v4010_v31  ;;  %v3887_v51 = vsel %vm3608_vm12, %v3822_v12, %v14062_v42  ;;  %v3828_v42 = vpop.permute.xlu2 %3827 }
 0x788   : > { %6734 = vmatpush.bf16.msrb.mxu0 %v14045_v1  ;;  %v5155_v15 = vadd.f32 %v5154_v59, %v4986_v43  ;;  %v14292_v62 = vpop.f32.mrf.mxu3  ;;  %v17525_v59 = vld [vmem:[#allocation64_spill] sm:$0xff]  ;;  %v17539_v1 = vld [vmem:[#allocation90_spill] sm:$0xff] }
 0x789   : > { %v4650_v52 = vpop.f32.mrf.mxu2  ;;  %v4022_v43 = vsel %vm3608_vm12, %v17525_v59, %v17527_v47 }
 0x78a   : > { %v5280_v63 = vmax.f32 %v5155_v15, 0.0  ;;  %v4651_v22 = vadd.f32 %v4650_v52, %v4482_v28  ;;  %v17530_v52 = vld [vmem:[#allocation77_spill] sm:$0xff] }
 0x78b   : > { %v14295_v50 = vpop.f32.mrf.mxu1 }
 0x78c   : > { %6735 = vmatpush.bf16.msrb.mxu0 %v14023_v60  ;;  %v4820_v37 = vadd.f32 %v4819_v11, %v4651_v22  ;;  %v14299_v8 = vpack.c.bf16 %v5280_v63, %v5279_v44  ;;  %v3889_v11 = vsel %vm3608_vm12, %v17527_v47, %v3832_v19  ;;  %v4494_v44 = vadd.f32 %v13996_v58, %v17530_v52  ;;  %v17534_v19 = vld [vmem:[#allocation73_spill] sm:$0xff]  ;;  %v17535_v47 = vld [vmem:[#allocation72_spill] sm:$0xff]  ;;  %v17537_v52 = vld [vmem:[#allocation70_spill] sm:$0xff] }
 0x78d   : > { %4863 = vmatmul.bf16.gmra.mxu3 %v3887_v51 }
 0x78e   : > { %v4989_v4 = vadd.f32 %v14041_v34, %v4820_v37  ;;  %10168 = vmatmul.msk.bf16.gmra.mxu1 %vm3608_vm12, %v17525_v59  ;;  %v3888_v34 = vsel %vm3608_vm12, %v3826_v24, %v3828_v42  ;;  %v3834_v15 = vpop.permute.xlu2 %3833  ;;  %v17531_v37 = vld [vmem:[#allocation76_spill] sm:$0xff]  ;;  %v17533_v59 = vld [vmem:[#allocation75_spill] sm:$0xff] }
 0x78f   : > { %v4492_v51 = vadd.f32 %v13996_v58, %v17531_v37  ;;  %v4489_v24 = vadd.f32 %v13996_v58, %v17533_v59 }
 0x790   : > { %v14304_v14 = vadd.f32 %v5157_v10, %v4989_v4  ;;  %v4824_v6 = vpop.f32.mrf.mxu3 }
 0x791   : > { %v4652_v36 = vpop.f32.mrf.mxu2 }
 0x793   : > { %v14306_v3 = vpop.f32.mrf.mxu1 }
 0x796   : > { %4694 = vmatmul.bf16.gmra.mxu2 %v4014_v30  ;;  %v17532_v30 = vld [vmem:[#allocation45_spill] sm:$0xff] }
 0x797   : > { %v3890_v42 = vsel %vm3608_vm12, %v3834_v15, %v17532_v30 }
 0x798   : > { %v4826_v39 = vpop.f32.mrf.mxu3 }
 0x799   : > { %v4655_v57 = vpop.f32.mrf.mxu2 }
 0x79b   : > { %v14310_v7 = vpop.f32.mrf.mxu1 }
 0x79d   : > { %4868 = vmatmul.bf16.gmra.mxu3 %v3888_v34 }
 0x79e   : > { %10169 = vmatmul.msk.bf16.gmra.mxu1 %vm3608_vm12, %v17526_v61 }
 0x7a0   : > { %v4829_v9 = vpop.f32.mrf.mxu3 }
 0x7a1   : > { %v4657_v10 = vpop.f32.mrf.mxu2 }
 0x7a3   : > { %v5169_v21 = vpop.f32.mrf.mxu1 }
 0x7a6   : > { %4699 = vmatmul.bf16.gmra.mxu2 %v4018_v25 }
 0x7a8   : > { %v4831_v32 = vpop.f32.mrf.mxu3 }
 0x7a9   : > { %v4660_v18 = vpop.f32.mrf.mxu2 }
 0x7aa   : > { %v4661_v34 = vadd.f32 %v4660_v18, %v4492_v51  ;;  %v17538_v18 = vld [vmem:[#allocation92_spill] sm:$0xff] }
 0x7ab   : > { %v5172_v55 = vpop.f32.mrf.mxu1 }
 0x7ad   : > { %4873 = vmatmul.bf16.gmra.mxu3 %v3889_v11  ;;  %v4487_v11 = vadd.f32 %v13996_v58, %v17535_v47 }
 0x7ae   : > { %10170 = vmatmul.msk.bf16.gmra.mxu1 %vm3608_vm12, %v17528_v0 }
 0x7af   : > { %v4656_v37 = vadd.f32 %v4655_v57, %v4487_v11 }
 0x7b0   : > { %v4834_v17 = vpop.f32.mrf.mxu3 }
 0x7b1   : > { %v4662_v48 = vpop.f32.mrf.mxu2  ;;  %v4825_v26 = vadd.f32 %v4824_v6, %v4656_v37 }
 0x7b2   : > { %v4663_v4 = vadd.f32 %v4662_v48, %v4494_v44  ;;  %v4484_v44 = vadd.f32 %v13996_v58, %v17537_v52 }
 0x7b3   : > { %v5174_v31 = vpop.f32.mrf.mxu1 }
 0x7b4   : > { %v4832_v48 = vadd.f32 %v4831_v32, %v4663_v4  ;;  %v4653_v51 = vadd.f32 %v4652_v36, %v4484_v44  ;;  %v17540_v32 = vld [vmem:[#allocation88_spill] sm:$0xff]  ;;  %v17545_v44 = vld [vmem:[#allocation38_spill] sm:$0xff] }
 0x7b6   : > { %4704 = vmatmul.bf16.gmra.mxu2 %v4022_v43  ;;  %v17536_v43 = vld [vmem:[#allocation4_spill] sm:$0xff]  ;;  %v5001_v47 = vadd.f32 %v17539_v1, %v4832_v48 }
 0x7b7   : > { %v4499_v46 = vadd.f32 %v13996_v58, %v17536_v43  ;;  %v17541_v43 = vld [vmem:[#allocation93_spill] sm:$0xff] }
 0x7b8   : > { %v4836_v28 = vpop.f32.mrf.mxu3  ;;  %v5170_v1 = vadd.f32 %v5169_v21, %v5001_v47 }
 0x7b9   : > { %v4665_v12 = vpop.f32.mrf.mxu2 }
 0x7ba   : > { %v4666_v63 = vadd.f32 %v4665_v12, %v4497_v56  ;;  %v4658_v56 = vadd.f32 %v4657_v10, %v4489_v24  ;;  %v4026_v10 = vsel %vm3608_vm12, %v17526_v61, %v3834_v15  ;;  %v3838_v15 = vpop.permute.xlu1 %3837 }
 0x7bb   : > { %v5177_v22 = vpop.f32.mrf.mxu1 }
 0x7bc   : > { %v4835_v25 = vadd.f32 %v4834_v17, %v4666_v63  ;;  %v4827_v60 = vadd.f32 %v4826_v39, %v4658_v56  ;;  %v17543_v39 = vld [vmem:[#allocation43_spill] sm:$0xff] }
 0x7bd   : > { %4878 = vmatmul.bf16.gmra.mxu3 %v3890_v42  ;;  %v4830_v42 = vadd.f32 %v4829_v9, %v4661_v34  ;;  %v4822_v9 = vadd.f32 %v14292_v62, %v4653_v51  ;;  %v17542_v34 = vld [vmem:[#allocation9_spill] sm:$0xff] }
 0x7be   : > { %10171 = vmatmul.msk.bf16.gmra.mxu1 %vm3608_vm12, %v17534_v19  ;;  %v5004_v17 = vadd.f32 %v17538_v18, %v4835_v25  ;;  %v4502_v36 = vadd.f32 %v13996_v58, %v17542_v34  ;;  %v3840_v25 = vpop.permute.xlu2 %3839  ;;  %v4996_v11 = vadd.f32 %v17543_v39, %v4827_v60  ;;  %v5286_v60 = vmax.f32 %v5170_v1, 0.0  ;;  %v17548_v51 = vld [vmem:[#allocation13_spill] sm:$0xff] }
 0x7bf   : > { %v4999_v4 = vadd.f32 %v17540_v32, %v4830_v42  ;;  %v4991_v62 = vadd.f32 %v17545_v44, %v4822_v9  ;;  %v4504_v47 = vadd.f32 %v13996_v58, %v17548_v51  ;;  %v17549_v39 = vld [vmem:[#allocation21_spill] sm:$0xff]  ;;  %v17552_v44 = vld [vmem:[#allocation20_spill] sm:$0xff] }
 0x7c0   : > { %v4839_v12 = vpop.f32.mrf.mxu3  ;;  %v5173_v24 = vadd.f32 %v5172_v55, %v5004_v17  ;;  %v5165_v42 = vadd.f32 %v14306_v3, %v4996_v11  ;;  %v17546_v17 = vld [vmem:[#allocation51_spill] sm:$0xff]  ;;  %v4507_v11 = vadd.f32 %v13996_v58, %v17549_v39 }
 0x7c1   : > { %v4667_v30 = vpop.f32.mrf.mxu2  ;;  %v5168_v55 = vadd.f32 %v14310_v7, %v4999_v4  ;;  %v5160_v3 = vadd.f32 %v14283_v41, %v4991_v62  ;;  %v4030_v41 = vsel %vm3608_vm12, %v17528_v0, %v3838_v15 }
 0x7c2   : > { %v4668_v63 = vadd.f32 %v4667_v30, %v4499_v46  ;;  %v17544_v46 = vld [vmem:[#allocation41_spill] sm:$0xff]  ;;  %v5287_v48 = vmax.f32 %v5173_v24, 0.0  ;;  %v3891_v30 = vsel %vm3608_vm12, %v3838_v15, %v3840_v25 }
 0x7c3   : > { %v5179_v59 = vpop.f32.mrf.mxu1  ;;  %v4994_v56 = vadd.f32 %v17544_v46, %v4825_v26  ;;  %v5285_v18 = vmax.f32 %v5168_v55, 0.0  ;;  %v5282_v9 = vmax.f32 %v5160_v3, 0.0  ;;  %v3844_v46 = vpop.permute.xlu1 %3843  ;;  %v17550_v55 = vld [vmem:[#allocation89_spill] sm:$0xff] }
 0x7c4   : > { %v4837_v29 = vadd.f32 %v4836_v28, %v4668_v63  ;;  %v17547_v63 = vld [vmem:[#allocation31_spill] sm:$0xff] }
 0x7c5   : > { %v5163_v26 = vadd.f32 %v14295_v50, %v4994_v56  ;;  %v14368_v4 = vpack.c.bf16 %v5286_v60, %v5285_v18  ;;  %v14402_v60 = vpop.f32.mrf.mxu0 }
 0x7c6   : > { %v5006_v57 = vadd.f32 %v17541_v43, %v4837_v29  ;;  %4709 = vmatmul.bf16.gmra.mxu2 %v4026_v10 }
 0x7c7   : > { %v5283_v24 = vmax.f32 %v5163_v26, 0.0 }
 0x7c8   : > { %v5175_v28 = vadd.f32 %v5174_v31, %v5006_v57  ;;  %v4841_v6 = vpop.f32.mrf.mxu3 }
 0x7c9   : > { %v4670_v61 = vpop.f32.mrf.mxu2 }
 0x7ca   : > { %v5288_v29 = vmax.f32 %v5175_v28, 0.0  ;;  %v4671_v52 = vadd.f32 %v4670_v61, %v4502_v36 }
 0x7cb   : > { %v5182_v37 = vpop.f32.mrf.mxu1 }
 0x7cc   : > { %v4840_v21 = vadd.f32 %v4839_v12, %v4671_v52  ;;  %v14357_v31 = vpack.c.bf16 %v5288_v29, %v5287_v48  ;;  %v5284_v12 = vmax.f32 %v5165_v42, 0.0  ;;  %v3892_v48 = vsel %vm3608_vm12, %v17550_v55, %v3844_v46  ;;  %v14398_v52 = vld [vmem:[%s17167_s4] ss:$0 sm:$0xff] }
 0x7cd   : > { %4883 = vmatmul.bf16.gmra.mxu3 %v3891_v30  ;;  %v4509_v62 = vadd.f32 %v14398_v52, %v17552_v44 }
 0x7ce   : > { %v5009_v7 = vadd.f32 %v17546_v17, %v4840_v21  ;;  %10172 = vmatmul.msk.bf16.gmra.mxu1 %vm3608_vm12, %v17547_v63  ;;  %5594 = vmatpush.bf16.msra.mxu3 %v14357_v31  ;;  %v14372_v36 = vpack.c.bf16 %v5284_v12, %v5283_v24  ;;  %v4034_v17 = vsel %vm3608_vm12, %v17534_v19, %v17550_v55  ;;  %v3846_v12 = vpop.permute.xlu2 %3845  ;;  %v14415_v19 = vpop.f32.mrf.mxu0 }
 0x7cf   : > { %6388 = vmatpush.bf16.msra.mxu1 %v14357_v31 }
 0x7d0   : > { %v5178_v10 = vadd.f32 %v5177_v22, %v5009_v7  ;;  %v4844_v32 = vpop.f32.mrf.mxu3  ;;  %v5281_v22 = vmax.f32 %v14304_v14, 0.0 }
 0x7d1   : > { %v4672_v50 = vpop.f32.mrf.mxu2 }
 0x7d2   : > { %v4673_v43 = vadd.f32 %v4672_v50, %v4504_v47  ;;  %5595 = vmatpush.bf16.msra.mxu3 %v14368_v4  ;;  %v5289_v61 = vmax.f32 %v5178_v10, 0.0 }
 0x7d3   : > { %6389 = vmatpush.bf16.msra.mxu1 %v14368_v4  ;;  %v5184_v57 = vpop.f32.mrf.mxu1 }
 0x7d4   : > { %v4842_v34 = vadd.f32 %v4841_v6, %v4673_v43  ;;  %v14382_v6 = vpack.c.bf16 %v5282_v9, %v5281_v22  ;;  %v17554_v9 = vld [vmem:[#allocation91_spill] sm:$0xff] }
 0x7d5   : > { %v17555_v22 = vld [vmem:[#allocation71_spill] sm:$0xff] }
 0x7d6   : > { %v5011_v25 = vadd.f32 %v14168_v38, %v4842_v34  ;;  %4714 = vmatmul.bf16.gmra.mxu2 %v4030_v41  ;;  %5596 = vmatpush.bf16.msra.mxu3 %v14372_v36  ;;  %v3893_v34 = vsel %vm3608_vm12, %v3846_v12, %v17554_v9 }
 0x7d7   : > { %6390 = vmatpush.bf16.msra.mxu1 %v14372_v36 }
 0x7d8   : > { %v5180_v1 = vadd.f32 %v5179_v59, %v5011_v25  ;;  %v4846_v28 = vpop.f32.mrf.mxu3  ;;  %v17551_v59 = vld [vmem:[#allocation23_spill] sm:$0xff]  ;;  %v17556_v25 = vld [vmem:[#allocation5_spill] sm:$0xff] }
 0x7d9   : > { %v4675_v56 = vpop.f32.mrf.mxu2  ;;  %v4514_v39 = vadd.f32 %v14398_v52, %v17556_v25 }
 0x7da   : > { %v5290_v0 = vmax.f32 %v5180_v1, 0.0  ;;  %v4676_v15 = vadd.f32 %v4675_v56, %v4507_v11  ;;  %5597 = vmatpush.bf16.msra.mxu3 %v14382_v6 }
 0x7db   : > { %6391 = vmatpush.bf16.msra.mxu1 %v14382_v6  ;;  %v5187_v38 = vpop.f32.mrf.mxu1 }
 0x7dc   : > { %v4845_v14 = vadd.f32 %v4844_v32, %v4676_v15  ;;  %v14388_v29 = vpack.c.bf16 %v5290_v0, %v5289_v61  ;;  %v14430_v0 = vpop.f32.mrf.mxu0 }
 0x7dd   : > { %4888 = vmatmul.bf16.gmra.mxu3 %v3892_v48 }
 0x7de   : > { %v5014_v58 = vadd.f32 %v14190_v35, %v4845_v14  ;;  %10173 = vmatmul.msk.bf16.gmra.mxu1 %vm3608_vm12, %v17551_v59  ;;  %5598 = vmatpush.bf16.msra.mxu3 %v14299_v8  ;;  %v17557_v14 = vld [vmem:[#allocation15_spill] sm:$0xff] }
 0x7df   : > { %6392 = vmatpush.bf16.msra.mxu1 %v14299_v8 }
 0x7e0   : > { %v5183_v30 = vadd.f32 %v5182_v37, %v5014_v58  ;;  %v4849_v42 = vpop.f32.mrf.mxu3  ;;  %v17553_v37 = vld [vmem:[#allocation10_spill] sm:$0xff]  ;;  %v3852_v58 = vpop.permute.xlu2 %3851 }
 0x7e1   : > { %v4677_v35 = vpop.f32.mrf.mxu2  ;;  %v4512_v51 = vadd.f32 %v14398_v52, %v17553_v37  ;;  %v17559_v37 = vld [vmem:[#allocation7_spill] sm:$0xff] }
 0x7e2   : > { %v4678_v21 = vadd.f32 %v4677_v35, %v4509_v62  ;;  %5599 = vmatpush.bf16.msra.mxu3 %v14271_v45  ;;  %v5291_v32 = vmax.f32 %v5183_v30, 0.0  ;;  %v3850_v35 = vpop.permute.xlu1 %3849 }
 0x7e3   : > { %6393 = vmatpush.bf16.msra.mxu1 %v14271_v45  ;;  %v5189_v26 = vpop.f32.mrf.mxu1 }
 0x7e4   : > { %v4847_v18 = vadd.f32 %v4846_v28, %v4678_v21 }
 0x7e6   : > { %v5016_v7 = vadd.f32 %v14212_v20, %v4847_v18  ;;  %4719 = vmatmul.bf16.gmra.mxu2 %v4034_v17  ;;  %5600 = vmatpush.bf16.msra.mxu3 %v14250_v49  ;;  %v17558_v17 = vld [vmem:[#allocation74_spill] sm:$0xff] }
 0x7e7   : > { %6394 = vmatpush.bf16.msra.mxu1 %v14250_v49 }
 0x7e8   : > { %v5185_v47 = vadd.f32 %v5184_v57, %v5016_v7  ;;  %v4851_v3 = vpop.f32.mrf.mxu3  ;;  %v14445_v7 = vpop.f32.mrf.mxu0 }
 0x7e9   : > { %v4680_v10 = vpop.f32.mrf.mxu2 }
 0x7ea   : > { %v5292_v50 = vmax.f32 %v5185_v47, 0.0  ;;  %v4681_v24 = vadd.f32 %v4680_v10, %v4512_v51  ;;  %5601 = vmatpush.bf16.msra.mxu3 %v14224_v23  ;;  %v4519_v51 = vadd.f32 %v14398_v52, %v17559_v37 }
 0x7eb   : > { %6395 = vmatpush.bf16.msra.mxu1 %v14224_v23  ;;  %v5192_v20 = vpop.f32.mrf.mxu1 }
 0x7ec   : > { %v4850_v43 = vadd.f32 %v4849_v42, %v4681_v24  ;;  %v14421_v57 = vpack.c.bf16 %v5292_v50, %v5291_v32 }
 0x7ed   : > { %4893 = vmatmul.bf16.gmra.mxu3 %v3893_v34 }
 0x7ee   : > { %v5019_v41 = vadd.f32 %v14234_v27, %v4850_v43  ;;  %10174 = vmatmul.msk.bf16.gmra.mxu1 %vm3608_vm12, %v17555_v22  ;;  %v4038_v27 = vsel %vm3608_vm12, %v17547_v63, %v3846_v12  ;;  %v17560_v43 = vld [vmem:[#allocation11_spill] sm:$0xff] }
 0x7ef   : > { %6777 = vmatpush.bf16.msrb.mxu1 %v14357_v31  ;;  %v4522_v9 = vadd.f32 %v14398_v52, %v17560_v43 }
 0x7f0   : > { %v5188_v11 = vadd.f32 %v5187_v38, %v5019_v41  ;;  %v4854_v1 = vpop.f32.mrf.mxu3  ;;  %v4517_v38 = vadd.f32 %v14398_v52, %v17557_v14  ;;  %v14461_v25 = vpop.f32.mrf.mxu0 }
 0x7f1   : > { %v4682_v28 = vpop.f32.mrf.mxu2 }
 0x7f2   : > { %v4683_v46 = vadd.f32 %v4682_v28, %v4514_v39  ;;  %v5293_v62 = vmax.f32 %v5188_v11, 0.0 }
 0x7f3   : > { %6778 = vmatpush.bf16.msrb.mxu1 %v14368_v4  ;;  %v5194_v56 = vpop.f32.mrf.mxu1 }
 0x7f4   : > { %v4852_v61 = vadd.f32 %v4851_v3, %v4683_v46  ;;  %v3854_v46 = vpop.permute.xlu1 %3853 }
 0x7f6   : > { %v5021_v15 = vadd.f32 %v14245_v5, %v4852_v61  ;;  %4724 = vmatmul.bf16.gmra.mxu2 %v4038_v27  ;;  %v3894_v5 = vsel %vm3608_vm12, %v3850_v35, %v3852_v58 }
 0x7f7   : > { %6779 = vmatpush.bf16.msrb.mxu1 %v14372_v36 }
 0x7f8   : > { %v5190_v55 = vadd.f32 %v5189_v26, %v5021_v15  ;;  %v4856_v48 = vpop.f32.mrf.mxu3  ;;  %v17561_v15 = vld [vmem:[#allocation56_spill] sm:$0xff] }
 0x7f9   : > { %v4685_v44 = vpop.f32.mrf.mxu2 }
 0x7fa   : > { %v5294_v30 = vmax.f32 %v5190_v55, 0.0  ;;  %v4686_v42 = vadd.f32 %v4685_v44, %v4517_v38  ;;  %v4046_v44 = vsel %vm3608_vm12, %v17555_v22, %v3854_v46 }
 0x7fb   : > { %6780 = vmatpush.bf16.msrb.mxu1 %v14382_v6  ;;  %v5197_v21 = vpop.f32.mrf.mxu1 }
 0x7fc   : > { %v4855_v18 = vadd.f32 %v4854_v1, %v4686_v42  ;;  %v14440_v63 = vpack.c.bf16 %v5294_v30, %v5293_v62  ;;  %v3860_v42 = vpop.permute.xlu1 %3859 }
 0x7fd   : > { %4898 = vmatmul.bf16.gmra.mxu3 %v3894_v5  ;;  %v17562_v5 = vld [vmem:[#allocation29_spill] sm:$0xff] }
 0x7fe   : > { %v5024_v26 = vadd.f32 %v14260_v54, %v4855_v18  ;;  %10175 = vmatmul.msk.bf16.gmra.mxu1 %vm3608_vm12, %v17558_v17  ;;  %v4042_v54 = vsel %vm3608_vm12, %v17551_v59, %v3850_v35 }
 0x7ff   : > { %6781 = vmatpush.bf16.msrb.mxu1 %v14299_v8 }
 0x800   : > { %v5193_v47 = vadd.f32 %v5192_v20, %v5024_v26  ;;  %v4859_v3 = vpop.f32.mrf.mxu3  ;;  %v3856_v20 = vpop.permute.xlu2 %3855 }
 0x801   : > { %v4687_v12 = vpop.f32.mrf.mxu2  ;;  %v3895_v61 = vsel %vm3608_vm12, %v3854_v46, %v3856_v20  ;;  %v17564_v46 = vld [vmem:[#allocation59_spill] sm:$0xff] }
 0x802   : > { %v4688_v10 = vadd.f32 %v4687_v12, %v4519_v51  ;;  %v5295_v11 = vmax.f32 %v5193_v47, 0.0 }
 0x803   : > { %6782 = vmatpush.bf16.msrb.mxu1 %v14271_v45  ;;  %v14450_v32 = vpop.f32.mrf.mxu1 }
 0x804   : > { %v4857_v50 = vadd.f32 %v4856_v48, %v4688_v10  ;;  %v14477_v48 = vpop.f32.mrf.mxu0 }
 0x806   : > { %v5026_v24 = vadd.f32 %v14277_v2, %v4857_v50  ;;  %4729 = vmatmul.bf16.gmra.mxu2 %v4042_v54 }
 0x807   : > { %6783 = vmatpush.bf16.msrb.mxu1 %v14250_v49 }
 0x808   : > { %v5195_v34 = vadd.f32 %v5194_v56, %v5026_v24  ;;  %v14459_v41 = vpop.f32.mrf.mxu3  ;;  %v3862_v12 = vpop.permute.xlu2 %3861 }
 0x809   : > { %v4690_v39 = vpop.f32.mrf.mxu2 }
 0x80a   : > { %v5296_v1 = vmax.f32 %v5195_v34, 0.0  ;;  %v4691_v28 = vadd.f32 %v4690_v39, %v4522_v9  ;;  %v17563_v39 = vld [vmem:[#allocation25_spill] sm:$0xff] }
 0x80b   : > { %6784 = vmatpush.bf16.msrb.mxu1 %v14224_v23  ;;  %v14463_v59 = vpop.f32.mrf.mxu1 }
 0x80c   : > { %v4860_v2 = vadd.f32 %v4859_v3, %v4691_v28  ;;  %v14466_v27 = vpack.c.bf16 %v5296_v1, %v5295_v11  ;;  %v5043_v18 = vpop.f32.mrf.mxu0  ;;  %v4537_v11 = vadd.f32 %v14398_v52, %v17563_v39 }
 0x80d   : > { %4903 = vmatmul.bf16.gmra.mxu3 %v3895_v61 }
 0x80e   : > { %v5029_v56 = vadd.f32 %v14402_v60, %v4860_v2  ;;  %10176 = vmatmul.msk.bf16.gmra.mxu1 %vm3608_vm12, %v17561_v15  ;;  %v3858_v60 = vpop.permute.xlu0 %3857  ;;  %v4534_v2 = vadd.f32 %v14398_v52, %v17564_v46  ;;  %v17568_v46 = vld [vmem:[#allocation18_spill] sm:$0xff] }
 0x80f   : > { %v4050_v22 = vsel %vm3608_vm12, %v17558_v17, %v3858_v60  ;;  %v4054_v17 = vsel %vm3608_vm12, %v17561_v15, %v3862_v12  ;;  %v17566_v15 = vld [vmem:[#allocation6_spill] sm:$0xff] }
 0x810   : > { %v14471_v14 = vadd.f32 %v5197_v21, %v5029_v56  ;;  %v14473_v38 = vpop.f32.mrf.mxu3  ;;  %v3896_v21 = vsel %vm3608_vm12, %v3858_v60, %v3860_v42  ;;  %v17565_v60 = vld [vmem:[#allocation28_spill] sm:$0xff] }
 0x811   : > { %v14475_v55 = vpop.f32.mrf.mxu2  ;;  %v4532_v42 = vadd.f32 %v14398_v52, %v17565_v60 }
 0x813   : > { %v14479_v58 = vpop.f32.mrf.mxu1 }
 0x814   : > { %v5045_v47 = vpop.f32.mrf.mxu0 }
 0x816   : > { %4734 = vmatmul.bf16.gmra.mxu2 %v4046_v44  ;;  %v3864_v50 = vpop.permute.xlu0 %3863 }
 0x817   : > { %v3897_v24 = vsel %vm3608_vm12, %v3862_v12, %v3864_v50  ;;  %v4529_v12 = vadd.f32 %v14398_v52, %v17566_v15  ;;  %v10180_v50 = vld [vmem:[%s17172_s9] sm:$0xf]  ;;  %v11267_v15 = vld [vmem:[%s17172_s9 + $0x4] sm:$0xf] }
 0x818   : > { %v14483_v62 = vpop.f32.mrf.mxu3 }
 0x819   : > { %v4695_v30 = vpop.f32.mrf.mxu2 }
 0x81b   : > { %v14485_v35 = vpop.f32.mrf.mxu1 }
 0x81c   : > { %v14494_v9 = vpop.f32.mrf.mxu0 }
 0x81d   : > { %4908 = vmatmul.bf16.gmra.mxu3 %v3896_v21 }
 0x81e   : > { %10177 = vmatmul.msk.bf16.gmra.mxu1 %vm3608_vm12, %v17562_v5 }
 0x820   : > { %v4869_v26 = vpop.f32.mrf.mxu3 }
 0x821   : > { %v4697_v37 = vpop.f32.mrf.mxu2 }
 0x823   : > { %v5209_v51 = vpop.f32.mrf.mxu1 }
 0x824   : > { %v14502_v56 = vpop.f32.mrf.mxu0 }
 0x826   : > { %4739 = vmatmul.bf16.gmra.mxu2 %v4050_v22 }
 0x828   : > { %v4871_v3 = vpop.f32.mrf.mxu3 }
 0x829   : > { %v4700_v10 = vpop.f32.mrf.mxu2 }
 0x82a   : > { %v4701_v5 = vadd.f32 %v4700_v10, %v4532_v42  ;;  %v4527_v10 = vadd.f32 %v14398_v52, %v17568_v46 }
 0x82b   : > { %v5212_v54 = vpop.f32.mrf.mxu1 }
 0x82d   : > { %4913 = vmatmul.bf16.gmra.mxu3 %v3897_v24  ;;  %v11269_v24 = vld [vmem:[%s17172_s9 + $0xc] sm:$0xf0] }
 0x82e   : > { %5251 = vmatmul.bf16.gmra.mxu1 %v17437_v13  ;;  %v10181_v42 = vor.u32 %v11269_v24, %v10180_v50  ;;  %v10182_v13 = vld [vmem:[%s17172_s9 + $0x10] sm:$0xf0] }
 0x82f   : > { %v10185_v46 = vor.u32 %v11267_v15, %v10182_v13  ;;  %v17571_v15 = vld [vmem:[#allocation37_spill] sm:$0xff] }
 0x830   : > { %v4874_v43 = vpop.f32.mrf.mxu3 }
 0x831   : > { %v4702_v20 = vpop.f32.mrf.mxu2 }
 0x832   : > { %v4703_v21 = vadd.f32 %v4702_v20, %v4534_v2  ;;  %v4870_v2 = vadd.f32 %v4869_v26, %v4701_v5 }
 0x833   : > { %v5214_v34 = vpop.f32.mrf.mxu1 }
 0x836   : > { %4744 = vmatmul.bf16.gmra.mxu2 %v4054_v17  ;;  %v17567_v17 = vld [vmem:[#allocation26_spill] sm:$0xff] }
 0x837   : > { %v4539_v39 = vadd.f32 %v14398_v52, %v17567_v17  ;;  %v17569_v17 = vld [vmem:[#allocation14_spill] sm:$0xff] }
 0x838   : > { %v4876_v1 = vpop.f32.mrf.mxu3 }
 0x839   : > { %v4705_v28 = vpop.f32.mrf.mxu2 }
 0x83a   : > { %v4706_v61 = vadd.f32 %v4705_v28, %v4537_v11  ;;  %v4872_v11 = vadd.f32 %v4871_v3, %v4703_v21  ;;  %v4524_v3 = vadd.f32 %v14398_v52, %v17569_v17  ;;  %v4696_v21 = vadd.f32 %v4695_v30, %v4527_v10  ;;  %v17570_v30 = vld [vmem:[#allocation67_spill] sm:$0xff] }
 0x83b   : > { %v5217_v44 = vpop.f32.mrf.mxu1  ;;  %v4542_v13 = vadd.f32 %v14398_v52, %v17570_v30  ;;  %v5297_v30 = vmax.f32 %v14471_v14, 0.0 }
 0x83c   : > { %v4875_v22 = vadd.f32 %v4874_v43, %v4706_v61  ;;  %v4698_v43 = vadd.f32 %v4697_v37, %v4529_v12  ;;  %v5041_v37 = vadd.f32 %v14477_v48, %v4872_v11  ;;  %v4693_v5 = vadd.f32 %v14475_v55, %v4524_v3 }
 0x83d   : > { %5602 = vmatmul.bf16.vlgmr.msra.gmra.mxu3 %v10185_v46  ;;  %v5039_v12 = vadd.f32 %v14461_v25, %v4870_v2 }
 0x83e   : > { %v5044_v61 = vadd.f32 %v5043_v18, %v4875_v22  ;;  %v14527_v18 = vpop.f32.mrf.mxu0  ;;  %v4867_v22 = vadd.f32 %v14483_v62, %v4698_v43  ;;  %v5210_v10 = vadd.f32 %v5209_v51, %v5041_v37  ;;  %v4862_v11 = vadd.f32 %v14459_v41, %v4693_v5  ;;  %v10198_v5 = vld [vmem:[%s17172_s9 + $0x30] sm:$0xf0] }
 0x83f   : > { %v5208_v62 = vadd.f32 %v14485_v35, %v5039_v12 }
 0x840   : > { %v4879_v28 = vpop.f32.mrf.mxu3  ;;  %v5213_v50 = vadd.f32 %v5212_v54, %v5044_v61  ;;  %v5036_v55 = vadd.f32 %v14445_v7, %v4867_v22  ;;  %v5031_v51 = vadd.f32 %v14415_v19, %v4862_v11  ;;  %v4544_v19 = vadd.f32 %v14398_v52, %v17571_v15 }
 0x841   : > { %v4707_v20 = vpop.f32.mrf.mxu2  ;;  %v5301_v41 = vmax.f32 %v5208_v62, 0.0 }
 0x842   : > { %v4708_v60 = vadd.f32 %v4707_v20, %v4539_v39  ;;  %v4865_v39 = vadd.f32 %v14473_v38, %v4696_v21  ;;  %v5303_v43 = vmax.f32 %v5213_v50, 0.0  ;;  %v5302_v38 = vmax.f32 %v5210_v10, 0.0 }
 0x843   : > { %v5219_v23 = vpop.f32.mrf.mxu1 }
 0x844   : > { %v4877_v26 = vadd.f32 %v4876_v1, %v4708_v60  ;;  %v14554_v3 = vpack.c.bf16 %v5302_v38, %v5301_v41  ;;  %v11277_v38 = vld [vmem:[%s17172_s9 + $0x4c] sm:$0xf0] }
 0x846   : > { %v5046_v24 = vadd.f32 %v5045_v47, %v4877_v26  ;;  %5553 = vmatmul.bf16.vlgmr.msra.gmra.mxu2 %v10181_v42  ;;  %v5034_v47 = vadd.f32 %v14430_v0, %v4865_v39  ;;  %v5055_v35 = vpop.f32.mrf.mxu0  ;;  %v10196_v0 = vld [vmem:[%s17172_s9 + $0x20] sm:$0xf]  ;;  %v11271_v26 = vld [vmem:[%s17172_s9 + $0x24] sm:$0xf] }
 0x847   : > { %v10201_v12 = vor.u32 %v11271_v26, %v10198_v5 }
 0x848   : > { %v5215_v48 = vadd.f32 %v5214_v34, %v5046_v24  ;;  %v4881_v1 = vpop.f32.mrf.mxu3  ;;  %v5205_v34 = vadd.f32 %v14479_v58, %v5036_v55  ;;  %v5203_v42 = vadd.f32 %v14463_v59, %v5034_v47 }
 0x849   : > { %v4710_v20 = vpop.f32.mrf.mxu2 }
 0x84a   : > { %v5304_v25 = vmax.f32 %v5215_v48, 0.0  ;;  %v4711_v54 = vadd.f32 %v4710_v20, %v4542_v13  ;;  %v5300_v21 = vmax.f32 %v5205_v34, 0.0  ;;  %v17572_v13 = vld [vmem:[#allocation55_spill] sm:$0xff] }
 0x84b   : > { %v5222_v2 = vpop.f32.mrf.mxu1  ;;  %v4547_v10 = vadd.f32 %v14398_v52, %v17572_v13  ;;  %v17575_v13 = vld [vmem:[#allocation80_spill] sm:$0xff] }
 0x84c   : > { %v4880_v61 = vadd.f32 %v4879_v28, %v4711_v54  ;;  %v14539_v60 = vpack.c.bf16 %v5304_v25, %v5303_v43  ;;  %v11273_v28 = vld [vmem:[%s17172_s9 + $0x2c] sm:$0xf0] }
 0x84d   : > { %v10197_v37 = vor.u32 %v11273_v28, %v10196_v0  ;;  %5607 = vmatmul.bf16.gmra.mxu3 %v10201_v12  ;;  %v10214_v28 = vld [vmem:[%s17172_s9 + $0x50] sm:$0xf0] }
 0x84e   : > { %v5049_v7 = vadd.f32 %v14494_v9, %v4880_v61  ;;  %5643 = vmatpush.bf16.msrb.mxu2 %v14539_v60  ;;  %v5200_v9 = vadd.f32 %v14450_v32, %v5031_v51  ;;  %v5058_v55 = vpop.f32.mrf.mxu0  ;;  %v17573_v61 = vld [vmem:[#allocation34_spill] sm:$0xff] }
 0x84f   : > { %v4549_v51 = vadd.f32 %v14398_v52, %v17573_v61 }
 0x850   : > { %v5218_v58 = vadd.f32 %v5217_v44, %v5049_v7  ;;  %v4884_v17 = vpop.f32.mrf.mxu3  ;;  %v5299_v44 = vmax.f32 %v5203_v42, 0.0  ;;  %v5298_v24 = vmax.f32 %v5200_v9, 0.0  ;;  %v17574_v9 = vld [vmem:[#allocation78_spill] sm:$0xff] }
 0x851   : > { %v4712_v46 = vpop.f32.mrf.mxu2 }
 0x852   : > { %v4713_v59 = vadd.f32 %v4712_v46, %v4544_v19  ;;  %5644 = vmatpush.bf16.msrb.mxu2 %v14554_v3  ;;  %v14564_v32 = vpack.c.bf16 %v5300_v21, %v5299_v44  ;;  %v14571_v62 = vpack.c.bf16 %v5298_v24, %v5297_v30  ;;  %v4552_v21 = vadd.f32 %v14398_v52, %v17574_v9  ;;  %v10228_v30 = vld [vmem:[%s17172_s9 + $0x60] sm:$0xf] }
 0x853   : > { %v5224_v22 = vpop.f32.mrf.mxu1 }
 0x854   : > { %v4882_v50 = vadd.f32 %v4881_v1, %v4713_v59  ;;  %v5305_v1 = vmax.f32 %v5218_v58, 0.0 }
 0x856   : > { %v5051_v39 = vadd.f32 %v14502_v56, %v4882_v50  ;;  %5558 = vmatmul.bf16.gmra.mxu2 %v10197_v37  ;;  %v5060_v15 = vpop.f32.mrf.mxu0 }
 0x857   : > { %5645 = vmatpush.bf16.msrb.mxu2 %v14564_v32 }
 0x858   : > { %v5220_v48 = vadd.f32 %v5219_v23, %v5051_v39  ;;  %v4886_v11 = vpop.f32.mrf.mxu3  ;;  %v10212_v23 = vld [vmem:[%s17172_s9 + $0x40] sm:$0xf] }
 0x859   : > { %v4715_v20 = vpop.f32.mrf.mxu2  ;;  %v10213_v0 = vor.u32 %v11277_v38, %v10212_v23 }
 0x85a   : > { %v5306_v43 = vmax.f32 %v5220_v48, 0.0  ;;  %v4716_v25 = vadd.f32 %v4715_v20, %v4547_v10  ;;  %v4554_v10 = vadd.f32 %v14398_v52, %v17575_v13 }
 0x85b   : > { %5646 = vmatpush.bf16.msrb.mxu2 %v14571_v62  ;;  %v5227_v56 = vpop.f32.mrf.mxu1 }
 0x85c   : > { %v4885_v54 = vadd.f32 %v4884_v17, %v4716_v25  ;;  %v14574_v47 = vpack.c.bf16 %v5306_v43, %v5305_v1  ;;  %v10230_v43 = vld [vmem:[%s17172_s9 + $0x70] sm:$0xf0] }
 0x85e   : > { %v5054_v14 = vadd.f32 %v14527_v18, %v4885_v54  ;;  %v11275_v18 = vld [vmem:[%s17172_s9 + $0x44] sm:$0xf] }
 0x85f   : > { %5647 = vmatpush.bf16.msrb.mxu2 %v14466_v27  ;;  %v10217_v19 = vor.u32 %v11275_v18, %v10214_v28  ;;  %v17577_v18 = vld [vmem:[#allocation44_spill] sm:$0xff] }
 0x860   : > { %v5223_v34 = vadd.f32 %v5222_v2, %v5054_v14  ;;  %v4889_v41 = vpop.f32.mrf.mxu3  ;;  %v17576_v14 = vld [vmem:[#allocation82_spill] sm:$0xff] }
 0x861   : > { %v4717_v7 = vpop.f32.mrf.mxu2  ;;  %5612 = vmatmul.bf16.gmra.mxu3 %v10217_v19  ;;  %v4557_v23 = vadd.f32 %v14398_v52, %v17576_v14  ;;  %v17578_v19 = vld [vmem:[#allocation84_spill] sm:$0xff] }
 0x862   : > { %v4718_v42 = vadd.f32 %v4717_v7, %v4549_v51  ;;  %v5307_v26 = vmax.f32 %v5223_v34, 0.0  ;;  %v11289_v14 = vld [vmem:[%s17172_s9 + $0xac] sm:$0xf0] }
 0x863   : > { %5648 = vmatpush.bf16.msrb.mxu2 %v14440_v63  ;;  %v5229_v17 = vpop.f32.mrf.mxu1 }
 0x864   : > { %v4887_v58 = vadd.f32 %v4886_v11, %v4718_v42 }
 0x866   : > { %v5056_v2 = vadd.f32 %v5055_v35, %v4887_v58  ;;  %5563 = vmatmul.bf16.gmra.mxu2 %v10213_v0  ;;  %v5063_v35 = vpop.f32.mrf.mxu0  ;;  %v4559_v58 = vadd.f32 %v14398_v52, %v17578_v19 }
 0x867   : > { %5649 = vmatpush.bf16.msrb.mxu2 %v14421_v57 }
 0x868   : > { %v5225_v46 = vadd.f32 %v5224_v22, %v5056_v2  ;;  %v4891_v59 = vpop.f32.mrf.mxu3  ;;  %v11281_v22 = vld [vmem:[%s17172_s9 + $0x6c] sm:$0xf0] }
 0x869   : > { %v4720_v37 = vpop.f32.mrf.mxu2  ;;  %v10229_v1 = vor.u32 %v11281_v22, %v10228_v30  ;;  %v17579_v2 = vld [vmem:[#allocation40_spill] sm:$0xff]  ;;  %v17581_v30 = vld [vmem:[#allocation30_spill] sm:$0xff] }
 0x86a   : > { %v5308_v5 = vmax.f32 %v5225_v46, 0.0  ;;  %v4721_v44 = vadd.f32 %v4720_v37, %v4552_v21  ;;  %v4562_v22 = vadd.f32 %v14398_v52, %v17581_v30 }
 0x86b   : > { %5650 = vmatpush.bf16.msrb.mxu2 %v14388_v29  ;;  %v5232_v39 = vpop.f32.mrf.mxu1 }
 0x86c   : > { %v4890_v12 = vadd.f32 %v4889_v41, %v4721_v44  ;;  %v14598_v50 = vpack.c.bf16 %v5308_v5, %v5307_v26  ;;  %v11283_v26 = vld [vmem:[%s17172_s9 + $0x84] sm:$0xf]  ;;  %v10246_v5 = vld [vmem:[%s17172_s9 + $0x90] sm:$0xf0] }
 0x86e   : > { %v5059_v24 = vadd.f32 %v5058_v55, %v4890_v12  ;;  %v11279_v55 = vld [vmem:[%s17172_s9 + $0x64] sm:$0xf]  ;;  %v10249_v12 = vor.u32 %v11283_v26, %v10246_v5 }
 0x86f   : > { %5934 = vmatpush.bf16.msra.mxu2 %v14187_v40  ;;  %v10233_v25 = vor.u32 %v11279_v55, %v10230_v43 }
 0x870   : > { %v5228_v48 = vadd.f32 %v5227_v56, %v5059_v24  ;;  %v4894_v40 = vpop.f32.mrf.mxu3  ;;  %v17580_v24 = vld [vmem:[#allocation33_spill] sm:$0xff] }
 0x871   : > { %v4722_v11 = vpop.f32.mrf.mxu2  ;;  %5617 = vmatmul.bf16.gmra.mxu3 %v10233_v25 }
 0x872   : > { %v4723_v20 = vadd.f32 %v4722_v11, %v4554_v10  ;;  %v5309_v41 = vmax.f32 %v5228_v48, 0.0  ;;  %v17582_v10 = vld [vmem:[#allocation8_spill] sm:$0xff] }
 0x873   : > { %5935 = vmatpush.bf16.msra.mxu2 %v14202_v53  ;;  %v5065_v53 = vpop.f32.mrf.mxu0  ;;  %v5234_v51 = vpop.f32.mrf.mxu1 }
 0x874   : > { %v4892_v54 = vadd.f32 %v4891_v59, %v4723_v20 }
 0x876   : > { %v5061_v56 = vadd.f32 %v5060_v15, %v4892_v54  ;;  %5568 = vmatmul.bf16.gmra.mxu2 %v10229_v1  ;;  %v10244_v15 = vld [vmem:[%s17172_s9 + $0x80] sm:$0xf] }
 0x877   : > { %5936 = vmatpush.bf16.msra.mxu2 %v14207_v16 }
 0x878   : > { %v5230_v38 = vadd.f32 %v5229_v17, %v5061_v56  ;;  %v4896_v61 = vpop.f32.mrf.mxu3 }
 0x879   : > { %v4725_v34 = vpop.f32.mrf.mxu2 }
 0x87a   : > { %v5310_v7 = vmax.f32 %v5230_v38, 0.0  ;;  %v4726_v42 = vadd.f32 %v4725_v34, %v4557_v23  ;;  %v11287_v34 = vld [vmem:[%s17172_s9 + $0xa4] sm:$0xf] }
 0x87b   : > { %5937 = vmatpush.bf16.msra.mxu2 %v14218_v33  ;;  %v11285_v33 = vld [vmem:[%s17172_s9 + $0x8c] sm:$0xf0]  ;;  %v5068_v21 = vpop.f32.mrf.mxu0  ;;  %v5237_v44 = vpop.f32.mrf.mxu1 }
 0x87c   : > { %v4895_v0 = vadd.f32 %v4894_v40, %v4726_v42  ;;  %v14620_v16 = vpack.c.bf16 %v5310_v7, %v5309_v41  ;;  %v10245_v37 = vor.u32 %v11285_v33, %v10244_v15  ;;  %v10262_v41 = vld [vmem:[%s17172_s9 + $0xb0] sm:$0xf0] }
 0x87d   : > { %v10265_v7 = vor.u32 %v11287_v34, %v10262_v41  ;;  %v10292_v41 = vld [vmem:[%s17172_s9 + $0xe0] sm:$0xf] }
 0x87e   : > { %v5064_v28 = vadd.f32 %v5063_v35, %v4895_v0 }
 0x87f   : > { %5938 = vmatpush.bf16.msra.mxu2 %v17577_v18  ;;  %v17583_v18 = vld [vmem:[#allocation36_spill] sm:$0xff] }
 0x880   : > { %v5233_v17 = vadd.f32 %v5232_v39, %v5064_v28  ;;  %v4899_v9 = vpop.f32.mrf.mxu3  ;;  %v4567_v28 = vadd.f32 %v14398_v52, %v17583_v18 }
 0x881   : > { %v4727_v46 = vpop.f32.mrf.mxu2  ;;  %5622 = vmatmul.bf16.gmra.mxu3 %v10249_v12 }
 0x882   : > { %v4728_v59 = vadd.f32 %v4727_v46, %v4559_v58  ;;  %v5311_v11 = vmax.f32 %v5233_v17, 0.0 }
 0x883   : > { %5939 = vmatpush.bf16.msra.mxu2 %v17579_v2  ;;  %v14643_v55 = vpop.f32.mrf.mxu0  ;;  %v14647_v54 = vpop.f32.mrf.mxu1  ;;  %v10276_v2 = vld [vmem:[%s17172_s9 + $0xc0] sm:$0xf] }
 0x884   : > { %v4897_v35 = vadd.f32 %v4896_v61, %v4728_v59 }
 0x886   : > { %v5066_v39 = vadd.f32 %v5065_v53, %v4897_v35  ;;  %5573 = vmatmul.bf16.gmra.mxu2 %v10245_v37  ;;  %v10260_v53 = vld [vmem:[%s17172_s9 + $0xa0] sm:$0xf]  ;;  %v11291_v35 = vld [vmem:[%s17172_s9 + $0xc4] sm:$0xf] }
 0x887   : > { %5940 = vmatpush.bf16.msra.mxu2 %v17580_v24  ;;  %v10278_v24 = vld [vmem:[%s17172_s9 + $0xd0] sm:$0xf0] }
 0x888   : > { %v5235_v13 = vadd.f32 %v5234_v51, %v5066_v39  ;;  %v14641_v48 = vpop.f32.mrf.mxu3  ;;  %v10261_v51 = vor.u32 %v11289_v14, %v10260_v53  ;;  %v10281_v39 = vor.u32 %v11291_v35, %v10278_v24 }
 0x889   : > { %v4730_v40 = vpop.f32.mrf.mxu2 }
 0x88a   : > { %v5312_v20 = vmax.f32 %v5235_v13, 0.0  ;;  %v4731_v1 = vadd.f32 %v4730_v40, %v4562_v22 }
 0x88b   : > { %5941 = vmatpush.bf16.msra.mxu2 %v17582_v10  ;;  %v5073_v42 = vpop.f32.mrf.mxu0  ;;  %v5242_v0 = vpop.f32.mrf.mxu1  ;;  %v17585_v10 = vld [vmem:[#allocation81_spill] sm:$0xff] }
 0x88c   : > { %v4900_v43 = vadd.f32 %v4899_v9, %v4731_v1  ;;  %v14645_v25 = vpack.c.bf16 %v5312_v20, %v5311_v11  ;;  %v11293_v9 = vld [vmem:[%s17172_s9 + $0xcc] sm:$0xf0]  ;;  %v4572_v40 = vadd.f32 %v14398_v52, %v17585_v10 }
 0x88d   : > { %v10277_v12 = vor.u32 %v11293_v9, %v10276_v2 }
 0x88e   : > { %v5069_v56 = vadd.f32 %v5068_v21, %v4900_v43  ;;  %v17584_v21 = vld [vmem:[#allocation79_spill] sm:$0xff] }
 0x88f   : > { %v4569_v46 = vadd.f32 %v14398_v52, %v17584_v21 }
 0x890   : > { %v14655_v23 = vadd.f32 %v5237_v44, %v5069_v56  ;;  %v4904_v38 = vpop.f32.mrf.mxu3 }
 0x891   : > { %v14657_v61 = vpop.f32.mrf.mxu2  ;;  %5627 = vmatmul.bf16.gmra.mxu3 %v10265_v7  ;;  %v11297_v7 = vld [vmem:[%s17172_s9 + $0xec] sm:$0xf0] }
 0x893   : > { %v5075_v17 = vpop.f32.mrf.mxu0  ;;  %v5244_v59 = vpop.f32.mrf.mxu1 }
 0x896   : > { %5578 = vmatmul.bf16.gmra.mxu2 %v10261_v51 }
 0x898   : > { %v4906_v15 = vpop.f32.mrf.mxu3 }
 0x899   : > { %v4735_v33 = vpop.f32.mrf.mxu2 }
 0x89a   : > { %v4736_v19 = vadd.f32 %v4735_v33, %v4567_v28  ;;  %v10293_v33 = vor.u32 %v11297_v7, %v10292_v41 }
 0x89b   : > { %v5078_v20 = vpop.f32.mrf.mxu0  ;;  %v5247_v14 = vpop.f32.mrf.mxu1 }
 0x89c   : > { %v4905_v58 = vadd.f32 %v4904_v38, %v4736_v19  ;;  %v11295_v19 = vld [vmem:[%s17172_s9 + $0xe4] sm:$0xf] }
 0x89e   : > { %v5074_v26 = vadd.f32 %v5073_v42, %v4905_v58  ;;  %v17586_v42 = vld [vmem:[#allocation83_spill] sm:$0xff]  ;;  %v10294_v58 = vld [vmem:[%s17172_s9 + $0xf0] sm:$0xf0] }
 0x89f   : > { %v10297_v2 = vor.u32 %v11295_v19, %v10294_v58 }
 0x8a0   : > { %v4909_v5 = vpop.f32.mrf.mxu3  ;;  %v5243_v22 = vadd.f32 %v5242_v0, %v5074_v26  ;;  %v4574_v0 = vadd.f32 %v14398_v52, %v17586_v42  ;;  %v17587_v26 = vld [vmem:[#allocation85_spill] sm:$0xff] }
 0x8a1   : > { %v4737_v37 = vpop.f32.mrf.mxu2  ;;  %5632 = vmatmul.bf16.gmra.mxu3 %v10281_v39 }
 0x8a2   : > { %v4738_v44 = vadd.f32 %v4737_v37, %v4569_v46  ;;  %v5315_v43 = vmax.f32 %v5243_v22, 0.0 }
 0x8a3   : > { %v5249_v21 = vpop.f32.mrf.mxu1 }
 0x8a4   : > { %v4907_v30 = vadd.f32 %v4906_v15, %v4738_v44 }
 0x8a6   : > { %v5076_v13 = vadd.f32 %v5075_v17, %v4907_v30  ;;  %5583 = vmatmul.bf16.gmra.mxu2 %v10277_v12  ;;  %v5080_v17 = vpop.f32.mrf.mxu0 }
 0x8a8   : > { %v5245_v11 = vadd.f32 %v5244_v59, %v5076_v13  ;;  %v4911_v38 = vpop.f32.mrf.mxu3 }
 0x8a9   : > { %v4740_v1 = vpop.f32.mrf.mxu2 }
 0x8aa   : > { %v5316_v56 = vmax.f32 %v5245_v11, 0.0  ;;  %v4741_v53 = vadd.f32 %v4740_v1, %v4572_v40  ;;  %v10188_v40 = vld [vmem:[%s17172_s9 + $0x8] sm:$0xf]  ;;  %v11270_v11 = vld [vmem:[%s17172_s9 + $0x14] sm:$0xf0] }
 0x8ab   : > { %v5252_v13 = vpop.f32.mrf.mxu1  ;;  %v10189_v41 = vor.u32 %v11270_v11, %v10188_v40  ;;  %v11268_v40 = vld [vmem:[%s17172_s9 + $0xc] sm:$0xf]  ;;  %v10190_v11 = vld [vmem:[%s17172_s9 + $0x18] sm:$0xf0] }
 0x8ac   : > { %v14683_v51 = vpack.c.bf16 %v5316_v56, %v5315_v43  ;;  %v4910_v34 = vadd.f32 %v4909_v5, %v4741_v53  ;;  %v4577_v5 = vadd.f32 %v14398_v52, %v17587_v26  ;;  %v17589_v53 = vld [vmem:[#allocation32_spill] sm:$0xff] }
 0x8ae   : > { %v5079_v28 = vadd.f32 %v5078_v20, %v4910_v34  ;;  %v5083_v30 = vpop.f32.mrf.mxu0  ;;  %v17588_v20 = vld [vmem:[#allocation86_spill] sm:$0xff] }
 0x8af   : > { %v4579_v1 = vadd.f32 %v14398_v52, %v17588_v20 }
 0x8b0   : > { %v5248_v46 = vadd.f32 %v5247_v14, %v5079_v28  ;;  %v4914_v59 = vpop.f32.mrf.mxu3  ;;  %v4564_v14 = vadd.f32 %v14398_v52, %v17589_v53  ;;  %v10236_v53 = vld [vmem:[%s17172_s9 + $0x68] sm:$0xf] }
 0x8b1   : > { %v4742_v18 = vpop.f32.mrf.mxu2  ;;  %5637 = vmatmul.bf16.gmra.mxu3 %v10297_v2 }
 0x8b2   : > { %v4743_v15 = vadd.f32 %v4742_v18, %v4574_v0  ;;  %v5317_v35 = vmax.f32 %v5248_v46, 0.0  ;;  %v4733_v7 = vadd.f32 %v14657_v61, %v4564_v14  ;;  %v11282_v14 = vld [vmem:[%s17172_s9 + $0x74] sm:$0xf0] }
 0x8b4   : > { %v4912_v9 = vadd.f32 %v4911_v38, %v4743_v15  ;;  %v5254_v15 = vpop.f32.mrf.mxu1 }
 0x8b6   : > { %v5081_v37 = vadd.f32 %v5080_v17, %v4912_v9  ;;  %5588 = vmatmul.bf16.gmra.mxu2 %v10293_v33  ;;  %v5085_v0 = vpop.f32.mrf.mxu0  ;;  %v4902_v33 = vadd.f32 %v14641_v48, %v4733_v7  ;;  %v11274_v48 = vld [vmem:[%s17172_s9 + $0x34] sm:$0xf0] }
 0x8b8   : > { %v5250_v44 = vadd.f32 %v5249_v21, %v5081_v37  ;;  %v4916_v43 = vpop.f32.mrf.mxu3  ;;  %v5071_v9 = vadd.f32 %v14643_v55, %v4902_v33  ;;  %v10204_v21 = vld [vmem:[%s17172_s9 + $0x28] sm:$0xf] }
 0x8b9   : > { %v4745_v12 = vpop.f32.mrf.mxu2  ;;  %v10205_v26 = vor.u32 %v11274_v48, %v10204_v21 }
 0x8ba   : > { %v5318_v24 = vmax.f32 %v5250_v44, 0.0  ;;  %v4746_v39 = vadd.f32 %v4745_v12, %v4577_v5  ;;  %v5313_v44 = vmax.f32 %v14655_v23, 0.0  ;;  %v10220_v23 = vld [vmem:[%s17172_s9 + $0x48] sm:$0xf] }
 0x8bc   : > { %v14701_v22 = vpack.c.bf16 %v5318_v24, %v5317_v35  ;;  %v4915_v10 = vadd.f32 %v4914_v59, %v4746_v39  ;;  %v5240_v59 = vadd.f32 %v14647_v54, %v5071_v9  ;;  %v11278_v24 = vld [vmem:[%s17172_s9 + $0x54] sm:$0xf0] }
 0x8bd   : > { %v11290_v9 = vld [vmem:[%s17172_s9 + $0xb4] sm:$0xf0] }
 0x8be   : > { %v5084_v38 = vadd.f32 %v5083_v30, %v4915_v10  ;;  %v5314_v5 = vmax.f32 %v5240_v59, 0.0  ;;  %v10221_v10 = vor.u32 %v11278_v24, %v10220_v23  ;;  %v10284_v24 = vld [vmem:[%s17172_s9 + $0xc8] sm:$0xf] }
 0x8c0   : > { %v5253_v18 = vadd.f32 %v5252_v13, %v5084_v38  ;;  %v5603_v58 = vpop.f32.mrf.mxu3  ;;  %v14740_v12 = vpack.c.bf16 %v5314_v5, %v5313_v44  ;;  %v10238_v5 = vld [vmem:[%s17172_s9 + $0x78] sm:$0xf0] }
 0x8c1   : > { %v4747_v56 = vpop.f32.mrf.mxu2 }
 0x8c2   : > { %v4748_v34 = vadd.f32 %v4747_v56, %v4579_v1  ;;  %v5319_v2 = vmax.f32 %v5253_v18, 0.0  ;;  %v10193_v1 = vor.u32 %v11268_v40, %v10190_v11 }
 0x8c4   : > { %v4917_v42 = vadd.f32 %v4916_v43, %v4748_v34 }
 0x8c6   : > { %v5086_v28 = vadd.f32 %v5085_v0, %v4917_v42  ;;  %5651 = vmatmul.bf16.vlgmr.msrb.gmra.mxu2 %v10189_v41  ;;  %v10237_v41 = vor.u32 %v11282_v14, %v10236_v53 }
 0x8c7   : > { %6032 = vmatpush.bf16.msrb.mxu2 %v14539_v60 }
 0x8c8   : > { %v5255_v19 = vadd.f32 %v5254_v15, %v5086_v28  ;;  %v14731_v37 = vpop.f32.mrf.mxu3  ;;  %v11286_v28 = vld [vmem:[%s17172_s9 + $0x94] sm:$0xf0] }
 0x8c9   : > { %v5554_v17 = vpop.f32.mrf.mxu2 }
 0x8ca   : > { %v5320_v52 = vmax.f32 %v5255_v19, 0.0  ;;  %v14728_v46 = vadd.f32 %v5603_v58, %v5554_v17  ;;  %v17590_v19 = vld [vmem:[#allocation50_spill] sm:$0xff] }
 0x8cb   : > { %6033 = vmatpush.bf16.msrb.mxu2 %v14554_v3 }
 0x8cc   : > { %v14718_v61 = vpack.c.bf16 %v5320_v52, %v5319_v2  ;;  %v10268_v52 = vld [vmem:[%s17172_s9 + $0xa8] sm:$0xf] }
 0x8cd   : > { %v10269_v59 = vor.u32 %v11290_v9, %v10268_v52 }
 0x8ce   : > { %5692 = vmatpush.bf16.msrb.mxu3 %v14718_v61 }
 0x8cf   : > { %6034 = vmatpush.bf16.msrb.mxu2 %v14564_v32 }
 0x8d0   : > { %v5608_v54 = vpop.f32.mrf.mxu3 }
 0x8d1   : > { %v14733_v55 = vpop.f32.mrf.mxu2 }
 0x8d2   : > { %5693 = vmatpush.bf16.msrb.mxu3 %v14701_v22 }
 0x8d3   : > { %6035 = vmatpush.bf16.msrb.mxu2 %v14571_v62 }
 0x8d6   : > { %5656 = vmatmul.bf16.gmra.mxu2 %v10205_v26  ;;  %5694 = vmatpush.bf16.msrb.mxu3 %v14683_v51  ;;  %v11280_v26 = vld [vmem:[%s17172_s9 + $0x6c] sm:$0xf] }
 0x8d7   : > { %6036 = vmatpush.bf16.msrb.mxu2 %v14466_v27 }
 0x8d8   : > { %v14754_v30 = vpop.f32.mrf.mxu3 }
 0x8d9   : > { %v5559_v35 = vpop.f32.mrf.mxu2 }
 0x8da   : > { %5695 = vmatpush.bf16.msrb.mxu3 %v14740_v12  ;;  %v14752_v39 = vadd.f32 %v5608_v54, %v5559_v35  ;;  %v10241_v54 = vor.u32 %v11280_v26, %v10238_v5  ;;  %v10286_v26 = vld [vmem:[%s17172_s9 + $0xd8] sm:$0xf0] }
 0x8db   : > { %6037 = vmatpush.bf16.msrb.mxu2 %v14440_v63 }
 0x8de   : > { %5696 = vmatpush.bf16.msrb.mxu3 %v14645_v25 }
 0x8df   : > { %6038 = vmatpush.bf16.msrb.mxu2 %v14421_v57 }
 0x8e1   : > { %v14756_v13 = vpop.f32.mrf.mxu2 }
 0x8e2   : > { %5697 = vmatpush.bf16.msrb.mxu3 %v14620_v16 }
 0x8e3   : > { %6039 = vmatpush.bf16.msrb.mxu2 %v14388_v29 }
 0x8e4   : > { %v5613_v20 = vpop.f32.mrf.mxu3 }
 0x8e6   : > { %5661 = vmatmul.bf16.gmra.mxu2 %v10221_v10  ;;  %5698 = vmatpush.bf16.msrb.mxu3 %v14598_v50  ;;  %v11294_v10 = vld [vmem:[%s17172_s9 + $0xd4] sm:$0xf0] }
 0x8e9   : > { %v5564_v43 = vpop.f32.mrf.mxu2 }
 0x8ea   : > { %5699 = vmatpush.bf16.msrb.mxu3 %v14574_v47  ;;  %v14769_v56 = vadd.f32 %v5613_v20, %v5564_v43  ;;  %v10285_v20 = vor.u32 %v11294_v10, %v10284_v24  ;;  %v10254_v43 = vld [vmem:[%s17172_s9 + $0x98] sm:$0xf0]  ;;  %v11305_v24 = vld [vmem:[%s17172_s9 + $0x12c] sm:$0xf0]  ;;  %v5606_v10 = vadd.f32 %v14731_v37, %v14733_v55  ;;  %v10372_v55 = vld [vmem:[%s17172_s9 + $0x140] sm:$0xf] }
 0x8ec   : > { %v14778_v38 = vpop.f32.mrf.mxu3 }
 0x8ed   : > { %5700 = vmatmul.bf16.vlgmr.msrb.gmra.mxu3 %v10193_v1  ;;  %v11284_v1 = vld [vmem:[%s17172_s9 + $0x8c] sm:$0xf] }
 0x8ee   : > { %5983 = vmatpush.bf16.msra.mxu3 %v14357_v31  ;;  %v11272_v31 = vld [vmem:[%s17172_s9 + $0x2c] sm:$0xf]  ;;  %v10257_v53 = vor.u32 %v11284_v1, %v10254_v43 }
 0x8f1   : > { %v14780_v34 = vpop.f32.mrf.mxu2 }
 0x8f2   : > { %5984 = vmatpush.bf16.msra.mxu3 %v14368_v4  ;;  %v10206_v4 = vld [vmem:[%s17172_s9 + $0x38] sm:$0xf0] }
 0x8f3   : > { %v10209_v42 = vor.u32 %v11272_v31, %v10206_v4  ;;  %v10300_v31 = vld [vmem:[%s17172_s9 + $0xe8] sm:$0xf]  ;;  %v11298_v4 = vld [vmem:[%s17172_s9 + $0xf4] sm:$0xf0] }
 0x8f4   : > { %v5618_v7 = vpop.f32.mrf.mxu3 }
 0x8f6   : > { %5985 = vmatpush.bf16.msra.mxu3 %v14372_v36  ;;  %5666 = vmatmul.bf16.gmra.mxu2 %v10237_v41  ;;  %v10252_v36 = vld [vmem:[%s17172_s9 + $0x88] sm:$0xf] }
 0x8f7   : > { %v10253_v33 = vor.u32 %v11286_v28, %v10252_v36  ;;  %v11288_v28 = vld [vmem:[%s17172_s9 + $0xac] sm:$0xf] }
 0x8f9   : > { %v5569_v0 = vpop.f32.mrf.mxu2 }
 0x8fa   : > { %5986 = vmatpush.bf16.msra.mxu3 %v14382_v6  ;;  %v14791_v18 = vadd.f32 %v5618_v7, %v5569_v0  ;;  %v10301_v0 = vor.u32 %v11298_v4, %v10300_v31  ;;  %v11309_v31 = vld [vmem:[%s17172_s9 + $0x14c] sm:$0xf0]  ;;  %v5611_v4 = vadd.f32 %v14754_v30, %v14756_v13  ;;  %v10388_v13 = vld [vmem:[%s17172_s9 + $0x160] sm:$0xf] }
 0x8fc   : > { %v14800_v15 = vpop.f32.mrf.mxu3 }
 0x8fd   : > { %5705 = vmatmul.bf16.gmra.mxu3 %v10209_v42 }
 0x8fe   : > { %5987 = vmatpush.bf16.msra.mxu3 %v14299_v8  ;;  %v10222_v8 = vld [vmem:[%s17172_s9 + $0x58] sm:$0xf0] }
 0x901   : > { %v14802_v6 = vpop.f32.mrf.mxu2 }
 0x902   : > { %5988 = vmatpush.bf16.msra.mxu3 %v14271_v45  ;;  %v11276_v45 = vld [vmem:[%s17172_s9 + $0x4c] sm:$0xf] }
 0x903   : > { %v10225_v17 = vor.u32 %v11276_v45, %v10222_v8 }
 0x904   : > { %v5623_v58 = vpop.f32.mrf.mxu3 }
 0x906   : > { %5989 = vmatpush.bf16.msra.mxu3 %v14250_v49  ;;  %5671 = vmatmul.bf16.gmra.mxu2 %v10253_v33  ;;  %v10270_v33 = vld [vmem:[%s17172_s9 + $0xb8] sm:$0xf0] }
 0x907   : > { %v10273_v45 = vor.u32 %v11288_v28, %v10270_v33  ;;  %v10373_v28 = vor.u32 %v11309_v31, %v10372_v55  ;;  %v11307_v31 = vld [vmem:[%s17172_s9 + $0x144] sm:$0xf] }
 0x909   : > { %v5574_v2 = vpop.f32.mrf.mxu2 }
 0x90a   : > { %5990 = vmatpush.bf16.msra.mxu3 %v17590_v19  ;;  %v14814_v49 = vadd.f32 %v5623_v58, %v5574_v2  ;;  %v10340_v58 = vld [vmem:[%s17172_s9 + $0x100] sm:$0xf] }
 0x90c   : > { %v14823_v21 = vpop.f32.mrf.mxu3 }
 0x90d   : > { %5710 = vmatmul.bf16.gmra.mxu3 %v10225_v17  ;;  %v11301_v17 = vld [vmem:[%s17172_s9 + $0x10c] sm:$0xf0] }
 0x90e   : > { %6081 = vmatpush.bf16.msrb.mxu3 %v14718_v61  ;;  %v10341_v9 = vor.u32 %v11301_v17, %v10340_v58  ;;  %v11313_v17 = vld [vmem:[%s17172_s9 + $0x16c] sm:$0xf0] }
 0x911   : > { %v14825_v48 = vpop.f32.mrf.mxu2 }
 0x912   : > { %6082 = vmatpush.bf16.msrb.mxu3 %v14701_v22 }
 0x914   : > { %v5628_v44 = vpop.f32.mrf.mxu3 }
 0x916   : > { %6083 = vmatpush.bf16.msrb.mxu3 %v14683_v51  ;;  %5676 = vmatmul.bf16.gmra.mxu2 %v10269_v59  ;;  %v11292_v59 = vld [vmem:[%s17172_s9 + $0xcc] sm:$0xf] }
 0x917   : > { %v10289_v5 = vor.u32 %v11292_v59, %v10286_v26 }
 0x919   : > { %v5579_v35 = vpop.f32.mrf.mxu2 }
 0x91a   : > { %6084 = vmatpush.bf16.msrb.mxu3 %v14740_v12  ;;  %v14836_v23 = vadd.f32 %v5628_v44, %v5579_v35  ;;  %v10356_v35 = vld [vmem:[%s17172_s9 + $0x120] sm:$0xf] }
 0x91b   : > { %v10357_v1 = vor.u32 %v11305_v24, %v10356_v35  ;;  %v11303_v35 = vld [vmem:[%s17172_s9 + $0x124] sm:$0xf]  ;;  %v10358_v24 = vld [vmem:[%s17172_s9 + $0x130] sm:$0xf0] }
 0x91c   : > { %v14845_v40 = vpop.f32.mrf.mxu3 }
 0x91d   : > { %5715 = vmatmul.bf16.gmra.mxu3 %v10241_v54 }
 0x91e   : > { %6085 = vmatpush.bf16.msrb.mxu3 %v14645_v25 }
 0x921   : > { %v14847_v11 = vpop.f32.mrf.mxu2 }
 0x922   : > { %6086 = vmatpush.bf16.msrb.mxu3 %v14620_v16 }
 0x924   : > { %v5633_v41 = vpop.f32.mrf.mxu3 }
 0x926   : > { %6087 = vmatpush.bf16.msrb.mxu3 %v14598_v50  ;;  %5681 = vmatmul.bf16.gmra.mxu2 %v10285_v20 }
 0x929   : > { %v5584_v14 = vpop.f32.mrf.mxu2 }
 0x92a   : > { %6088 = vmatpush.bf16.msrb.mxu3 %v14574_v47  ;;  %v14862_v7 = vadd.f32 %v5633_v41, %v5584_v14 }
 0x92c   : > { %v14866_v36 = vpop.f32.mrf.mxu3 }
 0x92d   : > { %5720 = vmatmul.bf16.gmra.mxu3 %v10257_v53  ;;  %v10302_v53 = vld [vmem:[%s17172_s9 + $0xf8] sm:$0xf0] }
 0x931   : > { %v14864_v42 = vpop.f32.mrf.mxu2 }
 0x934   : > { %v5638_v19 = vpop.f32.mrf.mxu3 }
 0x936   : > { %5686 = vmatmul.bf16.gmra.mxu2 %v10301_v0 }
 0x939   : > { %v5589_v8 = vpop.f32.mrf.mxu2 }
 0x93a   : > { %v14880_v2 = vadd.f32 %v5638_v19, %v5589_v8 }
 0x93c   : > { %v14928_v8 = vpop.f32.mrf.mxu3 }
 0x93d   : > { %5725 = vmatmul.bf16.gmra.mxu3 %v10273_v45  ;;  %v10342_v45 = vld [vmem:[%s17172_s9 + $0x110] sm:$0xf0] }
 0x941   : > { %v14882_v52 = vpop.f32.mrf.mxu2 }
 0x946   : > { %5942 = vmatmul.bf16.vlgmr.msra.gmra.mxu2 %v10341_v9  ;;  %v5616_v9 = vadd.f32 %v14778_v38, %v14780_v34 }
 0x947   : > { %6437 = vmatpush.bf16.msra.mxu2 %v14539_v60 }
 0x949   : > { %v5652_v44 = vpop.f32.mrf.mxu2 }
 0x94a   : > { %v5653_v54 = vadd.f32 %v5652_v44, %v14728_v46  ;;  %v11296_v46 = vld [vmem:[%s17172_s9 + $0xec] sm:$0xf] }
 0x94b   : > { %6438 = vmatpush.bf16.msra.mxu2 %v14554_v3  ;;  %v10305_v14 = vor.u32 %v11296_v46, %v10302_v53  ;;  %v11317_v46 = vld [vmem:[%s17172_s9 + $0x18c] sm:$0xf0] }
 0x94d   : > { %5730 = vmatmul.bf16.gmra.mxu3 %v10289_v5 }
 0x94f   : > { %6439 = vmatpush.bf16.msra.mxu2 %v14564_v32 }
 0x951   : > { %v5654_v20 = vpop.f32.mrf.mxu2 }
 0x952   : > { %v5655_v43 = vadd.f32 %v5654_v20, %v5606_v10 }
 0x953   : > { %6440 = vmatpush.bf16.msra.mxu2 %v14571_v62 }
 0x956   : > { %5947 = vmatmul.bf16.gmra.mxu2 %v10357_v1  ;;  %v10404_v1 = vld [vmem:[%s17172_s9 + $0x180] sm:$0xf] }
 0x957   : > { %6441 = vmatpush.bf16.msra.mxu2 %v14466_v27 }
 0x959   : > { %v5657_v41 = vpop.f32.mrf.mxu2 }
 0x95a   : > { %v5658_v37 = vadd.f32 %v5657_v41, %v14752_v39  ;;  %v11299_v39 = vld [vmem:[%s17172_s9 + $0x104] sm:$0xf] }
 0x95b   : > { %6442 = vmatpush.bf16.msra.mxu2 %v14440_v63  ;;  %v10345_v19 = vor.u32 %v11299_v39, %v10342_v45  ;;  %v10420_v39 = vld [vmem:[%s17172_s9 + $0x1a0] sm:$0xf]  ;;  %v11321_v45 = vld [vmem:[%s17172_s9 + $0x1ac] sm:$0xf0] }
 0x95d   : > { %5735 = vmatmul.bf16.gmra.mxu3 %v10305_v14 }
 0x95f   : > { %6443 = vmatpush.bf16.msra.mxu2 %v14421_v57 }
 0x961   : > { %v5659_v0 = vpop.f32.mrf.mxu2 }
 0x962   : > { %v5660_v33 = vadd.f32 %v5659_v0, %v5611_v4  ;;  %v10374_v4 = vld [vmem:[%s17172_s9 + $0x150] sm:$0xf0] }
 0x963   : > { %6444 = vmatpush.bf16.msra.mxu2 %v14388_v29 }
 0x966   : > { %5952 = vmatmul.bf16.gmra.mxu2 %v10373_v28 }
 0x969   : > { %v5662_v58 = vpop.f32.mrf.mxu2 }
 0x96a   : > { %v5663_v30 = vadd.f32 %v5662_v58, %v14769_v56  ;;  %v10389_v56 = vor.u32 %v11313_v17, %v10388_v13  ;;  %v10421_v17 = vor.u32 %v11321_v45, %v10420_v39  ;;  %v10422_v45 = vld [vmem:[%s17172_s9 + $0x1b0] sm:$0xf0] }
 0x96d   : > { %5991 = vmatmul.bf16.vlgmr.msra.gmra.mxu3 %v10345_v19  ;;  %v5626_v19 = vadd.f32 %v14823_v21, %v14825_v48 }
 0x96e   : > { %6486 = vmatpush.bf16.msra.mxu3 %v14718_v61 }
 0x970   : > { %v5701_v59 = vpop.f32.mrf.mxu3 }
 0x971   : > { %v14940_v26 = vadd.f32 %v5701_v59, %v5653_v54  ;;  %v5664_v5 = vpop.f32.mrf.mxu2  ;;  %v10361_v54 = vor.u32 %v11303_v35, %v10358_v24  ;;  %v10390_v59 = vld [vmem:[%s17172_s9 + $0x170] sm:$0xf0]  ;;  %v11325_v24 = vld [vmem:[%s17172_s9 + $0x1cc] sm:$0xf0] }
 0x972   : > { %6487 = vmatpush.bf16.msra.mxu3 %v14701_v22  ;;  %v5665_v44 = vadd.f32 %v5664_v5, %v5616_v9 }
 0x976   : > { %6488 = vmatpush.bf16.msra.mxu3 %v14683_v51  ;;  %5957 = vmatmul.bf16.gmra.mxu2 %v10389_v56 }
 0x978   : > { %v5703_v38 = vpop.f32.mrf.mxu3 }
 0x979   : > { %v14950_v34 = vadd.f32 %v5703_v38, %v5655_v43  ;;  %v5667_v10 = vpop.f32.mrf.mxu2  ;;  %v5621_v43 = vadd.f32 %v14800_v15, %v14802_v6  ;;  %v5631_v38 = vadd.f32 %v14845_v40, %v14847_v11 }
 0x97a   : > { %6489 = vmatpush.bf16.msra.mxu3 %v14740_v12  ;;  %v5668_v20 = vadd.f32 %v5667_v10, %v14791_v18  ;;  %v10405_v18 = vor.u32 %v11317_v46, %v10404_v1 }
 0x97d   : > { %5996 = vmatmul.bf16.gmra.mxu3 %v10361_v54 }
 0x97e   : > { %6490 = vmatpush.bf16.msra.mxu3 %v14645_v25 }
 0x980   : > { %v5706_v53 = vpop.f32.mrf.mxu3 }
 0x981   : > { %v14963_v14 = vadd.f32 %v5706_v53, %v5658_v37  ;;  %v5669_v41 = vpop.f32.mrf.mxu2  ;;  %v10377_v37 = vor.u32 %v11307_v31, %v10374_v4  ;;  %v11329_v31 = vld [vmem:[%s17172_s9 + $0x1ec] sm:$0xf0]  ;;  %v5636_v4 = vadd.f32 %v14866_v36, %v14864_v42 }
 0x982   : > { %6491 = vmatpush.bf16.msra.mxu3 %v14620_v16  ;;  %v5670_v55 = vadd.f32 %v5669_v41, %v5621_v43  ;;  %v10406_v43 = vld [vmem:[%s17172_s9 + $0x190] sm:$0xf0] }
 0x986   : > { %6492 = vmatpush.bf16.msra.mxu3 %v14598_v50  ;;  %5962 = vmatmul.bf16.gmra.mxu2 %v10405_v18 }
 0x988   : > { %v5708_v15 = vpop.f32.mrf.mxu3 }
 0x989   : > { %v14973_v6 = vadd.f32 %v5708_v15, %v5660_v33  ;;  %v5672_v0 = vpop.f32.mrf.mxu2 }
 0x98a   : > { %6493 = vmatpush.bf16.msra.mxu3 %v14574_v47  ;;  %v5673_v28 = vadd.f32 %v5672_v0, %v14814_v49  ;;  %v11311_v49 = vld [vmem:[%s17172_s9 + $0x164] sm:$0xf] }
 0x98b   : > { %v10393_v35 = vor.u32 %v11311_v49, %v10390_v59  ;;  %v5641_v49 = vadd.f32 %v14928_v8, %v14882_v52 }
 0x98d   : > { %6001 = vmatmul.bf16.gmra.mxu3 %v10377_v37 }
 0x990   : > { %v5711_v33 = vpop.f32.mrf.mxu3 }
 0x991   : > { %v14985_v58 = vadd.f32 %v5711_v33, %v5663_v30  ;;  %v5674_v13 = vpop.f32.mrf.mxu2  ;;  %v10436_v30 = vld [vmem:[%s17172_s9 + $0x1c0] sm:$0xf] }
 0x992   : > { %v5675_v9 = vadd.f32 %v5674_v13, %v5626_v19  ;;  %v10437_v1 = vor.u32 %v11325_v24, %v10436_v30  ;;  %v10438_v30 = vld [vmem:[%s17172_s9 + $0x1d0] sm:$0xf0] }
 0x996   : > { %5967 = vmatmul.bf16.gmra.mxu2 %v10421_v17  ;;  %v11302_v17 = vld [vmem:[%s17172_s9 + $0x114] sm:$0xf0] }
 0x998   : > { %v5713_v5 = vpop.f32.mrf.mxu3 }
 0x999   : > { %v14993_v56 = vadd.f32 %v5713_v5, %v5665_v44  ;;  %v5677_v21 = vpop.f32.mrf.mxu2 }
 0x99a   : > { %v5678_v48 = vadd.f32 %v5677_v21, %v14836_v23  ;;  %v11315_v23 = vld [vmem:[%s17172_s9 + $0x184] sm:$0xf] }
 0x99b   : > { %v10409_v18 = vor.u32 %v11315_v23, %v10406_v43 }
 0x99d   : > { %6006 = vmatmul.bf16.gmra.mxu3 %v10393_v35 }
 0x9a0   : > { %v5716_v54 = vpop.f32.mrf.mxu3 }
 0x9a1   : > { %v15004_v10 = vadd.f32 %v5716_v54, %v5668_v20  ;;  %v5679_v44 = vpop.f32.mrf.mxu2  ;;  %v10452_v20 = vld [vmem:[%s17172_s9 + $0x1e0] sm:$0xf]  ;;  %v11306_v54 = vld [vmem:[%s17172_s9 + $0x134] sm:$0xf0] }
 0x9a2   : > { %v5680_v46 = vadd.f32 %v5679_v44, %v5631_v38  ;;  %v10453_v0 = vor.u32 %v11329_v31, %v10452_v20 }
 0x9a6   : > { %5972 = vmatmul.bf16.gmra.mxu2 %v10437_v1 }
 0x9a8   : > { %v5718_v53 = vpop.f32.mrf.mxu3 }
 0x9a9   : > { %v15012_v41 = vadd.f32 %v5718_v53, %v5670_v55  ;;  %v5682_v40 = vpop.f32.mrf.mxu2 }
 0x9aa   : > { %v5683_v11 = vadd.f32 %v5682_v40, %v14862_v7  ;;  %v11319_v7 = vld [vmem:[%s17172_s9 + $0x1a4] sm:$0xf]  ;;  %v11310_v40 = vld [vmem:[%s17172_s9 + $0x154] sm:$0xf0] }
 0x9ab   : > { %v10425_v13 = vor.u32 %v11319_v7, %v10422_v45 }
 0x9ad   : > { %6011 = vmatmul.bf16.gmra.mxu3 %v10409_v18 }
 0x9b0   : > { %v5721_v15 = vpop.f32.mrf.mxu3 }
 0x9b1   : > { %v15023_v37 = vadd.f32 %v5721_v15, %v5673_v28  ;;  %v5684_v55 = vpop.f32.mrf.mxu2  ;;  %v10348_v28 = vld [vmem:[%s17172_s9 + $0x108] sm:$0xf] }
 0x9b2   : > { %v5685_v39 = vadd.f32 %v5684_v55, %v5636_v4  ;;  %v10349_v35 = vor.u32 %v11302_v17, %v10348_v28 }
 0x9b6   : > { %5977 = vmatmul.bf16.gmra.mxu2 %v10453_v0 }
 0x9b8   : > { %v5723_v19 = vpop.f32.mrf.mxu3 }
 0x9b9   : > { %v15031_v33 = vadd.f32 %v5723_v19, %v5675_v9  ;;  %v5687_v42 = vpop.f32.mrf.mxu2 }
 0x9ba   : > { %v5688_v36 = vadd.f32 %v5687_v42, %v14880_v2  ;;  %v11323_v2 = vld [vmem:[%s17172_s9 + $0x1c4] sm:$0xf]  ;;  %v10366_v42 = vld [vmem:[%s17172_s9 + $0x138] sm:$0xf0] }
 0x9bb   : > { %v10441_v52 = vor.u32 %v11323_v2, %v10438_v30 }
 0x9bd   : > { %6016 = vmatmul.bf16.gmra.mxu3 %v10425_v13 }
 0x9c0   : > { %v5726_v59 = vpop.f32.mrf.mxu3 }
 0x9c1   : > { %v15042_v5 = vadd.f32 %v5726_v59, %v5678_v48  ;;  %v5689_v9 = vpop.f32.mrf.mxu2  ;;  %v10364_v48 = vld [vmem:[%s17172_s9 + $0x128] sm:$0xf] }
 0x9c2   : > { %v5690_v21 = vadd.f32 %v5689_v9, %v5641_v49 }
 0x9c6   : > { %6040 = vmatmul.bf16.vlgmr.msrb.gmra.mxu2 %v10349_v35 }
 0x9c7   : > { %6826 = vmatpush.bf16.msrb.mxu2 %v14539_v60 }
 0x9c8   : > { %v5728_v24 = vpop.f32.mrf.mxu3 }
 0x9c9   : > { %v15051_v38 = vadd.f32 %v5728_v24, %v5680_v46  ;;  %v5943_v8 = vpop.f32.mrf.mxu2  ;;  %v10365_v46 = vor.u32 %v11306_v54, %v10364_v48 }
 0x9cb   : > { %17591 = vst [vmem:[#allocation49_spill] sm:$0xff] %v15051_v38  ;;  %6827 = vmatpush.bf16.msrb.mxu2 %v14554_v3  ;;  %v11327_v3 = vld [vmem:[%s17172_s9 + $0x1e4] sm:$0xf] }
 0x9cd   : > { %6021 = vmatmul.bf16.gmra.mxu3 %v10441_v52 }
 0x9cf   : > { %6828 = vmatpush.bf16.msrb.mxu2 %v14564_v32  ;;  %v10454_v32 = vld [vmem:[%s17172_s9 + $0x1f0] sm:$0xf0] }
 0x9d0   : > { %v5731_v44 = vpop.f32.mrf.mxu3  ;;  %v10457_v53 = vor.u32 %v11327_v3, %v10454_v32 }
 0x9d1   : > { %v15061_v60 = vadd.f32 %v5731_v44, %v5683_v11  ;;  %v5945_v1 = vpop.f32.mrf.mxu2 }
 0x9d3   : > { %17592 = vst [vmem:[#allocation48_spill] sm:$0xff] %v15061_v60  ;;  %6829 = vmatpush.bf16.msrb.mxu2 %v14571_v62  ;;  %v10380_v62 = vld [vmem:[%s17172_s9 + $0x148] sm:$0xf] }
 0x9d4   : > { %v10381_v31 = vor.u32 %v11310_v40, %v10380_v62 }
 0x9d6   : > { %6045 = vmatmul.bf16.gmra.mxu2 %v10365_v46 }
 0x9d7   : > { %6830 = vmatpush.bf16.msrb.mxu2 %v14466_v27 }
 0x9d8   : > { %v5733_v23 = vpop.f32.mrf.mxu3 }
 0x9d9   : > { %v15071_v43 = vadd.f32 %v5733_v23, %v5685_v39  ;;  %v5948_v18 = vpop.f32.mrf.mxu2  ;;  %v11314_v39 = vld [vmem:[%s17172_s9 + $0x174] sm:$0xf0] }
 0x9db   : > { %17593 = vst [vmem:[#allocation52_spill] sm:$0xff] %v15071_v43  ;;  %6831 = vmatpush.bf16.msrb.mxu2 %v14440_v63  ;;  %v11300_v63 = vld [vmem:[%s17172_s9 + $0x10c] sm:$0xf] }
 0x9dd   : > { %6026 = vmatmul.bf16.gmra.mxu3 %v10457_v53  ;;  %v10444_v53 = vld [vmem:[%s17172_s9 + $0x1c8] sm:$0xf] }
 0x9df   : > { %6832 = vmatpush.bf16.msrb.mxu2 %v14421_v57  ;;  %v10350_v57 = vld [vmem:[%s17172_s9 + $0x118] sm:$0xf0] }
 0x9e0   : > { %v5736_v11 = vpop.f32.mrf.mxu3  ;;  %v10353_v55 = vor.u32 %v11300_v63, %v10350_v57  ;;  %v10414_v63 = vld [vmem:[%s17172_s9 + $0x198] sm:$0xf0] }
 0x9e1   : > { %v15081_v27 = vadd.f32 %v5736_v11, %v5688_v36  ;;  %v5950_v20 = vpop.f32.mrf.mxu2 }
 0x9e3   : > { %17594 = vst [vmem:[#allocation47_spill] sm:$0xff] %v15081_v27  ;;  %6833 = vmatpush.bf16.msrb.mxu2 %v14388_v29  ;;  %v10396_v29 = vld [vmem:[%s17172_s9 + $0x168] sm:$0xf] }
 0x9e4   : > { %v10397_v13 = vor.u32 %v11314_v39, %v10396_v29  ;;  %v10460_v29 = vld [vmem:[%s17172_s9 + $0x1e8] sm:$0xf]  ;;  %v11330_v39 = vld [vmem:[%s17172_s9 + $0x1f4] sm:$0xf0] }
 0x9e6   : > { %6050 = vmatmul.bf16.gmra.mxu2 %v10381_v31  ;;  %v11316_v31 = vld [vmem:[%s17172_s9 + $0x18c] sm:$0xf] }
 0x9e8   : > { %v5738_v4 = vpop.f32.mrf.mxu3 }
 0x9e9   : > { %v15090_v15 = vadd.f32 %v5738_v4, %v5690_v21  ;;  %v5953_v0 = vpop.f32.mrf.mxu2 }
 0x9eb   : > { %17595 = vst [vmem:[#allocation46_spill] sm:$0xff] %v15090_v15 }
 0x9ed   : > { %6089 = vmatmul.bf16.vlgmr.msrb.gmra.mxu3 %v10353_v55  ;;  %v10417_v55 = vor.u32 %v11316_v31, %v10414_v63  ;;  %v10524_v63 = vld [vmem:[%s17172_s9 + $0x228] sm:$0xf] }
 0x9ee   : > { %6875 = vmatpush.bf16.msrb.mxu3 %v14718_v61  ;;  %v11304_v61 = vld [vmem:[%s17172_s9 + $0x12c] sm:$0xf] }
 0x9ef   : > { %v10369_v17 = vor.u32 %v11304_v61, %v10366_v42  ;;  %v10461_v61 = vor.u32 %v11330_v39, %v10460_v29  ;;  %v11320_v42 = vld [vmem:[%s17172_s9 + $0x1ac] sm:$0xf]  ;;  %v11335_v29 = vld [vmem:[%s17172_s9 + $0x224] sm:$0xf] }
 0x9f0   : > { %v5992_v7 = vpop.f32.mrf.mxu3 }
 0x9f1   : > { %v15099_v45 = vadd.f32 %v5992_v7, %v5943_v8  ;;  %v5955_v19 = vpop.f32.mrf.mxu2 }
 0x9f2   : > { %6876 = vmatpush.bf16.msrb.mxu3 %v14701_v22  ;;  %v11318_v22 = vld [vmem:[%s17172_s9 + $0x194] sm:$0xf0] }
 0x9f6   : > { %6877 = vmatpush.bf16.msrb.mxu3 %v14683_v51  ;;  %6055 = vmatmul.bf16.gmra.mxu2 %v10397_v13  ;;  %v10412_v51 = vld [vmem:[%s17172_s9 + $0x188] sm:$0xf] }
 0x9f7   : > { %v10413_v21 = vor.u32 %v11318_v22, %v10412_v51 }
 0x9f8   : > { %v5994_v36 = vpop.f32.mrf.mxu3 }
 0x9f9   : > { %v15109_v28 = vadd.f32 %v5994_v36, %v5945_v1  ;;  %v5958_v49 = vpop.f32.mrf.mxu2  ;;  %v11312_v1 = vld [vmem:[%s17172_s9 + $0x16c] sm:$0xf]  ;;  %v10430_v36 = vld [vmem:[%s17172_s9 + $0x1b8] sm:$0xf0] }
 0x9fa   : > { %6878 = vmatpush.bf16.msrb.mxu3 %v14740_v12  ;;  %v10382_v12 = vld [vmem:[%s17172_s9 + $0x158] sm:$0xf0]  ;;  %v10433_v51 = vor.u32 %v11320_v42, %v10430_v36 }
 0x9fd   : > { %6094 = vmatmul.bf16.gmra.mxu3 %v10369_v17 }
 0x9fe   : > { %6879 = vmatpush.bf16.msrb.mxu3 %v14645_v25  ;;  %v11308_v25 = vld [vmem:[%s17172_s9 + $0x14c] sm:$0xf] }
 0x9ff   : > { %v10385_v24 = vor.u32 %v11308_v25, %v10382_v12  ;;  %v10508_v25 = vld [vmem:[%s17172_s9 + $0x208] sm:$0xf]  ;;  %v11334_v12 = vld [vmem:[%s17172_s9 + $0x214] sm:$0xf0] }
 0xa00   : > { %v5997_v59 = vpop.f32.mrf.mxu3 }
 0xa01   : > { %v15119_v9 = vadd.f32 %v5997_v59, %v5948_v18  ;;  %v5960_v35 = vpop.f32.mrf.mxu2  ;;  %v11326_v18 = vld [vmem:[%s17172_s9 + $0x1d4] sm:$0xf0] }
 0xa02   : > { %6880 = vmatpush.bf16.msrb.mxu3 %v14620_v16  ;;  %v11322_v16 = vld [vmem:[%s17172_s9 + $0x1b4] sm:$0xf0] }
 0xa06   : > { %6881 = vmatpush.bf16.msrb.mxu3 %v14598_v50  ;;  %6060 = vmatmul.bf16.gmra.mxu2 %v10413_v21  ;;  %v10428_v50 = vld [vmem:[%s17172_s9 + $0x1a8] sm:$0xf] }
 0xa07   : > { %v10429_v44 = vor.u32 %v11322_v16, %v10428_v50  ;;  %v10500_v50 = vld [vmem:[%s17172_s9 + $0x200] sm:$0xf]  ;;  %v11333_v16 = vld [vmem:[%s17172_s9 + $0x20c] sm:$0xf0] }
 0xa08   : > { %v5999_v2 = vpop.f32.mrf.mxu3 }
 0xa09   : > { %v15129_v30 = vadd.f32 %v5999_v2, %v5950_v20  ;;  %v5963_v52 = vpop.f32.mrf.mxu2  ;;  %v10445_v20 = vor.u32 %v11326_v18, %v10444_v53  ;;  %v10509_v2 = vor.u32 %v11334_v12, %v10508_v25 }
 0xa0a   : > { %6882 = vmatpush.bf16.msrb.mxu3 %v14574_v47  ;;  %v10398_v47 = vld [vmem:[%s17172_s9 + $0x178] sm:$0xf0] }
 0xa0b   : > { %v10401_v32 = vor.u32 %v11312_v1, %v10398_v47 }
 0xa0d   : > { %6099 = vmatmul.bf16.gmra.mxu3 %v10385_v24  ;;  %v11324_v24 = vld [vmem:[%s17172_s9 + $0x1cc] sm:$0xf] }
 0xa10   : > { %v6002_v8 = vpop.f32.mrf.mxu3 }
 0xa11   : > { %v15138_v48 = vadd.f32 %v6002_v8, %v5953_v0  ;;  %v5965_v54 = vpop.f32.mrf.mxu2  ;;  %v11331_v8 = vld [vmem:[%s17172_s9 + $0x204] sm:$0xf] }
 0xa16   : > { %6065 = vmatmul.bf16.gmra.mxu2 %v10429_v44  ;;  %v10502_v44 = vld [vmem:[%s17172_s9 + $0x210] sm:$0xf0] }
 0xa17   : > { %v10505_v47 = vor.u32 %v11331_v8, %v10502_v44  ;;  %v11339_v8 = vld [vmem:[%s17172_s9 + $0x244] sm:$0xf]  ;;  %v10534_v44 = vld [vmem:[%s17172_s9 + $0x250] sm:$0xf0] }
 0xa18   : > { %v6004_v46 = vpop.f32.mrf.mxu3 }
 0xa19   : > { %v15146_v3 = vadd.f32 %v6004_v46, %v5955_v19  ;;  %v5968_v23 = vpop.f32.mrf.mxu2  ;;  %6396 = vmatmul.bf16.vlgmr.msra.gmra.mxu1 %v10505_v47  ;;  %v10537_v47 = vor.u32 %v11339_v8, %v10534_v44  ;;  %v11349_v44 = vld [vmem:[%s17172_s9 + $0x28c] sm:$0xf0] }
 0xa1d   : > { %6104 = vmatmul.bf16.gmra.mxu3 %v10401_v32 }
 0xa20   : > { %v6007_v62 = vpop.f32.mrf.mxu3 }
 0xa21   : > { %v15154_v40 = vadd.f32 %v6007_v62, %v5958_v49  ;;  %v5970_v11 = vpop.f32.mrf.mxu2 }
 0xa26   : > { %6070 = vmatmul.bf16.gmra.mxu2 %v10445_v20 }
 0xa28   : > { %v6009_v57 = vpop.f32.mrf.mxu3 }
 0xa29   : > { %v15162_v4 = vadd.f32 %v6009_v57, %v5960_v35  ;;  %v5973_v0 = vpop.f32.mrf.mxu2 }
 0xa2d   : > { %6109 = vmatmul.bf16.gmra.mxu3 %v10417_v55  ;;  %v10462_v55 = vld [vmem:[%s17172_s9 + $0x1f8] sm:$0xf0] }
 0xa30   : > { %v6012_v7 = vpop.f32.mrf.mxu3 }
 0xa31   : > { %v15170_v19 = vadd.f32 %v6012_v7, %v5963_v52  ;;  %v5975_v13 = vpop.f32.mrf.mxu2  ;;  %v10446_v52 = vld [vmem:[%s17172_s9 + $0x1d8] sm:$0xf0]  ;;  %v10518_v7 = vld [vmem:[%s17172_s9 + $0x230] sm:$0xf0] }
 0xa32   : > { %v10449_v32 = vor.u32 %v11324_v24, %v10446_v52  ;;  %v10521_v42 = vor.u32 %v11335_v29, %v10518_v7  ;;  %v10540_v52 = vld [vmem:[%s17172_s9 + $0x248] sm:$0xf]  ;;  %v11345_v29 = vld [vmem:[%s17172_s9 + $0x26c] sm:$0xf0] }
 0xa34   : > { %6401 = vmatmul.bf16.gmra.mxu1 %v10521_v42 }
 0xa36   : > { %6075 = vmatmul.bf16.gmra.mxu2 %v10461_v61 }
 0xa38   : > { %v6014_v17 = vpop.f32.mrf.mxu3 }
 0xa39   : > { %v15178_v49 = vadd.f32 %v6014_v17, %v5965_v54  ;;  %v5978_v22 = vpop.f32.mrf.mxu2  ;;  %v10501_v54 = vor.u32 %v11333_v16, %v10500_v50  ;;  %v11341_v16 = vld [vmem:[%s17172_s9 + $0x24c] sm:$0xf0] }
 0xa3b   : > { %6347 = vmatmul.bf16.vlgmr.msra.gmra.mxu0 %v10501_v54 }
 0xa3d   : > { %6114 = vmatmul.bf16.gmra.mxu3 %v10433_v51 }
 0xa40   : > { %v6017_v59 = vpop.f32.mrf.mxu3 }
 0xa41   : > { %v15180_v35 = vadd.f32 %v6017_v59, %v5968_v23  ;;  %v5980_v21 = vpop.f32.mrf.mxu2 }
 0xa44   : > { %6406 = vmatmul.bf16.gmra.mxu1 %v10537_v47 }
 0xa46   : > { %6445 = vmatmul.bf16.vlgmr.msra.gmra.mxu2 %v10509_v2 }
 0xa48   : > { %v6019_v1 = vpop.f32.mrf.mxu3 }
 0xa49   : > { %v15206_v46 = vadd.f32 %v6019_v1, %v5970_v11  ;;  %v6041_v23 = vpop.f32.mrf.mxu2  ;;  %v11338_v11 = vld [vmem:[%s17172_s9 + $0x234] sm:$0xf0] }
 0xa4a   : > { %v6042_v53 = vadd.f32 %v6041_v23, %v15099_v45  ;;  %v10525_v57 = vor.u32 %v11338_v11, %v10524_v63  ;;  %v11328_v45 = vld [vmem:[%s17172_s9 + $0x1ec] sm:$0xf] }
 0xa4b   : > { %v10465_v17 = vor.u32 %v11328_v45, %v10462_v55  ;;  %v10556_v55 = vld [vmem:[%s17172_s9 + $0x268] sm:$0xf] }
 0xa4d   : > { %6119 = vmatmul.bf16.gmra.mxu3 %v10449_v32 }
 0xa50   : > { %v6022_v18 = vpop.f32.mrf.mxu3 }
 0xa51   : > { %v15209_v62 = vadd.f32 %v6022_v18, %v5973_v0  ;;  %v6043_v20 = vpop.f32.mrf.mxu2  ;;  %v11337_v0 = vld [vmem:[%s17172_s9 + $0x22c] sm:$0xf0] }
 0xa52   : > { %v15212_v31 = vadd.f32 %v6043_v20, %v15109_v28  ;;  %v10516_v28 = vld [vmem:[%s17172_s9 + $0x220] sm:$0xf] }
 0xa53   : > { %v10517_v39 = vor.u32 %v11337_v0, %v10516_v28  ;;  %v10548_v0 = vld [vmem:[%s17172_s9 + $0x260] sm:$0xf] }
 0xa54   : > { %v10549_v7 = vor.u32 %v11345_v29, %v10548_v0 }
 0xa55   : > { %6352 = vmatmul.bf16.gmra.mxu0 %v10517_v39  ;;  %v11343_v39 = vld [vmem:[%s17172_s9 + $0x264] sm:$0xf] }
 0xa56   : > { %6450 = vmatmul.bf16.gmra.mxu2 %v10525_v57 }
 0xa58   : > { %v6024_v61 = vpop.f32.mrf.mxu3 }
 0xa59   : > { %v15238_v36 = vadd.f32 %v6024_v61, %v5975_v13  ;;  %v6046_v51 = vpop.f32.mrf.mxu2  ;;  %v11342_v13 = vld [vmem:[%s17172_s9 + $0x254] sm:$0xf0]  ;;  %v10550_v61 = vld [vmem:[%s17172_s9 + $0x270] sm:$0xf0] }
 0xa5a   : > { %v6047_v59 = vadd.f32 %v6046_v51, %v15119_v9  ;;  %v10541_v50 = vor.u32 %v11342_v13, %v10540_v52  ;;  %v11332_v9 = vld [vmem:[%s17172_s9 + $0x20c] sm:$0xf] }
 0xa5d   : > { %6124 = vmatmul.bf16.gmra.mxu3 %v10465_v17  ;;  %v10553_v17 = vor.u32 %v11343_v39, %v10550_v61 }
 0xa5f   : > { %6411 = vmatmul.bf16.gmra.mxu1 %v10553_v17  ;;  %v11353_v17 = vld [vmem:[%s17172_s9 + $0x2ac] sm:$0xf0] }
 0xa60   : > { %v6027_v25 = vpop.f32.mrf.mxu3 }
 0xa61   : > { %v15241_v12 = vadd.f32 %v6027_v25, %v5978_v22  ;;  %v6048_v2 = vpop.f32.mrf.mxu2  ;;  %v10510_v22 = vld [vmem:[%s17172_s9 + $0x218] sm:$0xf0] }
 0xa62   : > { %v15244_v24 = vadd.f32 %v6048_v2, %v15129_v30  ;;  %v10532_v30 = vld [vmem:[%s17172_s9 + $0x240] sm:$0xf]  ;;  %v10513_v23 = vor.u32 %v11332_v9, %v10510_v22 }
 0xa63   : > { %v10533_v54 = vor.u32 %v11341_v16, %v10532_v30 }
 0xa65   : > { %6357 = vmatmul.bf16.gmra.mxu0 %v10533_v54  ;;  %v10564_v54 = vld [vmem:[%s17172_s9 + $0x280] sm:$0xf] }
 0xa66   : > { %6455 = vmatmul.bf16.gmra.mxu2 %v10541_v50  ;;  %v10565_v47 = vor.u32 %v11349_v44, %v10564_v54 }
 0xa68   : > { %v6029_v1 = vpop.f32.mrf.mxu3 }
 0xa69   : > { %v15270_v32 = vadd.f32 %v6029_v1, %v5980_v21  ;;  %v6051_v18 = vpop.f32.mrf.mxu2  ;;  %v11346_v21 = vld [vmem:[%s17172_s9 + $0x274] sm:$0xf0]  ;;  %v11347_v1 = vld [vmem:[%s17172_s9 + $0x284] sm:$0xf] }
 0xa6a   : > { %v6052_v20 = vadd.f32 %v6051_v18, %v15138_v48  ;;  %v10557_v28 = vor.u32 %v11346_v21, %v10556_v55 }
 0xa6d   : > { %6494 = vmatmul.bf16.vlgmr.msra.gmra.mxu3 %v10513_v23  ;;  %v10566_v23 = vld [vmem:[%s17172_s9 + $0x290] sm:$0xf0] }
 0xa70   : > { %v6090_v63 = vpop.f32.mrf.mxu3 }
 0xa71   : > { %v15273_v11 = vadd.f32 %v6090_v63, %v6042_v53  ;;  %v6053_v57 = vpop.f32.mrf.mxu2  ;;  %v11336_v53 = vld [vmem:[%s17172_s9 + $0x22c] sm:$0xf]  ;;  %v10569_v63 = vor.u32 %v11347_v1, %v10566_v23 }
 0xa72   : > { %v15276_v45 = vadd.f32 %v6053_v57, %v15146_v3  ;;  %v10526_v3 = vld [vmem:[%s17172_s9 + $0x238] sm:$0xf0] }
 0xa73   : > { %v10529_v25 = vor.u32 %v11336_v53, %v10526_v3  ;;  %6416 = vmatmul.bf16.gmra.mxu1 %v10569_v63 }
 0xa75   : > { %6362 = vmatmul.bf16.gmra.mxu0 %v10549_v7 }
 0xa76   : > { %6460 = vmatmul.bf16.gmra.mxu2 %v10557_v28 }
 0xa78   : > { %v6092_v42 = vpop.f32.mrf.mxu3 }
 0xa79   : > { %v15305_v51 = vadd.f32 %v6092_v42, %v15212_v31  ;;  %v6056_v2 = vpop.f32.mrf.mxu2  ;;  %v10572_v31 = vld [vmem:[%s17172_s9 + $0x288] sm:$0xf]  ;;  %v10580_v42 = vld [vmem:[%s17172_s9 + $0x2a0] sm:$0xf] }
 0xa7a   : > { %v6057_v52 = vadd.f32 %v6056_v2, %v15154_v40  ;;  %v11350_v40 = vld [vmem:[%s17172_s9 + $0x294] sm:$0xf0]  ;;  %v10581_v2 = vor.u32 %v11353_v17, %v10580_v42 }
 0xa7b   : > { %v10573_v8 = vor.u32 %v11350_v40, %v10572_v31 }
 0xa7d   : > { %6499 = vmatmul.bf16.gmra.mxu3 %v10529_v25  ;;  %v11351_v25 = vld [vmem:[%s17172_s9 + $0x2a4] sm:$0xf] }
 0xa80   : > { %v6095_v50 = vpop.f32.mrf.mxu3 }
 0xa81   : > { %v15310_v9 = vadd.f32 %v6095_v50, %v6047_v59  ;;  %v6058_v22 = vpop.f32.mrf.mxu2  ;;  %v11340_v59 = vld [vmem:[%s17172_s9 + $0x24c] sm:$0xf]  ;;  %v10582_v50 = vld [vmem:[%s17172_s9 + $0x2b0] sm:$0xf0] }
 0xa82   : > { %v15313_v30 = vadd.f32 %v6058_v22, %v15162_v4  ;;  %v10542_v4 = vld [vmem:[%s17172_s9 + $0x258] sm:$0xf0]  ;;  %v10585_v31 = vor.u32 %v11351_v25, %v10582_v50 }
 0xa83   : > { %v10545_v55 = vor.u32 %v11340_v59, %v10542_v4 }
 0xa84   : > { %6421 = vmatmul.bf16.gmra.mxu1 %v10585_v31 }
 0xa85   : > { %6367 = vmatmul.bf16.gmra.mxu0 %v10565_v47 }
 0xa86   : > { %6465 = vmatmul.bf16.gmra.mxu2 %v10573_v8 }
 0xa88   : > { %v6097_v18 = vpop.f32.mrf.mxu3 }
 0xa89   : > { %v15342_v57 = vadd.f32 %v6097_v18, %v15244_v24  ;;  %v6061_v21 = vpop.f32.mrf.mxu2  ;;  %v10588_v24 = vld [vmem:[%s17172_s9 + $0x2a8] sm:$0xf] }
 0xa8a   : > { %v6062_v28 = vadd.f32 %v6061_v21, %v15170_v19  ;;  %v11354_v19 = vld [vmem:[%s17172_s9 + $0x2b4] sm:$0xf0]  ;;  %v11357_v21 = vld [vmem:[%s17172_s9 + $0x2cc] sm:$0xf0] }
 0xa8b   : > { %v10589_v61 = vor.u32 %v11354_v19, %v10588_v24  ;;  %v10598_v24 = vld [vmem:[%s17172_s9 + $0x2d0] sm:$0xf0] }
 0xa8d   : > { %6504 = vmatmul.bf16.gmra.mxu3 %v10545_v55  ;;  %v10596_v55 = vld [vmem:[%s17172_s9 + $0x2c0] sm:$0xf] }
 0xa90   : > { %v6100_v3 = vpop.f32.mrf.mxu3 }
 0xa91   : > { %v15347_v0 = vadd.f32 %v6100_v3, %v6052_v20  ;;  %v6063_v29 = vpop.f32.mrf.mxu2  ;;  %v11344_v20 = vld [vmem:[%s17172_s9 + $0x26c] sm:$0xf]  ;;  %v11355_v3 = vld [vmem:[%s17172_s9 + $0x2c4] sm:$0xf] }
 0xa92   : > { %v15350_v39 = vadd.f32 %v6063_v29, %v15178_v49  ;;  %v10558_v49 = vld [vmem:[%s17172_s9 + $0x278] sm:$0xf0]  ;;  %v10597_v29 = vor.u32 %v11357_v21, %v10596_v55 }
 0xa93   : > { %v10561_v8 = vor.u32 %v11344_v20, %v10558_v49 }
 0xa95   : > { %6372 = vmatmul.bf16.gmra.mxu0 %v10581_v2 }
 0xa96   : > { %6470 = vmatmul.bf16.gmra.mxu2 %v10589_v61  ;;  %v10601_v61 = vor.u32 %v11355_v3, %v10598_v24 }
 0xa98   : > { %v6102_v22 = vpop.f32.mrf.mxu3  ;;  %6426 = vmatmul.bf16.gmra.mxu1 %v10601_v61 }
 0xa99   : > { %v15379_v40 = vadd.f32 %v6102_v22, %v15276_v45  ;;  %v6066_v59 = vpop.f32.mrf.mxu2  ;;  %v10604_v45 = vld [vmem:[%s17172_s9 + $0x2c8] sm:$0xf] }
 0xa9a   : > { %v6067_v4 = vadd.f32 %v6066_v59, %v15180_v35  ;;  %v11358_v35 = vld [vmem:[%s17172_s9 + $0x2d4] sm:$0xf0] }
 0xa9b   : > { %v10605_v63 = vor.u32 %v11358_v35, %v10604_v45  ;;  %v11359_v45 = vld [vmem:[%s17172_s9 + $0x2e4] sm:$0xf] }
 0xa9d   : > { %6509 = vmatmul.bf16.gmra.mxu3 %v10561_v8 }
 0xaa0   : > { %v6105_v44 = vpop.f32.mrf.mxu3 }
 0xaa1   : > { %v15384_v1 = vadd.f32 %v6105_v44, %v6057_v52  ;;  %v6068_v47 = vpop.f32.mrf.mxu2  ;;  %v11348_v52 = vld [vmem:[%s17172_s9 + $0x28c] sm:$0xf]  ;;  %v10612_v44 = vld [vmem:[%s17172_s9 + $0x2e0] sm:$0xf] }
 0xaa2   : > { %v15387_v23 = vadd.f32 %v6068_v47, %v15206_v46  ;;  %v10574_v46 = vld [vmem:[%s17172_s9 + $0x298] sm:$0xf0]  ;;  %v11361_v47 = vld [vmem:[%s17172_s9 + $0x2ec] sm:$0xf0] }
 0xaa3   : > { %v10577_v49 = vor.u32 %v11348_v52, %v10574_v46  ;;  %v10613_v35 = vor.u32 %v11361_v47, %v10612_v44  ;;  %v10662_v47 = vld [vmem:[%s17172_s9 + $0x310] sm:$0xf0] }
 0xaa5   : > { %6377 = vmatmul.bf16.gmra.mxu0 %v10597_v29 }
 0xaa6   : > { %6475 = vmatmul.bf16.gmra.mxu2 %v10605_v63  ;;  %v10614_v63 = vld [vmem:[%s17172_s9 + $0x2f0] sm:$0xf0] }
 0xaa7   : > { %v10617_v46 = vor.u32 %v11359_v45, %v10614_v63 }
 0xaa8   : > { %v6107_v19 = vpop.f32.mrf.mxu3 }
 0xaa9   : > { %v15416_v20 = vadd.f32 %v6107_v19, %v15313_v30  ;;  %v6071_v42 = vpop.f32.mrf.mxu2  ;;  %v10620_v30 = vld [vmem:[%s17172_s9 + $0x2e8] sm:$0xf]  ;;  %6431 = vmatmul.bf16.gmra.mxu1 %v10617_v46 }
 0xaaa   : > { %v15419_v17 = vadd.f32 %v6071_v42, %v15209_v62  ;;  %v11362_v62 = vld [vmem:[%s17172_s9 + $0x2f4] sm:$0xf0] }
 0xaab   : > { %v10621_v59 = vor.u32 %v11362_v62, %v10620_v30  ;;  %v10660_v62 = vld [vmem:[%s17172_s9 + $0x300] sm:$0xf] }
 0xaad   : > { %6514 = vmatmul.bf16.gmra.mxu3 %v10577_v49 }
 0xab0   : > { %v6110_v2 = vpop.f32.mrf.mxu3 }
 0xab1   : > { %v15423_v50 = vadd.f32 %v6110_v2, %v6062_v28  ;;  %v6073_v22 = vpop.f32.mrf.mxu2  ;;  %v11352_v28 = vld [vmem:[%s17172_s9 + $0x2ac] sm:$0xf] }
 0xab2   : > { %v15426_v31 = vadd.f32 %v6073_v22, %v15238_v36  ;;  %v10590_v36 = vld [vmem:[%s17172_s9 + $0x2b8] sm:$0xf0] }
 0xab3   : > { %v10593_v21 = vor.u32 %v11352_v28, %v10590_v36  ;;  %v11363_v28 = vld [vmem:[%s17172_s9 + $0x304] sm:$0xf]  ;;  %v6397_v36 = vpop.f32.mrf.mxu1 }
 0xab5   : > { %6382 = vmatmul.bf16.gmra.mxu0 %v10613_v35  ;;  %v10665_v35 = vor.u32 %v11363_v28, %v10662_v47  ;;  %v10676_v47 = vld [vmem:[%s17172_s9 + $0x320] sm:$0xf] }
 0xab6   : > { %6480 = vmatmul.bf16.gmra.mxu2 %v10621_v59  ;;  %v11365_v59 = vld [vmem:[%s17172_s9 + $0x30c] sm:$0xf0] }
 0xab7   : > { %v10661_v44 = vor.u32 %v11365_v59, %v10660_v62 }
 0xab8   : > { %v6112_v52 = vpop.f32.mrf.mxu3  ;;  %v6348_v30 = vpop.f32.mrf.mxu0 }
 0xab9   : > { %v15455_v55 = vadd.f32 %v6112_v52, %v15350_v39  ;;  %v6076_v3 = vpop.f32.mrf.mxu2  ;;  %v10668_v39 = vld [vmem:[%s17172_s9 + $0x308] sm:$0xf]  ;;  %6785 = vmatmul.bf16.vlgmr.msrb.gmra.mxu1 %v10665_v35  ;;  %v11367_v35 = vld [vmem:[%s17172_s9 + $0x324] sm:$0xf] }
 0xaba   : > { %v15458_v29 = vadd.f32 %v6076_v3, %v15241_v12  ;;  %v11366_v12 = vld [vmem:[%s17172_s9 + $0x314] sm:$0xf0]  ;;  %v6398_v3 = vadd.f32 %v6397_v36, %v6348_v30  ;;  %v10622_v36 = vld [vmem:[%s17172_s9 + $0x2f8] sm:$0xf0] }
 0xabb   : > { %v10669_v22 = vor.u32 %v11366_v12, %v10668_v39  ;;  %v6399_v39 = vpop.f32.mrf.mxu1 }
 0xabd   : > { %6519 = vmatmul.bf16.gmra.mxu3 %v10593_v21 }
 0xac0   : > { %v6115_v19 = vpop.f32.mrf.mxu3 }
 0xac1   : > { %v15462_v61 = vadd.f32 %v6115_v19, %v6067_v4  ;;  %v6078_v49 = vpop.f32.mrf.mxu2  ;;  %v11356_v4 = vld [vmem:[%s17172_s9 + $0x2cc] sm:$0xf] }
 0xac2   : > { %v15465_v42 = vadd.f32 %v6078_v49, %v15270_v32  ;;  %v10606_v32 = vld [vmem:[%s17172_s9 + $0x2d8] sm:$0xf0]  ;;  %v6350_v49 = vpop.f32.mrf.mxu0 }
 0xac3   : > { %17596 = vst [vmem:[#allocation54_spill] sm:$0xff] %v15462_v61  ;;  %v10609_v52 = vor.u32 %v11356_v4, %v10606_v32  ;;  %v10684_v4 = vld [vmem:[%s17172_s9 + $0x328] sm:$0xf]  ;;  %v11370_v32 = vld [vmem:[%s17172_s9 + $0x334] sm:$0xf0] }
 0xac4   : > { %v10685_v28 = vor.u32 %v11370_v32, %v10684_v4 }
 0xac5   : > { %6736 = vmatmul.bf16.vlgmr.msrb.gmra.mxu0 %v10661_v44 }
 0xac6   : > { %6834 = vmatmul.bf16.vlgmr.msrb.gmra.mxu2 %v10669_v22  ;;  %v6400_v22 = vadd.f32 %v6399_v39, %v6350_v49 }
 0xac8   : > { %v6117_v45 = vpop.f32.mrf.mxu3 }
 0xac9   : > { %v15494_v63 = vadd.f32 %v6117_v45, %v15387_v23  ;;  %v6446_v46 = vpop.f32.mrf.mxu2  ;;  %v11369_v45 = vld [vmem:[%s17172_s9 + $0x32c] sm:$0xf0] }
 0xaca   : > { %v15498_v19 = vadd.f32 %v6446_v46, %v6398_v3  ;;  %v10677_v46 = vor.u32 %v11369_v45, %v10676_v47  ;;  %v10678_v3 = vld [vmem:[%s17172_s9 + $0x330] sm:$0xf0] }
 0xacb   : > { %17597 = vst [vmem:[#allocation69_spill] sm:$0xff] %v15494_v63  ;;  %v10681_v39 = vor.u32 %v11367_v35, %v10678_v3 }
 0xacd   : > { %6524 = vmatmul.bf16.gmra.mxu3 %v10609_v52  ;;  %v6402_v52 = vpop.f32.mrf.mxu1  ;;  %6790 = vmatmul.bf16.gmra.mxu1 %v10681_v39  ;;  %v11371_v39 = vld [vmem:[%s17172_s9 + $0x344] sm:$0xf] }
 0xad0   : > { %v6120_v12 = vpop.f32.mrf.mxu3 }
 0xad1   : > { %v15501_v62 = vadd.f32 %v6120_v12, %v15419_v17  ;;  %v6448_v23 = vpop.f32.mrf.mxu2  ;;  %v11360_v17 = vld [vmem:[%s17172_s9 + $0x2ec] sm:$0xf] }
 0xad2   : > { %v15503_v59 = vadd.f32 %v6448_v23, %v6400_v22  ;;  %v6353_v44 = vpop.f32.mrf.mxu0  ;;  %v10625_v22 = vor.u32 %v11360_v17, %v10622_v36  ;;  %v10700_v17 = vld [vmem:[%s17172_s9 + $0x348] sm:$0xf]  ;;  %v11374_v36 = vld [vmem:[%s17172_s9 + $0x354] sm:$0xf0] }
 0xad3   : > { %17598 = vst [vmem:[#allocation35_spill] sm:$0xff] %v15501_v62  ;;  %v6403_v23 = vadd.f32 %v6402_v52, %v6353_v44  ;;  %v10701_v52 = vor.u32 %v11374_v36, %v10700_v17 }
 0xad5   : > { %6741 = vmatmul.bf16.gmra.mxu0 %v10677_v46  ;;  %v6404_v45 = vpop.f32.mrf.mxu1  ;;  %v10692_v46 = vld [vmem:[%s17172_s9 + $0x340] sm:$0xf] }
 0xad6   : > { %6839 = vmatmul.bf16.gmra.mxu2 %v10685_v28 }
 0xad8   : > { %v6122_v49 = vpop.f32.mrf.mxu3 }
 0xad9   : > { %v15532_v12 = vadd.f32 %v6122_v49, %v15426_v31  ;;  %v6451_v4 = vpop.f32.mrf.mxu2  ;;  %v11373_v49 = vld [vmem:[%s17172_s9 + $0x34c] sm:$0xf0] }
 0xada   : > { %v15536_v28 = vadd.f32 %v6451_v4, %v6403_v23  ;;  %v6355_v47 = vpop.f32.mrf.mxu0  ;;  %v10693_v23 = vor.u32 %v11373_v49, %v10692_v46  ;;  %v10694_v4 = vld [vmem:[%s17172_s9 + $0x350] sm:$0xf0] }
 0xadb   : > { %17599 = vst [vmem:[#allocation24_spill] sm:$0xff] %v15532_v12  ;;  %v6405_v21 = vadd.f32 %v6404_v45, %v6355_v47  ;;  %v10697_v45 = vor.u32 %v11371_v39, %v10694_v4 }
 0xadd   : > { %6529 = vmatmul.bf16.gmra.mxu3 %v10625_v22  ;;  %v6407_v22 = vpop.f32.mrf.mxu1  ;;  %6795 = vmatmul.bf16.gmra.mxu1 %v10697_v45 }
 0xae0   : > { %v6125_v30 = vpop.f32.mrf.mxu3 }
 0xae1   : > { %v15539_v35 = vadd.f32 %v6125_v30, %v15458_v29  ;;  %v6453_v31 = vpop.f32.mrf.mxu2  ;;  %v11364_v29 = vld [vmem:[%s17172_s9 + $0x30c] sm:$0xf] }
 0xae2   : > { %v15541_v3 = vadd.f32 %v6453_v31, %v6405_v21  ;;  %v10670_v21 = vld [vmem:[%s17172_s9 + $0x318] sm:$0xf0]  ;;  %v6358_v30 = vpop.f32.mrf.mxu0 }
 0xae3   : > { %17600 = vst [vmem:[#allocation39_spill] sm:$0xff] %v15539_v35  ;;  %v10673_v17 = vor.u32 %v11364_v29, %v10670_v21  ;;  %v6408_v36 = vadd.f32 %v6407_v22, %v6358_v30  ;;  %v10716_v29 = vld [vmem:[%s17172_s9 + $0x368] sm:$0xf]  ;;  %v11378_v21 = vld [vmem:[%s17172_s9 + $0x374] sm:$0xf0] }
 0xae4   : > { %v10717_v30 = vor.u32 %v11378_v21, %v10716_v29  ;;  %v11368_v22 = vld [vmem:[%s17172_s9 + $0x32c] sm:$0xf] }
 0xae5   : > { %6746 = vmatmul.bf16.gmra.mxu0 %v10693_v23  ;;  %v6409_v49 = vpop.f32.mrf.mxu1  ;;  %v11377_v23 = vld [vmem:[%s17172_s9 + $0x36c] sm:$0xf0] }
 0xae6   : > { %6844 = vmatmul.bf16.gmra.mxu2 %v10701_v52 }
 0xae8   : > { %v6127_v47 = vpop.f32.mrf.mxu3 }
 0xae9   : > { %v15570_v31 = vadd.f32 %v6127_v47, %v15465_v42  ;;  %v6456_v52 = vpop.f32.mrf.mxu2  ;;  %v11375_v47 = vld [vmem:[%s17172_s9 + $0x364] sm:$0xf] }
 0xaea   : > { %v15574_v32 = vadd.f32 %v6456_v52, %v6408_v36  ;;  %v6360_v46 = vpop.f32.mrf.mxu0  ;;  %v10710_v36 = vld [vmem:[%s17172_s9 + $0x370] sm:$0xf0] }
 0xaeb   : > { %17601 = vst [vmem:[#allocation12_spill] sm:$0xff] %v15570_v31  ;;  %v6410_v24 = vadd.f32 %v6409_v49, %v6360_v46  ;;  %v10713_v46 = vor.u32 %v11375_v47, %v10710_v36 }
 0xaed   : > { %6883 = vmatmul.bf16.vlgmr.msrb.gmra.mxu3 %v10673_v17  ;;  %v6412_v45 = vpop.f32.mrf.mxu1  ;;  %6800 = vmatmul.bf16.gmra.mxu1 %v10713_v46 }
 0xaf0   : > { %v6495_v2 = vpop.f32.mrf.mxu3 }
 0xaf1   : > { %v15577_v39 = vadd.f32 %v6495_v2, %v15498_v19  ;;  %v6458_v42 = vpop.f32.mrf.mxu2  ;;  %v10686_v2 = vld [vmem:[%s17172_s9 + $0x338] sm:$0xf0]  ;;  %v10708_v19 = vld [vmem:[%s17172_s9 + $0x360] sm:$0xf] }
 0xaf2   : > { %v15579_v4 = vadd.f32 %v6458_v42, %v6410_v24  ;;  %v6363_v24 = vpop.f32.mrf.mxu0  ;;  %v10709_v17 = vor.u32 %v11377_v23, %v10708_v19  ;;  %v10689_v42 = vor.u32 %v11368_v22, %v10686_v2  ;;  %v11382_v22 = vld [vmem:[%s17172_s9 + $0x394] sm:$0xf0] }
 0xaf3   : > { %v6413_v29 = vadd.f32 %v6412_v45, %v6363_v24  ;;  %v11372_v24 = vld [vmem:[%s17172_s9 + $0x34c] sm:$0xf] }
 0xaf5   : > { %6751 = vmatmul.bf16.gmra.mxu0 %v10709_v17  ;;  %v6414_v8 = vpop.f32.mrf.mxu1  ;;  %v10726_v17 = vld [vmem:[%s17172_s9 + $0x390] sm:$0xf0] }
 0xaf6   : > { %6849 = vmatmul.bf16.gmra.mxu2 %v10717_v30 }
 0xaf8   : > { %v6497_v52 = vpop.f32.mrf.mxu3 }
 0xaf9   : > { %v15606_v49 = vadd.f32 %v6497_v52, %v15503_v59  ;;  %v6461_v21 = vpop.f32.mrf.mxu2  ;;  %v10732_v59 = vld [vmem:[%s17172_s9 + $0x388] sm:$0xf] }
 0xafa   : > { %v6462_v30 = vadd.f32 %v6461_v21, %v6413_v29  ;;  %v6365_v44 = vpop.f32.mrf.mxu0  ;;  %v10733_v2 = vor.u32 %v11382_v22, %v10732_v59 }
 0xafb   : > { %v6415_v19 = vadd.f32 %v6414_v8, %v6365_v44  ;;  %v10724_v8 = vld [vmem:[%s17172_s9 + $0x380] sm:$0xf]  ;;  %v11379_v44 = vld [vmem:[%s17172_s9 + $0x384] sm:$0xf] }
 0xafc   : > { %v10729_v52 = vor.u32 %v11379_v44, %v10726_v17  ;;  %v11383_v17 = vld [vmem:[%s17172_s9 + $0x3a4] sm:$0xf] }
 0xafd   : > { %6888 = vmatmul.bf16.gmra.mxu3 %v10689_v42  ;;  %v6417_v47 = vpop.f32.mrf.mxu1 }
 0xafe   : > { %6805 = vmatmul.bf16.gmra.mxu1 %v10729_v52 }
 0xb00   : > { %v6500_v25 = vpop.f32.mrf.mxu3 }
 0xb01   : > { %v15609_v23 = vadd.f32 %v6500_v25, %v15536_v28  ;;  %v6463_v18 = vpop.f32.mrf.mxu2  ;;  %v10702_v25 = vld [vmem:[%s17172_s9 + $0x358] sm:$0xf0]  ;;  %v11381_v28 = vld [vmem:[%s17172_s9 + $0x38c] sm:$0xf0] }
 0xb02   : > { %v15611_v54 = vadd.f32 %v6463_v18, %v6415_v19  ;;  %v6368_v18 = vpop.f32.mrf.mxu0  ;;  %v10725_v45 = vor.u32 %v11381_v28, %v10724_v8  ;;  %v10705_v42 = vor.u32 %v11372_v24, %v10702_v25  ;;  %v11386_v24 = vld [vmem:[%s17172_s9 + $0x3b4] sm:$0xf0] }
 0xb03   : > { %v6418_v29 = vadd.f32 %v6417_v47, %v6368_v18  ;;  %v11376_v18 = vld [vmem:[%s17172_s9 + $0x36c] sm:$0xf]  ;;  %v10740_v47 = vld [vmem:[%s17172_s9 + $0x3a0] sm:$0xf] }
 0xb05   : > { %6756 = vmatmul.bf16.gmra.mxu0 %v10725_v45  ;;  %v15642_v22 = vpop.f32.mrf.mxu1  ;;  %v11385_v45 = vld [vmem:[%s17172_s9 + $0x3ac] sm:$0xf0] }
 0xb06   : > { %6854 = vmatmul.bf16.gmra.mxu2 %v10733_v2  ;;  %v10741_v52 = vor.u32 %v11385_v45, %v10740_v47 }
 0xb08   : > { %v6502_v36 = vpop.f32.mrf.mxu3 }
 0xb09   : > { %v15638_v46 = vadd.f32 %v6502_v36, %v15541_v3  ;;  %v6466_v21 = vpop.f32.mrf.mxu2  ;;  %v10748_v3 = vld [vmem:[%s17172_s9 + $0x3a8] sm:$0xf] }
 0xb0a   : > { %v6467_v19 = vadd.f32 %v6466_v21, %v6418_v29  ;;  %v15640_v59 = vpop.f32.mrf.mxu0  ;;  %v10749_v25 = vor.u32 %v11386_v24, %v10748_v3 }
 0xb0d   : > { %6893 = vmatmul.bf16.gmra.mxu3 %v10705_v42  ;;  %v6422_v36 = vpop.f32.mrf.mxu1  ;;  %v10742_v42 = vld [vmem:[%s17172_s9 + $0x3b0] sm:$0xf0] }
 0xb0e   : > { %v10745_v21 = vor.u32 %v11383_v17, %v10742_v42  ;;  %v11387_v42 = vld [vmem:[%s17172_s9 + $0x3c4] sm:$0xf] }
 0xb10   : > { %v6505_v2 = vpop.f32.mrf.mxu3  ;;  %6810 = vmatmul.bf16.gmra.mxu1 %v10745_v21 }
 0xb11   : > { %v15645_v8 = vadd.f32 %v6505_v2, %v15574_v32  ;;  %v15647_v28 = vpop.f32.mrf.mxu2  ;;  %v10718_v32 = vld [vmem:[%s17172_s9 + $0x378] sm:$0xf0] }
 0xb12   : > { %v6373_v44 = vpop.f32.mrf.mxu0  ;;  %v10721_v3 = vor.u32 %v11376_v18, %v10718_v32  ;;  %v11390_v18 = vld [vmem:[%s17172_s9 + $0x3d4] sm:$0xf0] }
 0xb13   : > { %v6423_v24 = vadd.f32 %v6422_v36, %v6373_v44  ;;  %v11380_v44 = vld [vmem:[%s17172_s9 + $0x38c] sm:$0xf]  ;;  %v10756_v36 = vld [vmem:[%s17172_s9 + $0x3c0] sm:$0xf] }
 0xb15   : > { %6761 = vmatmul.bf16.gmra.mxu0 %v10741_v52  ;;  %v15678_v16 = vpop.f32.mrf.mxu1  ;;  %v11389_v52 = vld [vmem:[%s17172_s9 + $0x3cc] sm:$0xf0] }
 0xb16   : > { %6859 = vmatmul.bf16.gmra.mxu2 %v10749_v25  ;;  %v10757_v21 = vor.u32 %v11389_v52, %v10756_v36 }
 0xb18   : > { %v6507_v29 = vpop.f32.mrf.mxu3 }
 0xb19   : > { %v15674_v2 = vadd.f32 %v6507_v29, %v15579_v4  ;;  %v6471_v25 = vpop.f32.mrf.mxu2  ;;  %v10764_v4 = vld [vmem:[%s17172_s9 + $0x3c8] sm:$0xf] }
 0xb1a   : > { %v6472_v7 = vadd.f32 %v6471_v25, %v6423_v24  ;;  %v15676_v53 = vpop.f32.mrf.mxu0  ;;  %v10765_v32 = vor.u32 %v11390_v18, %v10764_v4 }
 0xb1d   : > { %6898 = vmatmul.bf16.gmra.mxu3 %v10721_v3  ;;  %v6427_v29 = vpop.f32.mrf.mxu1  ;;  %v10758_v3 = vld [vmem:[%s17172_s9 + $0x3d0] sm:$0xf0] }
 0xb1e   : > { %v10761_v25 = vor.u32 %v11387_v42, %v10758_v3 }
 0xb20   : > { %v6510_v47 = vpop.f32.mrf.mxu3  ;;  %6815 = vmatmul.bf16.gmra.mxu1 %v10761_v25 }
 0xb21   : > { %v15680_v45 = vadd.f32 %v6510_v47, %v6462_v30  ;;  %v15682_v13 = vpop.f32.mrf.mxu2  ;;  %v10734_v30 = vld [vmem:[%s17172_s9 + $0x398] sm:$0xf0] }
 0xb22   : > { %17602 = vst [vmem:[#allocation16_spill] sm:$0xff] %v15682_v13  ;;  %v6378_v17 = vpop.f32.mrf.mxu0  ;;  %v10737_v4 = vor.u32 %v11380_v44, %v10734_v30  ;;  %v10750_v44 = vld [vmem:[%s17172_s9 + $0x3b8] sm:$0xf0] }
 0xb23   : > { %v6428_v18 = vadd.f32 %v6427_v29, %v6378_v17 }
 0xb25   : > { %6766 = vmatmul.bf16.gmra.mxu0 %v10757_v21  ;;  %v15713_v15 = vpop.f32.mrf.mxu1  ;;  %v11394_v21 = vld [vmem:[%s17172_s9 + $0x3f4] sm:$0xf0] }
 0xb26   : > { %6864 = vmatmul.bf16.gmra.mxu2 %v10765_v32  ;;  %17604 = vst [vmem:[#allocation27_spill] sm:$0xff] %v15713_v15 }
 0xb28   : > { %v6512_v24 = vpop.f32.mrf.mxu3 }
 0xb29   : > { %v15709_v47 = vadd.f32 %v6512_v24, %v15611_v54  ;;  %v6476_v32 = vpop.f32.mrf.mxu2  ;;  %v11384_v54 = vld [vmem:[%s17172_s9 + $0x3ac] sm:$0xf] }
 0xb2a   : > { %v6477_v48 = vadd.f32 %v6476_v32, %v6428_v18  ;;  %v15711_v31 = vpop.f32.mrf.mxu0  ;;  %v10753_v29 = vor.u32 %v11384_v54, %v10750_v44  ;;  %v10772_v18 = vld [vmem:[%s17172_s9 + $0x3e0] sm:$0xf]  ;;  %v11393_v32 = vld [vmem:[%s17172_s9 + $0x3ec] sm:$0xf0]  ;;  %v10774_v44 = vld [vmem:[%s17172_s9 + $0x3f0] sm:$0xf0] }
 0xb2b   : > { %17603 = vst [vmem:[#allocation57_spill] sm:$0xff] %v15711_v31  ;;  %v10773_v54 = vor.u32 %v11393_v32, %v10772_v18 }
 0xb2d   : > { %6903 = vmatmul.bf16.gmra.mxu3 %v10737_v4  ;;  %v6432_v42 = vpop.f32.mrf.mxu1 }
 0xb30   : > { %v6515_v36 = vpop.f32.mrf.mxu3 }
 0xb31   : > { %v15715_v52 = vadd.f32 %v6515_v36, %v6467_v19  ;;  %v15717_v35 = vpop.f32.mrf.mxu2  ;;  %v10780_v19 = vld [vmem:[%s17172_s9 + $0x3e8] sm:$0xf]  ;;  %v11391_v36 = vld [vmem:[%s17172_s9 + $0x3e4] sm:$0xf] }
 0xb32   : > { %17605 = vst [vmem:[#allocation58_spill] sm:$0xff] %v15717_v35  ;;  %v6383_v30 = vpop.f32.mrf.mxu0  ;;  %v10781_v24 = vor.u32 %v11394_v21, %v10780_v19 }
 0xb33   : > { %v6433_v3 = vadd.f32 %v6432_v42, %v6383_v30  ;;  %v10777_v30 = vor.u32 %v11391_v36, %v10774_v44 }
 0xb35   : > { %6771 = vmatmul.bf16.gmra.mxu0 %v10773_v54  ;;  %6820 = vmatmul.bf16.gmra.mxu1 %v10777_v30  ;;  %v15749_v21 = vpop.f32.mrf.mxu1 }
 0xb36   : > { %6869 = vmatmul.bf16.gmra.mxu2 %v10781_v24  ;;  %17607 = vst [vmem:[#allocation60_spill] sm:$0xff] %v15749_v21  ;;  %v10766_v24 = vld [vmem:[%s17172_s9 + $0x3d8] sm:$0xf0]  ;;  %v11392_v21 = vld [vmem:[%s17172_s9 + $0x3ec] sm:$0xf] }
 0xb38   : > { %v15725_v17 = vpop.f32.mrf.mxu3 }
 0xb39   : > { %v6481_v25 = vpop.f32.mrf.mxu2 }
 0xb3a   : > { %v6482_v4 = vadd.f32 %v6481_v25, %v6433_v3  ;;  %v15747_v19 = vpop.f32.mrf.mxu0  ;;  %v11388_v3 = vld [vmem:[%s17172_s9 + $0x3cc] sm:$0xf] }
 0xb3b   : > { %17606 = vst [vmem:[#allocation53_spill] sm:$0xff] %v15747_v19  ;;  %v10769_v32 = vor.u32 %v11388_v3, %v10766_v24  ;;  %v10782_v19 = vld [vmem:[%s17172_s9 + $0x3f8] sm:$0xf0] }
 0xb3c   : > { %v10785_v3 = vor.u32 %v11392_v21, %v10782_v19 }
 0xb3d   : > { %6908 = vmatmul.bf16.gmra.mxu3 %v10753_v29  ;;  %v6786_v36 = vpop.f32.mrf.mxu1 }
 0xb40   : > { %v6520_v42 = vpop.f32.mrf.mxu3 }
 0xb41   : > { %v15745_v29 = vadd.f32 %v6520_v42, %v6472_v7  ;;  %v15757_v25 = vpop.f32.mrf.mxu2 }
 0xb42   : > { %17608 = vst [vmem:[#allocation62_spill] sm:$0xff] %v15757_v25  ;;  %v6737_v7 = vpop.f32.mrf.mxu0 }
 0xb43   : > { %v6787_v62 = vadd.f32 %v6786_v36, %v6737_v7 }
 0xb45   : > { %v6788_v25 = vpop.f32.mrf.mxu1 }
 0xb48   : > { %v15759_v18 = vpop.f32.mrf.mxu3 }
 0xb49   : > { %17609 = vst [vmem:[#allocation19_spill] sm:$0xff] %v15759_v18  ;;  %v6835_v44 = vpop.f32.mrf.mxu2  ;;  %v17614_v18 = vmax.f32 %v14940_v26, %v15273_v11 }
 0xb4a   : > { %v6739_v42 = vpop.f32.mrf.mxu0  ;;  %v6836_v15 = vadd.f32 %v6835_v44, %v6787_v62 }
 0xb4b   : > { %v6789_v19 = vadd.f32 %v6788_v25, %v6739_v42 }
 0xb4d   : > { %6913 = vmatmul.bf16.gmra.mxu3 %v10769_v32  ;;  %v6791_v43 = vpop.f32.mrf.mxu1 }
 0xb50   : > { %v6525_v54 = vpop.f32.mrf.mxu3 }
 0xb51   : > { %v15761_v30 = vadd.f32 %v6525_v54, %v6477_v48  ;;  %v6837_v24 = vpop.f32.mrf.mxu2 }
 0xb52   : > { %v6742_v32 = vpop.f32.mrf.mxu0 }
 0xb53   : > { %17610 = vst [vmem:[#allocation63_spill] sm:$0xff] %v15761_v30  ;;  %v6792_v61 = vadd.f32 %v6791_v43, %v6742_v32 }
 0xb55   : > { %v6793_v30 = vpop.f32.mrf.mxu1 }
 0xb58   : > { %v15769_v27 = vpop.f32.mrf.mxu3 }
 0xb59   : > { %17611 = vst [vmem:[#allocation87_spill] sm:$0xff] %v15769_v27  ;;  %v6840_v54 = vpop.f32.mrf.mxu2 }
 0xb5a   : > { %v6744_v60 = vpop.f32.mrf.mxu0 }
 0xb5d   : > { %6918 = vmatmul.bf16.gmra.mxu3 %v10785_v3  ;;  %v6796_v3 = vpop.f32.mrf.mxu1 }
 0xb60   : > { %v6530_v12 = vpop.f32.mrf.mxu3 }
 0xb61   : > { %v15771_v48 = vadd.f32 %v6530_v12, %v6482_v4  ;;  %v6842_v31 = vpop.f32.mrf.mxu2 }
 0xb62   : > { %v6747_v21 = vpop.f32.mrf.mxu0 }
 0xb63   : > { %17612 = vst [vmem:[#allocation65_spill] sm:$0xff] %v15771_v48  ;;  %v6838_v48 = vadd.f32 %v6837_v24, %v6789_v19 }
 0xb65   : > { %v6798_v26 = vpop.f32.mrf.mxu1 }
 0xb68   : > { %v15773_v35 = vpop.f32.mrf.mxu3 }
 0xb69   : > { %17613 = vst [vmem:[#allocation17_spill] sm:$0xff] %v15773_v35  ;;  %v6845_v35 = vpop.f32.mrf.mxu2 }
 0xb6a   : > { %v6749_v25 = vpop.f32.mrf.mxu0 }
 0xb70   : > { %v6884_v63 = vpop.f32.mrf.mxu3 }
 0xb71   : > { %v6885_v38 = vadd.f32 %v6884_v63, %v6836_v15  ;;  %v6847_v32 = vpop.f32.mrf.mxu2 }
 0xb73   : > { %v6924_v27 = vmax.f32 %v15577_v39, %v6885_v38  ;;  %v17615_v38 = vmax.f32 %v14950_v34, %v15305_v51  ;;  %v6841_v39 = vadd.f32 %v6840_v54, %v6792_v61  ;;  %v6794_v54 = vadd.f32 %v6793_v30, %v6744_v60  ;;  %v6801_v30 = vpop.f32.mrf.mxu1 }
 0xb75   : > { %v6940_v12 = vmax.f32 %v17614_v18, %v6924_v27 }
 0xb77   : > { %v6956_v4 = vpack.c.bf16 %v6940_v12, %v6940_v12 }
 0xb78   : > { %v6886_v13 = vpop.f32.mrf.mxu3 }
 0xb79   : > { %v6988_v7 = vunpack.c.l.b16 %v6956_v4  ;;  %v6887_v36 = vadd.f32 %v6886_v13, %v6838_v48  ;;  %v17619_v4 = vmax.f32 %v14963_v14, %v15310_v9 }
 0xb7b   : > { %v7004_v62 = vpack.c.b16 %v6988_v7, %v6988_v7  ;;  %v6925_v44 = vmax.f32 %v15606_v49, %v6887_v36 }
 0xb7d   : > { %v7021_v15 = vshrl.u32 %v7004_v62, 16  ;;  %v6941_v63 = vmax.f32 %v17615_v38, %v6925_v44  ;;  %v7024_v11 = vshll.u32 %v7004_v62, 16  ;;  %v6843_v38 = vadd.f32 %v6842_v31, %v6794_v54 }
 0xb7f   : > { %v7023_v27 = vrot.slane %v7021_v15, 7  ;;  %v6957_v18 = vpack.c.bf16 %v6941_v63, %v6941_v63  ;;  %v6752_v63 = vpop.f32.mrf.mxu0 }
 0xb80   : > { %v6889_v42 = vpop.f32.mrf.mxu3 }
 0xb81   : > { %v7026_v43 = vor.u32 %v7024_v11, %v7023_v27  ;;  %v6989_v49 = vunpack.c.l.b16 %v6957_v18  ;;  %v6890_v24 = vadd.f32 %v6889_v42, %v6841_v39  ;;  %v6797_v42 = vadd.f32 %v6796_v3, %v6747_v21 }
 0xb83   : > { %v7148_v34 = vsel %vm11631_vm2, 0, %v7026_v43  ;;  %v7005_v51 = vpack.c.b16 %v6989_v49, %v6989_v49  ;;  %v6926_v61 = vmax.f32 %v15609_v23, %v6890_v24  ;;  %v6850_v24 = vpop.f32.mrf.mxu2  ;;  %v6846_v21 = vadd.f32 %v6845_v35, %v6797_v42 }
 0xb84   : > { %v15793_v19 = vsel %vm15784_vm15, %v7148_v34, 0 }
 0xb85   : > { %v7028_v12 = vshrl.u32 %v7005_v51, 16  ;;  %v6942_v7 = vmax.f32 %v17619_v4, %v6926_v61  ;;  %v7186_v36 = vshll.u32 %v15793_v19, 16  ;;  %v7031_v44 = vshll.u32 %v7005_v51, 16 }
 0xb86   : > { %v7184_v23 = vshrl.u32 %v15793_v19, 16  ;;  %v17620_v51 = vmax.f32 %v14973_v6, %v15342_v57 }
 0xb87   : > { %v7030_v62 = vrot.slane %v7028_v12, 7  ;;  %v6958_v15 = vpack.c.bf16 %v6942_v7, %v6942_v7  ;;  %v7188_v60 = vrot.slane %v7186_v36, 1 }
 0xb88   : > { %v6891_v39 = vpop.f32.mrf.mxu3 }
 0xb89   : > { %v7033_v27 = vor.u32 %v7031_v44, %v7030_v62  ;;  %v6990_v11 = vunpack.c.l.b16 %v6958_v15  ;;  %v6892_v18 = vadd.f32 %v6891_v39, %v6843_v38  ;;  %v7189_v43 = vor.u32 %v7188_v60, %v7184_v23  ;;  %v6754_v38 = vpop.f32.mrf.mxu0  ;;  %v6803_v23 = vpop.f32.mrf.mxu1 }
 0xb8a   : > { %v6799_v60 = vadd.f32 %v6798_v26, %v6749_v25 }
 0xb8b   : > { %v7149_v14 = vsel %vm11631_vm2, 0, %v7033_v27  ;;  %v7006_v9 = vpack.c.b16 %v6990_v11, %v6990_v11  ;;  %v6927_v49 = vmax.f32 %v15638_v46, %v6892_v18  ;;  %7295 = vrot.lane.b32.xlu1 %v7189_v43, %s11551_s12  ;;  %v17621_v18 = vmax.f32 %v14985_v58, %v15347_v0 }
 0xb8c   : > { %v15806_v31 = vsel %vm15784_vm15, %v7149_v14, 0  ;;  %v6852_v14 = vpop.f32.mrf.mxu2 }
 0xb8d   : > { %v7035_v34 = vshrl.u32 %v7006_v9, 16  ;;  %v6943_v61 = vmax.f32 %v17620_v51, %v6927_v49  ;;  %v7193_v3 = vshll.u32 %v15806_v31, 16  ;;  %v7038_v12 = vshll.u32 %v7006_v9, 16 }
 0xb8e   : > { %v7191_v46 = vshrl.u32 %v15806_v31, 16  ;;  %v6848_v51 = vadd.f32 %v6847_v32, %v6799_v60 }
 0xb8f   : > { %v7037_v54 = vrot.slane %v7035_v34, 7  ;;  %v6959_v4 = vpack.c.bf16 %v6943_v61, %v6943_v61  ;;  %v7195_v36 = vrot.slane %v7193_v3, 1 }
 0xb90   : > { %v6894_v7 = vpop.f32.mrf.mxu3 }
 0xb91   : > { %v7040_v62 = vor.u32 %v7038_v12, %v7037_v54  ;;  %v6991_v44 = vunpack.c.l.b16 %v6959_v4  ;;  %v6895_v15 = vadd.f32 %v6894_v7, %v6846_v21  ;;  %v7196_v39 = vor.u32 %v7195_v36, %v7191_v46  ;;  %v6757_v7 = vpop.f32.mrf.mxu0  ;;  %v6806_v46 = vpop.f32.mrf.mxu1 }
 0xb92   : > { %v6802_v54 = vadd.f32 %v6801_v30, %v6752_v63 }
 0xb93   : > { %v7150_v6 = vsel %vm11631_vm2, 0, %v7040_v62  ;;  %v7007_v57 = vpack.c.b16 %v6991_v44, %v6991_v44  ;;  %v6928_v35 = vmax.f32 %v15645_v8, %v6895_v15  ;;  %7297 = vrot.lane.b32.xlu2 %v7196_v39, %s11551_s12  ;;  %v17622_v62 = vmax.f32 %v14993_v56, %v15379_v40 }
 0xb94   : > { %v15818_v27 = vsel %vm15784_vm15, %v7150_v6, 0  ;;  %v6851_v30 = vadd.f32 %v6850_v24, %v6802_v54  ;;  %v6855_v60 = vpop.f32.mrf.mxu2  ;;  %v6804_v24 = vadd.f32 %v6803_v23, %v6754_v38 }
 0xb95   : > { %v7042_v11 = vshrl.u32 %v7007_v57, 16  ;;  %v6944_v42 = vmax.f32 %v17621_v18, %v6928_v35  ;;  %v7200_v43 = vshll.u32 %v15818_v27, 16  ;;  %v7045_v49 = vshll.u32 %v7007_v57, 16 }
 0xb96   : > { %v7198_v25 = vshrl.u32 %v15818_v27, 16 }
 0xb97   : > { %v7044_v9 = vrot.slane %v7042_v11, 7  ;;  %v6960_v34 = vpack.c.bf16 %v6944_v42, %v6944_v42  ;;  %v7202_v26 = vrot.slane %v7200_v43, 1 }
 0xb98   : > { %v6896_v8 = vpop.f32.mrf.mxu3 }
 0xb99   : > { %v7047_v61 = vor.u32 %v7045_v49, %v7044_v9  ;;  %v6992_v21 = vunpack.c.l.b16 %v6960_v34  ;;  %v6897_v3 = vadd.f32 %v6896_v8, %v6848_v51  ;;  %v7203_v12 = vor.u32 %v7202_v26, %v7198_v25  ;;  %v6759_v25 = vpop.f32.mrf.mxu0 }
 0xb9a   : > { %v17623_v51 = vmax.f32 %v15004_v10, %v15384_v1 }
 0xb9b   : > { %v7151_v58 = vsel %vm11631_vm2, 0, %v7047_v61  ;;  %v7008_v0 = vpack.c.b16 %v6992_v21, %v6992_v21  ;;  %v6929_v4 = vmax.f32 %v15674_v2, %v6897_v3  ;;  %7299 = vrot.lane.b32.xlu0 %v7203_v12, %s11551_s12  ;;  %v6808_v61 = vpop.f32.mrf.mxu1 }
 0xb9c   : > { %v15832_v32 = vsel %vm15784_vm15, %v7151_v58, 0 }
 0xb9d   : > { %v7049_v36 = vshrl.u32 %v7008_v0, 16  ;;  %v6945_v63 = vmax.f32 %v17622_v62, %v6929_v4  ;;  %v7207_v44 = vshll.u32 %v15832_v32, 16  ;;  %v7052_v39 = vshll.u32 %v7008_v0, 16 }
 0xb9e   : > { %v7205_v57 = vshrl.u32 %v15832_v32, 16 }
 0xb9f   : > { %v7051_v15 = vrot.slane %v7049_v36, 7  ;;  %v6961_v6 = vpack.c.bf16 %v6945_v63, %v6945_v63  ;;  %v7209_v35 = vrot.slane %v7207_v44, 1  ;;  %v6807_v36 = vadd.f32 %v6806_v46, %v6757_v7  ;;  %v6857_v63 = vpop.f32.mrf.mxu2 }
 0xba0   : > { %v6899_v2 = vpop.f32.mrf.mxu3 }
 0xba1   : > { %v7054_v11 = vor.u32 %v7052_v39, %v7051_v15  ;;  %v6993_v18 = vunpack.c.l.b16 %v6961_v6  ;;  %v6900_v42 = vadd.f32 %v6899_v2, %v6851_v30  ;;  %v7210_v43 = vor.u32 %v7209_v35, %v7205_v57  ;;  %v6762_v57 = vpop.f32.mrf.mxu0 }
 0xba2   : > { %v17624_v15 = vmax.f32 %v15012_v41, %v15416_v20  ;;  %v6856_v7 = vadd.f32 %v6855_v60, %v6807_v36  ;;  %v6809_v60 = vadd.f32 %v6808_v61, %v6759_v25 }
 0xba3   : > { %v7152_v9 = vsel %vm11631_vm2, 0, %v7054_v11  ;;  %v7009_v56 = vpack.c.b16 %v6993_v18, %v6993_v18  ;;  %v6930_v40 = vmax.f32 %v15680_v45, %v6900_v42  ;;  %7301 = vrot.lane.b32.xlu1 %v7210_v43, %s11551_s12  ;;  %v6853_v45 = vadd.f32 %v6852_v14, %v6804_v24  ;;  %v6811_v18 = vpop.f32.mrf.mxu1 }
 0xba4   : > { %v15844_v49 = vsel %vm15784_vm15, %v7152_v9, 0 }
 0xba5   : > { %v7056_v34 = vshrl.u32 %v7009_v56, 16  ;;  %v6946_v8 = vmax.f32 %v17623_v51, %v6930_v40  ;;  %v7214_v26 = vshll.u32 %v15844_v49, 16  ;;  %v7059_v3 = vshll.u32 %v7009_v56, 16 }
 0xba6   : > { %v7212_v23 = vshrl.u32 %v15844_v49, 16  ;;  %v6420_v56 = vadd.f32 %v15642_v22, %v15640_v59 }
 0xba7   : > { %v7058_v21 = vrot.slane %v7056_v34, 7  ;;  %v6962_v54 = vpack.c.bf16 %v6946_v8, %v6946_v8  ;;  %v7216_v12 = vrot.slane %v7214_v26, 1  ;;  %v6860_v24 = vpop.f32.mrf.mxu2  ;;  %v17625_v34 = vmax.f32 %v15023_v37, %v15423_v50 }
 0xba8   : > { %v6901_v38 = vpop.f32.mrf.mxu3  ;;  %v6469_v59 = vadd.f32 %v15647_v28, %v6420_v56  ;;  %v6858_v26 = vadd.f32 %v6857_v63, %v6809_v60  ;;  %v17626_v28 = vmax.f32 %v15031_v33, %v15455_v55 }
 0xba9   : > { %v7061_v58 = vor.u32 %v7059_v3, %v7058_v21  ;;  %v6994_v0 = vunpack.c.l.b16 %v6962_v54  ;;  %v6902_v4 = vadd.f32 %v6901_v38, %v6853_v45  ;;  %v7217_v62 = vor.u32 %v7216_v12, %v7212_v23  ;;  %v6764_v23 = vpop.f32.mrf.mxu0 }
 0xbaa   : > { %v6518_v61 = vadd.f32 %v15725_v17, %v6469_v59  ;;  %v6812_v45 = vadd.f32 %v6811_v18, %v6762_v57  ;;  %v17629_v18 = vld [vmem:[#allocation16_spill] sm:$0xff] }
 0xbab   : > { %v7153_v10 = vsel %vm11631_vm2, 0, %v7061_v58  ;;  %v7010_v1 = vpack.c.b16 %v6994_v0, %v6994_v0  ;;  %v6931_v30 = vmax.f32 %v15709_v47, %v6902_v4  ;;  %7303 = vrot.lane.b32.xlu2 %v7217_v62, %s11551_s12  ;;  %v6813_v12 = vpop.f32.mrf.mxu1 }
 0xbac   : > { %v15858_v14 = vsel %vm15784_vm15, %v7153_v10, 0  ;;  %v6861_v4 = vadd.f32 %v6860_v24, %v6812_v45  ;;  %v6814_v33 = vadd.f32 %v6813_v12, %v6764_v23  ;;  %v11400_v45 = vld [vmem:[%s17168_s5 + $0x28] sm:$0xff]  ;;  %v17631_v23 = vld [vmem:[#allocation49_spill] sm:$0xff] }
 0xbad   : > { %v7063_v44 = vshrl.u32 %v7010_v1, 16  ;;  %v15863_v39 = vmax.f32 %v17624_v15, %v6931_v30  ;;  %v7221_v46 = vshll.u32 %v15858_v14, 16  ;;  %v7066_v2 = vshll.u32 %v7010_v1, 16  ;;  %v17632_v12 = vld [vmem:[#allocation69_spill] sm:$0xff] }
 0xbae   : > { %v7219_v47 = vshrl.u32 %v15858_v14, 16  ;;  %v6425_v15 = vadd.f32 %v15678_v16, %v15676_v53  ;;  %v17627_v16 = vld [vmem:[#allocation54_spill] sm:$0xff] }
 0xbaf   : > { %v7065_v6 = vrot.slane %v7063_v44, 7  ;;  %v7223_v11 = vrot.slane %v7221_v46, 1  ;;  %v6862_v36 = vpop.f32.mrf.mxu2  ;;  %v17628_v53 = vmax.f32 %v15042_v5, %v17627_v16  ;;  %v11401_v5 = vld [vmem:[%s17168_s5 + $0x30] sm:$0xff]  ;;  %v17636_v16 = vld [vmem:[#allocation63_spill] sm:$0xff] }
 0xbb0   : > { %v6904_v35 = vpop.f32.mrf.mxu3 }
 0xbb1   : > { %v7068_v42 = vor.u32 %v7066_v2, %v7065_v6  ;;  %v6905_v43 = vadd.f32 %v6904_v35, %v6856_v7  ;;  %v7224_v9 = vor.u32 %v7223_v11, %v7219_v47  ;;  %v6767_v2 = vpop.f32.mrf.mxu0  ;;  %v11402_v35 = vld [vmem:[%s17168_s5 + $0x38] sm:$0xff] }
 0xbb2   : > { %7988 = vmatpush.bf16.msra.mxu0 %v11402_v35 }
 0xbb3   : > { %v7154_v41 = vsel %vm11631_vm2, 0, %v7068_v42  ;;  %v6932_v20 = vmax.f32 %v15715_v52, %v6905_v43  ;;  %7305 = vrot.lane.b32.xlu0 %v7224_v9, %s11551_s12  ;;  %v6816_v57 = vpop.f32.mrf.mxu1  ;;  %v6474_v42 = vadd.f32 %v17629_v18, %v6425_v15 }
 0xbb4   : > { %v15874_v40 = vsel %vm15784_vm15, %v7154_v41, 0  ;;  %v6863_v41 = vadd.f32 %v6862_v36, %v6814_v33 }
 0xbb5   : > { %v6948_v51 = vmax.f32 %v17625_v34, %v6932_v20  ;;  %v7228_v8 = vshll.u32 %v15874_v40, 16  ;;  %v7226_v52 = vshrl.u32 %v15874_v40, 16  ;;  %v17630_v20 = vld [vmem:[#allocation19_spill] sm:$0xff] }
 0xbb6   : > { %v6523_v60 = vadd.f32 %v17630_v20, %v6474_v42  ;;  %7989 = vmatpush.bf16.msra.mxu0 %v11401_v5  ;;  %v11398_v42 = vld [vmem:[%s17168_s5 + $0x18] sm:$0xff] }
 0xbb7   : > { %v6964_v22 = vpack.c.bf16 %v6948_v51, %v6948_v51  ;;  %v7230_v25 = vrot.slane %v7228_v8, 1  ;;  %v6865_v8 = vpop.f32.mrf.mxu2 }
 0xbb8   : > { %v6906_v21 = vpop.f32.mrf.mxu3 }
 0xbb9   : > { %v6996_v3 = vunpack.c.l.b16 %v6964_v22  ;;  %v6907_v54 = vadd.f32 %v6906_v21, %v6858_v26  ;;  %v7231_v38 = vor.u32 %v7230_v25, %v7226_v52  ;;  %v6817_v21 = vadd.f32 %v6816_v57, %v6767_v2 }
 0xbba   : > { %7990 = vmatpush.bf16.msra.mxu0 %v11400_v45  ;;  %v11397_v45 = vld [vmem:[%s17168_s5 + $0x10] sm:$0xff] }
 0xbbb   : > { %v7012_v37 = vpack.c.b16 %v6996_v3, %v6996_v3  ;;  %v6933_v50 = vmax.f32 %v6518_v61, %v6907_v54  ;;  %7307 = vrot.lane.b32.xlu1 %v7231_v38, %s11551_s12 }
 0xbbd   : > { %v7077_v58 = vshrl.u32 %v7012_v37, 16  ;;  %v6949_v0 = vmax.f32 %v17626_v28, %v6933_v50  ;;  %v7080_v63 = vshll.u32 %v7012_v37, 16  ;;  %v17633_v37 = vmax.f32 %v17631_v23, %v17632_v12 }
 0xbbf   : > { %v7079_v62 = vrot.slane %v7077_v58, 7  ;;  %v6965_v17 = vpack.c.bf16 %v6949_v0, %v6949_v0  ;;  %v6866_v58 = vadd.f32 %v6865_v8, %v6817_v21  ;;  %v6769_v0 = vpop.f32.mrf.mxu0  ;;  %v6867_v57 = vpop.f32.mrf.mxu2  ;;  %v17641_v21 = vld [vmem:[#allocation87_spill] sm:$0xff] }
 0xbc0   : > { %v6909_v10 = vpop.f32.mrf.mxu3 }
 0xbc1   : > { %v7082_v1 = vor.u32 %v7080_v63, %v7079_v62  ;;  %v6997_v30 = vunpack.c.l.b16 %v6965_v17  ;;  %v6910_v44 = vadd.f32 %v6909_v10, %v6861_v4  ;;  %v6818_v4 = vpop.f32.mrf.mxu1 }
 0xbc3   : > { %v7156_v7 = vsel %vm11631_vm2, 0, %v7082_v1  ;;  %v7013_v46 = vpack.c.b16 %v6997_v30, %v6997_v30  ;;  %v6934_v6 = vmax.f32 %v15745_v29, %v6910_v44  ;;  %v11399_v30 = vld [vmem:[%s17168_s5 + $0x20] sm:$0xff] }
 0xbc4   : > { %v15895_v55 = vsel %vm15784_vm15, %v7156_v7, 0  ;;  %7991 = vmatpush.bf16.msra.mxu0 %v11399_v30  ;;  %v17642_v30 = vld [vmem:[#allocation52_spill] sm:$0xff] }
 0xbc5   : > { %v7084_v47 = vshrl.u32 %v7013_v46, 16  ;;  %v6950_v11 = vmax.f32 %v17628_v53, %v6934_v6  ;;  %v7242_v29 = vshll.u32 %v15895_v55, 16  ;;  %v7087_v9 = vshll.u32 %v7013_v46, 16  ;;  %v17634_v46 = vld [vmem:[#allocation57_spill] sm:$0xff]  ;;  %v17635_v6 = vld [vmem:[#allocation27_spill] sm:$0xff] }
 0xbc6   : > { %v7240_v34 = vshrl.u32 %v15895_v55, 16  ;;  %v6430_v33 = vadd.f32 %v17635_v6, %v17634_v46 }
 0xbc7   : > { %v7086_v43 = vrot.slane %v7084_v47, 7  ;;  %v6966_v56 = vpack.c.bf16 %v6950_v11, %v6950_v11  ;;  %v7244_v51 = vrot.slane %v7242_v29, 1  ;;  %v6819_v11 = vadd.f32 %v6818_v4, %v6769_v0  ;;  %v11426_v29 = vld [vmem:[%s17168_s5 + $0xf8] sm:$0xff] }
 0xbc8   : > { %v6911_v24 = vpop.f32.mrf.mxu3  ;;  %7992 = vmatpush.bf16.msra.mxu0 %v11398_v42  ;;  %8135 = vmatpush.bf16.msra.mxu3 %v11426_v29 }
 0xbc9   : > { %v7089_v59 = vor.u32 %v7087_v9, %v7086_v43  ;;  %v6998_v22 = vunpack.c.l.b16 %v6966_v56  ;;  %v6912_v26 = vadd.f32 %v6911_v24, %v6863_v41  ;;  %v7245_v52 = vor.u32 %v7244_v51, %v7240_v34  ;;  %v17637_v9 = vld [vmem:[#allocation48_spill] sm:$0xff]  ;;  %v17638_v56 = vld [vmem:[#allocation35_spill] sm:$0xff]  ;;  %v6772_v51 = vpop.f32.mrf.mxu0  ;;  %v6821_v8 = vpop.f32.mrf.mxu1 }
 0xbca   : > { %v17639_v41 = vmax.f32 %v17637_v9, %v17638_v56 }
 0xbcb   : > { %v7157_v25 = vsel %vm11631_vm2, 0, %v7089_v59  ;;  %v7014_v61 = vpack.c.b16 %v6998_v22, %v6998_v22  ;;  %v6935_v3 = vmax.f32 %v6523_v60, %v6912_v26  ;;  %7311 = vrot.lane.b32.xlu2 %v7245_v52, %s11551_s12  ;;  %v17640_v60 = vld [vmem:[#allocation58_spill] sm:$0xff]  ;;  %v6868_v26 = vadd.f32 %v6867_v57, %v6819_v11 }
 0xbcc   : > { %v15915_v54 = vsel %vm15784_vm15, %v7157_v25, 0  ;;  %v6479_v24 = vadd.f32 %v17640_v60, %v6430_v33  ;;  %7993 = vmatpush.bf16.msra.mxu0 %v11397_v45  ;;  %v11423_v11 = vld [vmem:[%s17168_s5 + $0xe0] sm:$0xff] }
 0xbcd   : > { %v7091_v38 = vshrl.u32 %v7014_v61, 16  ;;  %v6951_v50 = vmax.f32 %v17633_v37, %v6935_v3  ;;  %v7249_v28 = vshll.u32 %v15915_v54, 16  ;;  %v7094_v62 = vshll.u32 %v7014_v61, 16 }
 0xbce   : > { %v7247_v10 = vshrl.u32 %v15915_v54, 16  ;;  %v6528_v52 = vadd.f32 %v17641_v21, %v6479_v24 }
 0xbcf   : > { %v7093_v36 = vrot.slane %v7091_v38, 7  ;;  %v6967_v63 = vpack.c.bf16 %v6951_v50, %v6951_v50  ;;  %v7251_v1 = vrot.slane %v7249_v28, 1  ;;  %v11425_v38 = vld [vmem:[%s17168_s5 + $0xf0] sm:$0xff]  ;;  %v6822_v50 = vadd.f32 %v6821_v8, %v6772_v51  ;;  %v6870_v28 = vpop.f32.mrf.mxu2  ;;  %v11422_v51 = vld [vmem:[%s17168_s5 + $0xd8] sm:$0xff] }
 0xbd0   : > { %v6914_v17 = vpop.f32.mrf.mxu3  ;;  %8136 = vmatpush.bf16.msra.mxu3 %v11425_v38 }
 0xbd1   : > { %v7096_v44 = vor.u32 %v7094_v62, %v7093_v36  ;;  %v6999_v15 = vunpack.c.l.b16 %v6967_v63  ;;  %v6915_v7 = vadd.f32 %v6914_v17, %v6866_v58  ;;  %v7252_v2 = vor.u32 %v7251_v1, %v7247_v10  ;;  %v11396_v17 = vld [vmem:[%s17168_s5 + $0x8] sm:$0xff] }
 0xbd2   : > { %v6963_v62 = vpack.c.bf16 %v15863_v39, %v15863_v39  ;;  %v11424_v10 = vld [vmem:[%s17168_s5 + $0xe8] sm:$0xff]  ;;  %v6871_v39 = vadd.f32 %v6870_v28, %v6822_v50  ;;  %7994 = vmatpush.bf16.msra.mxu0 %v11396_v17 }
 0xbd3   : > { %v7158_v35 = vsel %vm11631_vm2, 0, %v7096_v44  ;;  %v7015_v47 = vpack.c.b16 %v6999_v15, %v6999_v15  ;;  %v6936_v53 = vmax.f32 %v17636_v16, %v6915_v7  ;;  %7313 = vrot.lane.b32.xlu0 %v7252_v2, %s11551_s12  ;;  %v17643_v44 = vld [vmem:[#allocation24_spill] sm:$0xff] }
 0xbd4   : > { %v15935_v18 = vsel %vm15784_vm15, %v7158_v35, 0  ;;  %v17644_v15 = vmax.f32 %v17642_v30, %v17643_v44  ;;  %8137 = vmatpush.bf16.msra.mxu3 %v11424_v10  ;;  %v6995_v57 = vunpack.c.l.b16 %v6963_v62 }
 0xbd5   : > { %v7098_v43 = vshrl.u32 %v7015_v47, 16  ;;  %v6952_v20 = vmax.f32 %v17639_v41, %v6936_v53  ;;  %v7256_v34 = vshll.u32 %v15935_v18, 16  ;;  %v7101_v59 = vshll.u32 %v7015_v47, 16  ;;  %v11395_v53 = vld [vmem:[%s17168_s5] sm:$0xff] }
 0xbd6   : > { %v7254_v61 = vshrl.u32 %v15935_v18, 16  ;;  %7995 = vmatpush.bf16.msra.mxu0 %v11395_v53  ;;  %v7011_v24 = vpack.c.b16 %v6995_v57, %v6995_v57 }
 0xbd7   : > { %v7100_v5 = vrot.slane %v7098_v43, 7  ;;  %v6968_v22 = vpack.c.bf16 %v6952_v20, %v6952_v20  ;;  %v7258_v3 = vrot.slane %v7256_v34, 1  ;;  %v17645_v20 = vld [vmem:[#allocation65_spill] sm:$0xff] }
 0xbd8   : > { %v6916_v25 = vpop.f32.mrf.mxu3  ;;  %8138 = vmatpush.bf16.msra.mxu3 %v11423_v11  ;;  %v7073_v17 = vshll.u32 %v7011_v24, 16 }
 0xbd9   : > { %v7103_v23 = vor.u32 %v7101_v59, %v7100_v5  ;;  %v7000_v12 = vunpack.c.l.b16 %v6968_v22  ;;  %v6917_v37 = vadd.f32 %v6916_v25, %v6868_v26  ;;  %v7259_v58 = vor.u32 %v7258_v3, %v7254_v61  ;;  %v17646_v5 = vld [vmem:[#allocation47_spill] sm:$0xff] }
 0xbda   : > { %v17647_v59 = vld [vmem:[#allocation39_spill] sm:$0xff]  ;;  %v7070_v3 = vshrl.u32 %v7011_v24, 16 }
 0xbdb   : > { %v7159_v0 = vsel %vm11631_vm2, 0, %v7103_v23  ;;  %v7016_v4 = vpack.c.b16 %v7000_v12, %v7000_v12  ;;  %v6937_v36 = vmax.f32 %v6528_v52, %v6917_v37  ;;  %7315 = vrot.lane.b32.xlu1 %v7259_v58, %s11551_s12  ;;  %v17648_v22 = vmax.f32 %v17646_v5, %v17647_v59  ;;  %v11421_v23 = vld [vmem:[%s17168_s5 + $0xd0] sm:$0xff]  ;;  %v11420_v58 = vld [vmem:[%s17168_s5 + $0xc8] sm:$0xff] }
 0xbdc   : > { %v15964_v63 = vsel %vm15784_vm15, %v7159_v0, 0  ;;  %8139 = vmatpush.bf16.msra.mxu3 %v11422_v51 }
 0xbdd   : > { %v7105_v1 = vshrl.u32 %v7016_v4, 16  ;;  %v6953_v7 = vmax.f32 %v17644_v15, %v6937_v36  ;;  %v7263_v46 = vshll.u32 %v15964_v63, 16  ;;  %v7108_v33 = vshll.u32 %v7016_v4, 16 }
 0xbde   : > { %v7261_v47 = vshrl.u32 %v15964_v63, 16  ;;  %v7072_v4 = vrot.slane %v7070_v3, 7 }
 0xbdf   : > { %v7107_v6 = vrot.slane %v7105_v1, 7  ;;  %v6969_v2 = vpack.c.bf16 %v6953_v7, %v6953_v7  ;;  %v7265_v16 = vrot.slane %v7263_v46, 1 }
 0xbe0   : > { %v6919_v35 = vpop.f32.mrf.mxu3  ;;  %8140 = vmatpush.bf16.msra.mxu3 %v11421_v23  ;;  %v7075_v44 = vor.u32 %v7073_v17, %v7072_v4 }
 0xbe1   : > { %v7110_v42 = vor.u32 %v7108_v33, %v7107_v6  ;;  %v7001_v29 = vunpack.c.l.b16 %v6969_v2  ;;  %v6920_v43 = vadd.f32 %v6919_v35, %v6871_v39  ;;  %v7266_v9 = vor.u32 %v7265_v16, %v7261_v47  ;;  %v11419_v39 = vld [vmem:[%s17168_s5 + $0xc0] sm:$0xff] }
 0xbe2   : > { %v7155_v2 = vsel %vm11631_vm2, 0, %v7075_v44 }
 0xbe3   : > { %v7160_v56 = vsel %vm11631_vm2, 0, %v7110_v42  ;;  %v7017_v41 = vpack.c.b16 %v7001_v29, %v7001_v29  ;;  %v6938_v60 = vmax.f32 %v17645_v20, %v6920_v43  ;;  %7317 = vrot.lane.b32.xlu2 %v7266_v9, %s11551_s12  ;;  %v16030_v53 = vsel %vm15784_vm15, %v7155_v2, 0  ;;  %v11407_v2 = vld [vmem:[%s17168_s5 + $0x60] sm:$0xff] }
 0xbe4   : > { %v15988_v34 = vsel %vm15784_vm15, %v7160_v56, 0  ;;  %8141 = vmatpush.bf16.msra.mxu3 %v11420_v58  ;;  %v7343_v42 = vrot.slane %v15793_v19, 1  ;;  %v7235_v29 = vshll.u32 %v16030_v53, 16  ;;  %v17649_v20 = vmov 0  }
 0xbe5   : > { %v7112_v8 = vshrl.u32 %v7017_v41, 16  ;;  %v6954_v26 = vmax.f32 %v17648_v22, %v6938_v60  ;;  %v7270_v21 = vshll.u32 %v15988_v34, 16  ;;  %v7115_v25 = vshll.u32 %v7017_v41, 16 }
 0xbe6   : > { %v7268_v45 = vshrl.u32 %v15988_v34, 16  ;;  %v7237_v9 = vrot.slane %v7235_v29, 1  ;;  %v16041_v60 = vunpack.c.l.b16 %v17649_v20  ;;  %v7233_v51 = vshrl.u32 %v16030_v53, 16  ;;  %v11406_v29 = vld [vmem:[%s17168_s5 + $0x58] sm:$0xff]  ;;  %v11415_v20 = vld [vmem:[%s17168_s5 + $0xa0] sm:$0xff] }
 0xbe7   : > { %v7114_v52 = vrot.slane %v7112_v8, 7  ;;  %v6970_v61 = vpack.c.bf16 %v6954_v26, %v6954_v26  ;;  %v7272_v38 = vrot.slane %v7270_v21, 1  ;;  %v16051_v22 = vrot.slane %v15806_v31, 1 }
 0xbe8   : > { %8142 = vmatpush.bf16.msra.mxu3 %v11419_v39  ;;  %v7238_v59 = vor.u32 %v7237_v9, %v7233_v51  ;;  %v16056_v21 = vrot.slane %v15818_v27, 1  ;;  %v16109_v39 = vrot.slane %v15915_v54, 1  ;;  %v6774_v9 = vpop.f32.mrf.mxu0 }
 0xbe9   : > { %v7117_v12 = vor.u32 %v7115_v25, %v7114_v52  ;;  %v7002_v37 = vunpack.c.l.b16 %v6970_v61  ;;  %v7273_v50 = vor.u32 %v7272_v38, %v7268_v45  ;;  %v16064_v38 = vrot.slane %v15832_v32, 1 }
 0xbeb   : > { %v7161_v28 = vsel %vm11631_vm2, 0, %v7117_v12  ;;  %v7018_v0 = vpack.c.b16 %v7002_v37, %v7002_v37  ;;  %7319 = vrot.lane.b32.xlu0 %v7273_v50, %s11551_s12  ;;  %v16075_v37 = vrot.slane %v15858_v14, 1  ;;  %v16078_v50 = vrot.slane %v15844_v49, 1 }
 0xbec   : > { %v16010_v36 = vsel %vm15784_vm15, %v7161_v28, 0 }
 0xbed   : > { %v7119_v62 = vshrl.u32 %v7018_v0, 16  ;;  %v7277_v10 = vshll.u32 %v16010_v36, 16  ;;  %v7122_v30 = vshll.u32 %v7018_v0, 16  ;;  %v7275_v15 = vshrl.u32 %v16010_v36, 16  ;;  %v7298_v56 = vpop.permute.xlu2 %7297 }
 0xbee   : > { %v7362_v8 = vsel %vm3608_vm12, %v15806_v31, %v7298_v56  ;;  %v6823_v56 = vpop.f32.mrf.mxu1 }
 0xbef   : > { %v7121_v1 = vrot.slane %v7119_v62, 7  ;;  %v7279_v7 = vrot.slane %v7277_v10, 1  ;;  %v7552_v25 = vunpack.c.l.b16 %v7362_v8 }
 0xbf1   : > { %v7124_v46 = vor.u32 %v7122_v30, %v7121_v1  ;;  %v7280_v6 = vor.u32 %v7279_v7, %v7275_v15  ;;  %v11409_v15 = vld [vmem:[%s17168_s5 + $0x70] sm:$0xff] }
 0xbf3   : > { %v7162_v33 = vsel %vm11631_vm2, 0, %v7124_v46  ;;  %7321 = vrot.lane.b32.xlu1 %v7280_v6, %s11551_s12  ;;  %v11408_v46 = vld [vmem:[%s17168_s5 + $0x68] sm:$0xff]  ;;  %v11418_v6 = vld [vmem:[%s17168_s5 + $0xb8] sm:$0xff] }
 0xbf4   : > { %v16023_v57 = vsel %vm15784_vm15, %v7162_v33, 0  ;;  %8086 = vmatpush.bf16.msra.mxu2 %v11418_v6  ;;  %v11428_v6 = vld [vmem:[%s17168_s5 + $0x108] sm:$0xff] }
 0xbf5   : > { %v7284_v35 = vshll.u32 %v16023_v57, 16  ;;  %v7282_v47 = vshrl.u32 %v16023_v57, 16 }
 0xbf7   : > { %v7286_v16 = vrot.slane %v7284_v35, 1  ;;  %v11417_v35 = vld [vmem:[%s17168_s5 + $0xb0] sm:$0xff] }
 0xbf8   : > { %8087 = vmatpush.bf16.msra.mxu2 %v11417_v35 }
 0xbf9   : > { %v7287_v11 = vor.u32 %v7286_v16, %v7282_v47  ;;  %v16127_v16 = vrot.slane %v15935_v18, 1 }
 0xbfb   : > { %7323 = vrot.lane.b32.xlu2 %v7287_v11, %s11551_s12  ;;  %7409 = vrot.lane.b32.xlu1 %v7343_v42, %s11551_s12 }
 0xbfd   : > { %v7296_v43 = vpop.permute.xlu1 %7295 }
 0xbfe   : > { %v7360_v41 = vsel %vm3608_vm12, %v15793_v19, %v7296_v43  ;;  %v11416_v43 = vld [vmem:[%s17168_s5 + $0xa8] sm:$0xff] }
 0xbff   : > { %v7554_v24 = vunpack.c.l.b16 %v7360_v41  ;;  %7407 = vrot.lane.b32.xlu0 %v7360_v41, %s11551_s12  ;;  %8088 = vmatpush.bf16.msra.mxu2 %v11416_v43  ;;  %v6824_v41 = vadd.f32 %v6823_v56, %v6774_v9  ;;  %v11427_v43 = vld [vmem:[%s17168_s5 + $0x100] sm:$0xff] }
 0xc01   : > { %v7688_v5 = vpack.c.b16 %v7554_v24, %v16041_v60  ;;  %v6872_v24 = vpop.f32.mrf.mxu2 }
 0xc03   : > { %7411 = vrot.lane.b32.xlu2 %v7362_v8, %s11551_s12  ;;  %7309 = vrot.lane.b32.xlu1 %v7238_v59, %s11551_s12  ;;  %v17651_v59 = vld [vmem:[#allocation60_spill] sm:$0xff] }
 0xc04   : > { %7996 = vmatmul.bf16.vlgmr.msra.gmra.mxu0 %v7688_v5  ;;  %8089 = vmatpush.bf16.msra.mxu2 %v11415_v20  ;;  %v17650_v5 = vld [vmem:[#allocation53_spill] sm:$0xff] }
 0xc05   : > { %v7304_v31 = vpop.permute.xlu2 %7303 }
 0xc06   : > { %v7368_v23 = vsel %vm3608_vm12, %v15844_v49, %v7304_v31  ;;  %v16088_v49 = vrot.slane %v15874_v40, 1  ;;  %v11414_v31 = vld [vmem:[%s17168_s5 + $0x98] sm:$0xff] }
 0xc07   : > { %7413 = vrot.lane.b32.xlu0 %v16051_v22, %s11551_s12  ;;  %v7565_v58 = vunpack.c.l.b16 %v7368_v23 }
 0xc08   : > { %8090 = vmatpush.bf16.msra.mxu2 %v11414_v31 }
 0xc0d   : > { %v7300_v26 = vpop.permute.xlu0 %7299 }
 0xc0e   : > { %v7364_v52 = vsel %vm3608_vm12, %v15818_v27, %v7300_v26  ;;  %v6435_v26 = vadd.f32 %v17651_v59, %v17650_v5 }
 0xc0f   : > { %v7557_v61 = vunpack.c.l.b16 %v7364_v52  ;;  %7415 = vrot.lane.b32.xlu2 %v7364_v52, %s11551_s12  ;;  %7417 = vrot.lane.b32.xlu0 %v16056_v21, %s11551_s12  ;;  %v6873_v52 = vadd.f32 %v6872_v24, %v6824_v41 }
 0xc11   : > { %v7691_v3 = vpack.c.b16 %v7557_v61, %v7552_v25 }
 0xc13   : > { %8143 = vmatmul.bf16.vlgmr.msra.gmra.mxu3 %v7691_v3 }
 0xc14   : > { %8001 = vmatmul.bf16.gmra.mxu0 %v7691_v3  ;;  %v11404_v3 = vld [vmem:[%s17168_s5 + $0x48] sm:$0xff] }
 0xc15   : > { %v7302_v45 = vpop.permute.xlu1 %7301 }
 0xc16   : > { %v7366_v27 = vsel %vm3608_vm12, %v15832_v32, %v7302_v45  ;;  %v6921_v45 = vpop.f32.mrf.mxu3 }
 0xc17   : > { %7421 = vrot.lane.b32.xlu2 %v16064_v38, %s11551_s12  ;;  %7423 = vrot.lane.b32.xlu0 %v7368_v23, %s11551_s12  ;;  %v7561_v12 = vunpack.c.l.b16 %v7366_v27 }
 0xc18   : > { %7419 = vrot.lane.b32.xlu1 %v7366_v27, %s11551_s12 }
 0xc19   : > { %v7695_v32 = vpack.c.b16 %v7565_v58, %v7561_v12  ;;  %v6922_v12 = vadd.f32 %v6921_v45, %v6873_v52  ;;  %v11403_v58 = vld [vmem:[%s17168_s5 + $0x40] sm:$0xff]  ;;  %v16218_v52 = vrot.slane %v16023_v57, 1 }
 0xc1f   : > { %7429 = vrot.lane.b32.xlu0 %v16075_v37, %s11551_s12 }
 0xc20   : > { %7425 = vrot.lane.b32.xlu1 %v16078_v50, %s11551_s12 }
 0xc23   : > { %8148 = vmatmul.bf16.gmra.mxu3 %v7695_v32 }
 0xc24   : > { %8006 = vmatmul.bf16.gmra.mxu0 %v7695_v32  ;;  %v11413_v32 = vld [vmem:[%s17168_s5 + $0x90] sm:$0xff] }
 0xc25   : > { %v7306_v28 = vpop.permute.xlu0 %7305  ;;  %v7312_v30 = vpop.permute.xlu2 %7311  ;;  %8091 = vmatpush.bf16.msra.mxu2 %v11413_v32 }
 0xc26   : > { %v7370_v0 = vsel %vm3608_vm12, %v15858_v14, %v7306_v28  ;;  %v7350_v14 = vrot.slane %v16030_v53, 1  ;;  %v7376_v44 = vsel %vm3608_vm12, %v15895_v55, %v7312_v30  ;;  %v11430_v28 = vld [vmem:[%s17168_s5 + $0x118] sm:$0xff] }
 0xc27   : > { %7427 = vrot.lane.b32.xlu2 %v7370_v0, %s11551_s12  ;;  %v7569_v17 = vunpack.c.l.b16 %v7370_v0  ;;  %v7585_v7 = vunpack.c.l.b16 %v7376_v44  ;;  %v17653_v0 = vld [vmem:[#allocation17_spill] sm:$0xff]  ;;  %8188 = vmatpush.bf16.msrb.mxu0 %v11430_v28 }
 0xc29   : > { %v7705_v33 = vpack.c.b16 %v7585_v7, %v16041_v60 }
 0xc2d   : > { %v7308_v4 = vpop.permute.xlu1 %7307 }
 0xc2e   : > { %v7372_v62 = vsel %vm3608_vm12, %v15874_v40, %v7308_v4  ;;  %v11410_v40 = vld [vmem:[%s17168_s5 + $0x78] sm:$0xff] }
 0xc2f   : > { %v7573_v10 = vunpack.c.l.b16 %v7372_v62  ;;  %7433 = vrot.lane.b32.xlu2 %v16088_v49, %s11551_s12  ;;  %7431 = vrot.lane.b32.xlu1 %v7372_v62, %s11551_s12  ;;  %v16172_v62 = vrot.slane %v15964_v63, 1 }
 0xc30   : > { %8037 = vmatpush.bf16.msra.mxu1 %v11410_v40  ;;  %v17655_v40 = vld [vmem:[#allocation12_spill] sm:$0xff] }
 0xc31   : > { %v7699_v1 = vpack.c.b16 %v7573_v10, %v7569_v17  ;;  %v11412_v10 = vld [vmem:[%s17168_s5 + $0x88] sm:$0xff] }
 0xc32   : > { %8092 = vmatpush.bf16.msra.mxu2 %v11412_v10 }
 0xc33   : > { %8153 = vmatmul.bf16.gmra.mxu3 %v7699_v1 }
 0xc34   : > { %8011 = vmatmul.bf16.gmra.mxu0 %v7699_v1  ;;  %8038 = vmatpush.bf16.msra.mxu1 %v11409_v15  ;;  %v11429_v1 = vld [vmem:[%s17168_s5 + $0x110] sm:$0xff] }
 0xc35   : > { %8189 = vmatpush.bf16.msrb.mxu0 %v11429_v1 }
 0xc37   : > { %7439 = vrot.lane.b32.xlu2 %v7376_v44, %s11551_s12  ;;  %7437 = vrot.lane.b32.xlu1 %v7350_v14, %s11551_s12  ;;  %v17654_v44 = vld [vmem:[#allocation46_spill] sm:$0xff] }
 0xc38   : > { %8039 = vmatpush.bf16.msra.mxu1 %v11408_v46  ;;  %v17656_v15 = vmax.f32 %v17654_v44, %v17655_v40  ;;  %v11411_v46 = vld [vmem:[%s17168_s5 + $0x80] sm:$0xff]  ;;  %v7558_v40 = vunpack.c.l.b16 %v16056_v21 }
 0xc39   : > { %8093 = vmatpush.bf16.msra.mxu2 %v11411_v46  ;;  %8190 = vmatpush.bf16.msrb.mxu0 %v11428_v6  ;;  %v7553_v6 = vunpack.c.l.b16 %v16051_v22 }
 0xc3c   : > { %8040 = vmatpush.bf16.msra.mxu1 %v11407_v2 }
 0xc3d   : > { %v7318_v30 = vpop.permute.xlu2 %7317  ;;  %8191 = vmatpush.bf16.msrb.mxu0 %v11427_v43 }
 0xc3f   : > { %7445 = vrot.lane.b32.xlu2 %v16109_v39, %s11551_s12 }
 0xc40   : > { %8041 = vmatpush.bf16.msra.mxu1 %v11406_v29 }
 0xc44   : > { %8016 = vmatmul.bf16.gmra.mxu0 %v7705_v33  ;;  %v16193_v33 = vsel %vm3608_vm12, %v15964_v63, %v7318_v30 }
 0xc45   : > { %v7314_v47 = vpop.permute.xlu0 %7313 }
 0xc46   : > { %v7378_v11 = vsel %vm3608_vm12, %v15915_v54, %v7314_v47  ;;  %v11405_v54 = vld [vmem:[%s17168_s5 + $0x50] sm:$0xff] }
 0xc47   : > { %7449 = vrot.lane.b32.xlu2 %v16127_v16, %s11551_s12  ;;  %7443 = vrot.lane.b32.xlu1 %v7378_v11, %s11551_s12  ;;  %v7583_v25 = vunpack.c.l.b16 %v7378_v11  ;;  %v7592_v11 = vunpack.c.l.b16 %v16193_v33 }
 0xc48   : > { %8042 = vmatpush.bf16.msra.mxu1 %v11405_v54  ;;  %v16206_v54 = vrot.slane %v16010_v36, 1 }
 0xc4c   : > { %8043 = vmatpush.bf16.msra.mxu1 %v11404_v3 }
 0xc4d   : > { %v7316_v51 = vpop.permute.xlu1 %7315 }
 0xc4e   : > { %v7380_v8 = vsel %vm3608_vm12, %v15935_v18, %v7316_v51  ;;  %v17652_v18 = vld [vmem:[#allocation62_spill] sm:$0xff] }
 0xc4f   : > { %v7588_v61 = vunpack.c.l.b16 %v7380_v8  ;;  %7447 = vrot.lane.b32.xlu1 %v7380_v8, %s11551_s12  ;;  %v6484_v27 = vadd.f32 %v17652_v18, %v6435_v26 }
 0xc50   : > { %8044 = vmatpush.bf16.msra.mxu1 %v11403_v58 }
 0xc51   : > { %v16157_v23 = vpack.c.b16 %v7588_v61, %v7583_v25  ;;  %v6533_v4 = vadd.f32 %v17653_v0, %v6484_v27 }
 0xc53   : > { %v6939_v17 = vmax.f32 %v6533_v4, %v6922_v12 }
 0xc54   : > { %8021 = vmatmul.bf16.gmra.mxu0 %v16157_v23 }
 0xc55   : > { %v6955_v7 = vmax.f32 %v17656_v15, %v6939_v17  ;;  %v7324_v56 = vpop.permute.xlu2 %7323 }
 0xc56   : > { %v16215_v8 = vsel %vm3608_vm12, %v16023_v57, %v7324_v56 }
 0xc57   : > { %7453 = vrot.lane.b32.xlu1 %v16172_v62, %s11551_s12  ;;  %v6971_v47 = vpack.c.bf16 %v6955_v7, %v6955_v7  ;;  %v7351_v7 = vrot.slane %v15895_v55, 1  ;;  %v11457_v55 = vld [vmem:[%s17170_s7 + $0xd0] sm:$0xff] }
 0xc59   : > { %v7003_v63 = vunpack.c.l.b16 %v6971_v47  ;;  %v7692_v47 = vpack.c.b16 %v7558_v40, %v7553_v6  ;;  %v7570_v40 = vunpack.c.l.b16 %v16075_v37 }
 0xc5b   : > { %v7019_v24 = vpack.c.b16 %v7003_v63, %v7003_v63 }
 0xc5d   : > { %v7320_v2 = vpop.permute.xlu0 %7319  ;;  %v7126_v51 = vshrl.u32 %v7019_v24, 16  ;;  %v7412_v5 = vpop.permute.xlu2 %7411  ;;  %v7129_v3 = vshll.u32 %v7019_v24, 16 }
 0xc5e   : > { %v7384_v35 = vsel %vm3608_vm12, %v15988_v34, %v7320_v2  ;;  %v7491_v61 = vsel %vm3608_vm12, %v7343_v42, %v7412_v5 }
 0xc5f   : > { %v7596_v29 = vunpack.c.l.b16 %v7384_v35  ;;  %7455 = vrot.lane.b32.xlu2 %v7384_v35, %s11551_s12  ;;  %v7128_v25 = vrot.slane %v7126_v51, 7  ;;  %v7555_v12 = vunpack.c.l.b16 %v7491_v61 }
 0xc61   : > { %v16202_v9 = vpack.c.b16 %v7596_v29, %v7592_v11  ;;  %v7131_v27 = vor.u32 %v7129_v3, %v7128_v25 }
 0xc63   : > { %v7163_v19 = vsel %vm11631_vm2, 0, %v7131_v27  ;;  %v7562_v27 = vunpack.c.l.b16 %v16064_v38 }
 0xc64   : > { %8026 = vmatmul.bf16.gmra.mxu0 %v16202_v9  ;;  %v16240_v1 = vsel %vm15784_vm15, %v7163_v19, 0 }
 0xc65   : > { %v7322_v41 = vpop.permute.xlu1 %7321  ;;  %v7291_v46 = vshll.u32 %v16240_v1, 16  ;;  %v7289_v43 = vshrl.u32 %v16240_v1, 16 }
 0xc66   : > { %v7386_v20 = vsel %vm3608_vm12, %v16010_v36, %v7322_v41  ;;  %v7604_v36 = vunpack.c.l.b16 %v16215_v8 }
 0xc67   : > { %7461 = vrot.lane.b32.xlu2 %v16206_v54, %s11551_s12  ;;  %7459 = vrot.lane.b32.xlu1 %v7386_v20, %s11551_s12  ;;  %v7600_v59 = vunpack.c.l.b16 %v7386_v20  ;;  %v7293_v29 = vrot.slane %v7291_v46, 1  ;;  %v7358_v46 = vrot.slane %v16240_v1, 1 }
 0xc69   : > { %v16226_v45 = vpack.c.b16 %v7604_v36, %v7600_v59  ;;  %v7416_v2 = vpop.permute.xlu2 %7415  ;;  %v7294_v63 = vor.u32 %v7293_v29, %v7289_v43  ;;  %v7584_v29 = vunpack.c.l.b16 %v16109_v39 }
 0xc6a   : > { %v7494_v41 = vsel %vm3608_vm12, %v16051_v22, %v7416_v2 }
 0xc6b   : > { %v7559_v25 = vunpack.c.l.b16 %v7494_v41 }
 0xc6d   : > { %v7410_v26 = vpop.permute.xlu1 %7409 }
 0xc6f   : > { %7465 = vrot.lane.b32.xlu1 %v16218_v52, %s11551_s12 }
 0xc71   : > { %v7408_v31 = vpop.permute.xlu0 %7407  ;;  %v7422_v20 = vpop.permute.xlu2 %7421 }
 0xc72   : > { %v7488_v18 = vsel %vm3608_vm12, 0, %v7408_v31  ;;  %v7471_v0 = vsel %vm3608_vm12, %v7408_v31, %v7410_v26  ;;  %v7566_v31 = vunpack.c.l.b16 %v16078_v50 }
 0xc73   : > { %v7550_v57 = vunpack.c.l.b16 %v7488_v18  ;;  %v7551_v30 = vunpack.c.l.b16 %v7471_v0 }
 0xc74   : > { %8031 = vmatmul.bf16.gmra.mxu0 %v16226_v45 }
 0xc75   : > { %v7689_v58 = vpack.c.b16 %v7555_v12, %v7550_v57  ;;  %v7310_v32 = vpop.permute.xlu1 %7309 }
 0xc76   : > { %v7374_v28 = vsel %vm3608_vm12, %v16030_v53, %v7310_v32 }
 0xc77   : > { %v7577_v42 = vunpack.c.l.b16 %v7374_v28  ;;  %8045 = vmatmul.bf16.vlgmr.msra.gmra.mxu1 %v7689_v58  ;;  %7435 = vrot.lane.b32.xlu0 %v7374_v28, %s11551_s12  ;;  %v16271_v58 = vrot.slane %v15988_v34, 1 }
 0xc79   : > { %v7414_v4 = vpop.permute.xlu0 %7413  ;;  %v7703_v17 = vpack.c.b16 %v16041_v60, %v7577_v42  ;;  %v7597_v53 = vunpack.c.l.b16 %v16271_v58 }
 0xc7a   : > { %v7472_v10 = vsel %vm3608_vm12, %v7412_v5, %v7414_v4 }
 0xc7b   : > { %v7556_v44 = vunpack.c.l.b16 %v7472_v10  ;;  %8158 = vmatmul.bf16.gmra.mxu3 %v7703_v17 }
 0xc7d   : > { %v7690_v15 = vpack.c.b16 %v7556_v44, %v7551_v30 }
 0xc7f   : > { %8094 = vmatmul.bf16.vlgmr.msra.gmra.mxu2 %v7690_v15  ;;  %7441 = vrot.lane.b32.xlu0 %v7351_v7, %s11551_s12 }
 0xc81   : > { %v16249_v35 = vpop.f32.mrf.mxu0  ;;  %v7418_v11 = vpop.permute.xlu0 %7417 }
 0xc82   : > { %v7473_v24 = vsel %vm3608_vm12, %v7416_v2, %v7418_v11  ;;  %v7428_v32 = vpop.permute.xlu2 %7427  ;;  %v7589_v11 = vunpack.c.l.b16 %v16127_v16 }
 0xc83   : > { %v7560_v36 = vunpack.c.l.b16 %v7473_v24  ;;  %v7503_v0 = vsel %vm3608_vm12, %v16078_v50, %v7428_v32 }
 0xc84   : > { %10930 = vmatmul.msk.bf16.vlgmr.msrb.gmra.mxu0 %vm3608_vm12, %v7692_v47  ;;  %v7571_v10 = vunpack.c.l.b16 %v7503_v0 }
 0xc87   : > { %7325 = vrot.lane.b32.xlu0 %v7294_v63, %s11551_s12  ;;  %v7709_v63 = vpack.c.b16 %v7589_v11, %v7584_v29  ;;  %v11449_v11 = vld [vmem:[%s17170_s7 + $0x90] sm:$0xff]  ;;  %v11458_v29 = vld [vmem:[%s17170_s7 + $0xd8] sm:$0xff] }
 0xc89   : > { %v16254_v56 = vpop.f32.mrf.mxu0  ;;  %v7424_v51 = vpop.permute.xlu0 %7423 }
 0xc8a   : > { %v7420_v5 = vpop.permute.xlu1 %7419  ;;  %v7500_v28 = vsel %vm3608_vm12, %v16064_v38, %v7424_v51  ;;  %v7574_v38 = vunpack.c.l.b16 %v16088_v49 }
 0xc8b   : > { %v7474_v59 = vsel %vm3608_vm12, %v7420_v5, %v7422_v20  ;;  %v7497_v26 = vsel %vm3608_vm12, %v16056_v21, %v7420_v5  ;;  %8163 = vmatmul.bf16.gmra.mxu3 %v16157_v23  ;;  %v7696_v21 = vpack.c.b16 %v7566_v31, %v7562_v27  ;;  %v7567_v4 = vunpack.c.l.b16 %v7500_v28  ;;  %v11462_v31 = vld [vmem:[%s17170_s7 + $0xf8] sm:$0xff] }
 0xc8c   : > { %v7563_v61 = vunpack.c.l.b16 %v7497_v26  ;;  %v7564_v3 = vunpack.c.l.b16 %v7474_v59  ;;  %v7700_v50 = vpack.c.b16 %v7574_v38, %v7570_v40  ;;  %v7601_v59 = vunpack.c.l.b16 %v16206_v54  ;;  %v11454_v26 = vld [vmem:[%s17170_s7 + $0xb8] sm:$0xff]  ;;  %9500 = vmatpush.bf16.msra.mxu0 %v11462_v31  ;;  %v16387_v31 = vld [vmem:[%s17169_s6] ss:$0 sm:$0xff] }
 0xc8d   : > { %v7697_v30 = vpack.c.b16 %v7571_v10, %v7567_v4  ;;  %9451 = vmatpush.bf16.msrb.mxu3 %v11454_v26 }
 0xc8e   : > { %v7693_v18 = vpack.c.b16 %v7563_v61, %v7559_v25  ;;  %v7694_v22 = vpack.c.b16 %v7564_v3, %v7560_v36  ;;  %v7434_v61 = vpop.permute.xlu2 %7433  ;;  %v11453_v3 = vld [vmem:[%s17170_s7 + $0xb0] sm:$0xff] }
 0xc8f   : > { %7451 = vrot.lane.b32.xlu0 %v16193_v33, %s11551_s12 }
 0xc90   : > { %8050 = vmatmul.bf16.gmra.mxu1 %v7693_v18  ;;  %8099 = vmatmul.bf16.gmra.mxu2 %v7694_v22  ;;  %v11452_v18 = vld [vmem:[%s17170_s7 + $0xa8] sm:$0xff] }
 0xc91   : > { %v16267_v12 = vpop.f32.mrf.mxu0  ;;  %v7430_v23 = vpop.permute.xlu0 %7429  ;;  %9452 = vmatpush.bf16.msrb.mxu3 %v11453_v3 }
 0xc92   : > { %v7426_v57 = vpop.permute.xlu1 %7425  ;;  %v7476_v33 = vsel %vm3608_vm12, %v7428_v32, %v7430_v23  ;;  %v11461_v32 = vld [vmem:[%s17170_s7 + $0xf0] sm:$0xff] }
 0xc93   : > { %v7475_v19 = vsel %vm3608_vm12, %v7424_v51, %v7426_v57  ;;  %v7572_v17 = vunpack.c.l.b16 %v7476_v33  ;;  %v7605_v51 = vunpack.c.l.b16 %v16218_v52  ;;  %9501 = vmatpush.bf16.msra.mxu0 %v11461_v32  ;;  %v11447_v32 = vld [vmem:[%s17170_s7 + $0x80] sm:$0xff] }
 0xc94   : > { %10931 = vmatmul.msk.bf16.gmra.mxu0 %vm3608_vm12, %v7696_v21  ;;  %v7568_v34 = vunpack.c.l.b16 %v7475_v19 }
 0xc95   : > { %v7717_v36 = vpack.c.b16 %v7605_v51, %v7601_v59  ;;  %9453 = vmatpush.bf16.msrb.mxu3 %v11452_v18 }
 0xc96   : > { %v7698_v44 = vpack.c.b16 %v7572_v17, %v7568_v34  ;;  %v7440_v34 = vpop.permute.xlu2 %7439 }
 0xc97   : > { %7457 = vrot.lane.b32.xlu0 %v16271_v58, %s11551_s12  ;;  %v7511_v51 = vsel %vm3608_vm12, 0, %v7440_v34 }
 0xc98   : > { %v7581_v18 = vunpack.c.l.b16 %v7511_v51 }
 0xc99   : > { %v16279_v42 = vpop.f32.mrf.mxu0 }
 0xc9b   : > { %8168 = vmatmul.bf16.gmra.mxu3 %v16202_v9 }
 0xc9f   : > { %7463 = vrot.lane.b32.xlu0 %v16215_v8, %s11551_s12  ;;  %v7578_v8 = vunpack.c.l.b16 %v7350_v14  ;;  %v7593_v14 = vunpack.c.l.b16 %v16172_v62 }
 0xca0   : > { %8055 = vmatmul.bf16.gmra.mxu1 %v7697_v30  ;;  %8104 = vmatmul.bf16.gmra.mxu2 %v7698_v44  ;;  %v7609_v30 = vunpack.c.l.b16 %v7358_v46  ;;  %v11460_v44 = vld [vmem:[%s17170_s7 + $0xe8] sm:$0xff] }
 0xca1   : > { %v16288_v15 = vpop.f32.mrf.mxu0  ;;  %v7704_v2 = vpack.c.b16 %v16041_v60, %v7578_v8  ;;  %v7713_v20 = vpack.c.b16 %v7597_v53, %v7593_v14  ;;  %v7432_v5 = vpop.permute.xlu1 %7431  ;;  %9502 = vmatpush.bf16.msra.mxu0 %v11460_v44 }
 0xca2   : > { %v7477_v22 = vsel %vm3608_vm12, %v7432_v5, %v7434_v61  ;;  %v7506_v27 = vsel %vm3608_vm12, %v16075_v37, %v7432_v5  ;;  %v11451_v37 = vld [vmem:[%s17170_s7 + $0xa0] sm:$0xff]  ;;  %v7446_v14 = vpop.permute.xlu2 %7445 }
 0xca3   : > { %v7575_v19 = vunpack.c.l.b16 %v7506_v27  ;;  %v7576_v0 = vunpack.c.l.b16 %v7477_v22  ;;  %9454 = vmatpush.bf16.msrb.mxu3 %v11451_v37  ;;  %v11455_v37 = vld [vmem:[%s17170_s7 + $0xc0] sm:$0xff] }
 0xca4   : > { %10932 = vmatmul.msk.bf16.gmra.mxu0 %vm3608_vm12, %v7700_v50 }
 0xca7   : > { %7469 = vrot.lane.b32.xlu0 %v7358_v46, %s11551_s12  ;;  %v11459_v46 = vld [vmem:[%s17170_s7 + $0xe0] sm:$0xff] }
 0xca8   : > { %9503 = vmatpush.bf16.msra.mxu0 %v11459_v46  ;;  %v8000_v46 = vadd.f32 %v16387_v31, %v16254_v56 }
 0xca9   : > { %v16293_v9 = vpop.f32.mrf.mxu0  ;;  %v7438_v23 = vpop.permute.xlu1 %7437 }
 0xcaa   : > { %v7450_v44 = vpop.permute.xlu2 %7449 }
 0xcab   : > { %8173 = vmatmul.bf16.gmra.mxu3 %v16226_v45 }
 0xcac   : > { %9504 = vmatpush.bf16.msra.mxu0 %v11458_v29 }
 0xcb0   : > { %9505 = vmatpush.bf16.msra.mxu0 %v11457_v55 }
 0xcb1   : > { %v16298_v6 = vpop.f32.mrf.mxu0 }
 0xcb4   : > { %10933 = vmatmul.msk.bf16.gmra.mxu0 %vm3608_vm12, %v7704_v2  ;;  %v7721_v2 = vpack.c.b16 %v16041_v60, %v7609_v30 }
 0xcb9   : > { %v16302_v47 = vpop.f32.mrf.mxu0  ;;  %v7444_v50 = vpop.permute.xlu1 %7443 }
 0xcba   : > { %v7480_v5 = vsel %vm3608_vm12, %v7444_v50, %v7446_v14 }
 0xcbb   : > { %v7587_v22 = vunpack.c.l.b16 %v7480_v5 }
 0xcc1   : > { %v16306_v43 = vpop.f32.mrf.mxu0  ;;  %v7448_v27 = vpop.permute.xlu1 %7447 }
 0xcc2   : > { %v7481_v29 = vsel %vm3608_vm12, %v7448_v27, %v7450_v44 }
 0xcc4   : > { %10934 = vmatmul.msk.bf16.gmra.mxu0 %vm3608_vm12, %v7709_v63  ;;  %v7514_v63 = vsel %vm3608_vm12, %v7351_v7, %v7444_v50  ;;  %v8144_v7 = vpop.f32.mrf.mxu3 }
 0xcc5   : > { %v7586_v26 = vunpack.c.l.b16 %v7514_v63  ;;  %v7517_v63 = vsel %vm3608_vm12, %v16109_v39, %v7448_v27  ;;  %v8003_v39 = vadd.f32 %v16387_v31, %v16267_v12 }
 0xcc9   : > { %v16309_v45 = vpop.f32.mrf.mxu0 }
 0xccc   : > { %v8146_v30 = vpop.f32.mrf.mxu3 }
 0xcd1   : > { %v16313_v41 = vpop.f32.mrf.mxu0 }
 0xcd4   : > { %10935 = vmatmul.msk.bf16.gmra.mxu0 %vm3608_vm12, %v7713_v20  ;;  %v11448_v20 = vld [vmem:[%s17170_s7 + $0x88] sm:$0xff] }
 0xcd9   : > { %v16316_v24 = vpop.f32.mrf.mxu0 }
 0xce1   : > { %v16323_v25 = vpop.f32.mrf.mxu0 }
 0xce4   : > { %10936 = vmatmul.msk.bf16.gmra.mxu0 %vm3608_vm12, %v7717_v36 }
 0xce9   : > { %v16338_v21 = vpop.f32.mrf.mxu0  ;;  %v7436_v57 = vpop.permute.xlu0 %7435 }
 0xcea   : > { %v7478_v28 = vsel %vm3608_vm12, %v7436_v57, %v7438_v23  ;;  %v7509_v33 = vsel %vm3608_vm12, %v16088_v49, %v7436_v57  ;;  %v11450_v49 = vld [vmem:[%s17170_s7 + $0x98] sm:$0xff] }
 0xceb   : > { %v7579_v4 = vunpack.c.l.b16 %v7509_v33  ;;  %v7580_v17 = vunpack.c.l.b16 %v7478_v28  ;;  %9455 = vmatpush.bf16.msrb.mxu3 %v11450_v49  ;;  %v7706_v28 = vpack.c.b16 %v7586_v26, %v7581_v18  ;;  %v7454_v49 = vpop.permute.xlu1 %7453 }
 0xced   : > { %v7701_v10 = vpack.c.b16 %v7579_v4, %v7575_v19  ;;  %v7702_v38 = vpack.c.b16 %v7580_v17, %v7576_v0  ;;  %v11456_v19 = vld [vmem:[%s17170_s7 + $0xc8] sm:$0xff]  ;;  %v7998_v0 = vadd.f32 %v16387_v31, %v16249_v35 }
 0xcee   : > { %9506 = vmatpush.bf16.msra.mxu0 %v11456_v19 }
 0xcef   : > { %8060 = vmatmul.bf16.gmra.mxu1 %v7701_v10  ;;  %8109 = vmatmul.bf16.gmra.mxu2 %v7702_v38 }
 0xcf0   : > { %9456 = vmatpush.bf16.msrb.mxu3 %v11449_v11 }
 0xcf1   : > { %v16355_v40 = vpop.f32.mrf.mxu0  ;;  %v7442_v8 = vpop.permute.xlu0 %7441 }
 0xcf2   : > { %v7479_v53 = vsel %vm3608_vm12, %v7440_v34, %v7442_v8  ;;  %9507 = vmatpush.bf16.msra.mxu0 %v11455_v37 }
 0xcf3   : > { %v7582_v36 = vunpack.c.l.b16 %v7479_v53  ;;  %v7460_v19 = vpop.permute.xlu1 %7459 }
 0xcf4   : > { %10937 = vmatmul.msk.bf16.gmra.mxu0 %vm3608_vm12, %v7721_v2  ;;  %9457 = vmatpush.bf16.msrb.mxu3 %v11448_v20  ;;  %v8046_v23 = vpop.f32.mrf.mxu1 }
 0xcf5   : > { %v7707_v33 = vpack.c.b16 %v7587_v22, %v7582_v36  ;;  %v8047_v17 = vadd.f32 %v8046_v23, %v7998_v0  ;;  %v7590_v36 = vunpack.c.l.b16 %v7517_v63 }
 0xcf8   : > { %9458 = vmatpush.bf16.msrb.mxu3 %v11447_v32 }
 0xcf9   : > { %v16377_v59 = vpop.f32.mrf.mxu0  ;;  %v7326_v61 = vpop.permute.xlu0 %7325 }
 0xcfa   : > { %v7390_v3 = vsel %vm3608_vm12, %v16240_v1, %v7326_v61  ;;  %v7591_v61 = vunpack.c.l.b16 %v7481_v29  ;;  %v8005_v29 = vadd.f32 %v16387_v31, %v16279_v42 }
 0xcfb   : > { %v7608_v57 = vunpack.c.l.b16 %v7390_v3  ;;  %7467 = vrot.lane.b32.xlu2 %v7390_v3, %s11551_s12 }
 0xcfc   : > { %v8048_v50 = vpop.f32.mrf.mxu1 }
 0xcfd   : > { %v7720_v1 = vpack.c.b16 %v16041_v60, %v7608_v57  ;;  %v8049_v14 = vadd.f32 %v8048_v50, %v8000_v46  ;;  %v8149_v57 = vpop.f32.mrf.mxu3  ;;  %v7526_v50 = vsel %vm3608_vm12, %v16271_v58, %v7460_v19 }
 0xcff   : > { %8065 = vmatmul.bf16.gmra.mxu1 %v7706_v28  ;;  %8114 = vmatmul.bf16.gmra.mxu2 %v7707_v33 }
 0xd00   : > { %8178 = vmatmul.bf16.gmra.mxu3 %v7720_v1 }
 0xd01   : > { %v8193_v4 = vpop.f32.mrf.mxu0  ;;  %v7452_v10 = vpop.permute.xlu0 %7451 }
 0xd02   : > { %v8095_v34 = vpop.f32.mrf.mxu2  ;;  %v7482_v35 = vsel %vm3608_vm12, %v7452_v10, %v7454_v49  ;;  %v7520_v2 = vsel %vm3608_vm12, %v16127_v16, %v7452_v10  ;;  %v7456_v16 = vpop.permute.xlu2 %7455 }
 0xd03   : > { %v8096_v38 = vadd.f32 %v8095_v34, %v8047_v17  ;;  %v7594_v20 = vunpack.c.l.b16 %v7520_v2  ;;  %v7595_v51 = vunpack.c.l.b16 %v7482_v35  ;;  %v7523_v35 = vsel %vm3608_vm12, %v16172_v62, %v7456_v16 }
 0xd05   : > { %v8145_v8 = vadd.f32 %v8144_v7, %v8096_v38  ;;  %v7710_v22 = vpack.c.b16 %v7594_v20, %v7590_v36  ;;  %v7711_v23 = vpack.c.b16 %v7595_v51, %v7591_v61  ;;  %v7602_v20 = vunpack.c.l.b16 %v7526_v50 }
 0xd07   : > { %v8194_v11 = vadd.f32 %v8193_v4, %v8145_v8 }
 0xd09   : > { %v8195_v53 = vpop.f32.mrf.mxu0  ;;  %v8233_v5 = vmax.f32 %v8194_v11, 0.0  ;;  %v7458_v37 = vpop.permute.xlu0 %7457 }
 0xd0a   : > { %v8097_v26 = vpop.f32.mrf.mxu2  ;;  %v7483_v8 = vsel %vm3608_vm12, %v7456_v16, %v7458_v37  ;;  %v7462_v2 = vpop.permute.xlu2 %7461 }
 0xd0b   : > { %v8249_v55 = vpack.c.bf16 %v8233_v5, %v8233_v5  ;;  %v8098_v7 = vadd.f32 %v8097_v26, %v8049_v14  ;;  %v7484_v63 = vsel %vm3608_vm12, %v7460_v19, %v7462_v2  ;;  %v8151_v14 = vpop.f32.mrf.mxu3  ;;  %v7599_v51 = vunpack.c.l.b16 %v7483_v8 }
 0xd0c   : > { %v7598_v26 = vunpack.c.l.b16 %v7523_v35 }
 0xd0d   : > { %v8281_v3 = vunpack.c.l.b16 %v8249_v55  ;;  %v8147_v18 = vadd.f32 %v8146_v30, %v8098_v7  ;;  %v8051_v56 = vpop.f32.mrf.mxu1  ;;  %v7603_v7 = vunpack.c.l.b16 %v7484_v63 }
 0xd0e   : > { %v8052_v0 = vadd.f32 %v8051_v56, %v8003_v39 }
 0xd0f   : > { %v8297_v32 = vpack.c.b16 %v8281_v3, %v8281_v3  ;;  %v8196_v28 = vadd.f32 %v8195_v53, %v8147_v18  ;;  %8070 = vmatmul.bf16.gmra.mxu1 %v7710_v22  ;;  %8119 = vmatmul.bf16.gmra.mxu2 %v7711_v23  ;;  %v7715_v39 = vpack.c.b16 %v7603_v7, %v7599_v51 }
 0xd11   : > { %v8314_v27 = vshrl.u32 %v8297_v32, 16  ;;  %v8234_v33 = vmax.f32 %v8196_v28, 0.0  ;;  %v8198_v1 = vpop.f32.mrf.mxu0  ;;  %v8317_v17 = vshll.u32 %v8297_v32, 16  ;;  %v7714_v28 = vpack.c.b16 %v7602_v20, %v7598_v26 }
 0xd13   : > { %v8316_v4 = vrot.slane %v8314_v27, 7  ;;  %v8250_v34 = vpack.c.bf16 %v8234_v33, %v8234_v33  ;;  %v8100_v10 = vpop.f32.mrf.mxu2  ;;  %v8154_v35 = vpop.f32.mrf.mxu3 }
 0xd14   : > { %v8101_v38 = vadd.f32 %v8100_v10, %v8052_v0  ;;  %v8008_v0 = vadd.f32 %v16387_v31, %v16288_v15 }
 0xd15   : > { %v8319_v30 = vor.u32 %v8317_v17, %v8316_v4  ;;  %v8282_v44 = vunpack.c.l.b16 %v8250_v34  ;;  %v8053_v49 = vpop.f32.mrf.mxu1 }
 0xd16   : > { %v8150_v12 = vadd.f32 %v8149_v57, %v8101_v38  ;;  %v8054_v61 = vadd.f32 %v8053_v49, %v8005_v29 }
 0xd17   : > { %v8441_v46 = vsel %vm11631_vm2, 0, %v8319_v30  ;;  %v8298_v11 = vpack.c.b16 %v8282_v44, %v8282_v44 }
 0xd18   : > { %v16424_v53 = vsel %vm15784_vm15, %v8441_v46, 0  ;;  %v8199_v58 = vadd.f32 %v8198_v1, %v8150_v12 }
 0xd19   : > { %v8321_v5 = vshrl.u32 %v8298_v11, 16  ;;  %v8601_v62 = vrot.slane %v16424_v53, 1  ;;  %v8476_v55 = vshll.u32 %v16424_v53, 16  ;;  %v8324_v16 = vshll.u32 %v8298_v11, 16  ;;  %v8200_v3 = vpop.f32.mrf.mxu0 }
 0xd1a   : > { %v8235_v36 = vmax.f32 %v8199_v58, 0.0  ;;  %v8474_v10 = vshrl.u32 %v16424_v53, 16  ;;  %v8617_v38 = vunpack.c.l.b16 %v16424_v53  ;;  %v8015_v53 = vadd.f32 %v16387_v31, %v16302_v47 }
 0xd1b   : > { %v8323_v42 = vrot.slane %v8321_v5, 7  ;;  %v8102_v18 = vpop.f32.mrf.mxu2  ;;  %v16428_v56 = vunpack.c.l.b16 %v8601_v62  ;;  %v8478_v19 = vrot.slane %v8476_v55, 1 }
 0xd1c   : > { %v8251_v22 = vpack.c.bf16 %v8235_v36, %v8235_v36  ;;  %v8103_v23 = vadd.f32 %v8102_v18, %v8054_v61 }
 0xd1d   : > { %v8326_v57 = vor.u32 %v8324_v16, %v8323_v42  ;;  %v8056_v32 = vpop.f32.mrf.mxu1  ;;  %v8815_v27 = vpack.c.b16 %v16428_v56, %v16041_v60  ;;  %v16440_v12 = vor.u32 %v8478_v19, %v8474_v10 }
 0xd1e   : > { %v8283_v33 = vunpack.c.l.b16 %v8251_v22  ;;  %v8152_v1 = vadd.f32 %v8151_v14, %v8103_v23  ;;  %v8057_v8 = vadd.f32 %v8056_v32, %v8008_v0  ;;  %v11446_v32 = vld [vmem:[%s17170_s7 + $0x78] sm:$0xff] }
 0xd1f   : > { %v8442_v4 = vsel %vm11631_vm2, 0, %v8326_v57  ;;  %8075 = vmatmul.bf16.gmra.mxu1 %v7714_v28  ;;  %8124 = vmatmul.bf16.gmra.mxu2 %v7715_v39  ;;  %v8618_v42 = vunpack.c.l.b16 %v16440_v12  ;;  %v11438_v57 = vld [vmem:[%s17170_s7 + $0x38] sm:$0xff] }
 0xd20   : > { %v8458_v17 = vsel %vm15784_vm15, %v8442_v4, 0  ;;  %v8299_v37 = vpack.c.b16 %v8283_v33, %v8283_v33  ;;  %v8201_v34 = vadd.f32 %v8200_v3, %v8152_v1  ;;  %9459 = vmatmul.bf16.vlgmr.msrb.gmra.mxu3 %v8815_v27  ;;  %v8010_v3 = vadd.f32 %v16387_v31, %v16293_v9  ;;  %9353 = vmatpush.bf16.msrb.mxu1 %v11438_v57 }
 0xd21   : > { %v8620_v30 = vunpack.c.l.b16 %v8458_v17  ;;  %v8602_v44 = vrot.slane %v8458_v17, 1  ;;  %v8483_v49 = vshll.u32 %v8458_v17, 16  ;;  %v8481_v29 = vshrl.u32 %v8458_v17, 16  ;;  %v8203_v5 = vpop.f32.mrf.mxu0  ;;  %9402 = vmatpush.bf16.msrb.mxu2 %v11446_v32 }
 0xd22   : > { %v8328_v50 = vshrl.u32 %v8299_v37, 16  ;;  %v8236_v15 = vmax.f32 %v8201_v34, 0.0  ;;  %v8331_v14 = vshll.u32 %v8299_v37, 16 }
 0xd23   : > { %v8105_v2 = vpop.f32.mrf.mxu2  ;;  %v8816_v46 = vpack.c.b16 %v8620_v30, %v8617_v38  ;;  %v16444_v11 = vunpack.c.l.b16 %v8602_v44  ;;  %v8485_v63 = vrot.slane %v8483_v49, 1  ;;  %v8156_v49 = vpop.f32.mrf.mxu3 }
 0xd24   : > { %v8330_v58 = vrot.slane %v8328_v50, 7  ;;  %v8252_v20 = vpack.c.bf16 %v8236_v15, %v8236_v15  ;;  %v8106_v51 = vadd.f32 %v8105_v2, %v8057_v8 }
 0xd25   : > { %9508 = vmatmul.bf16.vlgmr.msra.gmra.mxu0 %v8816_v46  ;;  %v8486_v26 = vor.u32 %v8485_v63, %v8481_v29  ;;  %v8058_v7 = vpop.f32.mrf.mxu1 }
 0xd26   : > { %v8333_v36 = vor.u32 %v8331_v14, %v8330_v58  ;;  %v8284_v61 = vunpack.c.l.b16 %v8252_v20  ;;  %v8155_v55 = vadd.f32 %v8154_v35, %v8106_v51  ;;  %v8059_v33 = vadd.f32 %v8058_v7, %v8010_v3  ;;  %v11436_v3 = vld [vmem:[%s17170_s7 + $0x28] sm:$0xff] }
 0xd27   : > { %v8621_v16 = vunpack.c.l.b16 %v8486_v26 }
 0xd28   : > { %v8300_v18 = vpack.c.b16 %v8284_v61, %v8284_v61  ;;  %v8204_v22 = vadd.f32 %v8203_v5, %v8155_v55  ;;  %v8443_v23 = vsel %vm11631_vm2, 0, %v8333_v36  ;;  %v11445_v5 = vld [vmem:[%s17170_s7 + $0x70] sm:$0xff] }
 0xd29   : > { %v8459_v28 = vsel %vm15784_vm15, %v8443_v23, 0  ;;  %v16463_v39 = vpack.c.b16 %v8621_v16, %v8618_v42  ;;  %v8205_v63 = vpop.f32.mrf.mxu0  ;;  %9403 = vmatpush.bf16.msrb.mxu2 %v11445_v5 }
 0xd2a   : > { %v8335_v9 = vshrl.u32 %v8300_v18, 16  ;;  %v8237_v27 = vmax.f32 %v8204_v22, 0.0  ;;  %v8603_v1 = vrot.slane %v8459_v28, 1  ;;  %v8338_v19 = vshll.u32 %v8300_v18, 16  ;;  %v11444_v22 = vld [vmem:[%s17170_s7 + $0x68] sm:$0xff] }
 0xd2b   : > { %v8107_v0 = vpop.f32.mrf.mxu2  ;;  %v8623_v4 = vunpack.c.l.b16 %v8459_v28  ;;  %v8490_v17 = vshll.u32 %v8459_v28, 16  ;;  %v8488_v15 = vshrl.u32 %v8459_v28, 16 }
 0xd2c   : > { %v8337_v37 = vrot.slane %v8335_v9, 7  ;;  %v8253_v34 = vpack.c.bf16 %v8237_v27, %v8237_v27  ;;  %v8108_v10 = vadd.f32 %v8107_v0, %v8059_v33  ;;  %v16465_v44 = vunpack.c.l.b16 %v8603_v1 }
 0xd2d   : > { %v16467_v50 = vpack.c.b16 %v8623_v4, %v8620_v30  ;;  %v8492_v8 = vrot.slane %v8490_v17, 1  ;;  %v11437_v30 = vld [vmem:[%s17170_s7 + $0x30] sm:$0xff]  ;;  %9404 = vmatpush.bf16.msrb.mxu2 %v11444_v22 }
 0xd2e   : > { %v8340_v35 = vor.u32 %v8338_v19, %v8337_v37  ;;  %v8285_v2 = vunpack.c.l.b16 %v8253_v34  ;;  %v8157_v46 = vadd.f32 %v8156_v49, %v8108_v10  ;;  %v16471_v29 = vpack.c.b16 %v16465_v44, %v16444_v11  ;;  %9354 = vmatpush.bf16.msrb.mxu1 %v11437_v30  ;;  %v11443_v49 = vld [vmem:[%s17170_s7 + $0x60] sm:$0xff]  ;;  %v11482_v34 = vld [vmem:[%s17170_s7 + $0x198] sm:$0xff] }
 0xd2f   : > { %v8493_v58 = vor.u32 %v8492_v8, %v8488_v15 }
 0xd30   : > { %v8301_v14 = vpack.c.b16 %v8285_v2, %v8285_v2  ;;  %v8206_v20 = vadd.f32 %v8205_v63, %v8157_v46  ;;  %9464 = vmatmul.bf16.gmra.mxu3 %v16471_v29  ;;  %v8444_v51 = vsel %vm11631_vm2, 0, %v8340_v35  ;;  %v11434_v63 = vld [vmem:[%s17170_s7 + $0x18] sm:$0xff] }
 0xd31   : > { %v8460_v26 = vsel %vm15784_vm15, %v8444_v51, 0  ;;  %v8624_v36 = vunpack.c.l.b16 %v8493_v58  ;;  %9405 = vmatpush.bf16.msrb.mxu2 %v11443_v49  ;;  %v11442_v58 = vld [vmem:[%s17170_s7 + $0x58] sm:$0xff] }
 0xd32   : > { %v8342_v61 = vshrl.u32 %v8301_v14, 16  ;;  %v8238_v55 = vmax.f32 %v8206_v20, 0.0  ;;  %v8626_v7 = vunpack.c.l.b16 %v8460_v26  ;;  %v8604_v18 = vrot.slane %v8460_v26, 1  ;;  %9355 = vmatpush.bf16.msrb.mxu1 %v11436_v3 }
 0xd33   : > { %v16490_v23 = vpack.c.b16 %v8624_v36, %v8621_v16  ;;  %v8497_v57 = vshll.u32 %v8460_v26, 16  ;;  %v8345_v28 = vshll.u32 %v8301_v14, 16  ;;  %v8495_v1 = vshrl.u32 %v8460_v26, 16 }
 0xd34   : > { %v8344_v32 = vrot.slane %v8342_v61, 7  ;;  %v8254_v9 = vpack.c.bf16 %v8238_v55, %v8238_v55  ;;  %v8822_v27 = vpack.c.b16 %v8626_v7, %v8623_v4  ;;  %v16492_v33 = vunpack.c.l.b16 %v8604_v18  ;;  %v11435_v4 = vld [vmem:[%s17170_s7 + $0x20] sm:$0xff] }
 0xd35   : > { %v8499_v19 = vrot.slane %v8497_v57, 1  ;;  %9406 = vmatpush.bf16.msrb.mxu2 %v11442_v58  ;;  %v11441_v57 = vld [vmem:[%s17170_s7 + $0x50] sm:$0xff] }
 0xd36   : > { %v8347_v0 = vor.u32 %v8345_v28, %v8344_v32  ;;  %v8286_v17 = vunpack.c.l.b16 %v8254_v9  ;;  %9513 = vmatmul.bf16.gmra.mxu0 %v8822_v27  ;;  %9356 = vmatpush.bf16.msrb.mxu1 %v11435_v4  ;;  %v11432_v27 = vld [vmem:[%s17170_s7 + $0x8] sm:$0xff] }
 0xd37   : > { %v8500_v37 = vor.u32 %v8499_v19, %v8495_v1  ;;  %v11440_v1 = vld [vmem:[%s17170_s7 + $0x48] sm:$0xff] }
 0xd38   : > { %v8302_v16 = vpack.c.b16 %v8286_v17, %v8286_v17  ;;  %v8445_v10 = vsel %vm11631_vm2, 0, %v8347_v0  ;;  %v11431_v17 = vld [vmem:[%s17170_s7] sm:$0xff] }
 0xd39   : > { %v8461_v15 = vsel %vm15784_vm15, %v8445_v10, 0  ;;  %v8627_v8 = vunpack.c.l.b16 %v8500_v37  ;;  %9407 = vmatpush.bf16.msrb.mxu2 %v11441_v57  ;;  %v11439_v37 = vld [vmem:[%s17170_s7 + $0x40] sm:$0xff]  ;;  %v7466_v10 = vpop.permute.xlu1 %7465 }
 0xd3a   : > { %v8349_v35 = vshrl.u32 %v8302_v16, 16  ;;  %v8605_v2 = vrot.slane %v8461_v15, 1  ;;  %v8629_v46 = vunpack.c.l.b16 %v8461_v15  ;;  %v8504_v14 = vshll.u32 %v8461_v15, 16  ;;  %9357 = vmatpush.bf16.msrb.mxu1 %v11434_v63 }
 0xd3b   : > { %v16512_v20 = vpack.c.b16 %v8627_v8, %v8624_v36  ;;  %v8352_v30 = vshll.u32 %v8302_v16, 16  ;;  %v8502_v61 = vshrl.u32 %v8461_v15, 16  ;;  %v7464_v16 = vpop.permute.xlu0 %7463 }
 0xd3c   : > { %v8351_v51 = vrot.slane %v8349_v35, 7  ;;  %v16514_v5 = vunpack.c.l.b16 %v8605_v2  ;;  %v16516_v26 = vpack.c.b16 %v8629_v46, %v8626_v7  ;;  %v8506_v55 = vrot.slane %v8504_v14, 1  ;;  %v11433_v7 = vld [vmem:[%s17170_s7 + $0x10] sm:$0xff] }
 0xd3d   : > { %9408 = vmatpush.bf16.msrb.mxu2 %v11440_v1  ;;  %v7485_v4 = vsel %vm3608_vm12, %v7464_v16, %v7466_v10  ;;  %v7529_v49 = vsel %vm3608_vm12, %v16206_v54, %v7464_v16  ;;  %v8813_v54 = vpack.c.b16 %v8617_v38, %v16041_v60 }
 0xd3e   : > { %v8354_v3 = vor.u32 %v8352_v30, %v8351_v51  ;;  %v16520_v18 = vpack.c.b16 %v16514_v5, %v16492_v33  ;;  %v16522_v22 = vor.u32 %v8506_v55, %v8502_v61  ;;  %9358 = vmatpush.bf16.msrb.mxu1 %v11433_v7  ;;  %v7607_v63 = vunpack.c.l.b16 %v7485_v4  ;;  %v8159_v61 = vpop.f32.mrf.mxu3  ;;  %v8208_v55 = vpop.f32.mrf.mxu0 }
 0xd40   : > { %17657 = vst [vmem:[#allocation66_spill] sm:$0xff] %v16520_v18  ;;  %9469 = vmatmul.bf16.gmra.mxu3 %v16520_v18  ;;  %v8446_v36 = vsel %vm11631_vm2, 0, %v8354_v3  ;;  %v17278_v28 = vunpack.c.l.b16 %v16522_v22  ;;  %v8814_v3 = vpack.c.b16 %v8618_v42, %v16041_v60 }
 0xd41   : > { %v16535_v32 = vsel %vm15784_vm15, %v8446_v36, 0  ;;  %9409 = vmatpush.bf16.msrb.mxu2 %v11439_v37  ;;  %v8013_v36 = vadd.f32 %v16387_v31, %v16298_v6 }
 0xd42   : > { %v8632_v9 = vunpack.c.l.b16 %v16535_v32  ;;  %v16547_v19 = vpack.c.b16 %v17278_v28, %v8627_v8  ;;  %9359 = vmatpush.bf16.msrb.mxu1 %v11432_v27  ;;  %v11475_v28 = vld [vmem:[%s17170_s7 + $0x160] sm:$0xff] }
 0xd43   : > { %v7470_v15 = vpop.permute.xlu0 %7469 }
 0xd44   : > { %v8828_v0 = vpack.c.b16 %v8632_v9, %v8629_v46  ;;  %v7606_v46 = vunpack.c.l.b16 %v7529_v49 }
 0xd46   : > { %9518 = vmatmul.bf16.gmra.mxu0 %v8828_v0  ;;  %9360 = vmatpush.bf16.msrb.mxu1 %v11431_v17  ;;  %v8161_v7 = vpop.f32.mrf.mxu3  ;;  %v8210_v27 = vpop.f32.mrf.mxu0 }
 0xd4e   : > { %v8164_v42 = vpop.f32.mrf.mxu3  ;;  %v8213_v6 = vpop.f32.mrf.mxu0 }
 0xd55   : > { %v7468_v8 = vpop.permute.xlu2 %7467 }
 0xd56   : > { %v7486_v35 = vsel %vm3608_vm12, %v7468_v8, %v7470_v15  ;;  %v7532_v2 = vsel %vm3608_vm12, %v16218_v52, %v7468_v8 }
 0xd57   : > { %v7610_v58 = vunpack.c.l.b16 %v7532_v2  ;;  %v7611_v14 = vunpack.c.l.b16 %v7486_v35  ;;  %v8018_v2 = vadd.f32 %v16387_v31, %v16306_v43 }
 0xd59   : > { %v7718_v51 = vpack.c.b16 %v7610_v58, %v7606_v46  ;;  %v7719_v30 = vpack.c.b16 %v7611_v14, %v7607_v63 }
 0xd5b   : > { %8080 = vmatmul.bf16.gmra.mxu1 %v7718_v51  ;;  %8129 = vmatmul.bf16.gmra.mxu2 %v7719_v30 }
 0xd6b   : > { %9361 = vmatmul.bf16.vlgmr.msrb.gmra.mxu1 %v8813_v54  ;;  %9410 = vmatmul.bf16.vlgmr.msrb.gmra.mxu2 %v8814_v3  ;;  %v8166_v3 = vpop.f32.mrf.mxu3 }
 0xd6c   : > { %v8061_v52 = vpop.f32.mrf.mxu1 }
 0xd6d   : > { %v8062_v57 = vadd.f32 %v8061_v52, %v8013_v36 }
 0xd72   : > { %v8110_v1 = vpop.f32.mrf.mxu2 }
 0xd73   : > { %v8111_v0 = vadd.f32 %v8110_v1, %v8062_v57 }
 0xd74   : > { %v8063_v17 = vpop.f32.mrf.mxu1 }
 0xd75   : > { %v8160_v37 = vadd.f32 %v8159_v61, %v8111_v0  ;;  %v8064_v12 = vadd.f32 %v8063_v17, %v8015_v53  ;;  %v8215_v0 = vpop.f32.mrf.mxu0  ;;  %v8606_v53 = vrot.slane %v16535_v32, 1 }
 0xd77   : > { %v8209_v38 = vadd.f32 %v8208_v55, %v8160_v37 }
 0xd79   : > { %v8239_v16 = vmax.f32 %v8209_v38, 0.0 }
 0xd7a   : > { %v8112_v10 = vpop.f32.mrf.mxu2 }
 0xd7b   : > { %v8255_v4 = vpack.c.bf16 %v8239_v16, %v8239_v16  ;;  %v8113_v49 = vadd.f32 %v8112_v10, %v8064_v12  ;;  %9366 = vmatmul.bf16.gmra.mxu1 %v16467_v50  ;;  %9415 = vmatmul.bf16.gmra.mxu2 %v16490_v23 }
 0xd7c   : > { %v8066_v15 = vpop.f32.mrf.mxu1 }
 0xd7d   : > { %v8287_v8 = vunpack.c.l.b16 %v8255_v4  ;;  %v8162_v35 = vadd.f32 %v8161_v7, %v8113_v49  ;;  %v8067_v14 = vadd.f32 %v8066_v15, %v8018_v2  ;;  %v8020_v7 = vadd.f32 %v16387_v31, %v16309_v45 }
 0xd7e   : > { %v8511_v45 = vshll.u32 %v16535_v32, 16 }
 0xd7f   : > { %v8303_v46 = vpack.c.b16 %v8287_v8, %v8287_v8  ;;  %v8211_v47 = vadd.f32 %v8210_v27, %v8162_v35 }
 0xd81   : > { %v8356_v63 = vshrl.u32 %v8303_v46, 16  ;;  %v8240_v58 = vmax.f32 %v8211_v47, 0.0  ;;  %v8359_v61 = vshll.u32 %v8303_v46, 16  ;;  %v16593_v46 = vunpack.c.l.b16 %v8606_v53 }
 0xd82   : > { %v8115_v51 = vpop.f32.mrf.mxu2 }
 0xd83   : > { %v8358_v30 = vrot.slane %v8356_v63, 7  ;;  %v8256_v55 = vpack.c.bf16 %v8240_v58, %v8240_v58  ;;  %v8116_v54 = vadd.f32 %v8115_v51, %v8067_v14  ;;  %v8169_v51 = vpop.f32.mrf.mxu3 }
 0xd84   : > { %v8068_v52 = vpop.f32.mrf.mxu1 }
 0xd85   : > { %v8361_v36 = vor.u32 %v8359_v61, %v8358_v30  ;;  %v8288_v57 = vunpack.c.l.b16 %v8256_v55  ;;  %v8165_v1 = vadd.f32 %v8164_v42, %v8116_v54  ;;  %v8069_v12 = vadd.f32 %v8068_v52, %v8020_v7 }
 0xd86   : > { %v8513_v61 = vrot.slane %v8511_v45, 1  ;;  %v8023_v54 = vadd.f32 %v16387_v31, %v16313_v41 }
 0xd87   : > { %v8304_v43 = vpack.c.b16 %v8288_v57, %v8288_v57  ;;  %v8214_v17 = vadd.f32 %v8213_v6, %v8165_v1  ;;  %v8447_v27 = vsel %vm11631_vm2, 0, %v8361_v36  ;;  %v8218_v1 = vpop.f32.mrf.mxu0 }
 0xd88   : > { %v16583_v37 = vsel %vm15784_vm15, %v8447_v27, 0 }
 0xd89   : > { %v8363_v38 = vshrl.u32 %v8304_v43, 16  ;;  %v8241_v16 = vmax.f32 %v8214_v17, 0.0  ;;  %v8607_v42 = vrot.slane %v16583_v37, 1  ;;  %v8366_v10 = vshll.u32 %v8304_v43, 16 }
 0xd8a   : > { %v8117_v4 = vpop.f32.mrf.mxu2  ;;  %v8518_v49 = vshll.u32 %v16583_v37, 16  ;;  %v8516_v55 = vshrl.u32 %v16583_v37, 16  ;;  %v8635_v7 = vunpack.c.l.b16 %v16583_v37  ;;  %v8509_v43 = vshrl.u32 %v16535_v32, 16 }
 0xd8b   : > { %v8365_v6 = vrot.slane %v8363_v38, 7  ;;  %v8257_v15 = vpack.c.bf16 %v8241_v16, %v8241_v16  ;;  %v8118_v8 = vadd.f32 %v8117_v4, %v8069_v12  ;;  %9371 = vmatmul.bf16.gmra.mxu1 %v16516_v26  ;;  %9420 = vmatmul.bf16.gmra.mxu2 %v16547_v19  ;;  %v16591_v35 = vunpack.c.l.b16 %v8607_v42 }
 0xd8c   : > { %v8071_v2 = vpop.f32.mrf.mxu1  ;;  %v8520_v47 = vrot.slane %v8518_v49, 1  ;;  %v16612_v12 = vor.u32 %v8513_v61, %v8509_v43 }
 0xd8d   : > { %v8368_v63 = vor.u32 %v8366_v10, %v8365_v6  ;;  %v8289_v58 = vunpack.c.l.b16 %v8257_v15  ;;  %v8167_v14 = vadd.f32 %v8166_v3, %v8118_v8  ;;  %v16597_v30 = vpack.c.b16 %v16591_v35, %v16593_v46 }
 0xd8e   : > { %v8521_v17 = vor.u32 %v8520_v47, %v8516_v55  ;;  %v8072_v41 = vadd.f32 %v8071_v2, %v8023_v54  ;;  %v17277_v61 = vunpack.c.l.b16 %v16612_v12 }
 0xd8f   : > { %17658 = vst [vmem:[#allocation68_spill] sm:$0xff] %v16597_v30  ;;  %v8305_v52 = vpack.c.b16 %v8289_v58, %v8289_v58  ;;  %v8216_v36 = vadd.f32 %v8215_v0, %v8167_v14  ;;  %v8448_v57 = vsel %vm11631_vm2, 0, %v8368_v63  ;;  %9474 = vmatmul.bf16.gmra.mxu3 %v16597_v30 }
 0xd90   : > { %v16607_v3 = vsel %vm15784_vm15, %v8448_v57, 0  ;;  %v8636_v15 = vunpack.c.l.b16 %v8521_v17  ;;  %v8171_v17 = vpop.f32.mrf.mxu3 }
 0xd91   : > { %v8370_v27 = vshrl.u32 %v8305_v52, 16  ;;  %v8242_v53 = vmax.f32 %v8216_v36, 0.0  ;;  %v17276_v0 = vunpack.c.l.b16 %v16607_v3  ;;  %v8373_v38 = vshll.u32 %v8305_v52, 16 }
 0xd92   : > { %v8120_v16 = vpop.f32.mrf.mxu2  ;;  %v8525_v42 = vshll.u32 %v16607_v3, 16  ;;  %v8608_v10 = vrot.slane %v16607_v3, 1  ;;  %v8523_v8 = vshrl.u32 %v16607_v3, 16  ;;  %v8025_v52 = vadd.f32 %v16387_v31, %v16316_v24 }
 0xd93   : > { %v8372_v4 = vrot.slane %v8370_v27, 7  ;;  %v8258_v45 = vpack.c.bf16 %v8242_v53, %v8242_v53  ;;  %v8121_v49 = vadd.f32 %v8120_v16, %v8072_v41  ;;  %v8834_v37 = vpack.c.b16 %v17276_v0, %v8635_v7 }
 0xd94   : > { %v8073_v6 = vpop.f32.mrf.mxu1  ;;  %v8527_v2 = vrot.slane %v8525_v42, 1  ;;  %v16619_v47 = vunpack.c.l.b16 %v8608_v10  ;;  %v16636_v27 = vpack.c.b16 %v8636_v15, %v17277_v61  ;;  %v8220_v42 = vpop.f32.mrf.mxu0 }
 0xd95   : > { %v8375_v63 = vor.u32 %v8373_v38, %v8372_v4  ;;  %v8290_v58 = vunpack.c.l.b16 %v8258_v45  ;;  %v8170_v14 = vadd.f32 %v8169_v51, %v8121_v49  ;;  %9523 = vmatmul.bf16.gmra.mxu0 %v8834_v37  ;;  %v16632_v51 = vpack.c.b16 %v8635_v7, %v8632_v9 }
 0xd96   : > { %v16622_v55 = vor.u32 %v8527_v2, %v8523_v8 }
 0xd97   : > { %v8306_v36 = vpack.c.b16 %v8290_v58, %v8290_v58  ;;  %v8219_v57 = vadd.f32 %v8218_v1, %v8170_v14  ;;  %v8449_v43 = vsel %vm11631_vm2, 0, %v8375_v63  ;;  %v8074_v1 = vadd.f32 %v8073_v6, %v8025_v52 }
 0xd98   : > { %v8465_v53 = vsel %vm15784_vm15, %v8449_v43, 0  ;;  %v17275_v41 = vunpack.c.l.b16 %v16622_v55 }
 0xd99   : > { %v8377_v24 = vshrl.u32 %v8306_v36, 16  ;;  %v8243_v38 = vmax.f32 %v8219_v57, 0.0  ;;  %v8609_v16 = vrot.slane %v8465_v53, 1  ;;  %v8380_v10 = vshll.u32 %v8306_v36, 16 }
 0xd9a   : > { %v8122_v4 = vpop.f32.mrf.mxu2  ;;  %v8532_v45 = vshll.u32 %v8465_v53, 16  ;;  %v16643_v32 = vpack.c.b16 %v17275_v41, %v8636_v15  ;;  %v8530_v52 = vshrl.u32 %v8465_v53, 16  ;;  %v8028_v15 = vadd.f32 %v16387_v31, %v16323_v25 }
 0xd9b   : > { %v8379_v9 = vrot.slane %v8377_v24, 7  ;;  %v8259_v7 = vpack.c.bf16 %v8243_v38, %v8243_v38  ;;  %v8123_v49 = vadd.f32 %v8122_v4, %v8074_v1  ;;  %9376 = vmatmul.bf16.gmra.mxu1 %v16632_v51  ;;  %9425 = vmatmul.bf16.gmra.mxu2 %v16636_v27  ;;  %v16647_v37 = vunpack.c.l.b16 %v8609_v16 }
 0xd9c   : > { %v8076_v8 = vpop.f32.mrf.mxu1  ;;  %v8534_v6 = vrot.slane %v8532_v45, 1  ;;  %v8641_v38 = vunpack.c.l.b16 %v8465_v53  ;;  %v8174_v45 = vpop.f32.mrf.mxu3 }
 0xd9d   : > { %v8382_v2 = vor.u32 %v8380_v10, %v8379_v9  ;;  %v8291_v63 = vunpack.c.l.b16 %v8259_v7  ;;  %v8172_v58 = vadd.f32 %v8171_v17, %v8123_v49  ;;  %v8842_v14 = vpack.c.b16 %v16647_v37, %v16041_v60  ;;  %v8223_v53 = vpop.f32.mrf.mxu0 }
 0xd9e   : > { %v8535_v1 = vor.u32 %v8534_v6, %v8530_v52  ;;  %v8077_v10 = vadd.f32 %v8076_v8, %v8028_v15 }
 0xd9f   : > { %v8307_v36 = vpack.c.b16 %v8291_v63, %v8291_v63  ;;  %v8221_v57 = vadd.f32 %v8220_v42, %v8172_v58  ;;  %v8450_v43 = vsel %vm11631_vm2, 0, %v8382_v2  ;;  %9479 = vmatmul.bf16.gmra.mxu3 %v8842_v14 }
 0xda0   : > { %v16657_v24 = vsel %vm15784_vm15, %v8450_v43, 0  ;;  %v8642_v6 = vunpack.c.l.b16 %v8535_v1 }
 0xda1   : > { %v8384_v17 = vshrl.u32 %v8307_v36, 16  ;;  %v8244_v16 = vmax.f32 %v8221_v57, 0.0  ;;  %v8644_v4 = vunpack.c.l.b16 %v16657_v24  ;;  %v8387_v9 = vshll.u32 %v8307_v36, 16 }
 0xda2   : > { %v8125_v25 = vpop.f32.mrf.mxu2  ;;  %v8610_v42 = vrot.slane %v16657_v24, 1  ;;  %v8539_v7 = vshll.u32 %v16657_v24, 16  ;;  %v8537_v8 = vshrl.u32 %v16657_v24, 16 }
 0xda3   : > { %v8386_v49 = vrot.slane %v8384_v17, 7  ;;  %v8260_v2 = vpack.c.bf16 %v8244_v16, %v8244_v16  ;;  %v8126_v63 = vadd.f32 %v8125_v25, %v8077_v10  ;;  %v8843_v58 = vpack.c.b16 %v8644_v4, %v8641_v38 }
 0xda4   : > { %v16664_v14 = vunpack.c.l.b16 %v8610_v42  ;;  %v8541_v52 = vrot.slane %v8539_v7, 1  ;;  %v8078_v43 = vpop.f32.mrf.mxu1  ;;  %v8030_v16 = vadd.f32 %v16387_v31, %v16338_v21  ;;  %v8840_v42 = vpack.c.b16 %v8641_v38, %v16041_v60 }
 0xda5   : > { %v8389_v15 = vor.u32 %v8387_v9, %v8386_v49  ;;  %v8292_v36 = vunpack.c.l.b16 %v8260_v2  ;;  %v8175_v57 = vadd.f32 %v8174_v45, %v8126_v63  ;;  %9528 = vmatmul.bf16.gmra.mxu0 %v8843_v58  ;;  %v8841_v9 = vpack.c.b16 %v8642_v6, %v16041_v60 }
 0xda6   : > { %v16667_v54 = vor.u32 %v8541_v52, %v8537_v8  ;;  %v8079_v63 = vadd.f32 %v8078_v43, %v8030_v16  ;;  %v8225_v16 = vpop.f32.mrf.mxu0 }
 0xda7   : > { %v8308_v10 = vpack.c.b16 %v8292_v36, %v8292_v36  ;;  %v8224_v1 = vadd.f32 %v8223_v53, %v8175_v57  ;;  %v8451_v25 = vsel %vm11631_vm2, 0, %v8389_v15  ;;  %v8176_v57 = vpop.f32.mrf.mxu3 }
 0xda8   : > { %v8467_v45 = vsel %vm15784_vm15, %v8451_v25, 0  ;;  %v8645_v7 = vunpack.c.l.b16 %v16667_v54 }
 0xda9   : > { %v8391_v49 = vshrl.u32 %v8308_v10, 16  ;;  %v8245_v2 = vmax.f32 %v8224_v1, 0.0  ;;  %v8611_v58 = vrot.slane %v8467_v45, 1  ;;  %v8394_v8 = vshll.u32 %v8308_v10, 16 }
 0xdaa   : > { %v8127_v21 = vpop.f32.mrf.mxu2  ;;  %v8546_v31 = vshll.u32 %v8467_v45, 16  ;;  %v16680_v53 = vpack.c.b16 %v8645_v7, %v8642_v6 }
 0xdab   : > { %v8393_v52 = vrot.slane %v8391_v49, 7  ;;  %v8261_v15 = vpack.c.bf16 %v8245_v2, %v8245_v2  ;;  %v8128_v36 = vadd.f32 %v8127_v21, %v8079_v63  ;;  %9381 = vmatmul.bf16.gmra.mxu1 %v8840_v42  ;;  %9430 = vmatmul.bf16.gmra.mxu2 %v8841_v9  ;;  %v16682_v38 = vunpack.c.l.b16 %v8611_v58 }
 0xdac   : > { %v8548_v25 = vrot.slane %v8546_v31, 1  ;;  %v8544_v49 = vshrl.u32 %v8467_v45, 16  ;;  %v8647_v9 = vunpack.c.l.b16 %v8467_v45 }
 0xdad   : > { %v8396_v17 = vor.u32 %v8394_v8, %v8393_v52  ;;  %v8293_v54 = vunpack.c.l.b16 %v8261_v15  ;;  %v8177_v41 = vadd.f32 %v8176_v57, %v8128_v36  ;;  %v16686_v43 = vpack.c.b16 %v16682_v38, %v16664_v14 }
 0xdae   : > { %v8549_v8 = vor.u32 %v8548_v25, %v8544_v49 }
 0xdaf   : > { %17659 = vst [vmem:[#allocation64_spill] sm:$0xff] %v16686_v43  ;;  %v8309_v10 = vpack.c.b16 %v8293_v54, %v8293_v54  ;;  %v8226_v6 = vadd.f32 %v8225_v16, %v8177_v41  ;;  %v8452_v1 = vsel %vm11631_vm2, 0, %v8396_v17  ;;  %9484 = vmatmul.bf16.gmra.mxu3 %v16686_v43 }
 0xdb0   : > { %v8468_v42 = vsel %vm15784_vm15, %v8452_v1, 0  ;;  %v8648_v61 = vunpack.c.l.b16 %v8549_v8 }
 0xdb1   : > { %v8398_v2 = vshrl.u32 %v8309_v10, 16  ;;  %v8246_v63 = vmax.f32 %v8226_v6, 0.0  ;;  %v8650_v58 = vunpack.c.l.b16 %v8468_v42  ;;  %v8612_v21 = vrot.slane %v8468_v42, 1 }
 0xdb2   : > { %v8553_v31 = vshll.u32 %v8468_v42, 16  ;;  %v8401_v15 = vshll.u32 %v8309_v10, 16  ;;  %v8551_v17 = vshrl.u32 %v8468_v42, 16  ;;  %v16703_v42 = vpack.c.b16 %v8647_v9, %v8644_v4 }
 0xdb3   : > { %v8400_v52 = vrot.slane %v8398_v2, 7  ;;  %v8262_v36 = vpack.c.bf16 %v8246_v63, %v8246_v63  ;;  %v8849_v41 = vpack.c.b16 %v8650_v58, %v8647_v9  ;;  %v16693_v57 = vunpack.c.l.b16 %v8612_v21 }
 0xdb4   : > { %v8555_v54 = vrot.slane %v8553_v31, 1  ;;  %v16705_v63 = vpack.c.b16 %v8648_v61, %v8645_v7 }
 0xdb5   : > { %v8403_v16 = vor.u32 %v8401_v15, %v8400_v52  ;;  %v8294_v0 = vunpack.c.l.b16 %v8262_v36  ;;  %9533 = vmatmul.bf16.gmra.mxu0 %v8849_v41 }
 0xdb6   : > { %v8556_v1 = vor.u32 %v8555_v54, %v8551_v17 }
 0xdb7   : > { %v8310_v6 = vpack.c.b16 %v8294_v0, %v8294_v0  ;;  %v8453_v25 = vsel %vm11631_vm2, 0, %v8403_v16 }
 0xdb8   : > { %v8469_v10 = vsel %vm15784_vm15, %v8453_v25, 0  ;;  %v8651_v49 = vunpack.c.l.b16 %v8556_v1 }
 0xdb9   : > { %v8405_v2 = vshrl.u32 %v8310_v6, 16  ;;  %v8613_v8 = vrot.slane %v8469_v10, 1  ;;  %v8560_v21 = vshll.u32 %v8469_v10, 16  ;;  %v8408_v0 = vshll.u32 %v8310_v6, 16 }
 0xdba   : > { %v16707_v31 = vpack.c.b16 %v8651_v49, %v8648_v61  ;;  %v8558_v9 = vshrl.u32 %v8469_v10, 16  ;;  %v8653_v41 = vunpack.c.l.b16 %v8469_v10  ;;  %v11492_v10 = vld [vmem:[%s17170_s7 + $0x1e8] sm:$0xff] }
 0xdbb   : > { %v8407_v52 = vrot.slane %v8405_v2, 7  ;;  %9386 = vmatmul.bf16.gmra.mxu1 %v16703_v42  ;;  %9435 = vmatmul.bf16.gmra.mxu2 %v16705_v63  ;;  %v16711_v15 = vunpack.c.l.b16 %v8613_v8  ;;  %v8562_v4 = vrot.slane %v8560_v21, 1 }
 0xdbd   : > { %v8410_v36 = vor.u32 %v8408_v0, %v8407_v52  ;;  %v16715_v24 = vpack.c.b16 %v16711_v15, %v16693_v57  ;;  %v8563_v54 = vor.u32 %v8562_v4, %v8558_v9  ;;  %v8179_v0 = vpop.f32.mrf.mxu3  ;;  %v16737_v4 = vpop.f32.mrf.mxu0 }
 0xdbf   : > { %17660 = vst [vmem:[#allocation61_spill] sm:$0xff] %v16715_v24  ;;  %v8454_v7 = vsel %vm11631_vm2, 0, %v8410_v36  ;;  %9489 = vmatmul.bf16.gmra.mxu3 %v16715_v24  ;;  %v8654_v21 = vunpack.c.l.b16 %v8563_v54  ;;  %v11470_v54 = vld [vmem:[%s17170_s7 + $0x138] sm:$0xff]  ;;  %v11463_v24 = vld [vmem:[%s17170_s7 + $0x100] sm:$0xff] }
 0xdc0   : > { %v16722_v61 = vsel %vm15784_vm15, %v8454_v7, 0  ;;  %v16739_v7 = vpack.c.b16 %v8653_v41, %v8650_v58  ;;  %9549 = vmatpush.bf16.msra.mxu1 %v11470_v54  ;;  %v11486_v58 = vld [vmem:[%s17170_s7 + $0x1b8] sm:$0xff]  ;;  %v11477_v54 = vld [vmem:[%s17170_s7 + $0x170] sm:$0xff] }
 0xdc1   : > { %v17280_v17 = vunpack.c.l.b16 %v16722_v61  ;;  %v8614_v16 = vrot.slane %v16722_v61, 1  ;;  %v8567_v1 = vshll.u32 %v16722_v61, 16  ;;  %v8565_v2 = vshrl.u32 %v16722_v61, 16  ;;  %9647 = vmatpush.bf16.msra.mxu3 %v11486_v58  ;;  %v11484_v58 = vld [vmem:[%s17170_s7 + $0x1a8] sm:$0xff] }
 0xdc2   : > { %v16741_v9 = vpack.c.b16 %v8654_v21, %v8651_v49  ;;  %v11469_v49 = vld [vmem:[%s17170_s7 + $0x130] sm:$0xff] }
 0xdc3   : > { %v8855_v6 = vpack.c.b16 %v17280_v17, %v8653_v41  ;;  %v16729_v25 = vunpack.c.l.b16 %v8614_v16  ;;  %v8569_v8 = vrot.slane %v8567_v1, 1  ;;  %v11478_v41 = vld [vmem:[%s17170_s7 + $0x178] sm:$0xff]  ;;  %v11485_v1 = vld [vmem:[%s17170_s7 + $0x1b0] sm:$0xff] }
 0xdc4   : > { %9550 = vmatpush.bf16.msra.mxu1 %v11469_v49  ;;  %9598 = vmatpush.bf16.msra.mxu2 %v11478_v41  ;;  %v11467_v49 = vld [vmem:[%s17170_s7 + $0x120] sm:$0xff]  ;;  %v11493_v41 = vld [vmem:[%s17170_s7 + $0x1f0] sm:$0xff] }
 0xdc5   : > { %9538 = vmatmul.bf16.gmra.mxu0 %v8855_v6  ;;  %v16732_v52 = vor.u32 %v8569_v8, %v8565_v2  ;;  %v16764_v6 = vpop.f32.mrf.mxu3  ;;  %v16766_v2 = vpop.f32.mrf.mxu0  ;;  %9648 = vmatpush.bf16.msra.mxu3 %v11485_v1  ;;  %v11468_v8 = vld [vmem:[%s17170_s7 + $0x128] sm:$0xff] }
 0xdc7   : > { %v17279_v36 = vunpack.c.l.b16 %v16732_v52 }
 0xdc8   : > { %9551 = vmatpush.bf16.msra.mxu1 %v11468_v8  ;;  %9599 = vmatpush.bf16.msra.mxu2 %v11477_v54  ;;  %v11476_v8 = vld [vmem:[%s17170_s7 + $0x168] sm:$0xff] }
 0xdc9   : > { %v16745_v16 = vpack.c.b16 %v17279_v36, %v8654_v21  ;;  %v11494_v21 = vld [vmem:[%s17170_s7 + $0x1f8] sm:$0xff]  ;;  %9649 = vmatpush.bf16.msra.mxu3 %v11484_v58 }
 0xdca   : > { %9696 = vmatpush.bf16.msrb.mxu0 %v11494_v21  ;;  %v11483_v21 = vld [vmem:[%s17170_s7 + $0x1a0] sm:$0xff]  ;;  %v11466_v58 = vld [vmem:[%s17170_s7 + $0x118] sm:$0xff] }
 0xdcb   : > { %9391 = vmatmul.bf16.gmra.mxu1 %v16739_v7  ;;  %9440 = vmatmul.bf16.gmra.mxu2 %v16741_v9 }
 0xdcc   : > { %9552 = vmatpush.bf16.msra.mxu1 %v11467_v49  ;;  %9600 = vmatpush.bf16.msra.mxu2 %v11476_v8  ;;  %v11465_v8 = vld [vmem:[%s17170_s7 + $0x110] sm:$0xff] }
 0xdcd   : > { %v16792_v54 = vpop.f32.mrf.mxu3  ;;  %v16800_v49 = vpop.f32.mrf.mxu0  ;;  %9650 = vmatpush.bf16.msra.mxu3 %v11483_v21 }
 0xdce   : > { %9697 = vmatpush.bf16.msrb.mxu0 %v11493_v41  ;;  %v11536_v41 = vld [vmem:[%s17169_s6] ss:$0 sm:$0xff] }
 0xdcf   : > { %v8033_v45 = vadd.f32 %v11536_v41, %v16355_v40  ;;  %v11491_v40 = vld [vmem:[%s17170_s7 + $0x1e0] sm:$0xff] }
 0xdd0   : > { %9553 = vmatpush.bf16.msra.mxu1 %v11466_v58  ;;  %9601 = vmatpush.bf16.msra.mxu2 %v11475_v28 }
 0xdd1   : > { %9651 = vmatpush.bf16.msra.mxu3 %v11482_v34  ;;  %v11481_v34 = vld [vmem:[%s17170_s7 + $0x190] sm:$0xff] }
 0xdd2   : > { %9698 = vmatpush.bf16.msrb.mxu0 %v11492_v10  ;;  %v11474_v10 = vld [vmem:[%s17170_s7 + $0x158] sm:$0xff] }
 0xdd4   : > { %9554 = vmatpush.bf16.msra.mxu1 %v11465_v8  ;;  %9602 = vmatpush.bf16.msra.mxu2 %v11474_v10 }
 0xdd5   : > { %9652 = vmatpush.bf16.msra.mxu3 %v11481_v34  ;;  %v16837_v58 = vpop.f32.mrf.mxu3 }
 0xdd6   : > { %9699 = vmatpush.bf16.msrb.mxu0 %v11491_v40  ;;  %17661 = vst [vmem:[#allocation42_spill] sm:$0xff] %v16837_v58  ;;  %v16840_v40 = vpop.f32.mrf.mxu0 }
 0xdd7   : > { %17662 = vst [vmem:[#allocation22_spill] sm:$0xff] %v16840_v40 }
 0xdd8   : > { %v8081_v1 = vpop.f32.mrf.mxu1 }
 0xdd9   : > { %v8082_v62 = vadd.f32 %v8081_v1, %v8033_v45  ;;  %v11464_v45 = vld [vmem:[%s17170_s7 + $0x108] sm:$0xff] }
 0xdda   : > { %v11480_v1 = vld [vmem:[%s17170_s7 + $0x188] sm:$0xff]  ;;  %9555 = vmatpush.bf16.msra.mxu1 %v11464_v45 }
 0xddb   : > { %9653 = vmatpush.bf16.msra.mxu3 %v11480_v1 }
 0xdde   : > { %v8130_v36 = vpop.f32.mrf.mxu2  ;;  %9556 = vmatpush.bf16.msra.mxu1 %v11463_v24  ;;  %v11488_v24 = vld [vmem:[%s17170_s7 + $0x1c8] sm:$0xff] }
 0xddf   : > { %v8131_v21 = vadd.f32 %v8130_v36, %v8082_v62  ;;  %v11490_v62 = vld [vmem:[%s17170_s7 + $0x1d8] sm:$0xff]  ;;  %v11473_v36 = vld [vmem:[%s17170_s7 + $0x150] sm:$0xff] }
 0xde0   : > { %v8083_v17 = vpop.f32.mrf.mxu1  ;;  %9700 = vmatpush.bf16.msrb.mxu0 %v11490_v62  ;;  %9603 = vmatpush.bf16.msra.mxu2 %v11473_v36  ;;  %v16858_v36 = vld [vmem:[%s17171_s8] ss:$0 sm:$0xff] }
 0xde1   : > { %v8180_v28 = vadd.f32 %v8179_v0, %v8131_v21  ;;  %v8035_v0 = vadd.f32 %v11536_v41, %v16377_v59  ;;  %v11489_v59 = vld [vmem:[%s17170_s7 + $0x1d0] sm:$0xff] }
 0xde3   : > { %v8229_v8 = vadd.f32 %v16737_v4, %v8180_v28  ;;  %v8084_v10 = vadd.f32 %v8083_v17, %v8035_v0  ;;  %v11472_v17 = vld [vmem:[%s17170_s7 + $0x148] sm:$0xff]  ;;  %v11479_v28 = vld [vmem:[%s17170_s7 + $0x180] sm:$0xff] }
 0xde4   : > { %9701 = vmatpush.bf16.msrb.mxu0 %v11489_v59  ;;  %9604 = vmatpush.bf16.msra.mxu2 %v11472_v17 }
 0xde5   : > { %v8247_v21 = vmax.f32 %v8229_v8, 0.0  ;;  %9654 = vmatpush.bf16.msra.mxu3 %v11479_v28  ;;  %v11471_v8 = vld [vmem:[%s17170_s7 + $0x140] sm:$0xff] }
 0xde6   : > { %v8132_v34 = vpop.f32.mrf.mxu2 }
 0xde7   : > { %v8263_v41 = vpack.c.bf16 %v8247_v21, %v8247_v21  ;;  %v8133_v43 = vadd.f32 %v8132_v34, %v8084_v10  ;;  %v16870_v34 = vpop.f32.mrf.mxu0 }
 0xde8   : > { %v9362_v4 = vpop.f32.mrf.mxu1  ;;  %9702 = vmatpush.bf16.msrb.mxu0 %v11488_v24  ;;  %17664 = vst [vmem:[#allocation77_spill] sm:$0xff] %v16870_v34  ;;  %9605 = vmatpush.bf16.msra.mxu2 %v11471_v8 }
 0xde9   : > { %v8295_v45 = vunpack.c.l.b16 %v8263_v41  ;;  %v8182_v62 = vadd.f32 %v16764_v6, %v8133_v43  ;;  %v16867_v43 = vpop.f32.mrf.mxu3  ;;  %v9363_v10 = vadd.f32 %v16858_v36, %v9362_v4  ;;  %v11487_v41 = vld [vmem:[%s17170_s7 + $0x1c0] sm:$0xff] }
 0xdea   : > { %17663 = vst [vmem:[#allocation3_spill] sm:$0xff] %v16867_v43 }
 0xdeb   : > { %v8311_v1 = vpack.c.b16 %v8295_v45, %v8295_v45  ;;  %v8231_v0 = vadd.f32 %v16766_v2, %v8182_v62 }
 0xdec   : > { %9703 = vmatpush.bf16.msrb.mxu0 %v11487_v41  ;;  %v17665_v41 = vunpack.c.l.b16 %v16722_v61 }
 0xded   : > { %v8412_v6 = vshrl.u32 %v8311_v1, 16  ;;  %v8248_v21 = vmax.f32 %v8231_v0, 0.0  ;;  %v8415_v17 = vshll.u32 %v8311_v1, 16 }
 0xdee   : > { %v9411_v59 = vpop.f32.mrf.mxu2 }
 0xdef   : > { %v8414_v2 = vrot.slane %v8412_v6, 7  ;;  %v8264_v28 = vpack.c.bf16 %v8248_v21, %v8248_v21  ;;  %v16875_v45 = vadd.f32 %v9411_v59, %v9363_v10 }
 0xdf0   : > { %v16877_v62 = vpop.f32.mrf.mxu1 }
 0xdf1   : > { %v8417_v24 = vor.u32 %v8415_v17, %v8414_v2  ;;  %v8296_v0 = vunpack.c.l.b16 %v8264_v28  ;;  %v16885_v21 = vpop.f32.mrf.mxu3  ;;  %v16893_v28 = vpop.f32.mrf.mxu0 }
 0xdf2   : > { %17666 = vst [vmem:[#allocation76_spill] sm:$0xff] %v16893_v28 }
 0xdf3   : > { %v8312_v30 = vpack.c.b16 %v8296_v0, %v8296_v0  ;;  %v8455_v4 = vsel %vm11631_vm2, 0, %v8417_v24 }
 0xdf4   : > { %v8471_v8 = vsel %vm15784_vm15, %v8455_v4, 0 }
 0xdf5   : > { %v8419_v18 = vshrl.u32 %v8312_v30, 16  ;;  %v8659_v40 = vunpack.c.l.b16 %v8471_v8  ;;  %v8615_v34 = vrot.slane %v8471_v8, 1  ;;  %v8574_v1 = vshll.u32 %v8471_v8, 16 }
 0xdf6   : > { %v16883_v6 = vpop.f32.mrf.mxu2  ;;  %v8422_v59 = vshll.u32 %v8312_v30, 16  ;;  %v8572_v0 = vshrl.u32 %v8471_v8, 16 }
 0xdf7   : > { %v8421_v10 = vrot.slane %v8419_v18, 7  ;;  %v16889_v2 = vpack.c.b16 %v8659_v40, %v17665_v41  ;;  %v16891_v17 = vunpack.c.l.b16 %v8615_v34  ;;  %v8576_v4 = vrot.slane %v8574_v1, 1 }
 0xdf8   : > { %v9367_v24 = vpop.f32.mrf.mxu1 }
 0xdf9   : > { %v8424_v58 = vor.u32 %v8422_v59, %v8421_v10  ;;  %9396 = vmatmul.bf16.gmra.mxu1 %v16889_v2  ;;  %v16898_v43 = vpack.c.b16 %v16891_v17, %v16729_v25  ;;  %v8577_v18 = vor.u32 %v8576_v4, %v8572_v0  ;;  %v9368_v8 = vadd.f32 %v16858_v36, %v9367_v24 }
 0xdfa   : > { %v17668_v0 = vunpack.c.l.b16 %v16732_v52 }
 0xdfb   : > { %17667 = vst [vmem:[#allocation45_spill] sm:$0xff] %v16898_v43  ;;  %9494 = vmatmul.bf16.gmra.mxu3 %v16898_v43  ;;  %v8456_v30 = vsel %vm11631_vm2, 0, %v8424_v58  ;;  %v8660_v61 = vunpack.c.l.b16 %v8577_v18  ;;  %v16925_v43 = vpop.f32.mrf.mxu3  ;;  %vm9886_vm2 = vcmask 1043459  }
 0xdfc   : > { %v16905_v34 = vsel %vm15784_vm15, %v8456_v30, 0 }
 0xdfd   : > { %v17286_v1 = vunpack.c.l.b16 %v16905_v34  ;;  %v8581_v10 = vshll.u32 %v16905_v34, 16  ;;  %v8616_v59 = vrot.slane %v16905_v34, 1  ;;  %v16913_v4 = vpack.c.b16 %v8660_v61, %v17668_v0  ;;  %v16929_v0 = vpop.f32.mrf.mxu0 }
 0xdfe   : > { %v9416_v41 = vpop.f32.mrf.mxu2  ;;  %v8579_v58 = vshrl.u32 %v16905_v34, 16 }
 0xdff   : > { %v16915_v48 = vadd.f32 %v9416_v41, %v9368_v8  ;;  %v8861_v13 = vpack.c.b16 %v17286_v1, %v8659_v40  ;;  %v8583_v18 = vrot.slane %v8581_v10, 1  ;;  %9445 = vmatmul.bf16.gmra.mxu2 %v16913_v4  ;;  %v16923_v30 = vunpack.c.l.b16 %v8616_v59 }
 0xe00   : > { %v16921_v24 = vpop.f32.mrf.mxu1 }
 0xe01   : > { %9543 = vmatmul.bf16.gmra.mxu0 %v8861_v13  ;;  %v16927_v52 = vor.u32 %v8583_v18, %v8579_v58 }
 0xe03   : > { %v17287_v40 = vunpack.c.l.b16 %v16927_v52  ;;  %v16941_v1 = vpop.f32.mrf.mxu3 }
 0xe04   : > { %17669 = vst [vmem:[#allocation75_spill] sm:$0xff] %v16941_v1 }
 0xe05   : > { %v16936_v10 = vpack.c.b16 %v17287_v40, %v8660_v61  ;;  %v16944_v13 = vpop.f32.mrf.mxu0  ;;  %v17671_v61 = vpack.c.b16 %v16444_v11, %v16428_v56 }
 0xe06   : > { %v16938_v41 = vpop.f32.mrf.mxu2  ;;  %17670 = vst [vmem:[#allocation73_spill] sm:$0xff] %v16944_v13 }
 0xe08   : > { %v9372_v59 = vpop.f32.mrf.mxu1 }
 0xe09   : > { %9557 = vmatmul.bf16.vlgmr.msra.gmra.mxu1 %v16463_v39  ;;  %v9373_v58 = vadd.f32 %v16858_v36, %v9372_v59 }
 0xe0b   : > { %9655 = vmatmul.bf16.vlgmr.msra.gmra.mxu3 %v16467_v50 }
 0xe0e   : > { %v9421_v18 = vpop.f32.mrf.mxu2 }
 0xe0f   : > { %v16947_v8 = vadd.f32 %v9421_v18, %v9373_v58  ;;  %9606 = vmatmul.bf16.vlgmr.msra.gmra.mxu2 %v17671_v61 }
 0xe10   : > { %v16952_v40 = vpop.f32.mrf.mxu1 }
 0xe11   : > { %9704 = vmatmul.bf16.vlgmr.msrb.gmra.mxu0 %v16490_v23  ;;  %v17675_v23 = vpack.c.b16 %v16492_v33, %v16465_v44 }
 0xe12   : > { %v9475_v39 = vpop.f32.mrf.mxu3  ;;  %v9524_v28 = vpop.f32.mrf.mxu0 }
 0xe16   : > { %v16955_v1 = vpop.f32.mrf.mxu2 }
 0xe17   : > { %17672 = vst [vmem:[#allocation72_spill] sm:$0xff] %v16955_v1 }
 0xe18   : > { %v9377_v50 = vpop.f32.mrf.mxu1 }
 0xe19   : > { %9562 = vmatmul.bf16.gmra.mxu1 %v16512_v20  ;;  %v9378_v58 = vadd.f32 %v16858_v36, %v9377_v50  ;;  %v17676_v50 = vunpack.c.l.b16 %v16522_v22 }
 0xe1a   : > { %v16959_v59 = vpop.f32.mrf.mxu3  ;;  %v16962_v18 = vpop.f32.mrf.mxu0 }
 0xe1b   : > { %9660 = vmatmul.bf16.gmra.mxu3 %v16516_v26  ;;  %17673 = vst [vmem:[#allocation4_spill] sm:$0xff] %v16959_v59 }
 0xe1c   : > { %17674 = vst [vmem:[#allocation70_spill] sm:$0xff] %v16962_v18  ;;  %v17677_v18 = vunpack.c.l.b16 %v16612_v12 }
 0xe1e   : > { %v9426_v56 = vpop.f32.mrf.mxu2  ;;  %v8829_v59 = vpack.c.b16 %v17677_v18, %v17676_v50 }
 0xe1f   : > { %v9427_v11 = vadd.f32 %v9426_v56, %v9378_v58  ;;  %9611 = vmatmul.bf16.gmra.mxu2 %v17675_v23 }
 0xe20   : > { %v16967_v61 = vpop.f32.mrf.mxu1 }
 0xe21   : > { %v9476_v13 = vadd.f32 %v9475_v39, %v9427_v11  ;;  %9709 = vmatmul.bf16.gmra.mxu0 %v16547_v19  ;;  %v8830_v19 = vpack.c.b16 %v16593_v46, %v16514_v5  ;;  %v17678_v5 = vunpack.c.l.b16 %v16607_v3 }
 0xe22   : > { %v9480_v26 = vpop.f32.mrf.mxu3  ;;  %v9529_v58 = vpop.f32.mrf.mxu0 }
 0xe23   : > { %v16970_v20 = vadd.f32 %v9524_v28, %v9476_v13  ;;  %v8837_v46 = vpack.c.b16 %v16041_v60, %v17678_v5 }
 0xe26   : > { %v16972_v1 = vpop.f32.mrf.mxu2 }
 0xe28   : > { %v9382_v56 = vpop.f32.mrf.mxu1 }
 0xe29   : > { %9567 = vmatmul.bf16.gmra.mxu1 %v8829_v59  ;;  %v9383_v44 = vadd.f32 %v16858_v36, %v9382_v56 }
 0xe2a   : > { %v9482_v13 = vpop.f32.mrf.mxu3  ;;  %v9531_v22 = vpop.f32.mrf.mxu0 }
 0xe2b   : > { %9665 = vmatmul.bf16.gmra.mxu3 %v16632_v51 }
 0xe2e   : > { %v9431_v33 = vpop.f32.mrf.mxu2 }
 0xe2f   : > { %v9432_v28 = vadd.f32 %v9431_v33, %v9383_v44  ;;  %9616 = vmatmul.bf16.gmra.mxu2 %v8830_v19  ;;  %v17679_v19 = vunpack.c.l.b16 %v16622_v55  ;;  %v11501_v55 = vld [vmem:[%s17170_s7 + $0x230] sm:$0xff] }
 0xe30   : > { %v9384_v39 = vpop.f32.mrf.mxu1 }
 0xe31   : > { %v9481_v11 = vadd.f32 %v9480_v26, %v9432_v28  ;;  %9714 = vmatmul.bf16.gmra.mxu0 %v16636_v27  ;;  %v9385_v59 = vadd.f32 %v16858_v36, %v9384_v39  ;;  %v8838_v28 = vpack.c.b16 %v16041_v60, %v17679_v19 }
 0xe32   : > { %v9485_v56 = vpop.f32.mrf.mxu3  ;;  %v9534_v27 = vpop.f32.mrf.mxu0 }
 0xe33   : > { %v16983_v12 = vadd.f32 %v9529_v58, %v9481_v11 }
 0xe36   : > { %v9433_v18 = vpop.f32.mrf.mxu2 }
 0xe37   : > { %v9434_v51 = vadd.f32 %v9433_v18, %v9385_v59 }
 0xe38   : > { %v9387_v23 = vpop.f32.mrf.mxu1 }
 0xe39   : > { %v9483_v50 = vadd.f32 %v9482_v13, %v9434_v51  ;;  %9572 = vmatmul.bf16.gmra.mxu1 %v16643_v32  ;;  %v9388_v58 = vadd.f32 %v16858_v36, %v9387_v23  ;;  %v17680_v32 = vpack.c.b16 %v16619_v47, %v16591_v35  ;;  %v11502_v35 = vld [vmem:[%s17170_s7 + $0x238] sm:$0xff] }
 0xe3a   : > { %v9487_v11 = vpop.f32.mrf.mxu3  ;;  %v9536_v59 = vpop.f32.mrf.mxu0  ;;  %9745 = vmatpush.bf16.msrb.mxu1 %v11502_v35 }
 0xe3b   : > { %9670 = vmatmul.bf16.gmra.mxu3 %v8837_v46  ;;  %v16990_v26 = vadd.f32 %v9531_v22, %v9483_v50 }
 0xe3e   : > { %v9436_v44 = vpop.f32.mrf.mxu2  ;;  %9746 = vmatpush.bf16.msrb.mxu1 %v11501_v55  ;;  %v17685_v55 = vunpack.c.l.b16 %v16927_v52 }
 0xe3f   : > { %v9437_v33 = vadd.f32 %v9436_v44, %v9388_v58  ;;  %9621 = vmatmul.bf16.gmra.mxu2 %v17680_v32  ;;  %v17681_v44 = vpack.c.b16 %v16664_v14, %v16647_v37  ;;  %v11499_v37 = vld [vmem:[%s17170_s7 + $0x220] sm:$0xff] }
 0xe40   : > { %v9389_v3 = vpop.f32.mrf.mxu1 }
 0xe41   : > { %v9486_v13 = vadd.f32 %v9485_v56, %v9437_v33  ;;  %9719 = vmatmul.bf16.gmra.mxu0 %v8838_v28  ;;  %v9390_v22 = vadd.f32 %v16858_v36, %v9389_v3 }
 0xe42   : > { %v9490_v56 = vpop.f32.mrf.mxu3 }
 0xe43   : > { %v16999_v39 = vadd.f32 %v9534_v27, %v9486_v13 }
 0xe46   : > { %v9438_v18 = vpop.f32.mrf.mxu2 }
 0xe47   : > { %v9439_v51 = vadd.f32 %v9438_v18, %v9390_v22  ;;  %v11498_v22 = vld [vmem:[%s17170_s7 + $0x218] sm:$0xff]  ;;  %v11497_v18 = vld [vmem:[%s17170_s7 + $0x210] sm:$0xff] }
 0xe48   : > { %v9392_v23 = vpop.f32.mrf.mxu1 }
 0xe49   : > { %v9488_v50 = vadd.f32 %v9487_v11, %v9439_v51  ;;  %9577 = vmatmul.bf16.gmra.mxu1 %v16680_v53  ;;  %v9393_v46 = vadd.f32 %v16858_v36, %v9392_v23  ;;  %v9539_v53 = vpop.f32.mrf.mxu0  ;;  %v17682_v51 = vpack.c.b16 %v16693_v57, %v16682_v38  ;;  %v17683_v38 = vpack.c.b16 %v16729_v25, %v16711_v15 }
 0xe4a   : > { %v9492_v14 = vpop.f32.mrf.mxu3  ;;  %v17686_v15 = vpack.c.b16 %v16923_v30, %v16891_v17  ;;  %v9461_v25 = vadd.f32 %v16792_v54, %v16875_v45  ;;  %v9365_v45 = vadd.f32 %v16858_v36, %v16877_v62 }
 0xe4b   : > { %9675 = vmatmul.bf16.gmra.mxu3 %v16703_v42  ;;  %v17010_v5 = vadd.f32 %v9536_v59, %v9488_v50  ;;  %v11500_v42 = vld [vmem:[%s17170_s7 + $0x228] sm:$0xff] }
 0xe4c   : > { %9747 = vmatpush.bf16.msrb.mxu1 %v11500_v42 }
 0xe4e   : > { %v9441_v27 = vpop.f32.mrf.mxu2 }
 0xe4f   : > { %v9442_v58 = vadd.f32 %v9441_v27, %v9393_v46  ;;  %9626 = vmatmul.bf16.gmra.mxu2 %v17681_v44  ;;  %v9510_v46 = vadd.f32 %v16800_v49, %v9461_v25 }
 0xe50   : > { %v9394_v19 = vpop.f32.mrf.mxu1  ;;  %9748 = vmatpush.bf16.msrb.mxu1 %v11499_v37  ;;  %v17687_v37 = vld [vmem:[#allocation3_spill] sm:$0xff] }
 0xe51   : > { %v9491_v33 = vadd.f32 %v9490_v56, %v9442_v58  ;;  %9724 = vmatmul.bf16.gmra.mxu0 %v16705_v63  ;;  %v9395_v32 = vadd.f32 %v16858_v36, %v9394_v19  ;;  %v9541_v63 = vpop.f32.mrf.mxu0 }
 0xe53   : > { %v17020_v28 = vadd.f32 %v9539_v53, %v9491_v33 }
 0xe54   : > { %9749 = vmatpush.bf16.msrb.mxu1 %v11498_v22 }
 0xe56   : > { %v9443_v3 = vpop.f32.mrf.mxu2 }
 0xe57   : > { %v9444_v13 = vadd.f32 %v9443_v3, %v9395_v32  ;;  %v9414_v3 = vadd.f32 %v16883_v6, %v9365_v45  ;;  %v17691_v6 = vld [vmem:[#allocation66_spill] sm:$0xff]  ;;  %v17692_v45 = vld [vmem:[#allocation76_spill] sm:$0xff] }
 0xe58   : > { %9750 = vmatpush.bf16.msrb.mxu1 %v11497_v18  ;;  %v17689_v18 = vld [vmem:[#allocation77_spill] sm:$0xff] }
 0xe59   : > { %v9493_v11 = vadd.f32 %v9492_v14, %v9444_v13  ;;  %9582 = vmatmul.bf16.gmra.mxu1 %v16707_v31  ;;  %v11496_v31 = vld [vmem:[%s17170_s7 + $0x208] sm:$0xff]  ;;  %v9466_v14 = vadd.f32 %v17687_v37, %v16915_v48  ;;  %v17694_v37 = vld [vmem:[#allocation72_spill] sm:$0xff] }
 0xe5b   : > { %9680 = vmatmul.bf16.gmra.mxu3 %v16739_v7  ;;  %v17031_v59 = vadd.f32 %v9541_v63, %v9493_v11  ;;  %v11495_v7 = vld [vmem:[%s17170_s7 + $0x200] sm:$0xff] }
 0xe5c   : > { %9751 = vmatpush.bf16.msrb.mxu1 %v11496_v31 }
 0xe5f   : > { %9631 = vmatmul.bf16.gmra.mxu2 %v17682_v51  ;;  %v9515_v51 = vadd.f32 %v17689_v18, %v9466_v14 }
 0xe60   : > { %9752 = vmatpush.bf16.msrb.mxu1 %v11495_v7 }
 0xe61   : > { %9729 = vmatmul.bf16.gmra.mxu0 %v16741_v9  ;;  %v17684_v9 = vunpack.c.l.b16 %v16905_v34 }
 0xe63   : > { %v8864_v23 = vpack.c.b16 %v16041_v60, %v17684_v9  ;;  %v17690_v9 = vld [vmem:[#allocation22_spill] sm:$0xff] }
 0xe69   : > { %9587 = vmatmul.bf16.gmra.mxu1 %v16745_v16 }
 0xe6b   : > { %9685 = vmatmul.bf16.gmra.mxu3 %v16889_v2  ;;  %v8865_v2 = vpack.c.b16 %v16041_v60, %v17685_v55  ;;  %v9370_v55 = vadd.f32 %v16858_v36, %v16921_v24 }
 0xe6f   : > { %9636 = vmatmul.bf16.gmra.mxu2 %v17683_v38 }
 0xe71   : > { %9734 = vmatmul.bf16.gmra.mxu0 %v16913_v4 }
 0xe76   : > { %v9397_v57 = vpop.f32.mrf.mxu1 }
 0xe77   : > { %v9398_v34 = vadd.f32 %v16858_v36, %v9397_v57 }
 0xe79   : > { %9592 = vmatmul.bf16.gmra.mxu1 %v16936_v10 }
 0xe7b   : > { %9690 = vmatmul.bf16.gmra.mxu3 %v8864_v23 }
 0xe7e   : > { %v9399_v50 = vpop.f32.mrf.mxu1  ;;  %v9495_v35 = vpop.f32.mrf.mxu3 }
 0xe7f   : > { %v9544_v16 = vpop.f32.mrf.mxu0  ;;  %9641 = vmatmul.bf16.gmra.mxu2 %v17686_v15  ;;  %v9400_v17 = vadd.f32 %v16858_v36, %v9399_v50 }
 0xe81   : > { %9739 = vmatmul.bf16.gmra.mxu0 %v8865_v2 }
 0xe82   : > { %v9446_v4 = vpop.f32.mrf.mxu2 }
 0xe83   : > { %v9447_v10 = vadd.f32 %v9446_v4, %v9398_v34  ;;  %v9419_v4 = vadd.f32 %v16938_v41, %v9370_v55  ;;  %v17693_v41 = vld [vmem:[#allocation68_spill] sm:$0xff]  ;;  %v9380_v55 = vadd.f32 %v16858_v36, %v16967_v61 }
 0xe85   : > { %v9496_v56 = vadd.f32 %v9495_v35, %v9447_v10 }
 0xe86   : > { %v9497_v27 = vpop.f32.mrf.mxu3  ;;  %v9558_v58 = vpop.f32.mrf.mxu1 }
 0xe87   : > { %v9546_v52 = vpop.f32.mrf.mxu0  ;;  %v9559_v53 = vadd.f32 %v9558_v58, %v9510_v46  ;;  %v17066_v44 = vadd.f32 %v9544_v16, %v9496_v56  ;;  %v9471_v46 = vadd.f32 %v16925_v43, %v16947_v8 }
 0xe89   : > { %9753 = vmatmul.bf16.vlgmr.msrb.gmra.mxu1 %v16471_v29  ;;  %v17688_v29 = vld [vmem:[#allocation42_spill] sm:$0xff] }
 0xe8a   : > { %v9448_v33 = vpop.f32.mrf.mxu2  ;;  %v9463_v63 = vadd.f32 %v17688_v29, %v9414_v3 }
 0xe8b   : > { %v9449_v54 = vadd.f32 %v9448_v33, %v9400_v17 }
 0xe8c   : > { %v9512_v23 = vadd.f32 %v17690_v9, %v9463_v63 }
 0xe8d   : > { %v9498_v42 = vadd.f32 %v9497_v27, %v9449_v54  ;;  %v9468_v27 = vadd.f32 %v16885_v21, %v9419_v4  ;;  %v9375_v21 = vadd.f32 %v16858_v36, %v16952_v40  ;;  %v17696_v40 = vld [vmem:[#allocation73_spill] sm:$0xff] }
 0xe8e   : > { %v9560_v19 = vpop.f32.mrf.mxu1  ;;  %v9656_v32 = vpop.f32.mrf.mxu3 }
 0xe8f   : > { %v9705_v49 = vpop.f32.mrf.mxu0  ;;  %v17073_v13 = vadd.f32 %v9546_v52, %v9498_v42  ;;  %v9561_v35 = vadd.f32 %v9560_v19, %v9512_v23  ;;  %v9520_v52 = vadd.f32 %v16929_v0, %v9471_v46  ;;  %v9517_v42 = vadd.f32 %v17692_v45, %v9468_v27 }
 0xe90   : > { %v9424_v14 = vadd.f32 %v17694_v37, %v9375_v21 }
 0xe92   : > { %v9607_v11 = vpop.f32.mrf.mxu2 }
 0xe93   : > { %v9608_v22 = vadd.f32 %v9607_v11, %v9559_v53 }
 0xe95   : > { %v9657_v31 = vadd.f32 %v9656_v32, %v9608_v22  ;;  %v17695_v22 = vld [vmem:[#allocation75_spill] sm:$0xff] }
 0xe96   : > { %v9563_v7 = vpop.f32.mrf.mxu1  ;;  %v9658_v62 = vpop.f32.mrf.mxu3  ;;  %v9473_v18 = vadd.f32 %v17695_v22, %v9424_v14 }
 0xe97   : > { %v9564_v38 = vadd.f32 %v9563_v7, %v9515_v51  ;;  %v9707_v57 = vpop.f32.mrf.mxu0  ;;  %v17080_v50 = vadd.f32 %v9705_v49, %v9657_v31 }
 0xe99   : > { %9758 = vmatmul.bf16.gmra.mxu1 %v17691_v6 }
 0xe9a   : > { %v9609_v16 = vpop.f32.mrf.mxu2 }
 0xe9b   : > { %v9610_v48 = vadd.f32 %v9609_v16, %v9561_v35 }
 0xe9d   : > { %v9659_v2 = vadd.f32 %v9658_v62, %v9610_v48 }
 0xe9e   : > { %v9565_v15 = vpop.f32.mrf.mxu1  ;;  %v9661_v25 = vpop.f32.mrf.mxu3 }
 0xe9f   : > { %v9710_v34 = vpop.f32.mrf.mxu0  ;;  %v17086_v10 = vadd.f32 %v9707_v57, %v9659_v2  ;;  %v9566_v32 = vadd.f32 %v9565_v15, %v9517_v42  ;;  %v9522_v57 = vadd.f32 %v17696_v40, %v9473_v18 }
 0xea2   : > { %v9612_v56 = vpop.f32.mrf.mxu2 }
 0xea3   : > { %v9613_v58 = vadd.f32 %v9612_v56, %v9564_v38  ;;  %v8839_v38 = vpack.c.b16 %v16041_v60, %v16619_v47  ;;  %v17697_v47 = vld [vmem:[#allocation4_spill] sm:$0xff] }
 0xea5   : > { %v9662_v53 = vadd.f32 %v9661_v25, %v9613_v58  ;;  %v9429_v25 = vadd.f32 %v16972_v1, %v9380_v55 }
 0xea6   : > { %v9568_v17 = vpop.f32.mrf.mxu1  ;;  %v9663_v24 = vpop.f32.mrf.mxu3 }
 0xea7   : > { %v9569_v33 = vadd.f32 %v9568_v17, %v9520_v52  ;;  %v9712_v54 = vpop.f32.mrf.mxu0  ;;  %v17093_v19 = vadd.f32 %v9710_v34, %v9662_v53  ;;  %v9478_v46 = vadd.f32 %v17697_v47, %v9429_v25  ;;  %v17698_v17 = vld [vmem:[#allocation70_spill] sm:$0xff] }
 0xea9   : > { %9763 = vmatmul.bf16.gmra.mxu1 %v17693_v41 }
 0xeaa   : > { %v9614_v49 = vpop.f32.mrf.mxu2 }
 0xeab   : > { %v9615_v43 = vadd.f32 %v9614_v49, %v9566_v32 }
 0xead   : > { %v9664_v8 = vadd.f32 %v9663_v24, %v9615_v43  ;;  %v9527_v24 = vadd.f32 %v17698_v17, %v9478_v46 }
 0xeae   : > { %v9570_v3 = vpop.f32.mrf.mxu1  ;;  %v9666_v0 = vpop.f32.mrf.mxu3 }
 0xeaf   : > { %v17099_v11 = vadd.f32 %v9712_v54, %v9664_v8  ;;  %v9715_v29 = vpop.f32.mrf.mxu0  ;;  %v9571_v6 = vadd.f32 %v9570_v3, %v9522_v57  ;;  %v17699_v54 = vld [vmem:[#allocation64_spill] sm:$0xff]  ;;  %v17700_v3 = vld [vmem:[#allocation61_spill] sm:$0xff] }
 0xeb2   : > { %v9617_v63 = vpop.f32.mrf.mxu2 }
 0xeb3   : > { %v9618_v51 = vadd.f32 %v9617_v63, %v9569_v33 }
 0xeb5   : > { %v9667_v31 = vadd.f32 %v9666_v0, %v9618_v51 }
 0xeb6   : > { %v9573_v7 = vpop.f32.mrf.mxu1  ;;  %v9668_v23 = vpop.f32.mrf.mxu3 }
 0xeb7   : > { %v9574_v62 = vadd.f32 %v9573_v7, %v16970_v20  ;;  %v9716_v9 = vadd.f32 %v9715_v29, %v9667_v31  ;;  %v9717_v35 = vpop.f32.mrf.mxu0  ;;  %v17701_v29 = vld [vmem:[#allocation45_spill] sm:$0xff] }
 0xeb9   : > { %9768 = vmatmul.bf16.gmra.mxu1 %v8839_v38 }
 0xeba   : > { %v9619_v16 = vpop.f32.mrf.mxu2 }
 0xebb   : > { %v9620_v48 = vadd.f32 %v9619_v16, %v9571_v6 }
 0xebd   : > { %v9669_v2 = vadd.f32 %v9668_v23, %v9620_v48 }
 0xebe   : > { %v9575_v15 = vpop.f32.mrf.mxu1  ;;  %v9671_v34 = vpop.f32.mrf.mxu3 }
 0xebf   : > { %v9718_v20 = vadd.f32 %v9717_v35, %v9669_v2  ;;  %v9720_v27 = vpop.f32.mrf.mxu0  ;;  %v9576_v36 = vadd.f32 %v9575_v15, %v9527_v24 }
 0xec2   : > { %v9622_v4 = vpop.f32.mrf.mxu2 }
 0xec3   : > { %v9623_v56 = vadd.f32 %v9622_v4, %v9574_v62 }
 0xec5   : > { %v9672_v58 = vadd.f32 %v9671_v34, %v9623_v56 }
 0xec6   : > { %v9578_v52 = vpop.f32.mrf.mxu1  ;;  %v9673_v1 = vpop.f32.mrf.mxu3 }
 0xec7   : > { %v9579_v53 = vadd.f32 %v9578_v52, %v16983_v12  ;;  %v9721_v33 = vadd.f32 %v9720_v27, %v9672_v58  ;;  %v9722_v32 = vpop.f32.mrf.mxu0 }
 0xec9   : > { %9773 = vmatmul.bf16.gmra.mxu1 %v17699_v54 }
 0xeca   : > { %v9624_v61 = vpop.f32.mrf.mxu2 }
 0xecb   : > { %v9625_v45 = vadd.f32 %v9624_v61, %v9576_v36 }
 0xecd   : > { %v9674_v42 = vadd.f32 %v9673_v1, %v9625_v45 }
 0xece   : > { %v9580_v41 = vpop.f32.mrf.mxu1  ;;  %v9676_v6 = vpop.f32.mrf.mxu3 }
 0xecf   : > { %v9581_v49 = vadd.f32 %v9580_v41, %v16990_v26  ;;  %v9723_v43 = vadd.f32 %v9722_v32, %v9674_v42 }
 0xed6   : > { %v9583_v21 = vpop.f32.mrf.mxu1 }
 0xed7   : > { %v9584_v8 = vadd.f32 %v9583_v21, %v16999_v39  ;;  %v8866_v39 = vpack.c.b16 %v16041_v60, %v16923_v30  ;;  %v9627_v30 = vpop.f32.mrf.mxu2 }
 0xed8   : > { %v9628_v55 = vadd.f32 %v9627_v30, %v9579_v53 }
 0xed9   : > { %9778 = vmatmul.bf16.gmra.mxu1 %v17700_v3 }
 0xeda   : > { %v9677_v25 = vadd.f32 %v9676_v6, %v9628_v55 }
 0xede   : > { %v9585_v12 = vpop.f32.mrf.mxu1 }
 0xedf   : > { %v9586_v0 = vadd.f32 %v9585_v12, %v17010_v5  ;;  %v9629_v35 = vpop.f32.mrf.mxu2 }
 0xee6   : > { %v9588_v37 = vpop.f32.mrf.mxu1 }
 0xee7   : > { %v17118_v14 = vadd.f32 %v9588_v37, %v17020_v28  ;;  %v9632_v2 = vpop.f32.mrf.mxu2 }
 0xee8   : > { %v9633_v24 = vadd.f32 %v9632_v2, %v9584_v8 }
 0xee9   : > { %9783 = vmatmul.bf16.gmra.mxu1 %v17701_v29 }
 0xeee   : > { %v9590_v63 = vpop.f32.mrf.mxu1 }
 0xeef   : > { %v17122_v22 = vadd.f32 %v9590_v63, %v17031_v59  ;;  %v9634_v56 = vpop.f32.mrf.mxu2 }
 0xef0   : > { %v9635_v3 = vadd.f32 %v9634_v56, %v9586_v0 }
 0xef6   : > { %v9593_v26 = vpop.f32.mrf.mxu1 }
 0xef7   : > { %v17125_v18 = vadd.f32 %v9593_v26, %v17066_v44 }
 0xef9   : > { %9788 = vmatmul.bf16.gmra.mxu1 %v8866_v39 }
 0xefe   : > { %v9595_v51 = vpop.f32.mrf.mxu1 }
 0xeff   : > { %v17130_v5 = vadd.f32 %v9595_v51, %v17073_v13 }
 0xf06   : > { %v9754_v28 = vpop.f32.mrf.mxu1 }
 0xf07   : > { %v9755_v31 = vadd.f32 %v9754_v28, %v17080_v50  ;;  %v9725_v50 = vpop.f32.mrf.mxu0 }
 0xf08   : > { %v9726_v4 = vadd.f32 %v9725_v50, %v9677_v25 }
 0xf09   : > { %v9794_v27 = vmax.f32 %v9755_v31, 0.0 }
 0xf0e   : > { %v9756_v7 = vpop.f32.mrf.mxu1 }
 0xf0f   : > { %v9757_v62 = vadd.f32 %v9756_v7, %v17086_v10  ;;  %v9678_v10 = vpop.f32.mrf.mxu3 }
 0xf11   : > { %v9795_v42 = vmax.f32 %v9757_v62, 0.0 }
 0xf16   : > { %v9759_v59 = vpop.f32.mrf.mxu1 }
 0xf17   : > { %v9760_v38 = vadd.f32 %v9759_v59, %v17093_v19  ;;  %v9681_v34 = vpop.f32.mrf.mxu3 }
 0xf18   : > { %v9682_v1 = vadd.f32 %v9681_v34, %v9633_v24 }
 0xf19   : > { %v9796_v28 = vmax.f32 %v9760_v38, 0.0 }
 0xf1e   : > { %v9761_v40 = vpop.f32.mrf.mxu1 }
 0xf1f   : > { %v17136_v44 = vadd.f32 %v9761_v40, %v17099_v11  ;;  %v9727_v11 = vpop.f32.mrf.mxu0  ;;  %v9683_v36 = vpop.f32.mrf.mxu3 }
 0xf20   : > { %v9684_v39 = vadd.f32 %v9683_v36, %v9635_v3 }
 0xf21   : > { %v9797_v38 = vmax.f32 %v17136_v44, 0.0 }
 0xf26   : > { %v9764_v57 = vpop.f32.mrf.mxu1 }
 0xf27   : > { %v17138_v60 = vadd.f32 %v9764_v57, %v9716_v9  ;;  %v9630_v9 = vadd.f32 %v9629_v35, %v9581_v49  ;;  %v9730_v52 = vpop.f32.mrf.mxu0  ;;  %v9637_v49 = vpop.f32.mrf.mxu2 }
 0xf28   : > { %v9731_v29 = vadd.f32 %v9730_v52, %v9682_v1  ;;  %v9686_v51 = vpop.f32.mrf.mxu3  ;;  %v9638_v57 = vadd.f32 %v9637_v49, %v17118_v14 }
 0xf29   : > { %v9679_v46 = vadd.f32 %v9678_v10, %v9630_v9  ;;  %v9798_v36 = vmax.f32 %v17138_v60, 0.0 }
 0xf2a   : > { %v9687_v2 = vadd.f32 %v9686_v51, %v9638_v57 }
 0xf2b   : > { %v9728_v53 = vadd.f32 %v9727_v11, %v9679_v46 }
 0xf2e   : > { %v9766_v23 = vpop.f32.mrf.mxu1 }
 0xf2f   : > { %v17140_v13 = vadd.f32 %v9766_v23, %v9718_v20  ;;  %v9732_v21 = vpop.f32.mrf.mxu0  ;;  %v9639_v30 = vpop.f32.mrf.mxu2 }
 0xf30   : > { %v9733_v35 = vadd.f32 %v9732_v21, %v9684_v39  ;;  %v9640_v46 = vadd.f32 %v9639_v30, %v17122_v22 }
 0xf31   : > { %v9799_v60 = vmax.f32 %v17140_v13, 0.0 }
 0xf36   : > { %v9769_v16 = vpop.f32.mrf.mxu1 }
 0xf37   : > { %v17142_v48 = vadd.f32 %v9769_v16, %v9721_v33  ;;  %v9735_v50 = vpop.f32.mrf.mxu0 }
 0xf39   : > { %v9800_v13 = vmax.f32 %v17142_v48, 0.0 }
 0xf3e   : > { %v9771_v19 = vpop.f32.mrf.mxu1 }
 0xf3f   : > { %v17144_v15 = vadd.f32 %v9771_v19, %v9723_v43  ;;  %v9737_v44 = vpop.f32.mrf.mxu0 }
 0xf46   : > { %v9774_v47 = vpop.f32.mrf.mxu1 }
 0xf47   : > { %v9775_v20 = vadd.f32 %v9774_v47, %v9726_v4  ;;  %v9688_v4 = vpop.f32.mrf.mxu3 }
 0xf49   : > { %v9802_v58 = vmax.f32 %v9775_v20, 0.0 }
 0xf4b   : > { %v9810_v17 = vsub.f32 %v9794_v27, %v9802_v58  ;;  %v9736_v58 = vadd.f32 %v9735_v50, %v9687_v2 }
 0xf4d   : > { %v9818_v33 = vand.u32 2147483647, %v9810_v17  ;;  %v9642_v17 = vpop.f32.mrf.mxu2 }
 0xf4e   : > { %v9776_v54 = vpop.f32.mrf.mxu1  ;;  %v9643_v22 = vadd.f32 %v9642_v17, %v17125_v18 }
 0xf4f   : > { %v9826_v61 = vrot.slane %v9818_v33, 4  ;;  %v9777_v45 = vadd.f32 %v9776_v54, %v9728_v53  ;;  %v9689_v54 = vadd.f32 %v9688_v4, %v9640_v46  ;;  %v9691_v49 = vpop.f32.mrf.mxu3  ;;  %v9801_v46 = vmax.f32 %v17144_v15, 0.0 }
 0xf51   : > { %v9827_v41 = vadd.f32 %v9826_v61, %v9818_v33  ;;  %v9803_v32 = vmax.f32 %v9777_v45, 0.0  ;;  %v9738_v3 = vadd.f32 %v9737_v44, %v9689_v54 }
 0xf53   : > { %v9811_v43 = vsub.f32 %v9795_v42, %v9803_v32  ;;  %v9828_v12 = vrot.slane %v9827_v41, 2 }
 0xf55   : > { %v9819_v37 = vand.u32 2147483647, %v9811_v43  ;;  %v9829_v31 = vadd.f32 %v9828_v12, %v9827_v41 }
 0xf56   : > { %v9779_v63 = vpop.f32.mrf.mxu1 }
 0xf57   : > { %v9832_v26 = vrot.slane %v9819_v37, 4  ;;  %v9780_v8 = vadd.f32 %v9779_v63, %v9731_v29  ;;  %v9830_v23 = vrot.slane %v9829_v31, 1 }
 0xf59   : > { %v9833_v7 = vadd.f32 %v9832_v26, %v9819_v37  ;;  %v9804_v59 = vmax.f32 %v9780_v8, 0.0  ;;  %v9831_v11 = vadd.f32 %v9830_v23, %v9829_v31  ;;  %v9692_v26 = vadd.f32 %v9691_v49, %v9643_v22  ;;  %v9644_v8 = vpop.f32.mrf.mxu2  ;;  %v9740_v31 = vpop.f32.mrf.mxu0 }
 0xf5b   : > { %v9834_v40 = vrot.slane %v9833_v7, 2  ;;  %v9812_v62 = vsub.f32 %v9796_v28, %v9804_v59  ;;  %v9741_v30 = vadd.f32 %v9740_v31, %v9692_v26 }
 0xf5d   : > { %v9835_v6 = vadd.f32 %v9834_v40, %v9833_v7  ;;  %v9820_v0 = vand.u32 2147483647, %v9812_v62  ;;  %v9645_v40 = vadd.f32 %v9644_v8, %v17130_v5 }
 0xf5e   : > { %v9781_v16 = vpop.f32.mrf.mxu1 }
 0xf5f   : > { %v9836_v10 = vrot.slane %v9835_v6, 1  ;;  %v9838_v55 = vrot.slane %v9820_v0, 4  ;;  %v9782_v19 = vadd.f32 %v9781_v16, %v9733_v35 }
 0xf61   : > { %v9837_v25 = vadd.f32 %v9836_v10, %v9835_v6  ;;  %v9839_v9 = vadd.f32 %v9838_v55, %v9820_v0  ;;  %v9805_v34 = vmax.f32 %v9782_v19, 0.0  ;;  %v9693_v6 = vpop.f32.mrf.mxu3 }
 0xf62   : > { %v9694_v16 = vadd.f32 %v9693_v6, %v9645_v40 }
 0xf63   : > { %v9883_v14 = vsel %vm9882_vm0, %v9837_v25, %v9831_v11  ;;  %v9840_v47 = vrot.slane %v9839_v9, 2  ;;  %v9813_v20 = vsub.f32 %v9797_v38, %v9805_v34  ;;  %v9742_v25 = vpop.f32.mrf.mxu0 }
 0xf64   : > { %v9743_v34 = vadd.f32 %v9742_v25, %v9694_v16 }
 0xf65   : > { %v9841_v56 = vadd.f32 %v9840_v47, %v9839_v9  ;;  %v9821_v27 = vand.u32 2147483647, %v9813_v20 }
 0xf66   : > { %v9784_v52 = vpop.f32.mrf.mxu1 }
 0xf67   : > { %v9842_v24 = vrot.slane %v9841_v56, 1  ;;  %v9844_v33 = vrot.slane %v9821_v27, 4  ;;  %v9785_v53 = vadd.f32 %v9784_v52, %v9736_v58 }
 0xf69   : > { %v9843_v61 = vadd.f32 %v9842_v24, %v9841_v56  ;;  %v9845_v45 = vadd.f32 %v9844_v33, %v9821_v27  ;;  %v9806_v1 = vmax.f32 %v9785_v53, 0.0 }
 0xf6b   : > { %v9885_v42 = vsel %vm9884_vm1, %v9843_v61, %v9883_v14  ;;  %v9846_v41 = vrot.slane %v9845_v45, 2  ;;  %v9814_v32 = vsub.f32 %v9798_v36, %v9806_v1 }
 0xf6d   : > { %v9847_v43 = vadd.f32 %v9846_v41, %v9845_v45  ;;  %v9822_v21 = vand.u32 2147483647, %v9814_v32 }
 0xf6e   : > { %v9786_v12 = vpop.f32.mrf.mxu1 }
 0xf6f   : > { %v9848_v37 = vrot.slane %v9847_v43, 1  ;;  %v9850_v29 = vrot.slane %v9822_v21, 4  ;;  %v9787_v63 = vadd.f32 %v9786_v12, %v9738_v3 }
 0xf71   : > { %v9849_v39 = vadd.f32 %v9848_v37, %v9847_v43  ;;  %v9851_v51 = vadd.f32 %v9850_v29, %v9822_v21  ;;  %v9807_v28 = vmax.f32 %v9787_v63, 0.0 }
 0xf73   : > { %v9887_v7 = vsel %vm9886_vm2, %v9849_v39, %v9885_v42  ;;  %v9852_v59 = vrot.slane %v9851_v51, 2  ;;  %v9815_v18 = vsub.f32 %v9799_v60, %v9807_v28 }
 0xf75   : > { %v9853_v62 = vadd.f32 %v9852_v59, %v9851_v51  ;;  %v9823_v57 = vand.u32 2147483647, %v9815_v18 }
 0xf76   : > { %v9789_v23 = vpop.f32.mrf.mxu1 }
 0xf77   : > { %v9854_v0 = vrot.slane %v9853_v62, 1  ;;  %v9856_v35 = vrot.slane %v9823_v57, 4  ;;  %v9790_v50 = vadd.f32 %v9789_v23, %v9741_v30 }
 0xf79   : > { %v9855_v10 = vadd.f32 %v9854_v0, %v9853_v62  ;;  %v9857_v55 = vadd.f32 %v9856_v35, %v9823_v57  ;;  %v9808_v19 = vmax.f32 %v9790_v50, 0.0 }
 0xf7b   : > { %v9889_v2 = vsel %vm9888_vm3, %v9855_v10, %v9887_v7  ;;  %v9858_v38 = vrot.slane %v9857_v55, 2  ;;  %v9816_v11 = vsub.f32 %v9800_v13, %v9808_v19 }
 0xf7d   : > { %v9859_v5 = vadd.f32 %v9858_v38, %v9857_v55  ;;  %v9824_v9 = vand.u32 2147483647, %v9816_v11 }
 0xf7e   : > { %v9791_v4 = vpop.f32.mrf.mxu1 }
 0xf7f   : > { %v9860_v14 = vrot.slane %v9859_v5, 1  ;;  %v9862_v47 = vrot.slane %v9824_v9, 4  ;;  %v9792_v20 = vadd.f32 %v9791_v4, %v9743_v34 }
 0xf81   : > { %v9861_v48 = vadd.f32 %v9860_v14, %v9859_v5  ;;  %v9863_v56 = vadd.f32 %v9862_v47, %v9824_v9  ;;  %v9809_v27 = vmax.f32 %v9792_v20, 0.0 }
 0xf83   : > { %v9891_v58 = vsel %vm9890_vm4, %v9861_v48, %v9889_v2  ;;  %v9864_v52 = vrot.slane %v9863_v56, 2  ;;  %v9817_v17 = vsub.f32 %v9801_v46, %v9809_v27 }
 0xf85   : > { %v9865_v24 = vadd.f32 %v9864_v52, %v9863_v56  ;;  %v9825_v33 = vand.u32 2147483647, %v9817_v17 }
 0xf87   : > { %v9866_v53 = vrot.slane %v9865_v24, 1  ;;  %v9868_v44 = vrot.slane %v9825_v33, 4 }
 0xf89   : > { %v9867_v54 = vadd.f32 %v9866_v53, %v9865_v24  ;;  %v9869_v36 = vadd.f32 %v9868_v44, %v9825_v33 }
 0xf8b   : > { %v9893_v61 = vsel %vm9892_vm5, %v9867_v54, %v9891_v58  ;;  %v9870_v45 = vrot.slane %v9869_v36, 2 }
 0xf8d   : > { %v9871_v1 = vadd.f32 %v9870_v45, %v9869_v36 }
 0xf8f   : > { %v9872_v15 = vrot.slane %v9871_v1, 1 }
 0xf91   : > { %v9873_v42 = vadd.f32 %v9872_v15, %v9871_v1 }
 0xf93   : > { %v9895_v41 = vsel %vm9894_vm6, %v9873_v42, %v9893_v61 }
 0xf94   : > { %9897 = vst [vmem:[%s362_s17] sm:$0xff] %v9895_v41 }
 0xf95 PF: > { %s20_s13 = sadd.s32 1, %s11543_s13  }
 0xf96   : > { %p17_p5 = scmp.ge.s32.totalorder %s20_s13, 4  }
 0xf98   :  { %19 = sbr.rel (!%p17_p5) target bundleno = 1 (0x1), region = 93 }

</bundles_post_ra>
